<compile_context>
chip_gen: v7x
topology: tpu7x:2x2x1
jax: 0.10.0
libtpu: 0.0.40
codegen_flags: <defaults>
</compile_context>

<pallas_src>
import numpy as np
import jax
import jax.numpy as jnp
from jax import lax
from jax.experimental import pallas as pl
from jax.experimental.pallas import tpu as pltpu

NBLOCKS = 8          # DonutNet.nblocks
EPS = 1e-5           # BatchNorm eps
LANE = 128
CIN0 = 8             # network input is zero-padded from 1 to 8 channels


def _round_up(x, m):
    return ((x + m - 1) // m) * m


def _geom(H, W):
    """Padded-flattened 'wrap' geometry for an HxW activation."""
    Wp = W + 2                       # 1 left pad + W + 1 right pad
    L = (H + 3) * Wp                 # 1 top pad row + H rows + 2 bottom pad rows
    L128 = _round_up(L, LANE)
    # taps of every valid output lane never wrap around the circular roll
    assert (H + 1) * Wp + W + 1 < L128, (H, W)
    return Wp, L, L128


def _const_index_map(nd):
    return lambda n: (0,) * nd


# ----------------------------------------------------------------------------
# Fused forward kernel: all conv+BN+ReLU(+residual) layers in one kernel body
# ----------------------------------------------------------------------------
def _make_fused_kernel(infos):
    """infos: per-layer static metadata + operand indices (unrolled at trace)."""

    def kernel(*refs):
        out_ref = refs[-1]
        act = refs[0][0]                                    # (CIN0, L128_0) f32

        for info in infos:                                  # python-unrolled
            wp, l128 = info["Wp"], info["L128"]
            w = refs[info["w_idx"]][...]                    # bf16, BN scale folded
            b = refs[info["b_idx"]][...]                    # (Cout, 1) f32

            if info["kind"] == "s1":
                # 1x1 spatial: all non-center taps read zero padding, so the
                # conv is a single (Cout,Cin)@(Cin,128) matmul (review #2).
                y = jnp.dot(w, act.astype(jnp.bfloat16),
                            preferred_element_type=jnp.float32)
            else:
                # 9 taps of the 3x3 conv == static lane-rolls of the padded
                # buffer; one MXU matmul (K = 9*Cin) in bf16 (review #3).
                taps = []
                for ky in range(3):
                    for kx in range(3):
                        off = ky * wp + kx
                        taps.append(act if off == 0
                                    else pltpu.roll(act, l128 - off, 1))
                x9 = jnp.concatenate(taps, axis=0).astype(jnp.bfloat16)
                y = jnp.dot(w, x9, preferred_element_type=jnp.float32)

            z = jnp.maximum(y + b, 0.0)                     # (Cout, L128) f32

            if info["is_last"]:
                out_ref[0] = z.astype(out_ref.dtype)
            elif info["kind"] == "s1":
                # 1x1 layers: data already sits at its padded lane; just mask.
                zk = z * refs[info["keep_idx"]][...]
                act = act + zk if info["residual"] else zk
            elif info["stride"] == 1:
                # Re-pad for the next same-resolution layer: zero wrap/pad
                # lanes and shift by one padded row + one column.
                r = pltpu.roll(z * refs[info["mask_idx"]][...], wp + 1, 1)
                act = act + r if info["residual"] else r    # SkipBlock residual
            else:
                # Stride-2 re-pack (review #1): masked log2-compaction rolls.
                # Keep only the even output positions, compact columns, compact
                # rows, then shift into the next layer's padded layout.
                x = z * refs[info["src_idx"]][...]
                for midx, d in info["steps"]:
                    m = refs[midx][...]
                    x = pltpu.roll(x * m, l128 - d, 1) + x * (1.0 - m)
                x = pltpu.roll(x, info["final_shift"], 1)
                act = x[:, :info["L128_next"]]

    return kernel


# ----------------------------------------------------------------------------
# Wrapper: weight folding, padded-layout mask constants, pallas_call
# ----------------------------------------------------------------------------
def _fold_weight(p, cin_eff):
    """Fold conv bias + inference-mode BatchNorm into a (Cout, 9*Cin) weight/bias."""
    w = p["w"]                                              # (Cout, Cin, 3, 3)
    cout, cin = w.shape[0], w.shape[1]
    scale = p["gamma"] / jnp.sqrt(p["rvar"] + EPS)          # (Cout,)
    bias = p["beta"] + (p["b"] - p["rmean"]) * scale        # (Cout,)
    wf = w * scale[:, None, None, None]
    if cin_eff != cin:
        wf = jnp.pad(wf, ((0, 0), (0, cin_eff - cin), (0, 0), (0, 0)))
    # Column order matches the in-kernel tap concat: (ky, kx) major, ci minor.
    wcat = jnp.transpose(wf, (0, 2, 3, 1)).reshape(cout, 9 * cin_eff)
    return wcat.astype(jnp.float32), bias.reshape(cout, 1).astype(jnp.float32)


def _make_layer_plan(params, H, W):
    layers = [dict(cin=CIN0, cout=params["stem"]["w"].shape[0], H=H, W=W,
                   stride=1, residual=False, p=params["stem"])]
    for blk in params["blocks"]:
        for sp in blk["skips"]:
            c = sp["w"].shape[0]
            layers.append(dict(cin=c, cout=c, H=H, W=W, stride=1,
                               residual=True, p=sp))
        layers.append(dict(cin=blk["down"]["w"].shape[1],
                           cout=blk["down"]["w"].shape[0], H=H, W=W,
                           stride=2, residual=False, p=blk["down"]))
        H, W = (H + 1) // 2, (W + 1) // 2
    return layers


# ---- host-side mask builders (tiny (1, L128) f32 constants) -----------------
def _repad_mask(H, W):
    Wp, _, L128 = _geom(H, W)
    m = np.zeros((1, L128), np.float32)
    q = np.arange(H * Wp)
    m[0, q] = (q % Wp < W).astype(np.float32)
    return m


def _keep1_mask(H, W):
    Wp, _, L128 = _geom(H, W)
    m = np.zeros((1, L128), np.float32)
    m[0, Wp + 1] = 1.0                       # padded position of pixel (0,0)
    return m


def _down_src_mask(H, W):
    Wp, _, L128 = _geom(H, W)
    H2, W2 = (H + 1) // 2, (W + 1) // 2
    m = np.zeros((1, L128), np.float32)
    for i2 in range(H2):
        for j2 in range(W2):
            m[0, 2 * i2 * Wp + 2 * j2] = 1.0
    return m


def _down_col_mask(H, W, k):
    Wp, _, L128 = _geom(H, W)
    H2, W2 = (H + 1) // 2, (W + 1) // 2
    m = np.zeros((1, L128), np.float32)
    for i2 in range(H2):
        for j2 in range(W2):
            if (j2 >> k) & 1:
                m[0, 2 * i2 * Wp + 2 * j2 - (j2 % (1 << k))] = 1.0
    return m


def _down_row_mask(H, W, k):
    Wp, _, L128 = _geom(H, W)
    H2, W2 = (H + 1) // 2, (W + 1) // 2
    Wp2 = W2 + 2
    drow = 2 * Wp - Wp2
    m = np.zeros((1, L128), np.float32)
    for i2 in range(H2):
        if (i2 >> k) & 1:
            for j2 in range(W2):
                m[0, 2 * Wp * i2 - (i2 % (1 << k)) * drow + j2] = 1.0
    return m


def donut_forward(x_nchw, params):
    N, C, H0, W0 = x_nchw.shape
    layers = _make_layer_plan(params, H0, W0)
    nlayers = len(layers)
    _, _, L128_0 = _geom(H0, W0)

    # ---- input in padded-flattened layout -----------------------------------
    xp = jnp.pad(x_nchw, ((0, 0), (0, CIN0 - C), (1, 2), (1, 1)))
    xflat = xp.reshape(N, CIN0, (H0 + 3) * (W0 + 2)).astype(jnp.float32)
    xflat = jnp.pad(xflat, ((0, 0), (0, 0), (0, L128_0 - xflat.shape[-1])))

    operands = [xflat]
    in_specs = [pl.BlockSpec((1, CIN0, L128_0), lambda n: (n, 0, 0))]

    def add_const(arr):
        idx = len(operands)
        operands.append(arr)
        in_specs.append(pl.BlockSpec(arr.shape, _const_index_map(arr.ndim)))
        return idx

    mask_cache = {}

    def add_mask(key, build):
        if key not in mask_cache:
            mask_cache[key] = add_const(jnp.asarray(build()))
        return mask_cache[key]

    # ---- per-layer static plan + operands ------------------------------------
    infos = []
    for li, ly in enumerate(layers):
        H, W = ly["H"], ly["W"]
        Wp, L, L128 = _geom(H, W)
        cin_eff = ly["cin"]
        wcat, bias = _fold_weight(ly["p"], cin_eff)
        spatial1 = (H == 1 and W == 1)
        if spatial1:
            wker = wcat[:, 4 * cin_eff:5 * cin_eff]          # center tap only
        else:
            wker = wcat
        info = dict(kind="s1" if spatial1 else "conv",
                    Wp=Wp, L128=L128, stride=ly["stride"],
                    residual=ly["residual"], is_last=(li == nlayers - 1),
                    w_idx=add_const(wker.astype(jnp.bfloat16)),
                    b_idx=add_const(bias))

        if not info["is_last"]:
            if spatial1:
                info["keep_idx"] = add_mask(("keep", H, W),
                                            lambda: _keep1_mask(H, W))
            elif ly["stride"] == 1:
                info["mask_idx"] = add_mask(("repad", H, W),
                                            lambda: _repad_mask(H, W))
            else:
                H2, W2 = (H + 1) // 2, (W + 1) // 2
                Wp2 = W2 + 2
                _, _, L128n = _geom(H2, W2)
                assert H2 * Wp2 + W2 < L128n                 # repacked data fits
                steps = []
                for k in range((W2 - 1).bit_length()):       # column compaction
                    d = 1 << k
                    assert d < L128
                    steps.append((add_mask(("dcol", H, W, k),
                                           lambda k=k: _down_col_mask(H, W, k)), d))
                drow = 2 * Wp - Wp2
                for k in range((H2 - 1).bit_length()):        # row compaction
                    d = drow * (1 << k)
                    assert d < L128
                    steps.append((add_mask(("drow", H, W, k),
                                           lambda k=k: _down_row_mask(H, W, k)), d))
                info["src_idx"] = add_mask(("dsrc", H, W),
                                           lambda: _down_src_mask(H, W))
                info["steps"] = steps
                info["final_shift"] = Wp2 + 1
                info["L128_next"] = L128n
        infos.append(info)

    c_last = layers[-1]["cout"]
    Hl, Wl = layers[-1]["H"], layers[-1]["W"]
    L128_last = _geom(Hl, Wl)[2]

    out_full = pl.pallas_call(
        _make_fused_kernel(infos),
        out_shape=jax.ShapeDtypeStruct((N, c_last, L128_last), jnp.float32),
        grid_spec=pltpu.PrefetchScalarGridSpec(
            num_scalar_prefetch=0,
            grid=(N,),
            in_specs=in_specs,
            out_specs=pl.BlockSpec((1, c_last, L128_last), lambda n: (n, 0, 0)),
        ),
        compiler_params=pltpu.CompilerParams(
            dimension_semantics=("parallel",),
            vmem_limit_bytes=16 * 1024 * 1024,
        ),
    )(*operands)

    # Last layer is a stride-2 conv; gather its valid output lanes (== Flatten).
    Wp_l = Wl + 2
    H2, W2 = (Hl + 1) // 2, (Wl + 1) // 2
    if Hl == 1 and Wl == 1:                                   # center-tap path
        idx = np.array([Wp_l + 1], dtype=np.int32)
    else:                                                     # 9-tap path
        idx = np.array([2 * i * Wp_l + 2 * j
                        for i in range(H2) for j in range(W2)], dtype=np.int32)
    feat = jnp.take(out_full, jnp.asarray(idx), axis=2)       # (N, Cout, H2*W2)
    return feat.reshape(N, -1)


# ----------------------------------------------------------------------------
# Pure-JAX reference
# ----------------------------------------------------------------------------
def _conv_bn_relu_ref(x_nhwc, p, stride):
    y = lax.conv_general_dilated(
        x_nhwc, jnp.transpose(p["w"], (2, 3, 1, 0)),
        window_strides=(stride, stride), padding=((1, 1), (1, 1)),
        dimension_numbers=("NHWC", "HWIO", "NHWC"),
        precision=lax.Precision.HIGHEST)
    y = y + p["b"]
    y = (y - p["rmean"]) / jnp.sqrt(p["rvar"] + EPS) * p["gamma"] + p["beta"]
    return jnp.maximum(y, 0.0)


def donut_ref(x_nchw, params):
    x = jnp.transpose(x_nchw, (0, 2, 3, 1))
    x = _conv_bn_relu_ref(x, params["stem"], 1)
    for blk in params["blocks"]:
        for sp in blk["skips"]:
            x = x + _conv_bn_relu_ref(x, sp, 1)
        x = _conv_bn_relu_ref(x, blk["down"], 2)
    x = jnp.transpose(x, (0, 3, 1, 2))
    return x.reshape(x.shape[0], -1)


# ----------------------------------------------------------------------------
# Deterministic parameter init (synthetic; shapes follow DonutNet.__init__)
# ----------------------------------------------------------------------------
def _init_conv_bn(key, cin, cout):
    k1, k2, k3, k4, k5, k6 = jax.random.split(key, 6)
    fan_in = cin * 9
    return dict(
        w=jax.random.normal(k1, (cout, cin, 3, 3), jnp.float32) * np.sqrt(2.0 / fan_in),
        b=0.05 * jax.random.normal(k2, (cout,), jnp.float32),
        gamma=1.0 + 0.1 * jax.random.normal(k3, (cout,), jnp.float32),
        beta=0.05 * jax.random.normal(k4, (cout,), jnp.float32),
        rmean=0.05 * jax.random.normal(k5, (cout,), jnp.float32),
        rvar=1.0 + 0.1 * jax.random.uniform(k6, (cout,), jnp.float32),
    )


def init_params(key, n, d):
    keys = jax.random.split(key, 1 + NBLOCKS * (n - 1) + NBLOCKS)
    ki = iter(range(len(keys)))
    params = {"stem": _init_conv_bn(keys[next(ki)], 1, 8), "blocks": []}
    for i in range(NBLOCKS):
        cin = min(d, 2 ** (i + 3))
        cout = min(d, 2 ** (i + 4))
        skips = [_init_conv_bn(keys[next(ki)], cin, cin) for _ in range(n - 1)]
        down = _init_conv_bn(keys[next(ki)], cin, cout)
        params["blocks"].append({"skips": skips, "down": down})
    return params


if __name__ == "__main__":
    n, d = 2, 32                                   # DonutNet(n=2, d=32)
    key = jax.random.PRNGKey(0)
    kx, kp = jax.random.split(key)
    # small input consistent with the module: batch=2, 1-channel 32x32 "donuts"
    x = jax.random.normal(kx, (2, 1, 32, 32), jnp.float32)
    params = init_params(kp, n, d)

    fwd = jax.jit(donut_forward)
    out = jax.block_until_ready(fwd(x, params))
    ref = jax.block_until_ready(donut_ref(x, params))

    assert out.shape == (2, d), out.shape          # 32x32 -> 1x1 spatial, d channels
    # bf16 MXU operands (review #3): tolerance widened vs. the all-f32 variant.
    np.testing.assert_allclose(np.asarray(out), np.asarray(ref),
                               rtol=2e-2, atol=2e-2)
    print("KERNEL_OK")
</pallas_src>

<mosaic_0001>
module attributes {stable_mosaic.version = 11 : i64} {
  func.func @kernel(%arg0: i32, %arg1: memref<1x8x1280xf32, #tpu.memory_space<vmem>>, %arg2: memref<8x72xbf16, #tpu.memory_space<vmem>>, %arg3: memref<8x1xf32, #tpu.memory_space<vmem>>, %arg4: memref<1x1280xf32, #tpu.memory_space<vmem>>, %arg5: memref<8x72xbf16, #tpu.memory_space<vmem>>, %arg6: memref<8x1xf32, #tpu.memory_space<vmem>>, %arg7: memref<16x72xbf16, #tpu.memory_space<vmem>>, %arg8: memref<16x1xf32, #tpu.memory_space<vmem>>, %arg9: memref<1x1280xf32, #tpu.memory_space<vmem>>, %arg10: memref<1x1280xf32, #tpu.memory_space<vmem>>, %arg11: memref<1x1280xf32, #tpu.memory_space<vmem>>, %arg12: memref<1x1280xf32, #tpu.memory_space<vmem>>, %arg13: memref<1x1280xf32, #tpu.memory_space<vmem>>, %arg14: memref<1x1280xf32, #tpu.memory_space<vmem>>, %arg15: memref<1x1280xf32, #tpu.memory_space<vmem>>, %arg16: memref<1x1280xf32, #tpu.memory_space<vmem>>, %arg17: memref<1x1280xf32, #tpu.memory_space<vmem>>, %arg18: memref<16x144xbf16, #tpu.memory_space<vmem>>, %arg19: memref<16x1xf32, #tpu.memory_space<vmem>>, %arg20: memref<1x384xf32, #tpu.memory_space<vmem>>, %arg21: memref<32x144xbf16, #tpu.memory_space<vmem>>, %arg22: memref<32x1xf32, #tpu.memory_space<vmem>>, %arg23: memref<1x384xf32, #tpu.memory_space<vmem>>, %arg24: memref<1x384xf32, #tpu.memory_space<vmem>>, %arg25: memref<1x384xf32, #tpu.memory_space<vmem>>, %arg26: memref<1x384xf32, #tpu.memory_space<vmem>>, %arg27: memref<1x384xf32, #tpu.memory_space<vmem>>, %arg28: memref<1x384xf32, #tpu.memory_space<vmem>>, %arg29: memref<1x384xf32, #tpu.memory_space<vmem>>, %arg30: memref<32x288xbf16, #tpu.memory_space<vmem>>, %arg31: memref<32x1xf32, #tpu.memory_space<vmem>>, %arg32: memref<1x128xf32, #tpu.memory_space<vmem>>, %arg33: memref<32x288xbf16, #tpu.memory_space<vmem>>, %arg34: memref<32x1xf32, #tpu.memory_space<vmem>>, %arg35: memref<1x128xf32, #tpu.memory_space<vmem>>, %arg36: memref<1x128xf32, #tpu.memory_space<vmem>>, %arg37: memref<1x128xf32, #tpu.memory_space<vmem>>, %arg38: memref<1x128xf32, #tpu.memory_space<vmem>>, %arg39: memref<1x128xf32, #tpu.memory_space<vmem>>, %arg40: memref<32x288xbf16, #tpu.memory_space<vmem>>, %arg41: memref<32x1xf32, #tpu.memory_space<vmem>>, %arg42: memref<1x128xf32, #tpu.memory_space<vmem>>, %arg43: memref<32x288xbf16, #tpu.memory_space<vmem>>, %arg44: memref<32x1xf32, #tpu.memory_space<vmem>>, %arg45: memref<1x128xf32, #tpu.memory_space<vmem>>, %arg46: memref<1x128xf32, #tpu.memory_space<vmem>>, %arg47: memref<1x128xf32, #tpu.memory_space<vmem>>, %arg48: memref<32x288xbf16, #tpu.memory_space<vmem>>, %arg49: memref<32x1xf32, #tpu.memory_space<vmem>>, %arg50: memref<1x128xf32, #tpu.memory_space<vmem>>, %arg51: memref<32x288xbf16, #tpu.memory_space<vmem>>, %arg52: memref<32x1xf32, #tpu.memory_space<vmem>>, %arg53: memref<1x128xf32, #tpu.memory_space<vmem>>, %arg54: memref<32x32xbf16, #tpu.memory_space<vmem>>, %arg55: memref<32x1xf32, #tpu.memory_space<vmem>>, %arg56: memref<1x128xf32, #tpu.memory_space<vmem>>, %arg57: memref<32x32xbf16, #tpu.memory_space<vmem>>, %arg58: memref<32x1xf32, #tpu.memory_space<vmem>>, %arg59: memref<32x32xbf16, #tpu.memory_space<vmem>>, %arg60: memref<32x1xf32, #tpu.memory_space<vmem>>, %arg61: memref<32x32xbf16, #tpu.memory_space<vmem>>, %arg62: memref<32x1xf32, #tpu.memory_space<vmem>>, %arg63: memref<32x32xbf16, #tpu.memory_space<vmem>>, %arg64: memref<32x1xf32, #tpu.memory_space<vmem>>, %arg65: memref<32x32xbf16, #tpu.memory_space<vmem>>, %arg66: memref<32x1xf32, #tpu.memory_space<vmem>>, %arg67: memref<1x32x128xf32, #tpu.memory_space<vmem>>) attributes {dimension_semantics = [#tpu.dimension_semantics<parallel>], iteration_bounds = array<i64: 2>, scalar_prefetch = 0 : i64, scratch_operands = 0 : i64, tpu.core_type = #tpu.core_type<tc>, window_params = [{transform_indices = @transform_0, window_bounds = array<i64: 1, 8, 1280>}, {pipeline_mode = #tpu.pipeline_mode<synchronous>, transform_indices = @transform_1, window_bounds = array<i64: 8, 72>}, {pipeline_mode = #tpu.pipeline_mode<synchronous>, transform_indices = @transform_2, window_bounds = array<i64: 8, 1>}, {pipeline_mode = #tpu.pipeline_mode<synchronous>, transform_indices = @transform_3, window_bounds = array<i64: 1, 1280>}, {pipeline_mode = #tpu.pipeline_mode<synchronous>, transform_indices = @transform_4, window_bounds = array<i64: 8, 72>}, {pipeline_mode = #tpu.pipeline_mode<synchronous>, transform_indices = @transform_5, window_bounds = array<i64: 8, 1>}, {pipeline_mode = #tpu.pipeline_mode<synchronous>, transform_indices = @transform_6, window_bounds = array<i64: 16, 72>}, {pipeline_mode = #tpu.pipeline_mode<synchronous>, transform_indices = @transform_7, window_bounds = array<i64: 16, 1>}, {pipeline_mode = #tpu.pipeline_mode<synchronous>, transform_indices = @transform_8, window_bounds = array<i64: 1, 1280>}, {pipeline_mode = #tpu.pipeline_mode<synchronous>, transform_indices = @transform_9, window_bounds = array<i64: 1, 1280>}, {pipeline_mode = #tpu.pipeline_mode<synchronous>, transform_indices = @transform_10, window_bounds = array<i64: 1, 1280>}, {pipeline_mode = #tpu.pipeline_mode<synchronous>, transform_indices = @transform_11, window_bounds = array<i64: 1, 1280>}, {pipeline_mode = #tpu.pipeline_mode<synchronous>, transform_indices = @transform_12, window_bounds = array<i64: 1, 1280>}, {pipeline_mode = #tpu.pipeline_mode<synchronous>, transform_indices = @transform_13, window_bounds = array<i64: 1, 1280>}, {pipeline_mode = #tpu.pipeline_mode<synchronous>, transform_indices = @transform_14, window_bounds = array<i64: 1, 1280>}, {pipeline_mode = #tpu.pipeline_mode<synchronous>, transform_indices = @transform_15, window_bounds = array<i64: 1, 1280>}, {pipeline_mode = #tpu.pipeline_mode<synchronous>, transform_indices = @transform_16, window_bounds = array<i64: 1, 1280>}, {pipeline_mode = #tpu.pipeline_mode<synchronous>, transform_indices = @transform_17, window_bounds = array<i64: 16, 144>}, {pipeline_mode = #tpu.pipeline_mode<synchronous>, transform_indices = @transform_18, window_bounds = array<i64: 16, 1>}, {pipeline_mode = #tpu.pipeline_mode<synchronous>, transform_indices = @transform_19, window_bounds = array<i64: 1, 384>}, {pipeline_mode = #tpu.pipeline_mode<synchronous>, transform_indices = @transform_20, window_bounds = array<i64: 32, 144>}, {pipeline_mode = #tpu.pipeline_mode<synchronous>, transform_indices = @transform_21, window_bounds = array<i64: 32, 1>}, {pipeline_mode = #tpu.pipeline_mode<synchronous>, transform_indices = @transform_22, window_bounds = array<i64: 1, 384>}, {pipeline_mode = #tpu.pipeline_mode<synchronous>, transform_indices = @transform_23, window_bounds = array<i64: 1, 384>}, {pipeline_mode = #tpu.pipeline_mode<synchronous>, transform_indices = @transform_24, window_bounds = array<i64: 1, 384>}, {pipeline_mode = #tpu.pipeline_mode<synchronous>, transform_indices = @transform_25, window_bounds = array<i64: 1, 384>}, {pipeline_mode = #tpu.pipeline_mode<synchronous>, transform_indices = @transform_26, window_bounds = array<i64: 1, 384>}, {pipeline_mode = #tpu.pipeline_mode<synchronous>, transform_indices = @transform_27, window_bounds = array<i64: 1, 384>}, {pipeline_mode = #tpu.pipeline_mode<synchronous>, transform_indices = @transform_28, window_bounds = array<i64: 1, 384>}, {pipeline_mode = #tpu.pipeline_mode<synchronous>, transform_indices = @transform_29, window_bounds = array<i64: 32, 288>}, {pipeline_mode = #tpu.pipeline_mode<synchronous>, transform_indices = @transform_30, window_bounds = array<i64: 32, 1>}, {pipeline_mode = #tpu.pipeline_mode<synchronous>, transform_indices = @transform_31, window_bounds = array<i64: 1, 128>}, {pipeline_mode = #tpu.pipeline_mode<synchronous>, transform_indices = @transform_32, window_bounds = array<i64: 32, 288>}, {pipeline_mode = #tpu.pipeline_mode<synchronous>, transform_indices = @transform_33, window_bounds = array<i64: 32, 1>}, {pipeline_mode = #tpu.pipeline_mode<synchronous>, transform_indices = @transform_34, window_bounds = array<i64: 1, 128>}, {pipeline_mode = #tpu.pipeline_mode<synchronous>, transform_indices = @transform_35, window_bounds = array<i64: 1, 128>}, {pipeline_mode = #tpu.pipeline_mode<synchronous>, transform_indices = @transform_36, window_bounds = array<i64: 1, 128>}, {pipeline_mode = #tpu.pipeline_mode<synchronous>, transform_indices = @transform_37, window_bounds = array<i64: 1, 128>}, {pipeline_mode = #tpu.pipeline_mode<synchronous>, transform_indices = @transform_38, window_bounds = array<i64: 1, 128>}, {pipeline_mode = #tpu.pipeline_mode<synchronous>, transform_indices = @transform_39, window_bounds = array<i64: 32, 288>}, {pipeline_mode = #tpu.pipeline_mode<synchronous>, transform_indices = @transform_40, window_bounds = array<i64: 32, 1>}, {pipeline_mode = #tpu.pipeline_mode<synchronous>, transform_indices = @transform_41, window_bounds = array<i64: 1, 128>}, {pipeline_mode = #tpu.pipeline_mode<synchronous>, transform_indices = @transform_42, window_bounds = array<i64: 32, 288>}, {pipeline_mode = #tpu.pipeline_mode<synchronous>, transform_indices = @transform_43, window_bounds = array<i64: 32, 1>}, {pipeline_mode = #tpu.pipeline_mode<synchronous>, transform_indices = @transform_44, window_bounds = array<i64: 1, 128>}, {pipeline_mode = #tpu.pipeline_mode<synchronous>, transform_indices = @transform_45, window_bounds = array<i64: 1, 128>}, {pipeline_mode = #tpu.pipeline_mode<synchronous>, transform_indices = @transform_46, window_bounds = array<i64: 1, 128>}, {pipeline_mode = #tpu.pipeline_mode<synchronous>, transform_indices = @transform_47, window_bounds = array<i64: 32, 288>}, {pipeline_mode = #tpu.pipeline_mode<synchronous>, transform_indices = @transform_48, window_bounds = array<i64: 32, 1>}, {pipeline_mode = #tpu.pipeline_mode<synchronous>, transform_indices = @transform_49, window_bounds = array<i64: 1, 128>}, {pipeline_mode = #tpu.pipeline_mode<synchronous>, transform_indices = @transform_50, window_bounds = array<i64: 32, 288>}, {pipeline_mode = #tpu.pipeline_mode<synchronous>, transform_indices = @transform_51, window_bounds = array<i64: 32, 1>}, {pipeline_mode = #tpu.pipeline_mode<synchronous>, transform_indices = @transform_52, window_bounds = array<i64: 1, 128>}, {pipeline_mode = #tpu.pipeline_mode<synchronous>, transform_indices = @transform_53, window_bounds = array<i64: 32, 32>}, {pipeline_mode = #tpu.pipeline_mode<synchronous>, transform_indices = @transform_54, window_bounds = array<i64: 32, 1>}, {pipeline_mode = #tpu.pipeline_mode<synchronous>, transform_indices = @transform_55, window_bounds = array<i64: 1, 128>}, {pipeline_mode = #tpu.pipeline_mode<synchronous>, transform_indices = @transform_56, window_bounds = array<i64: 32, 32>}, {pipeline_mode = #tpu.pipeline_mode<synchronous>, transform_indices = @transform_57, window_bounds = array<i64: 32, 1>}, {pipeline_mode = #tpu.pipeline_mode<synchronous>, transform_indices = @transform_58, window_bounds = array<i64: 32, 32>}, {pipeline_mode = #tpu.pipeline_mode<synchronous>, transform_indices = @transform_59, window_bounds = array<i64: 32, 1>}, {pipeline_mode = #tpu.pipeline_mode<synchronous>, transform_indices = @transform_60, window_bounds = array<i64: 32, 32>}, {pipeline_mode = #tpu.pipeline_mode<synchronous>, transform_indices = @transform_61, window_bounds = array<i64: 32, 1>}, {pipeline_mode = #tpu.pipeline_mode<synchronous>, transform_indices = @transform_62, window_bounds = array<i64: 32, 32>}, {pipeline_mode = #tpu.pipeline_mode<synchronous>, transform_indices = @transform_63, window_bounds = array<i64: 32, 1>}, {pipeline_mode = #tpu.pipeline_mode<synchronous>, transform_indices = @transform_64, window_bounds = array<i64: 32, 32>}, {pipeline_mode = #tpu.pipeline_mode<synchronous>, transform_indices = @transform_65, window_bounds = array<i64: 32, 1>}, {transform_indices = @transform_66, window_bounds = array<i64: 1, 32, 128>}]} {
    %c0 = arith.constant 0 : index
    %c0_0 = arith.constant 0 : index
    %c0_1 = arith.constant 0 : index
    %0 = vector.load %arg1[%c0, %c0_0, %c0_1] : memref<1x8x1280xf32, #tpu.memory_space<vmem>>, vector<1x8x1280xf32>
    %1 = vector.shape_cast %0 : vector<1x8x1280xf32> to vector<8x1280xf32>
    %c0_2 = arith.constant 0 : index
    %c0_3 = arith.constant 0 : index
    %2 = vector.load %arg2[%c0_2, %c0_3] : memref<8x72xbf16, #tpu.memory_space<vmem>>, vector<8x72xbf16>
    %c0_4 = arith.constant 0 : index
    %c0_5 = arith.constant 0 : index
    %3 = vector.load %arg3[%c0_4, %c0_5] : memref<8x1xf32, #tpu.memory_space<vmem>>, vector<8x1xf32>
    %c1279_i32 = arith.constant 1279 : i32
    %4 = tpu.dynamic_rotate %1 by %c1279_i32 dim 1 : vector<8x1280xf32>, i32 -> vector<8x1280xf32>
    %c1278_i32 = arith.constant 1278 : i32
    %5 = tpu.dynamic_rotate %1 by %c1278_i32 dim 1 : vector<8x1280xf32>, i32 -> vector<8x1280xf32>
    %c1246_i32 = arith.constant 1246 : i32
    %6 = tpu.dynamic_rotate %1 by %c1246_i32 dim 1 : vector<8x1280xf32>, i32 -> vector<8x1280xf32>
    %c1245_i32 = arith.constant 1245 : i32
    %7 = tpu.dynamic_rotate %1 by %c1245_i32 dim 1 : vector<8x1280xf32>, i32 -> vector<8x1280xf32>
    %c1244_i32 = arith.constant 1244 : i32
    %8 = tpu.dynamic_rotate %1 by %c1244_i32 dim 1 : vector<8x1280xf32>, i32 -> vector<8x1280xf32>
    %c1212_i32 = arith.constant 1212 : i32
    %9 = tpu.dynamic_rotate %1 by %c1212_i32 dim 1 : vector<8x1280xf32>, i32 -> vector<8x1280xf32>
    %c1211_i32 = arith.constant 1211 : i32
    %10 = tpu.dynamic_rotate %1 by %c1211_i32 dim 1 : vector<8x1280xf32>, i32 -> vector<8x1280xf32>
    %c1210_i32 = arith.constant 1210 : i32
    %11 = tpu.dynamic_rotate %1 by %c1210_i32 dim 1 : vector<8x1280xf32>, i32 -> vector<8x1280xf32>
    %12 = tpu.concatenate %1, %4, %5, %6, %7, %8, %9, %10, %11 in 0 : vector<8x1280xf32>, vector<8x1280xf32>, vector<8x1280xf32>, vector<8x1280xf32>, vector<8x1280xf32>, vector<8x1280xf32>, vector<8x1280xf32>, vector<8x1280xf32>, vector<8x1280xf32> -> vector<72x1280xf32>
    %13 = arith.truncf %12 : vector<72x1280xf32> to vector<72x1280xbf16>
    %cst = arith.constant dense<0.000000e+00> : vector<8x1280xf32>
    %14 = tpu.matmul %2, %13, %cst {dimension_numbers = #tpu.dot_dimension_numbers<[1], [0], [0], [1], [0, 0, 1, 1], [], []>} : vector<8x72xbf16>, vector<72x1280xbf16>, vector<8x1280xf32> -> vector<8x1280xf32>
    %15 = vector.broadcast %3 : vector<8x1xf32> to vector<8x1280xf32>
    %16 = arith.addf %14, %15 : vector<8x1280xf32>
    %cst_6 = arith.constant 0.000000e+00 : f32
    %17 = vector.broadcast %cst_6 : f32 to vector<8x1280xf32>
    %18 = arith.maximumf %16, %17 : vector<8x1280xf32>
    %c0_7 = arith.constant 0 : index
    %c0_8 = arith.constant 0 : index
    %19 = vector.load %arg4[%c0_7, %c0_8] : memref<1x1280xf32, #tpu.memory_space<vmem>>, vector<1x1280xf32>
    %20 = vector.broadcast %19 : vector<1x1280xf32> to vector<8x1280xf32>
    %21 = arith.mulf %18, %20 : vector<8x1280xf32>
    %c35_i32 = arith.constant 35 : i32
    %22 = tpu.dynamic_rotate %21 by %c35_i32 dim 1 : vector<8x1280xf32>, i32 -> vector<8x1280xf32>
    %c0_9 = arith.constant 0 : index
    %c0_10 = arith.constant 0 : index
    %23 = vector.load %arg5[%c0_9, %c0_10] : memref<8x72xbf16, #tpu.memory_space<vmem>>, vector<8x72xbf16>
    %c0_11 = arith.constant 0 : index
    %c0_12 = arith.constant 0 : index
    %24 = vector.load %arg6[%c0_11, %c0_12] : memref<8x1xf32, #tpu.memory_space<vmem>>, vector<8x1xf32>
    %c1279_i32_13 = arith.constant 1279 : i32
    %25 = tpu.dynamic_rotate %22 by %c1279_i32_13 dim 1 : vector<8x1280xf32>, i32 -> vector<8x1280xf32>
    %c1278_i32_14 = arith.constant 1278 : i32
    %26 = tpu.dynamic_rotate %22 by %c1278_i32_14 dim 1 : vector<8x1280xf32>, i32 -> vector<8x1280xf32>
    %c1246_i32_15 = arith.constant 1246 : i32
    %27 = tpu.dynamic_rotate %22 by %c1246_i32_15 dim 1 : vector<8x1280xf32>, i32 -> vector<8x1280xf32>
    %c1245_i32_16 = arith.constant 1245 : i32
    %28 = tpu.dynamic_rotate %22 by %c1245_i32_16 dim 1 : vector<8x1280xf32>, i32 -> vector<8x1280xf32>
    %c1244_i32_17 = arith.constant 1244 : i32
    %29 = tpu.dynamic_rotate %22 by %c1244_i32_17 dim 1 : vector<8x1280xf32>, i32 -> vector<8x1280xf32>
    %c1212_i32_18 = arith.constant 1212 : i32
    %30 = tpu.dynamic_rotate %22 by %c1212_i32_18 dim 1 : vector<8x1280xf32>, i32 -> vector<8x1280xf32>
    %c1211_i32_19 = arith.constant 1211 : i32
    %31 = tpu.dynamic_rotate %22 by %c1211_i32_19 dim 1 : vector<8x1280xf32>, i32 -> vector<8x1280xf32>
    %c1210_i32_20 = arith.constant 1210 : i32
    %32 = tpu.dynamic_rotate %22 by %c1210_i32_20 dim 1 : vector<8x1280xf32>, i32 -> vector<8x1280xf32>
    %33 = tpu.concatenate %22, %25, %26, %27, %28, %29, %30, %31, %32 in 0 : vector<8x1280xf32>, vector<8x1280xf32>, vector<8x1280xf32>, vector<8x1280xf32>, vector<8x1280xf32>, vector<8x1280xf32>, vector<8x1280xf32>, vector<8x1280xf32>, vector<8x1280xf32> -> vector<72x1280xf32>
    %34 = arith.truncf %33 : vector<72x1280xf32> to vector<72x1280xbf16>
    %cst_21 = arith.constant dense<0.000000e+00> : vector<8x1280xf32>
    %35 = tpu.matmul %23, %34, %cst_21 {dimension_numbers = #tpu.dot_dimension_numbers<[1], [0], [0], [1], [0, 0, 1, 1], [], []>} : vector<8x72xbf16>, vector<72x1280xbf16>, vector<8x1280xf32> -> vector<8x1280xf32>
    %36 = vector.broadcast %24 : vector<8x1xf32> to vector<8x1280xf32>
    %37 = arith.addf %35, %36 : vector<8x1280xf32>
    %cst_22 = arith.constant 0.000000e+00 : f32
    %38 = vector.broadcast %cst_22 : f32 to vector<8x1280xf32>
    %39 = arith.maximumf %37, %38 : vector<8x1280xf32>
    %c0_23 = arith.constant 0 : index
    %c0_24 = arith.constant 0 : index
    %40 = vector.load %arg4[%c0_23, %c0_24] : memref<1x1280xf32, #tpu.memory_space<vmem>>, vector<1x1280xf32>
    %41 = vector.broadcast %40 : vector<1x1280xf32> to vector<8x1280xf32>
    %42 = arith.mulf %39, %41 : vector<8x1280xf32>
    %c35_i32_25 = arith.constant 35 : i32
    %43 = tpu.dynamic_rotate %42 by %c35_i32_25 dim 1 : vector<8x1280xf32>, i32 -> vector<8x1280xf32>
    %44 = arith.addf %22, %43 : vector<8x1280xf32>
    %c0_26 = arith.constant 0 : index
    %c0_27 = arith.constant 0 : index
    %45 = vector.load %arg7[%c0_26, %c0_27] : memref<16x72xbf16, #tpu.memory_space<vmem>>, vector<16x72xbf16>
    %c0_28 = arith.constant 0 : index
    %c0_29 = arith.constant 0 : index
    %46 = vector.load %arg8[%c0_28, %c0_29] : memref<16x1xf32, #tpu.memory_space<vmem>>, vector<16x1xf32>
    %c1279_i32_30 = arith.constant 1279 : i32
    %47 = tpu.dynamic_rotate %44 by %c1279_i32_30 dim 1 : vector<8x1280xf32>, i32 -> vector<8x1280xf32>
    %c1278_i32_31 = arith.constant 1278 : i32
    %48 = tpu.dynamic_rotate %44 by %c1278_i32_31 dim 1 : vector<8x1280xf32>, i32 -> vector<8x1280xf32>
    %c1246_i32_32 = arith.constant 1246 : i32
    %49 = tpu.dynamic_rotate %44 by %c1246_i32_32 dim 1 : vector<8x1280xf32>, i32 -> vector<8x1280xf32>
    %c1245_i32_33 = arith.constant 1245 : i32
    %50 = tpu.dynamic_rotate %44 by %c1245_i32_33 dim 1 : vector<8x1280xf32>, i32 -> vector<8x1280xf32>
    %c1244_i32_34 = arith.constant 1244 : i32
    %51 = tpu.dynamic_rotate %44 by %c1244_i32_34 dim 1 : vector<8x1280xf32>, i32 -> vector<8x1280xf32>
    %c1212_i32_35 = arith.constant 1212 : i32
    %52 = tpu.dynamic_rotate %44 by %c1212_i32_35 dim 1 : vector<8x1280xf32>, i32 -> vector<8x1280xf32>
    %c1211_i32_36 = arith.constant 1211 : i32
    %53 = tpu.dynamic_rotate %44 by %c1211_i32_36 dim 1 : vector<8x1280xf32>, i32 -> vector<8x1280xf32>
    %c1210_i32_37 = arith.constant 1210 : i32
    %54 = tpu.dynamic_rotate %44 by %c1210_i32_37 dim 1 : vector<8x1280xf32>, i32 -> vector<8x1280xf32>
    %55 = tpu.concatenate %44, %47, %48, %49, %50, %51, %52, %53, %54 in 0 : vector<8x1280xf32>, vector<8x1280xf32>, vector<8x1280xf32>, vector<8x1280xf32>, vector<8x1280xf32>, vector<8x1280xf32>, vector<8x1280xf32>, vector<8x1280xf32>, vector<8x1280xf32> -> vector<72x1280xf32>
    %56 = arith.truncf %55 : vector<72x1280xf32> to vector<72x1280xbf16>
    %cst_38 = arith.constant dense<0.000000e+00> : vector<16x1280xf32>
    %57 = tpu.matmul %45, %56, %cst_38 {dimension_numbers = #tpu.dot_dimension_numbers<[1], [0], [0], [1], [0, 0, 1, 1], [], []>} : vector<16x72xbf16>, vector<72x1280xbf16>, vector<16x1280xf32> -> vector<16x1280xf32>
    %58 = vector.broadcast %46 : vector<16x1xf32> to vector<16x1280xf32>
    %59 = arith.addf %57, %58 : vector<16x1280xf32>
    %cst_39 = arith.constant 0.000000e+00 : f32
    %60 = vector.broadcast %cst_39 : f32 to vector<16x1280xf32>
    %61 = arith.maximumf %59, %60 : vector<16x1280xf32>
    %c0_40 = arith.constant 0 : index
    %c0_41 = arith.constant 0 : index
    %62 = vector.load %arg17[%c0_40, %c0_41] : memref<1x1280xf32, #tpu.memory_space<vmem>>, vector<1x1280xf32>
    %63 = vector.broadcast %62 : vector<1x1280xf32> to vector<16x1280xf32>
    %64 = arith.mulf %61, %63 : vector<16x1280xf32>
    %c0_42 = arith.constant 0 : index
    %c0_43 = arith.constant 0 : index
    %65 = vector.load %arg9[%c0_42, %c0_43] : memref<1x1280xf32, #tpu.memory_space<vmem>>, vector<1x1280xf32>
    %66 = vector.broadcast %65 : vector<1x1280xf32> to vector<16x1280xf32>
    %67 = arith.mulf %64, %66 : vector<16x1280xf32>
    %c1279_i32_44 = arith.constant 1279 : i32
    %68 = tpu.dynamic_rotate %67 by %c1279_i32_44 dim 1 : vector<16x1280xf32>, i32 -> vector<16x1280xf32>
    %cst_45 = arith.constant 1.000000e+00 : f32
    %69 = vector.broadcast %cst_45 : f32 to vector<1x1280xf32>
    %70 = arith.subf %69, %65 : vector<1x1280xf32>
    %71 = vector.broadcast %70 : vector<1x1280xf32> to vector<16x1280xf32>
    %72 = arith.mulf %64, %71 : vector<16x1280xf32>
    %73 = arith.addf %68, %72 : vector<16x1280xf32>
    %c0_46 = arith.constant 0 : index
    %c0_47 = arith.constant 0 : index
    %74 = vector.load %arg10[%c0_46, %c0_47] : memref<1x1280xf32, #tpu.memory_space<vmem>>, vector<1x1280xf32>
    %75 = vector.broadcast %74 : vector<1x1280xf32> to vector<16x1280xf32>
    %76 = arith.mulf %73, %75 : vector<16x1280xf32>
    %c1278_i32_48 = arith.constant 1278 : i32
    %77 = tpu.dynamic_rotate %76 by %c1278_i32_48 dim 1 : vector<16x1280xf32>, i32 -> vector<16x1280xf32>
    %cst_49 = arith.constant 1.000000e+00 : f32
    %78 = vector.broadcast %cst_49 : f32 to vector<1x1280xf32>
    %79 = arith.subf %78, %74 : vector<1x1280xf32>
    %80 = vector.broadcast %79 : vector<1x1280xf32> to vector<16x1280xf32>
    %81 = arith.mulf %73, %80 : vector<16x1280xf32>
    %82 = arith.addf %77, %81 : vector<16x1280xf32>
    %c0_50 = arith.constant 0 : index
    %c0_51 = arith.constant 0 : index
    %83 = vector.load %arg11[%c0_50, %c0_51] : memref<1x1280xf32, #tpu.memory_space<vmem>>, vector<1x1280xf32>
    %84 = vector.broadcast %83 : vector<1x1280xf32> to vector<16x1280xf32>
    %85 = arith.mulf %82, %84 : vector<16x1280xf32>
    %c1276_i32 = arith.constant 1276 : i32
    %86 = tpu.dynamic_rotate %85 by %c1276_i32 dim 1 : vector<16x1280xf32>, i32 -> vector<16x1280xf32>
    %cst_52 = arith.constant 1.000000e+00 : f32
    %87 = vector.broadcast %cst_52 : f32 to vector<1x1280xf32>
    %88 = arith.subf %87, %83 : vector<1x1280xf32>
    %89 = vector.broadcast %88 : vector<1x1280xf32> to vector<16x1280xf32>
    %90 = arith.mulf %82, %89 : vector<16x1280xf32>
    %91 = arith.addf %86, %90 : vector<16x1280xf32>
    %c0_53 = arith.constant 0 : index
    %c0_54 = arith.constant 0 : index
    %92 = vector.load %arg12[%c0_53, %c0_54] : memref<1x1280xf32, #tpu.memory_space<vmem>>, vector<1x1280xf32>
    %93 = vector.broadcast %92 : vector<1x1280xf32> to vector<16x1280xf32>
    %94 = arith.mulf %91, %93 : vector<16x1280xf32>
    %c1272_i32 = arith.constant 1272 : i32
    %95 = tpu.dynamic_rotate %94 by %c1272_i32 dim 1 : vector<16x1280xf32>, i32 -> vector<16x1280xf32>
    %cst_55 = arith.constant 1.000000e+00 : f32
    %96 = vector.broadcast %cst_55 : f32 to vector<1x1280xf32>
    %97 = arith.subf %96, %92 : vector<1x1280xf32>
    %98 = vector.broadcast %97 : vector<1x1280xf32> to vector<16x1280xf32>
    %99 = arith.mulf %91, %98 : vector<16x1280xf32>
    %100 = arith.addf %95, %99 : vector<16x1280xf32>
    %c0_56 = arith.constant 0 : index
    %c0_57 = arith.constant 0 : index
    %101 = vector.load %arg13[%c0_56, %c0_57] : memref<1x1280xf32, #tpu.memory_space<vmem>>, vector<1x1280xf32>
    %102 = vector.broadcast %101 : vector<1x1280xf32> to vector<16x1280xf32>
    %103 = arith.mulf %100, %102 : vector<16x1280xf32>
    %c1230_i32 = arith.constant 1230 : i32
    %104 = tpu.dynamic_rotate %103 by %c1230_i32 dim 1 : vector<16x1280xf32>, i32 -> vector<16x1280xf32>
    %cst_58 = arith.constant 1.000000e+00 : f32
    %105 = vector.broadcast %cst_58 : f32 to vector<1x1280xf32>
    %106 = arith.subf %105, %101 : vector<1x1280xf32>
    %107 = vector.broadcast %106 : vector<1x1280xf32> to vector<16x1280xf32>
    %108 = arith.mulf %100, %107 : vector<16x1280xf32>
    %109 = arith.addf %104, %108 : vector<16x1280xf32>
    %c0_59 = arith.constant 0 : index
    %c0_60 = arith.constant 0 : index
    %110 = vector.load %arg14[%c0_59, %c0_60] : memref<1x1280xf32, #tpu.memory_space<vmem>>, vector<1x1280xf32>
    %111 = vector.broadcast %110 : vector<1x1280xf32> to vector<16x1280xf32>
    %112 = arith.mulf %109, %111 : vector<16x1280xf32>
    %c1180_i32 = arith.constant 1180 : i32
    %113 = tpu.dynamic_rotate %112 by %c1180_i32 dim 1 : vector<16x1280xf32>, i32 -> vector<16x1280xf32>
    %cst_61 = arith.constant 1.000000e+00 : f32
    %114 = vector.broadcast %cst_61 : f32 to vector<1x1280xf32>
    %115 = arith.subf %114, %110 : vector<1x1280xf32>
    %116 = vector.broadcast %115 : vector<1x1280xf32> to vector<16x1280xf32>
    %117 = arith.mulf %109, %116 : vector<16x1280xf32>
    %118 = arith.addf %113, %117 : vector<16x1280xf32>
    %c0_62 = arith.constant 0 : index
    %c0_63 = arith.constant 0 : index
    %119 = vector.load %arg15[%c0_62, %c0_63] : memref<1x1280xf32, #tpu.memory_space<vmem>>, vector<1x1280xf32>
    %120 = vector.broadcast %119 : vector<1x1280xf32> to vector<16x1280xf32>
    %121 = arith.mulf %118, %120 : vector<16x1280xf32>
    %c1080_i32 = arith.constant 1080 : i32
    %122 = tpu.dynamic_rotate %121 by %c1080_i32 dim 1 : vector<16x1280xf32>, i32 -> vector<16x1280xf32>
    %cst_64 = arith.constant 1.000000e+00 : f32
    %123 = vector.broadcast %cst_64 : f32 to vector<1x1280xf32>
    %124 = arith.subf %123, %119 : vector<1x1280xf32>
    %125 = vector.broadcast %124 : vector<1x1280xf32> to vector<16x1280xf32>
    %126 = arith.mulf %118, %125 : vector<16x1280xf32>
    %127 = arith.addf %122, %126 : vector<16x1280xf32>
    %c0_65 = arith.constant 0 : index
    %c0_66 = arith.constant 0 : index
    %128 = vector.load %arg16[%c0_65, %c0_66] : memref<1x1280xf32, #tpu.memory_space<vmem>>, vector<1x1280xf32>
    %129 = vector.broadcast %128 : vector<1x1280xf32> to vector<16x1280xf32>
    %130 = arith.mulf %127, %129 : vector<16x1280xf32>
    %c880_i32 = arith.constant 880 : i32
    %131 = tpu.dynamic_rotate %130 by %c880_i32 dim 1 : vector<16x1280xf32>, i32 -> vector<16x1280xf32>
    %cst_67 = arith.constant 1.000000e+00 : f32
    %132 = vector.broadcast %cst_67 : f32 to vector<1x1280xf32>
    %133 = arith.subf %132, %128 : vector<1x1280xf32>
    %134 = vector.broadcast %133 : vector<1x1280xf32> to vector<16x1280xf32>
    %135 = arith.mulf %127, %134 : vector<16x1280xf32>
    %136 = arith.addf %131, %135 : vector<16x1280xf32>
    %c19_i32 = arith.constant 19 : i32
    %137 = tpu.dynamic_rotate %136 by %c19_i32 dim 1 : vector<16x1280xf32>, i32 -> vector<16x1280xf32>
    %138 = vector.extract_strided_slice %137 {offsets = [0, 0], sizes = [16, 384], strides = [1, 1]} : vector<16x1280xf32> to vector<16x384xf32>
    %c0_68 = arith.constant 0 : index
    %c0_69 = arith.constant 0 : index
    %139 = vector.load %arg18[%c0_68, %c0_69] : memref<16x144xbf16, #tpu.memory_space<vmem>>, vector<16x144xbf16>
    %c0_70 = arith.constant 0 : index
    %c0_71 = arith.constant 0 : index
    %140 = vector.load %arg19[%c0_70, %c0_71] : memref<16x1xf32, #tpu.memory_space<vmem>>, vector<16x1xf32>
    %c383_i32 = arith.constant 383 : i32
    %141 = tpu.dynamic_rotate %138 by %c383_i32 dim 1 : vector<16x384xf32>, i32 -> vector<16x384xf32>
    %c382_i32 = arith.constant 382 : i32
    %142 = tpu.dynamic_rotate %138 by %c382_i32 dim 1 : vector<16x384xf32>, i32 -> vector<16x384xf32>
    %c366_i32 = arith.constant 366 : i32
    %143 = tpu.dynamic_rotate %138 by %c366_i32 dim 1 : vector<16x384xf32>, i32 -> vector<16x384xf32>
    %c365_i32 = arith.constant 365 : i32
    %144 = tpu.dynamic_rotate %138 by %c365_i32 dim 1 : vector<16x384xf32>, i32 -> vector<16x384xf32>
    %c364_i32 = arith.constant 364 : i32
    %145 = tpu.dynamic_rotate %138 by %c364_i32 dim 1 : vector<16x384xf32>, i32 -> vector<16x384xf32>
    %c348_i32 = arith.constant 348 : i32
    %146 = tpu.dynamic_rotate %138 by %c348_i32 dim 1 : vector<16x384xf32>, i32 -> vector<16x384xf32>
    %c347_i32 = arith.constant 347 : i32
    %147 = tpu.dynamic_rotate %138 by %c347_i32 dim 1 : vector<16x384xf32>, i32 -> vector<16x384xf32>
    %c346_i32 = arith.constant 346 : i32
    %148 = tpu.dynamic_rotate %138 by %c346_i32 dim 1 : vector<16x384xf32>, i32 -> vector<16x384xf32>
    %149 = tpu.concatenate %138, %141, %142, %143, %144, %145, %146, %147, %148 in 0 : vector<16x384xf32>, vector<16x384xf32>, vector<16x384xf32>, vector<16x384xf32>, vector<16x384xf32>, vector<16x384xf32>, vector<16x384xf32>, vector<16x384xf32>, vector<16x384xf32> -> vector<144x384xf32>
    %150 = arith.truncf %149 : vector<144x384xf32> to vector<144x384xbf16>
    %cst_72 = arith.constant dense<0.000000e+00> : vector<16x384xf32>
    %151 = tpu.matmul %139, %150, %cst_72 {dimension_numbers = #tpu.dot_dimension_numbers<[1], [0], [0], [1], [0, 0, 1, 1], [], []>} : vector<16x144xbf16>, vector<144x384xbf16>, vector<16x384xf32> -> vector<16x384xf32>
    %152 = vector.broadcast %140 : vector<16x1xf32> to vector<16x384xf32>
    %153 = arith.addf %151, %152 : vector<16x384xf32>
    %cst_73 = arith.constant 0.000000e+00 : f32
    %154 = vector.broadcast %cst_73 : f32 to vector<16x384xf32>
    %155 = arith.maximumf %153, %154 : vector<16x384xf32>
    %c0_74 = arith.constant 0 : index
    %c0_75 = arith.constant 0 : index
    %156 = vector.load %arg20[%c0_74, %c0_75] : memref<1x384xf32, #tpu.memory_space<vmem>>, vector<1x384xf32>
    %157 = vector.broadcast %156 : vector<1x384xf32> to vector<16x384xf32>
    %158 = arith.mulf %155, %157 : vector<16x384xf32>
    %c19_i32_76 = arith.constant 19 : i32
    %159 = tpu.dynamic_rotate %158 by %c19_i32_76 dim 1 : vector<16x384xf32>, i32 -> vector<16x384xf32>
    %160 = arith.addf %138, %159 : vector<16x384xf32>
    %c0_77 = arith.constant 0 : index
    %c0_78 = arith.constant 0 : index
    %161 = vector.load %arg21[%c0_77, %c0_78] : memref<32x144xbf16, #tpu.memory_space<vmem>>, vector<32x144xbf16>
    %c0_79 = arith.constant 0 : index
    %c0_80 = arith.constant 0 : index
    %162 = vector.load %arg22[%c0_79, %c0_80] : memref<32x1xf32, #tpu.memory_space<vmem>>, vector<32x1xf32>
    %c383_i32_81 = arith.constant 383 : i32
    %163 = tpu.dynamic_rotate %160 by %c383_i32_81 dim 1 : vector<16x384xf32>, i32 -> vector<16x384xf32>
    %c382_i32_82 = arith.constant 382 : i32
    %164 = tpu.dynamic_rotate %160 by %c382_i32_82 dim 1 : vector<16x384xf32>, i32 -> vector<16x384xf32>
    %c366_i32_83 = arith.constant 366 : i32
    %165 = tpu.dynamic_rotate %160 by %c366_i32_83 dim 1 : vector<16x384xf32>, i32 -> vector<16x384xf32>
    %c365_i32_84 = arith.constant 365 : i32
    %166 = tpu.dynamic_rotate %160 by %c365_i32_84 dim 1 : vector<16x384xf32>, i32 -> vector<16x384xf32>
    %c364_i32_85 = arith.constant 364 : i32
    %167 = tpu.dynamic_rotate %160 by %c364_i32_85 dim 1 : vector<16x384xf32>, i32 -> vector<16x384xf32>
    %c348_i32_86 = arith.constant 348 : i32
    %168 = tpu.dynamic_rotate %160 by %c348_i32_86 dim 1 : vector<16x384xf32>, i32 -> vector<16x384xf32>
    %c347_i32_87 = arith.constant 347 : i32
    %169 = tpu.dynamic_rotate %160 by %c347_i32_87 dim 1 : vector<16x384xf32>, i32 -> vector<16x384xf32>
    %c346_i32_88 = arith.constant 346 : i32
    %170 = tpu.dynamic_rotate %160 by %c346_i32_88 dim 1 : vector<16x384xf32>, i32 -> vector<16x384xf32>
    %171 = tpu.concatenate %160, %163, %164, %165, %166, %167, %168, %169, %170 in 0 : vector<16x384xf32>, vector<16x384xf32>, vector<16x384xf32>, vector<16x384xf32>, vector<16x384xf32>, vector<16x384xf32>, vector<16x384xf32>, vector<16x384xf32>, vector<16x384xf32> -> vector<144x384xf32>
    %172 = arith.truncf %171 : vector<144x384xf32> to vector<144x384xbf16>
    %cst_89 = arith.constant dense<0.000000e+00> : vector<32x384xf32>
    %173 = tpu.matmul %161, %172, %cst_89 {dimension_numbers = #tpu.dot_dimension_numbers<[1], [0], [0], [1], [0, 0, 1, 1], [], []>} : vector<32x144xbf16>, vector<144x384xbf16>, vector<32x384xf32> -> vector<32x384xf32>
    %174 = vector.broadcast %162 : vector<32x1xf32> to vector<32x384xf32>
    %175 = arith.addf %173, %174 : vector<32x384xf32>
    %cst_90 = arith.constant 0.000000e+00 : f32
    %176 = vector.broadcast %cst_90 : f32 to vector<32x384xf32>
    %177 = arith.maximumf %175, %176 : vector<32x384xf32>
    %c0_91 = arith.constant 0 : index
    %c0_92 = arith.constant 0 : index
    %178 = vector.load %arg29[%c0_91, %c0_92] : memref<1x384xf32, #tpu.memory_space<vmem>>, vector<1x384xf32>
    %179 = vector.broadcast %178 : vector<1x384xf32> to vector<32x384xf32>
    %180 = arith.mulf %177, %179 : vector<32x384xf32>
    %c0_93 = arith.constant 0 : index
    %c0_94 = arith.constant 0 : index
    %181 = vector.load %arg23[%c0_93, %c0_94] : memref<1x384xf32, #tpu.memory_space<vmem>>, vector<1x384xf32>
    %182 = vector.broadcast %181 : vector<1x384xf32> to vector<32x384xf32>
    %183 = arith.mulf %180, %182 : vector<32x384xf32>
    %c383_i32_95 = arith.constant 383 : i32
    %184 = tpu.dynamic_rotate %183 by %c383_i32_95 dim 1 : vector<32x384xf32>, i32 -> vector<32x384xf32>
    %cst_96 = arith.constant 1.000000e+00 : f32
    %185 = vector.broadcast %cst_96 : f32 to vector<1x384xf32>
    %186 = arith.subf %185, %181 : vector<1x384xf32>
    %187 = vector.broadcast %186 : vector<1x384xf32> to vector<32x384xf32>
    %188 = arith.mulf %180, %187 : vector<32x384xf32>
    %189 = arith.addf %184, %188 : vector<32x384xf32>
    %c0_97 = arith.constant 0 : index
    %c0_98 = arith.constant 0 : index
    %190 = vector.load %arg24[%c0_97, %c0_98] : memref<1x384xf32, #tpu.memory_space<vmem>>, vector<1x384xf32>
    %191 = vector.broadcast %190 : vector<1x384xf32> to vector<32x384xf32>
    %192 = arith.mulf %189, %191 : vector<32x384xf32>
    %c382_i32_99 = arith.constant 382 : i32
    %193 = tpu.dynamic_rotate %192 by %c382_i32_99 dim 1 : vector<32x384xf32>, i32 -> vector<32x384xf32>
    %cst_100 = arith.constant 1.000000e+00 : f32
    %194 = vector.broadcast %cst_100 : f32 to vector<1x384xf32>
    %195 = arith.subf %194, %190 : vector<1x384xf32>
    %196 = vector.broadcast %195 : vector<1x384xf32> to vector<32x384xf32>
    %197 = arith.mulf %189, %196 : vector<32x384xf32>
    %198 = arith.addf %193, %197 : vector<32x384xf32>
    %c0_101 = arith.constant 0 : index
    %c0_102 = arith.constant 0 : index
    %199 = vector.load %arg25[%c0_101, %c0_102] : memref<1x384xf32, #tpu.memory_space<vmem>>, vector<1x384xf32>
    %200 = vector.broadcast %199 : vector<1x384xf32> to vector<32x384xf32>
    %201 = arith.mulf %198, %200 : vector<32x384xf32>
    %c380_i32 = arith.constant 380 : i32
    %202 = tpu.dynamic_rotate %201 by %c380_i32 dim 1 : vector<32x384xf32>, i32 -> vector<32x384xf32>
    %cst_103 = arith.constant 1.000000e+00 : f32
    %203 = vector.broadcast %cst_103 : f32 to vector<1x384xf32>
    %204 = arith.subf %203, %199 : vector<1x384xf32>
    %205 = vector.broadcast %204 : vector<1x384xf32> to vector<32x384xf32>
    %206 = arith.mulf %198, %205 : vector<32x384xf32>
    %207 = arith.addf %202, %206 : vector<32x384xf32>
    %c0_104 = arith.constant 0 : index
    %c0_105 = arith.constant 0 : index
    %208 = vector.load %arg26[%c0_104, %c0_105] : memref<1x384xf32, #tpu.memory_space<vmem>>, vector<1x384xf32>
    %209 = vector.broadcast %208 : vector<1x384xf32> to vector<32x384xf32>
    %210 = arith.mulf %207, %209 : vector<32x384xf32>
    %c358_i32 = arith.constant 358 : i32
    %211 = tpu.dynamic_rotate %210 by %c358_i32 dim 1 : vector<32x384xf32>, i32 -> vector<32x384xf32>
    %cst_106 = arith.constant 1.000000e+00 : f32
    %212 = vector.broadcast %cst_106 : f32 to vector<1x384xf32>
    %213 = arith.subf %212, %208 : vector<1x384xf32>
    %214 = vector.broadcast %213 : vector<1x384xf32> to vector<32x384xf32>
    %215 = arith.mulf %207, %214 : vector<32x384xf32>
    %216 = arith.addf %211, %215 : vector<32x384xf32>
    %c0_107 = arith.constant 0 : index
    %c0_108 = arith.constant 0 : index
    %217 = vector.load %arg27[%c0_107, %c0_108] : memref<1x384xf32, #tpu.memory_space<vmem>>, vector<1x384xf32>
    %218 = vector.broadcast %217 : vector<1x384xf32> to vector<32x384xf32>
    %219 = arith.mulf %216, %218 : vector<32x384xf32>
    %c332_i32 = arith.constant 332 : i32
    %220 = tpu.dynamic_rotate %219 by %c332_i32 dim 1 : vector<32x384xf32>, i32 -> vector<32x384xf32>
    %cst_109 = arith.constant 1.000000e+00 : f32
    %221 = vector.broadcast %cst_109 : f32 to vector<1x384xf32>
    %222 = arith.subf %221, %217 : vector<1x384xf32>
    %223 = vector.broadcast %222 : vector<1x384xf32> to vector<32x384xf32>
    %224 = arith.mulf %216, %223 : vector<32x384xf32>
    %225 = arith.addf %220, %224 : vector<32x384xf32>
    %c0_110 = arith.constant 0 : index
    %c0_111 = arith.constant 0 : index
    %226 = vector.load %arg28[%c0_110, %c0_111] : memref<1x384xf32, #tpu.memory_space<vmem>>, vector<1x384xf32>
    %227 = vector.broadcast %226 : vector<1x384xf32> to vector<32x384xf32>
    %228 = arith.mulf %225, %227 : vector<32x384xf32>
    %c280_i32 = arith.constant 280 : i32
    %229 = tpu.dynamic_rotate %228 by %c280_i32 dim 1 : vector<32x384xf32>, i32 -> vector<32x384xf32>
    %cst_112 = arith.constant 1.000000e+00 : f32
    %230 = vector.broadcast %cst_112 : f32 to vector<1x384xf32>
    %231 = arith.subf %230, %226 : vector<1x384xf32>
    %232 = vector.broadcast %231 : vector<1x384xf32> to vector<32x384xf32>
    %233 = arith.mulf %225, %232 : vector<32x384xf32>
    %234 = arith.addf %229, %233 : vector<32x384xf32>
    %c11_i32 = arith.constant 11 : i32
    %235 = tpu.dynamic_rotate %234 by %c11_i32 dim 1 : vector<32x384xf32>, i32 -> vector<32x384xf32>
    %236 = vector.extract_strided_slice %235 {offsets = [0, 0], sizes = [32, 128], strides = [1, 1]} : vector<32x384xf32> to vector<32x128xf32>
    %c0_113 = arith.constant 0 : index
    %c0_114 = arith.constant 0 : index
    %237 = vector.load %arg30[%c0_113, %c0_114] : memref<32x288xbf16, #tpu.memory_space<vmem>>, vector<32x288xbf16>
    %c0_115 = arith.constant 0 : index
    %c0_116 = arith.constant 0 : index
    %238 = vector.load %arg31[%c0_115, %c0_116] : memref<32x1xf32, #tpu.memory_space<vmem>>, vector<32x1xf32>
    %c127_i32 = arith.constant 127 : i32
    %239 = tpu.dynamic_rotate %236 by %c127_i32 dim 1 : vector<32x128xf32>, i32 -> vector<32x128xf32>
    %c126_i32 = arith.constant 126 : i32
    %240 = tpu.dynamic_rotate %236 by %c126_i32 dim 1 : vector<32x128xf32>, i32 -> vector<32x128xf32>
    %c118_i32 = arith.constant 118 : i32
    %241 = tpu.dynamic_rotate %236 by %c118_i32 dim 1 : vector<32x128xf32>, i32 -> vector<32x128xf32>
    %c117_i32 = arith.constant 117 : i32
    %242 = tpu.dynamic_rotate %236 by %c117_i32 dim 1 : vector<32x128xf32>, i32 -> vector<32x128xf32>
    %c116_i32 = arith.constant 116 : i32
    %243 = tpu.dynamic_rotate %236 by %c116_i32 dim 1 : vector<32x128xf32>, i32 -> vector<32x128xf32>
    %c108_i32 = arith.constant 108 : i32
    %244 = tpu.dynamic_rotate %236 by %c108_i32 dim 1 : vector<32x128xf32>, i32 -> vector<32x128xf32>
    %c107_i32 = arith.constant 107 : i32
    %245 = tpu.dynamic_rotate %236 by %c107_i32 dim 1 : vector<32x128xf32>, i32 -> vector<32x128xf32>
    %c106_i32 = arith.constant 106 : i32
    %246 = tpu.dynamic_rotate %236 by %c106_i32 dim 1 : vector<32x128xf32>, i32 -> vector<32x128xf32>
    %247 = tpu.concatenate %236, %239, %240, %241, %242, %243, %244, %245, %246 in 0 : vector<32x128xf32>, vector<32x128xf32>, vector<32x128xf32>, vector<32x128xf32>, vector<32x128xf32>, vector<32x128xf32>, vector<32x128xf32>, vector<32x128xf32>, vector<32x128xf32> -> vector<288x128xf32>
    %248 = arith.truncf %247 : vector<288x128xf32> to vector<288x128xbf16>
    %cst_117 = arith.constant dense<0.000000e+00> : vector<32x128xf32>
    %249 = tpu.matmul %237, %248, %cst_117 {dimension_numbers = #tpu.dot_dimension_numbers<[1], [0], [0], [1], [0, 0, 1, 1], [], []>} : vector<32x288xbf16>, vector<288x128xbf16>, vector<32x128xf32> -> vector<32x128xf32>
    %250 = vector.broadcast %238 : vector<32x1xf32> to vector<32x128xf32>
    %251 = arith.addf %249, %250 : vector<32x128xf32>
    %cst_118 = arith.constant 0.000000e+00 : f32
    %252 = vector.broadcast %cst_118 : f32 to vector<32x128xf32>
    %253 = arith.maximumf %251, %252 : vector<32x128xf32>
    %c0_119 = arith.constant 0 : index
    %c0_120 = arith.constant 0 : index
    %254 = vector.load %arg32[%c0_119, %c0_120] : memref<1x128xf32, #tpu.memory_space<vmem>>, vector<1x128xf32>
    %255 = vector.broadcast %254 : vector<1x128xf32> to vector<32x128xf32>
    %256 = arith.mulf %253, %255 : vector<32x128xf32>
    %c11_i32_121 = arith.constant 11 : i32
    %257 = tpu.dynamic_rotate %256 by %c11_i32_121 dim 1 : vector<32x128xf32>, i32 -> vector<32x128xf32>
    %258 = arith.addf %236, %257 : vector<32x128xf32>
    %c0_122 = arith.constant 0 : index
    %c0_123 = arith.constant 0 : index
    %259 = vector.load %arg33[%c0_122, %c0_123] : memref<32x288xbf16, #tpu.memory_space<vmem>>, vector<32x288xbf16>
    %c0_124 = arith.constant 0 : index
    %c0_125 = arith.constant 0 : index
    %260 = vector.load %arg34[%c0_124, %c0_125] : memref<32x1xf32, #tpu.memory_space<vmem>>, vector<32x1xf32>
    %c127_i32_126 = arith.constant 127 : i32
    %261 = tpu.dynamic_rotate %258 by %c127_i32_126 dim 1 : vector<32x128xf32>, i32 -> vector<32x128xf32>
    %c126_i32_127 = arith.constant 126 : i32
    %262 = tpu.dynamic_rotate %258 by %c126_i32_127 dim 1 : vector<32x128xf32>, i32 -> vector<32x128xf32>
    %c118_i32_128 = arith.constant 118 : i32
    %263 = tpu.dynamic_rotate %258 by %c118_i32_128 dim 1 : vector<32x128xf32>, i32 -> vector<32x128xf32>
    %c117_i32_129 = arith.constant 117 : i32
    %264 = tpu.dynamic_rotate %258 by %c117_i32_129 dim 1 : vector<32x128xf32>, i32 -> vector<32x128xf32>
    %c116_i32_130 = arith.constant 116 : i32
    %265 = tpu.dynamic_rotate %258 by %c116_i32_130 dim 1 : vector<32x128xf32>, i32 -> vector<32x128xf32>
    %c108_i32_131 = arith.constant 108 : i32
    %266 = tpu.dynamic_rotate %258 by %c108_i32_131 dim 1 : vector<32x128xf32>, i32 -> vector<32x128xf32>
    %c107_i32_132 = arith.constant 107 : i32
    %267 = tpu.dynamic_rotate %258 by %c107_i32_132 dim 1 : vector<32x128xf32>, i32 -> vector<32x128xf32>
    %c106_i32_133 = arith.constant 106 : i32
    %268 = tpu.dynamic_rotate %258 by %c106_i32_133 dim 1 : vector<32x128xf32>, i32 -> vector<32x128xf32>
    %269 = tpu.concatenate %258, %261, %262, %263, %264, %265, %266, %267, %268 in 0 : vector<32x128xf32>, vector<32x128xf32>, vector<32x128xf32>, vector<32x128xf32>, vector<32x128xf32>, vector<32x128xf32>, vector<32x128xf32>, vector<32x128xf32>, vector<32x128xf32> -> vector<288x128xf32>
    %270 = arith.truncf %269 : vector<288x128xf32> to vector<288x128xbf16>
    %cst_134 = arith.constant dense<0.000000e+00> : vector<32x128xf32>
    %271 = tpu.matmul %259, %270, %cst_134 {dimension_numbers = #tpu.dot_dimension_numbers<[1], [0], [0], [1], [0, 0, 1, 1], [], []>} : vector<32x288xbf16>, vector<288x128xbf16>, vector<32x128xf32> -> vector<32x128xf32>
    %272 = vector.broadcast %260 : vector<32x1xf32> to vector<32x128xf32>
    %273 = arith.addf %271, %272 : vector<32x128xf32>
    %cst_135 = arith.constant 0.000000e+00 : f32
    %274 = vector.broadcast %cst_135 : f32 to vector<32x128xf32>
    %275 = arith.maximumf %273, %274 : vector<32x128xf32>
    %c0_136 = arith.constant 0 : index
    %c0_137 = arith.constant 0 : index
    %276 = vector.load %arg39[%c0_136, %c0_137] : memref<1x128xf32, #tpu.memory_space<vmem>>, vector<1x128xf32>
    %277 = vector.broadcast %276 : vector<1x128xf32> to vector<32x128xf32>
    %278 = arith.mulf %275, %277 : vector<32x128xf32>
    %c0_138 = arith.constant 0 : index
    %c0_139 = arith.constant 0 : index
    %279 = vector.load %arg35[%c0_138, %c0_139] : memref<1x128xf32, #tpu.memory_space<vmem>>, vector<1x128xf32>
    %280 = vector.broadcast %279 : vector<1x128xf32> to vector<32x128xf32>
    %281 = arith.mulf %278, %280 : vector<32x128xf32>
    %c127_i32_140 = arith.constant 127 : i32
    %282 = tpu.dynamic_rotate %281 by %c127_i32_140 dim 1 : vector<32x128xf32>, i32 -> vector<32x128xf32>
    %cst_141 = arith.constant 1.000000e+00 : f32
    %283 = vector.broadcast %cst_141 : f32 to vector<1x128xf32>
    %284 = arith.subf %283, %279 : vector<1x128xf32>
    %285 = vector.broadcast %284 : vector<1x128xf32> to vector<32x128xf32>
    %286 = arith.mulf %278, %285 : vector<32x128xf32>
    %287 = arith.addf %282, %286 : vector<32x128xf32>
    %c0_142 = arith.constant 0 : index
    %c0_143 = arith.constant 0 : index
    %288 = vector.load %arg36[%c0_142, %c0_143] : memref<1x128xf32, #tpu.memory_space<vmem>>, vector<1x128xf32>
    %289 = vector.broadcast %288 : vector<1x128xf32> to vector<32x128xf32>
    %290 = arith.mulf %287, %289 : vector<32x128xf32>
    %c126_i32_144 = arith.constant 126 : i32
    %291 = tpu.dynamic_rotate %290 by %c126_i32_144 dim 1 : vector<32x128xf32>, i32 -> vector<32x128xf32>
    %cst_145 = arith.constant 1.000000e+00 : f32
    %292 = vector.broadcast %cst_145 : f32 to vector<1x128xf32>
    %293 = arith.subf %292, %288 : vector<1x128xf32>
    %294 = vector.broadcast %293 : vector<1x128xf32> to vector<32x128xf32>
    %295 = arith.mulf %287, %294 : vector<32x128xf32>
    %296 = arith.addf %291, %295 : vector<32x128xf32>
    %c0_146 = arith.constant 0 : index
    %c0_147 = arith.constant 0 : index
    %297 = vector.load %arg37[%c0_146, %c0_147] : memref<1x128xf32, #tpu.memory_space<vmem>>, vector<1x128xf32>
    %298 = vector.broadcast %297 : vector<1x128xf32> to vector<32x128xf32>
    %299 = arith.mulf %296, %298 : vector<32x128xf32>
    %c114_i32 = arith.constant 114 : i32
    %300 = tpu.dynamic_rotate %299 by %c114_i32 dim 1 : vector<32x128xf32>, i32 -> vector<32x128xf32>
    %cst_148 = arith.constant 1.000000e+00 : f32
    %301 = vector.broadcast %cst_148 : f32 to vector<1x128xf32>
    %302 = arith.subf %301, %297 : vector<1x128xf32>
    %303 = vector.broadcast %302 : vector<1x128xf32> to vector<32x128xf32>
    %304 = arith.mulf %296, %303 : vector<32x128xf32>
    %305 = arith.addf %300, %304 : vector<32x128xf32>
    %c0_149 = arith.constant 0 : index
    %c0_150 = arith.constant 0 : index
    %306 = vector.load %arg38[%c0_149, %c0_150] : memref<1x128xf32, #tpu.memory_space<vmem>>, vector<1x128xf32>
    %307 = vector.broadcast %306 : vector<1x128xf32> to vector<32x128xf32>
    %308 = arith.mulf %305, %307 : vector<32x128xf32>
    %c100_i32 = arith.constant 100 : i32
    %309 = tpu.dynamic_rotate %308 by %c100_i32 dim 1 : vector<32x128xf32>, i32 -> vector<32x128xf32>
    %cst_151 = arith.constant 1.000000e+00 : f32
    %310 = vector.broadcast %cst_151 : f32 to vector<1x128xf32>
    %311 = arith.subf %310, %306 : vector<1x128xf32>
    %312 = vector.broadcast %311 : vector<1x128xf32> to vector<32x128xf32>
    %313 = arith.mulf %305, %312 : vector<32x128xf32>
    %314 = arith.addf %309, %313 : vector<32x128xf32>
    %c7_i32 = arith.constant 7 : i32
    %315 = tpu.dynamic_rotate %314 by %c7_i32 dim 1 : vector<32x128xf32>, i32 -> vector<32x128xf32>
    %c0_152 = arith.constant 0 : index
    %c0_153 = arith.constant 0 : index
    %316 = vector.load %arg40[%c0_152, %c0_153] : memref<32x288xbf16, #tpu.memory_space<vmem>>, vector<32x288xbf16>
    %c0_154 = arith.constant 0 : index
    %c0_155 = arith.constant 0 : index
    %317 = vector.load %arg41[%c0_154, %c0_155] : memref<32x1xf32, #tpu.memory_space<vmem>>, vector<32x1xf32>
    %c127_i32_156 = arith.constant 127 : i32
    %318 = tpu.dynamic_rotate %315 by %c127_i32_156 dim 1 : vector<32x128xf32>, i32 -> vector<32x128xf32>
    %c126_i32_157 = arith.constant 126 : i32
    %319 = tpu.dynamic_rotate %315 by %c126_i32_157 dim 1 : vector<32x128xf32>, i32 -> vector<32x128xf32>
    %c122_i32 = arith.constant 122 : i32
    %320 = tpu.dynamic_rotate %315 by %c122_i32 dim 1 : vector<32x128xf32>, i32 -> vector<32x128xf32>
    %c121_i32 = arith.constant 121 : i32
    %321 = tpu.dynamic_rotate %315 by %c121_i32 dim 1 : vector<32x128xf32>, i32 -> vector<32x128xf32>
    %c120_i32 = arith.constant 120 : i32
    %322 = tpu.dynamic_rotate %315 by %c120_i32 dim 1 : vector<32x128xf32>, i32 -> vector<32x128xf32>
    %c116_i32_158 = arith.constant 116 : i32
    %323 = tpu.dynamic_rotate %315 by %c116_i32_158 dim 1 : vector<32x128xf32>, i32 -> vector<32x128xf32>
    %c115_i32 = arith.constant 115 : i32
    %324 = tpu.dynamic_rotate %315 by %c115_i32 dim 1 : vector<32x128xf32>, i32 -> vector<32x128xf32>
    %c114_i32_159 = arith.constant 114 : i32
    %325 = tpu.dynamic_rotate %315 by %c114_i32_159 dim 1 : vector<32x128xf32>, i32 -> vector<32x128xf32>
    %326 = tpu.concatenate %315, %318, %319, %320, %321, %322, %323, %324, %325 in 0 : vector<32x128xf32>, vector<32x128xf32>, vector<32x128xf32>, vector<32x128xf32>, vector<32x128xf32>, vector<32x128xf32>, vector<32x128xf32>, vector<32x128xf32>, vector<32x128xf32> -> vector<288x128xf32>
    %327 = arith.truncf %326 : vector<288x128xf32> to vector<288x128xbf16>
    %cst_160 = arith.constant dense<0.000000e+00> : vector<32x128xf32>
    %328 = tpu.matmul %316, %327, %cst_160 {dimension_numbers = #tpu.dot_dimension_numbers<[1], [0], [0], [1], [0, 0, 1, 1], [], []>} : vector<32x288xbf16>, vector<288x128xbf16>, vector<32x128xf32> -> vector<32x128xf32>
    %329 = vector.broadcast %317 : vector<32x1xf32> to vector<32x128xf32>
    %330 = arith.addf %328, %329 : vector<32x128xf32>
    %cst_161 = arith.constant 0.000000e+00 : f32
    %331 = vector.broadcast %cst_161 : f32 to vector<32x128xf32>
    %332 = arith.maximumf %330, %331 : vector<32x128xf32>
    %c0_162 = arith.constant 0 : index
    %c0_163 = arith.constant 0 : index
    %333 = vector.load %arg42[%c0_162, %c0_163] : memref<1x128xf32, #tpu.memory_space<vmem>>, vector<1x128xf32>
    %334 = vector.broadcast %333 : vector<1x128xf32> to vector<32x128xf32>
    %335 = arith.mulf %332, %334 : vector<32x128xf32>
    %c7_i32_164 = arith.constant 7 : i32
    %336 = tpu.dynamic_rotate %335 by %c7_i32_164 dim 1 : vector<32x128xf32>, i32 -> vector<32x128xf32>
    %337 = arith.addf %315, %336 : vector<32x128xf32>
    %c0_165 = arith.constant 0 : index
    %c0_166 = arith.constant 0 : index
    %338 = vector.load %arg43[%c0_165, %c0_166] : memref<32x288xbf16, #tpu.memory_space<vmem>>, vector<32x288xbf16>
    %c0_167 = arith.constant 0 : index
    %c0_168 = arith.constant 0 : index
    %339 = vector.load %arg44[%c0_167, %c0_168] : memref<32x1xf32, #tpu.memory_space<vmem>>, vector<32x1xf32>
    %c127_i32_169 = arith.constant 127 : i32
    %340 = tpu.dynamic_rotate %337 by %c127_i32_169 dim 1 : vector<32x128xf32>, i32 -> vector<32x128xf32>
    %c126_i32_170 = arith.constant 126 : i32
    %341 = tpu.dynamic_rotate %337 by %c126_i32_170 dim 1 : vector<32x128xf32>, i32 -> vector<32x128xf32>
    %c122_i32_171 = arith.constant 122 : i32
    %342 = tpu.dynamic_rotate %337 by %c122_i32_171 dim 1 : vector<32x128xf32>, i32 -> vector<32x128xf32>
    %c121_i32_172 = arith.constant 121 : i32
    %343 = tpu.dynamic_rotate %337 by %c121_i32_172 dim 1 : vector<32x128xf32>, i32 -> vector<32x128xf32>
    %c120_i32_173 = arith.constant 120 : i32
    %344 = tpu.dynamic_rotate %337 by %c120_i32_173 dim 1 : vector<32x128xf32>, i32 -> vector<32x128xf32>
    %c116_i32_174 = arith.constant 116 : i32
    %345 = tpu.dynamic_rotate %337 by %c116_i32_174 dim 1 : vector<32x128xf32>, i32 -> vector<32x128xf32>
    %c115_i32_175 = arith.constant 115 : i32
    %346 = tpu.dynamic_rotate %337 by %c115_i32_175 dim 1 : vector<32x128xf32>, i32 -> vector<32x128xf32>
    %c114_i32_176 = arith.constant 114 : i32
    %347 = tpu.dynamic_rotate %337 by %c114_i32_176 dim 1 : vector<32x128xf32>, i32 -> vector<32x128xf32>
    %348 = tpu.concatenate %337, %340, %341, %342, %343, %344, %345, %346, %347 in 0 : vector<32x128xf32>, vector<32x128xf32>, vector<32x128xf32>, vector<32x128xf32>, vector<32x128xf32>, vector<32x128xf32>, vector<32x128xf32>, vector<32x128xf32>, vector<32x128xf32> -> vector<288x128xf32>
    %349 = arith.truncf %348 : vector<288x128xf32> to vector<288x128xbf16>
    %cst_177 = arith.constant dense<0.000000e+00> : vector<32x128xf32>
    %350 = tpu.matmul %338, %349, %cst_177 {dimension_numbers = #tpu.dot_dimension_numbers<[1], [0], [0], [1], [0, 0, 1, 1], [], []>} : vector<32x288xbf16>, vector<288x128xbf16>, vector<32x128xf32> -> vector<32x128xf32>
    %351 = vector.broadcast %339 : vector<32x1xf32> to vector<32x128xf32>
    %352 = arith.addf %350, %351 : vector<32x128xf32>
    %cst_178 = arith.constant 0.000000e+00 : f32
    %353 = vector.broadcast %cst_178 : f32 to vector<32x128xf32>
    %354 = arith.maximumf %352, %353 : vector<32x128xf32>
    %c0_179 = arith.constant 0 : index
    %c0_180 = arith.constant 0 : index
    %355 = vector.load %arg47[%c0_179, %c0_180] : memref<1x128xf32, #tpu.memory_space<vmem>>, vector<1x128xf32>
    %356 = vector.broadcast %355 : vector<1x128xf32> to vector<32x128xf32>
    %357 = arith.mulf %354, %356 : vector<32x128xf32>
    %c0_181 = arith.constant 0 : index
    %c0_182 = arith.constant 0 : index
    %358 = vector.load %arg45[%c0_181, %c0_182] : memref<1x128xf32, #tpu.memory_space<vmem>>, vector<1x128xf32>
    %359 = vector.broadcast %358 : vector<1x128xf32> to vector<32x128xf32>
    %360 = arith.mulf %357, %359 : vector<32x128xf32>
    %c127_i32_183 = arith.constant 127 : i32
    %361 = tpu.dynamic_rotate %360 by %c127_i32_183 dim 1 : vector<32x128xf32>, i32 -> vector<32x128xf32>
    %cst_184 = arith.constant 1.000000e+00 : f32
    %362 = vector.broadcast %cst_184 : f32 to vector<1x128xf32>
    %363 = arith.subf %362, %358 : vector<1x128xf32>
    %364 = vector.broadcast %363 : vector<1x128xf32> to vector<32x128xf32>
    %365 = arith.mulf %357, %364 : vector<32x128xf32>
    %366 = arith.addf %361, %365 : vector<32x128xf32>
    %c0_185 = arith.constant 0 : index
    %c0_186 = arith.constant 0 : index
    %367 = vector.load %arg46[%c0_185, %c0_186] : memref<1x128xf32, #tpu.memory_space<vmem>>, vector<1x128xf32>
    %368 = vector.broadcast %367 : vector<1x128xf32> to vector<32x128xf32>
    %369 = arith.mulf %366, %368 : vector<32x128xf32>
    %c120_i32_187 = arith.constant 120 : i32
    %370 = tpu.dynamic_rotate %369 by %c120_i32_187 dim 1 : vector<32x128xf32>, i32 -> vector<32x128xf32>
    %cst_188 = arith.constant 1.000000e+00 : f32
    %371 = vector.broadcast %cst_188 : f32 to vector<1x128xf32>
    %372 = arith.subf %371, %367 : vector<1x128xf32>
    %373 = vector.broadcast %372 : vector<1x128xf32> to vector<32x128xf32>
    %374 = arith.mulf %366, %373 : vector<32x128xf32>
    %375 = arith.addf %370, %374 : vector<32x128xf32>
    %c5_i32 = arith.constant 5 : i32
    %376 = tpu.dynamic_rotate %375 by %c5_i32 dim 1 : vector<32x128xf32>, i32 -> vector<32x128xf32>
    %c0_189 = arith.constant 0 : index
    %c0_190 = arith.constant 0 : index
    %377 = vector.load %arg48[%c0_189, %c0_190] : memref<32x288xbf16, #tpu.memory_space<vmem>>, vector<32x288xbf16>
    %c0_191 = arith.constant 0 : index
    %c0_192 = arith.constant 0 : index
    %378 = vector.load %arg49[%c0_191, %c0_192] : memref<32x1xf32, #tpu.memory_space<vmem>>, vector<32x1xf32>
    %c127_i32_193 = arith.constant 127 : i32
    %379 = tpu.dynamic_rotate %376 by %c127_i32_193 dim 1 : vector<32x128xf32>, i32 -> vector<32x128xf32>
    %c126_i32_194 = arith.constant 126 : i32
    %380 = tpu.dynamic_rotate %376 by %c126_i32_194 dim 1 : vector<32x128xf32>, i32 -> vector<32x128xf32>
    %c124_i32 = arith.constant 124 : i32
    %381 = tpu.dynamic_rotate %376 by %c124_i32 dim 1 : vector<32x128xf32>, i32 -> vector<32x128xf32>
    %c123_i32 = arith.constant 123 : i32
    %382 = tpu.dynamic_rotate %376 by %c123_i32 dim 1 : vector<32x128xf32>, i32 -> vector<32x128xf32>
    %c122_i32_195 = arith.constant 122 : i32
    %383 = tpu.dynamic_rotate %376 by %c122_i32_195 dim 1 : vector<32x128xf32>, i32 -> vector<32x128xf32>
    %c120_i32_196 = arith.constant 120 : i32
    %384 = tpu.dynamic_rotate %376 by %c120_i32_196 dim 1 : vector<32x128xf32>, i32 -> vector<32x128xf32>
    %c119_i32 = arith.constant 119 : i32
    %385 = tpu.dynamic_rotate %376 by %c119_i32 dim 1 : vector<32x128xf32>, i32 -> vector<32x128xf32>
    %c118_i32_197 = arith.constant 118 : i32
    %386 = tpu.dynamic_rotate %376 by %c118_i32_197 dim 1 : vector<32x128xf32>, i32 -> vector<32x128xf32>
    %387 = tpu.concatenate %376, %379, %380, %381, %382, %383, %384, %385, %386 in 0 : vector<32x128xf32>, vector<32x128xf32>, vector<32x128xf32>, vector<32x128xf32>, vector<32x128xf32>, vector<32x128xf32>, vector<32x128xf32>, vector<32x128xf32>, vector<32x128xf32> -> vector<288x128xf32>
    %388 = arith.truncf %387 : vector<288x128xf32> to vector<288x128xbf16>
    %cst_198 = arith.constant dense<0.000000e+00> : vector<32x128xf32>
    %389 = tpu.matmul %377, %388, %cst_198 {dimension_numbers = #tpu.dot_dimension_numbers<[1], [0], [0], [1], [0, 0, 1, 1], [], []>} : vector<32x288xbf16>, vector<288x128xbf16>, vector<32x128xf32> -> vector<32x128xf32>
    %390 = vector.broadcast %378 : vector<32x1xf32> to vector<32x128xf32>
    %391 = arith.addf %389, %390 : vector<32x128xf32>
    %cst_199 = arith.constant 0.000000e+00 : f32
    %392 = vector.broadcast %cst_199 : f32 to vector<32x128xf32>
    %393 = arith.maximumf %391, %392 : vector<32x128xf32>
    %c0_200 = arith.constant 0 : index
    %c0_201 = arith.constant 0 : index
    %394 = vector.load %arg50[%c0_200, %c0_201] : memref<1x128xf32, #tpu.memory_space<vmem>>, vector<1x128xf32>
    %395 = vector.broadcast %394 : vector<1x128xf32> to vector<32x128xf32>
    %396 = arith.mulf %393, %395 : vector<32x128xf32>
    %c5_i32_202 = arith.constant 5 : i32
    %397 = tpu.dynamic_rotate %396 by %c5_i32_202 dim 1 : vector<32x128xf32>, i32 -> vector<32x128xf32>
    %398 = arith.addf %376, %397 : vector<32x128xf32>
    %c0_203 = arith.constant 0 : index
    %c0_204 = arith.constant 0 : index
    %399 = vector.load %arg51[%c0_203, %c0_204] : memref<32x288xbf16, #tpu.memory_space<vmem>>, vector<32x288xbf16>
    %c0_205 = arith.constant 0 : index
    %c0_206 = arith.constant 0 : index
    %400 = vector.load %arg52[%c0_205, %c0_206] : memref<32x1xf32, #tpu.memory_space<vmem>>, vector<32x1xf32>
    %c127_i32_207 = arith.constant 127 : i32
    %401 = tpu.dynamic_rotate %398 by %c127_i32_207 dim 1 : vector<32x128xf32>, i32 -> vector<32x128xf32>
    %c126_i32_208 = arith.constant 126 : i32
    %402 = tpu.dynamic_rotate %398 by %c126_i32_208 dim 1 : vector<32x128xf32>, i32 -> vector<32x128xf32>
    %c124_i32_209 = arith.constant 124 : i32
    %403 = tpu.dynamic_rotate %398 by %c124_i32_209 dim 1 : vector<32x128xf32>, i32 -> vector<32x128xf32>
    %c123_i32_210 = arith.constant 123 : i32
    %404 = tpu.dynamic_rotate %398 by %c123_i32_210 dim 1 : vector<32x128xf32>, i32 -> vector<32x128xf32>
    %c122_i32_211 = arith.constant 122 : i32
    %405 = tpu.dynamic_rotate %398 by %c122_i32_211 dim 1 : vector<32x128xf32>, i32 -> vector<32x128xf32>
    %c120_i32_212 = arith.constant 120 : i32
    %406 = tpu.dynamic_rotate %398 by %c120_i32_212 dim 1 : vector<32x128xf32>, i32 -> vector<32x128xf32>
    %c119_i32_213 = arith.constant 119 : i32
    %407 = tpu.dynamic_rotate %398 by %c119_i32_213 dim 1 : vector<32x128xf32>, i32 -> vector<32x128xf32>
    %c118_i32_214 = arith.constant 118 : i32
    %408 = tpu.dynamic_rotate %398 by %c118_i32_214 dim 1 : vector<32x128xf32>, i32 -> vector<32x128xf32>
    %409 = tpu.concatenate %398, %401, %402, %403, %404, %405, %406, %407, %408 in 0 : vector<32x128xf32>, vector<32x128xf32>, vector<32x128xf32>, vector<32x128xf32>, vector<32x128xf32>, vector<32x128xf32>, vector<32x128xf32>, vector<32x128xf32>, vector<32x128xf32> -> vector<288x128xf32>
    %410 = arith.truncf %409 : vector<288x128xf32> to vector<288x128xbf16>
    %cst_215 = arith.constant dense<0.000000e+00> : vector<32x128xf32>
    %411 = tpu.matmul %399, %410, %cst_215 {dimension_numbers = #tpu.dot_dimension_numbers<[1], [0], [0], [1], [0, 0, 1, 1], [], []>} : vector<32x288xbf16>, vector<288x128xbf16>, vector<32x128xf32> -> vector<32x128xf32>
    %412 = vector.broadcast %400 : vector<32x1xf32> to vector<32x128xf32>
    %413 = arith.addf %411, %412 : vector<32x128xf32>
    %cst_216 = arith.constant 0.000000e+00 : f32
    %414 = vector.broadcast %cst_216 : f32 to vector<32x128xf32>
    %415 = arith.maximumf %413, %414 : vector<32x128xf32>
    %c0_217 = arith.constant 0 : index
    %c0_218 = arith.constant 0 : index
    %416 = vector.load %arg53[%c0_217, %c0_218] : memref<1x128xf32, #tpu.memory_space<vmem>>, vector<1x128xf32>
    %417 = vector.broadcast %416 : vector<1x128xf32> to vector<32x128xf32>
    %418 = arith.mulf %415, %417 : vector<32x128xf32>
    %c4_i32 = arith.constant 4 : i32
    %419 = tpu.dynamic_rotate %418 by %c4_i32 dim 1 : vector<32x128xf32>, i32 -> vector<32x128xf32>
    %c0_219 = arith.constant 0 : index
    %c0_220 = arith.constant 0 : index
    %420 = vector.load %arg54[%c0_219, %c0_220] : memref<32x32xbf16, #tpu.memory_space<vmem>>, vector<32x32xbf16>
    %c0_221 = arith.constant 0 : index
    %c0_222 = arith.constant 0 : index
    %421 = vector.load %arg55[%c0_221, %c0_222] : memref<32x1xf32, #tpu.memory_space<vmem>>, vector<32x1xf32>
    %422 = arith.truncf %419 : vector<32x128xf32> to vector<32x128xbf16>
    %cst_223 = arith.constant dense<0.000000e+00> : vector<32x128xf32>
    %423 = tpu.matmul %420, %422, %cst_223 {dimension_numbers = #tpu.dot_dimension_numbers<[1], [0], [0], [1], [0, 0, 1, 1], [], []>} : vector<32x32xbf16>, vector<32x128xbf16>, vector<32x128xf32> -> vector<32x128xf32>
    %424 = vector.broadcast %421 : vector<32x1xf32> to vector<32x128xf32>
    %425 = arith.addf %423, %424 : vector<32x128xf32>
    %cst_224 = arith.constant 0.000000e+00 : f32
    %426 = vector.broadcast %cst_224 : f32 to vector<32x128xf32>
    %427 = arith.maximumf %425, %426 : vector<32x128xf32>
    %c0_225 = arith.constant 0 : index
    %c0_226 = arith.constant 0 : index
    %428 = vector.load %arg56[%c0_225, %c0_226] : memref<1x128xf32, #tpu.memory_space<vmem>>, vector<1x128xf32>
    %429 = vector.broadcast %428 : vector<1x128xf32> to vector<32x128xf32>
    %430 = arith.mulf %427, %429 : vector<32x128xf32>
    %431 = arith.addf %419, %430 : vector<32x128xf32>
    %c0_227 = arith.constant 0 : index
    %c0_228 = arith.constant 0 : index
    %432 = vector.load %arg57[%c0_227, %c0_228] : memref<32x32xbf16, #tpu.memory_space<vmem>>, vector<32x32xbf16>
    %c0_229 = arith.constant 0 : index
    %c0_230 = arith.constant 0 : index
    %433 = vector.load %arg58[%c0_229, %c0_230] : memref<32x1xf32, #tpu.memory_space<vmem>>, vector<32x1xf32>
    %434 = arith.truncf %431 : vector<32x128xf32> to vector<32x128xbf16>
    %cst_231 = arith.constant dense<0.000000e+00> : vector<32x128xf32>
    %435 = tpu.matmul %432, %434, %cst_231 {dimension_numbers = #tpu.dot_dimension_numbers<[1], [0], [0], [1], [0, 0, 1, 1], [], []>} : vector<32x32xbf16>, vector<32x128xbf16>, vector<32x128xf32> -> vector<32x128xf32>
    %436 = vector.broadcast %433 : vector<32x1xf32> to vector<32x128xf32>
    %437 = arith.addf %435, %436 : vector<32x128xf32>
    %cst_232 = arith.constant 0.000000e+00 : f32
    %438 = vector.broadcast %cst_232 : f32 to vector<32x128xf32>
    %439 = arith.maximumf %437, %438 : vector<32x128xf32>
    %c0_233 = arith.constant 0 : index
    %c0_234 = arith.constant 0 : index
    %440 = vector.load %arg56[%c0_233, %c0_234] : memref<1x128xf32, #tpu.memory_space<vmem>>, vector<1x128xf32>
    %441 = vector.broadcast %440 : vector<1x128xf32> to vector<32x128xf32>
    %442 = arith.mulf %439, %441 : vector<32x128xf32>
    %c0_235 = arith.constant 0 : index
    %c0_236 = arith.constant 0 : index
    %443 = vector.load %arg59[%c0_235, %c0_236] : memref<32x32xbf16, #tpu.memory_space<vmem>>, vector<32x32xbf16>
    %c0_237 = arith.constant 0 : index
    %c0_238 = arith.constant 0 : index
    %444 = vector.load %arg60[%c0_237, %c0_238] : memref<32x1xf32, #tpu.memory_space<vmem>>, vector<32x1xf32>
    %445 = arith.truncf %442 : vector<32x128xf32> to vector<32x128xbf16>
    %cst_239 = arith.constant dense<0.000000e+00> : vector<32x128xf32>
    %446 = tpu.matmul %443, %445, %cst_239 {dimension_numbers = #tpu.dot_dimension_numbers<[1], [0], [0], [1], [0, 0, 1, 1], [], []>} : vector<32x32xbf16>, vector<32x128xbf16>, vector<32x128xf32> -> vector<32x128xf32>
    %447 = vector.broadcast %444 : vector<32x1xf32> to vector<32x128xf32>
    %448 = arith.addf %446, %447 : vector<32x128xf32>
    %cst_240 = arith.constant 0.000000e+00 : f32
    %449 = vector.broadcast %cst_240 : f32 to vector<32x128xf32>
    %450 = arith.maximumf %448, %449 : vector<32x128xf32>
    %c0_241 = arith.constant 0 : index
    %c0_242 = arith.constant 0 : index
    %451 = vector.load %arg56[%c0_241, %c0_242] : memref<1x128xf32, #tpu.memory_space<vmem>>, vector<1x128xf32>
    %452 = vector.broadcast %451 : vector<1x128xf32> to vector<32x128xf32>
    %453 = arith.mulf %450, %452 : vector<32x128xf32>
    %454 = arith.addf %442, %453 : vector<32x128xf32>
    %c0_243 = arith.constant 0 : index
    %c0_244 = arith.constant 0 : index
    %455 = vector.load %arg61[%c0_243, %c0_244] : memref<32x32xbf16, #tpu.memory_space<vmem>>, vector<32x32xbf16>
    %c0_245 = arith.constant 0 : index
    %c0_246 = arith.constant 0 : index
    %456 = vector.load %arg62[%c0_245, %c0_246] : memref<32x1xf32, #tpu.memory_space<vmem>>, vector<32x1xf32>
    %457 = arith.truncf %454 : vector<32x128xf32> to vector<32x128xbf16>
    %cst_247 = arith.constant dense<0.000000e+00> : vector<32x128xf32>
    %458 = tpu.matmul %455, %457, %cst_247 {dimension_numbers = #tpu.dot_dimension_numbers<[1], [0], [0], [1], [0, 0, 1, 1], [], []>} : vector<32x32xbf16>, vector<32x128xbf16>, vector<32x128xf32> -> vector<32x128xf32>
    %459 = vector.broadcast %456 : vector<32x1xf32> to vector<32x128xf32>
    %460 = arith.addf %458, %459 : vector<32x128xf32>
    %cst_248 = arith.constant 0.000000e+00 : f32
    %461 = vector.broadcast %cst_248 : f32 to vector<32x128xf32>
    %462 = arith.maximumf %460, %461 : vector<32x128xf32>
    %c0_249 = arith.constant 0 : index
    %c0_250 = arith.constant 0 : index
    %463 = vector.load %arg56[%c0_249, %c0_250] : memref<1x128xf32, #tpu.memory_space<vmem>>, vector<1x128xf32>
    %464 = vector.broadcast %463 : vector<1x128xf32> to vector<32x128xf32>
    %465 = arith.mulf %462, %464 : vector<32x128xf32>
    %c0_251 = arith.constant 0 : index
    %c0_252 = arith.constant 0 : index
    %466 = vector.load %arg63[%c0_251, %c0_252] : memref<32x32xbf16, #tpu.memory_space<vmem>>, vector<32x32xbf16>
    %c0_253 = arith.constant 0 : index
    %c0_254 = arith.constant 0 : index
    %467 = vector.load %arg64[%c0_253, %c0_254] : memref<32x1xf32, #tpu.memory_space<vmem>>, vector<32x1xf32>
    %468 = arith.truncf %465 : vector<32x128xf32> to vector<32x128xbf16>
    %cst_255 = arith.constant dense<0.000000e+00> : vector<32x128xf32>
    %469 = tpu.matmul %466, %468, %cst_255 {dimension_numbers = #tpu.dot_dimension_numbers<[1], [0], [0], [1], [0, 0, 1, 1], [], []>} : vector<32x32xbf16>, vector<32x128xbf16>, vector<32x128xf32> -> vector<32x128xf32>
    %470 = vector.broadcast %467 : vector<32x1xf32> to vector<32x128xf32>
    %471 = arith.addf %469, %470 : vector<32x128xf32>
    %cst_256 = arith.constant 0.000000e+00 : f32
    %472 = vector.broadcast %cst_256 : f32 to vector<32x128xf32>
    %473 = arith.maximumf %471, %472 : vector<32x128xf32>
    %c0_257 = arith.constant 0 : index
    %c0_258 = arith.constant 0 : index
    %474 = vector.load %arg56[%c0_257, %c0_258] : memref<1x128xf32, #tpu.memory_space<vmem>>, vector<1x128xf32>
    %475 = vector.broadcast %474 : vector<1x128xf32> to vector<32x128xf32>
    %476 = arith.mulf %473, %475 : vector<32x128xf32>
    %477 = arith.addf %465, %476 : vector<32x128xf32>
    %c0_259 = arith.constant 0 : index
    %c0_260 = arith.constant 0 : index
    %478 = vector.load %arg65[%c0_259, %c0_260] : memref<32x32xbf16, #tpu.memory_space<vmem>>, vector<32x32xbf16>
    %c0_261 = arith.constant 0 : index
    %c0_262 = arith.constant 0 : index
    %479 = vector.load %arg66[%c0_261, %c0_262] : memref<32x1xf32, #tpu.memory_space<vmem>>, vector<32x1xf32>
    %480 = arith.truncf %477 : vector<32x128xf32> to vector<32x128xbf16>
    %cst_263 = arith.constant dense<0.000000e+00> : vector<32x128xf32>
    %481 = tpu.matmul %478, %480, %cst_263 {dimension_numbers = #tpu.dot_dimension_numbers<[1], [0], [0], [1], [0, 0, 1, 1], [], []>} : vector<32x32xbf16>, vector<32x128xbf16>, vector<32x128xf32> -> vector<32x128xf32>
    %482 = vector.broadcast %479 : vector<32x1xf32> to vector<32x128xf32>
    %483 = arith.addf %481, %482 : vector<32x128xf32>
    %cst_264 = arith.constant 0.000000e+00 : f32
    %484 = vector.broadcast %cst_264 : f32 to vector<32x128xf32>
    %485 = arith.maximumf %483, %484 : vector<32x128xf32>
    %c0_265 = arith.constant 0 : index
    %c0_266 = arith.constant 0 : index
    %c0_267 = arith.constant 0 : index
    %486 = vector.load %arg67[%c0_265, %c0_266, %c0_267] : memref<1x32x128xf32, #tpu.memory_space<vmem>>, vector<1x32x128xf32>
    %487 = vector.shape_cast %486 : vector<1x32x128xf32> to vector<32x128xf32>
    %488 = vector.shape_cast %485 : vector<32x128xf32> to vector<1x32x128xf32>
    tpu.vector_store %arg67[%c0_265, %c0_266, %c0_267], %488 {strides = array<i32>} : memref<1x32x128xf32, #tpu.memory_space<vmem>>, vector<1x32x128xf32>,
    return
  }
  func.func @transform_0(%arg0: i32) -> (i32, i32, i32) {
    %c0_i32 = arith.constant 0 : i32
    %c0_i32_0 = arith.constant 0 : i32
    %c0_i32_1 = arith.constant 0 : i32
    return %arg0, %c0_i32, %c0_i32_0 : i32, i32, i32
  }
  func.func @transform_1(%arg0: i32) -> (i32, i32) {
    %c0_i32 = arith.constant 0 : i32
    %c0_i32_0 = arith.constant 0 : i32
    %c0_i32_1 = arith.constant 0 : i32
    return %c0_i32, %c0_i32_0 : i32, i32
  }
  func.func @transform_2(%arg0: i32) -> (i32, i32) {
    %c0_i32 = arith.constant 0 : i32
    %c0_i32_0 = arith.constant 0 : i32
    %c0_i32_1 = arith.constant 0 : i32
    return %c0_i32, %c0_i32_0 : i32, i32
  }
  func.func @transform_3(%arg0: i32) -> (i32, i32) {
    %c0_i32 = arith.constant 0 : i32
    %c0_i32_0 = arith.constant 0 : i32
    %c0_i32_1 = arith.constant 0 : i32
    return %c0_i32, %c0_i32_0 : i32, i32
  }
  func.func @transform_4(%arg0: i32) -> (i32, i32) {
    %c0_i32 = arith.constant 0 : i32
    %c0_i32_0 = arith.constant 0 : i32
    %c0_i32_1 = arith.constant 0 : i32
    return %c0_i32, %c0_i32_0 : i32, i32
  }
  func.func @transform_5(%arg0: i32) -> (i32, i32) {
    %c0_i32 = arith.constant 0 : i32
    %c0_i32_0 = arith.constant 0 : i32
    %c0_i32_1 = arith.constant 0 : i32
    return %c0_i32, %c0_i32_0 : i32, i32
  }
  func.func @transform_6(%arg0: i32) -> (i32, i32) {
    %c0_i32 = arith.constant 0 : i32
    %c0_i32_0 = arith.constant 0 : i32
    %c0_i32_1 = arith.constant 0 : i32
    return %c0_i32, %c0_i32_0 : i32, i32
  }
  func.func @transform_7(%arg0: i32) -> (i32, i32) {
    %c0_i32 = arith.constant 0 : i32
    %c0_i32_0 = arith.constant 0 : i32
    %c0_i32_1 = arith.constant 0 : i32
    return %c0_i32, %c0_i32_0 : i32, i32
  }
  func.func @transform_8(%arg0: i32) -> (i32, i32) {
    %c0_i32 = arith.constant 0 : i32
    %c0_i32_0 = arith.constant 0 : i32
    %c0_i32_1 = arith.constant 0 : i32
    return %c0_i32, %c0_i32_0 : i32, i32
  }
  func.func @transform_9(%arg0: i32) -> (i32, i32) {
    %c0_i32 = arith.constant 0 : i32
    %c0_i32_0 = arith.constant 0 : i32
    %c0_i32_1 = arith.constant 0 : i32
    return %c0_i32, %c0_i32_0 : i32, i32
  }
  func.func @transform_10(%arg0: i32) -> (i32, i32) {
    %c0_i32 = arith.constant 0 : i32
    %c0_i32_0 = arith.constant 0 : i32
    %c0_i32_1 = arith.constant 0 : i32
    return %c0_i32, %c0_i32_0 : i32, i32
  }
  func.func @transform_11(%arg0: i32) -> (i32, i32) {
    %c0_i32 = arith.constant 0 : i32
    %c0_i32_0 = arith.constant 0 : i32
    %c0_i32_1 = arith.constant 0 : i32
    return %c0_i32, %c0_i32_0 : i32, i32
  }
  func.func @transform_12(%arg0: i32) -> (i32, i32) {
    %c0_i32 = arith.constant 0 : i32
    %c0_i32_0 = arith.constant 0 : i32
    %c0_i32_1 = arith.constant 0 : i32
    return %c0_i32, %c0_i32_0 : i32, i32
  }
  func.func @transform_13(%arg0: i32) -> (i32, i32) {
    %c0_i32 = arith.constant 0 : i32
    %c0_i32_0 = arith.constant 0 : i32
    %c0_i32_1 = arith.constant 0 : i32
    return %c0_i32, %c0_i32_0 : i32, i32
  }
  func.func @transform_14(%arg0: i32) -> (i32, i32) {
    %c0_i32 = arith.constant 0 : i32
    %c0_i32_0 = arith.constant 0 : i32
    %c0_i32_1 = arith.constant 0 : i32
    return %c0_i32, %c0_i32_0 : i32, i32
  }
  func.func @transform_15(%arg0: i32) -> (i32, i32) {
    %c0_i32 = arith.constant 0 : i32
    %c0_i32_0 = arith.constant 0 : i32
    %c0_i32_1 = arith.constant 0 : i32
    return %c0_i32, %c0_i32_0 : i32, i32
  }
  func.func @transform_16(%arg0: i32) -> (i32, i32) {
    %c0_i32 = arith.constant 0 : i32
    %c0_i32_0 = arith.constant 0 : i32
    %c0_i32_1 = arith.constant 0 : i32
    return %c0_i32, %c0_i32_0 : i32, i32
  }
  func.func @transform_17(%arg0: i32) -> (i32, i32) {
    %c0_i32 = arith.constant 0 : i32
    %c0_i32_0 = arith.constant 0 : i32
    %c0_i32_1 = arith.constant 0 : i32
    return %c0_i32, %c0_i32_0 : i32, i32
  }
  func.func @transform_18(%arg0: i32) -> (i32, i32) {
    %c0_i32 = arith.constant 0 : i32
    %c0_i32_0 = arith.constant 0 : i32
    %c0_i32_1 = arith.constant 0 : i32
    return %c0_i32, %c0_i32_0 : i32, i32
  }
  func.func @transform_19(%arg0: i32) -> (i32, i32) {
    %c0_i32 = arith.constant 0 : i32
    %c0_i32_0 = arith.constant 0 : i32
    %c0_i32_1 = arith.constant 0 : i32
    return %c0_i32, %c0_i32_0 : i32, i32
  }
  func.func @transform_20(%arg0: i32) -> (i32, i32) {
    %c0_i32 = arith.constant 0 : i32
    %c0_i32_0 = arith.constant 0 : i32
    %c0_i32_1 = arith.constant 0 : i32
    return %c0_i32, %c0_i32_0 : i32, i32
  }
  func.func @transform_21(%arg0: i32) -> (i32, i32) {
    %c0_i32 = arith.constant 0 : i32
    %c0_i32_0 = arith.constant 0 : i32
    %c0_i32_1 = arith.constant 0 : i32
    return %c0_i32, %c0_i32_0 : i32, i32
  }
  func.func @transform_22(%arg0: i32) -> (i32, i32) {
    %c0_i32 = arith.constant 0 : i32
    %c0_i32_0 = arith.constant 0 : i32
    %c0_i32_1 = arith.constant 0 : i32
    return %c0_i32, %c0_i32_0 : i32, i32
  }
  func.func @transform_23(%arg0: i32) -> (i32, i32) {
    %c0_i32 = arith.constant 0 : i32
    %c0_i32_0 = arith.constant 0 : i32
    %c0_i32_1 = arith.constant 0 : i32
    return %c0_i32, %c0_i32_0 : i32, i32
  }
  func.func @transform_24(%arg0: i32) -> (i32, i32) {
    %c0_i32 = arith.constant 0 : i32
    %c0_i32_0 = arith.constant 0 : i32
    %c0_i32_1 = arith.constant 0 : i32
    return %c0_i32, %c0_i32_0 : i32, i32
  }
  func.func @transform_25(%arg0: i32) -> (i32, i32) {
    %c0_i32 = arith.constant 0 : i32
    %c0_i32_0 = arith.constant 0 : i32
    %c0_i32_1 = arith.constant 0 : i32
    return %c0_i32, %c0_i32_0 : i32, i32
  }
  func.func @transform_26(%arg0: i32) -> (i32, i32) {
    %c0_i32 = arith.constant 0 : i32
    %c0_i32_0 = arith.constant 0 : i32
    %c0_i32_1 = arith.constant 0 : i32
    return %c0_i32, %c0_i32_0 : i32, i32
  }
  func.func @transform_27(%arg0: i32) -> (i32, i32) {
    %c0_i32 = arith.constant 0 : i32
    %c0_i32_0 = arith.constant 0 : i32
    %c0_i32_1 = arith.constant 0 : i32
    return %c0_i32, %c0_i32_0 : i32, i32
  }
  func.func @transform_28(%arg0: i32) -> (i32, i32) {
    %c0_i32 = arith.constant 0 : i32
    %c0_i32_0 = arith.constant 0 : i32
    %c0_i32_1 = arith.constant 0 : i32
    return %c0_i32, %c0_i32_0 : i32, i32
  }
  func.func @transform_29(%arg0: i32) -> (i32, i32) {
    %c0_i32 = arith.constant 0 : i32
    %c0_i32_0 = arith.constant 0 : i32
    %c0_i32_1 = arith.constant 0 : i32
    return %c0_i32, %c0_i32_0 : i32, i32
  }
  func.func @transform_30(%arg0: i32) -> (i32, i32) {
    %c0_i32 = arith.constant 0 : i32
    %c0_i32_0 = arith.constant 0 : i32
    %c0_i32_1 = arith.constant 0 : i32
    return %c0_i32, %c0_i32_0 : i32, i32
  }
  func.func @transform_31(%arg0: i32) -> (i32, i32) {
    %c0_i32 = arith.constant 0 : i32
    %c0_i32_0 = arith.constant 0 : i32
    %c0_i32_1 = arith.constant 0 : i32
    return %c0_i32, %c0_i32_0 : i32, i32
  }
  func.func @transform_32(%arg0: i32) -> (i32, i32) {
    %c0_i32 = arith.constant 0 : i32
    %c0_i32_0 = arith.constant 0 : i32
    %c0_i32_1 = arith.constant 0 : i32
    return %c0_i32, %c0_i32_0 : i32, i32
  }
  func.func @transform_33(%arg0: i32) -> (i32, i32) {
    %c0_i32 = arith.constant 0 : i32
    %c0_i32_0 = arith.constant 0 : i32
    %c0_i32_1 = arith.constant 0 : i32
    return %c0_i32, %c0_i32_0 : i32, i32
  }
  func.func @transform_34(%arg0: i32) -> (i32, i32) {
    %c0_i32 = arith.constant 0 : i32
    %c0_i32_0 = arith.constant 0 : i32
    %c0_i32_1 = arith.constant 0 : i32
    return %c0_i32, %c0_i32_0 : i32, i32
  }
  func.func @transform_35(%arg0: i32) -> (i32, i32) {
    %c0_i32 = arith.constant 0 : i32
    %c0_i32_0 = arith.constant 0 : i32
    %c0_i32_1 = arith.constant 0 : i32
    return %c0_i32, %c0_i32_0 : i32, i32
  }
  func.func @transform_36(%arg0: i32) -> (i32, i32) {
    %c0_i32 = arith.constant 0 : i32
    %c0_i32_0 = arith.constant 0 : i32
    %c0_i32_1 = arith.constant 0 : i32
    return %c0_i32, %c0_i32_0 : i32, i32
  }
  func.func @transform_37(%arg0: i32) -> (i32, i32) {
    %c0_i32 = arith.constant 0 : i32
    %c0_i32_0 = arith.constant 0 : i32
    %c0_i32_1 = arith.constant 0 : i32
    return %c0_i32, %c0_i32_0 : i32, i32
  }
  func.func @transform_38(%arg0: i32) -> (i32, i32) {
    %c0_i32 = arith.constant 0 : i32
    %c0_i32_0 = arith.constant 0 : i32
    %c0_i32_1 = arith.constant 0 : i32
    return %c0_i32, %c0_i32_0 : i32, i32
  }
  func.func @transform_39(%arg0: i32) -> (i32, i32) {
    %c0_i32 = arith.constant 0 : i32
    %c0_i32_0 = arith.constant 0 : i32
    %c0_i32_1 = arith.constant 0 : i32
    return %c0_i32, %c0_i32_0 : i32, i32
  }
  func.func @transform_40(%arg0: i32) -> (i32, i32) {
    %c0_i32 = arith.constant 0 : i32
    %c0_i32_0 = arith.constant 0 : i32
    %c0_i32_1 = arith.constant 0 : i32
    return %c0_i32, %c0_i32_0 : i32, i32
  }
  func.func @transform_41(%arg0: i32) -> (i32, i32) {
    %c0_i32 = arith.constant 0 : i32
    %c0_i32_0 = arith.constant 0 : i32
    %c0_i32_1 = arith.constant 0 : i32
    return %c0_i32, %c0_i32_0 : i32, i32
  }
  func.func @transform_42(%arg0: i32) -> (i32, i32) {
    %c0_i32 = arith.constant 0 : i32
    %c0_i32_0 = arith.constant 0 : i32
    %c0_i32_1 = arith.constant 0 : i32
    return %c0_i32, %c0_i32_0 : i32, i32
  }
  func.func @transform_43(%arg0: i32) -> (i32, i32) {
    %c0_i32 = arith.constant 0 : i32
    %c0_i32_0 = arith.constant 0 : i32
    %c0_i32_1 = arith.constant 0 : i32
    return %c0_i32, %c0_i32_0 : i32, i32
  }
  func.func @transform_44(%arg0: i32) -> (i32, i32) {
    %c0_i32 = arith.constant 0 : i32
    %c0_i32_0 = arith.constant 0 : i32
    %c0_i32_1 = arith.constant 0 : i32
    return %c0_i32, %c0_i32_0 : i32, i32
  }
  func.func @transform_45(%arg0: i32) -> (i32, i32) {
    %c0_i32 = arith.constant 0 : i32
    %c0_i32_0 = arith.constant 0 : i32
    %c0_i32_1 = arith.constant 0 : i32
    return %c0_i32, %c0_i32_0 : i32, i32
  }
  func.func @transform_46(%arg0: i32) -> (i32, i32) {
    %c0_i32 = arith.constant 0 : i32
    %c0_i32_0 = arith.constant 0 : i32
    %c0_i32_1 = arith.constant 0 : i32
    return %c0_i32, %c0_i32_0 : i32, i32
  }
  func.func @transform_47(%arg0: i32) -> (i32, i32) {
    %c0_i32 = arith.constant 0 : i32
    %c0_i32_0 = arith.constant 0 : i32
    %c0_i32_1 = arith.constant 0 : i32
    return %c0_i32, %c0_i32_0 : i32, i32
  }
  func.func @transform_48(%arg0: i32) -> (i32, i32) {
    %c0_i32 = arith.constant 0 : i32
    %c0_i32_0 = arith.constant 0 : i32
    %c0_i32_1 = arith.constant 0 : i32
    return %c0_i32, %c0_i32_0 : i32, i32
  }
  func.func @transform_49(%arg0: i32) -> (i32, i32) {
    %c0_i32 = arith.constant 0 : i32
    %c0_i32_0 = arith.constant 0 : i32
    %c0_i32_1 = arith.constant 0 : i32
    return %c0_i32, %c0_i32_0 : i32, i32
  }
  func.func @transform_50(%arg0: i32) -> (i32, i32) {
    %c0_i32 = arith.constant 0 : i32
    %c0_i32_0 = arith.constant 0 : i32
    %c0_i32_1 = arith.constant 0 : i32
    return %c0_i32, %c0_i32_0 : i32, i32
  }
  func.func @transform_51(%arg0: i32) -> (i32, i32) {
    %c0_i32 = arith.constant 0 : i32
    %c0_i32_0 = arith.constant 0 : i32
    %c0_i32_1 = arith.constant 0 : i32
    return %c0_i32, %c0_i32_0 : i32, i32
  }
  func.func @transform_52(%arg0: i32) -> (i32, i32) {
    %c0_i32 = arith.constant 0 : i32
    %c0_i32_0 = arith.constant 0 : i32
    %c0_i32_1 = arith.constant 0 : i32
    return %c0_i32, %c0_i32_0 : i32, i32
  }
  func.func @transform_53(%arg0: i32) -> (i32, i32) {
    %c0_i32 = arith.constant 0 : i32
    %c0_i32_0 = arith.constant 0 : i32
    %c0_i32_1 = arith.constant 0 : i32
    return %c0_i32, %c0_i32_0 : i32, i32
  }
  func.func @transform_54(%arg0: i32) -> (i32, i32) {
    %c0_i32 = arith.constant 0 : i32
    %c0_i32_0 = arith.constant 0 : i32
    %c0_i32_1 = arith.constant 0 : i32
    return %c0_i32, %c0_i32_0 : i32, i32
  }
  func.func @transform_55(%arg0: i32) -> (i32, i32) {
    %c0_i32 = arith.constant 0 : i32
    %c0_i32_0 = arith.constant 0 : i32
    %c0_i32_1 = arith.constant 0 : i32
    return %c0_i32, %c0_i32_0 : i32, i32
  }
  func.func @transform_56(%arg0: i32) -> (i32, i32) {
    %c0_i32 = arith.constant 0 : i32
    %c0_i32_0 = arith.constant 0 : i32
    %c0_i32_1 = arith.constant 0 : i32
    return %c0_i32, %c0_i32_0 : i32, i32
  }
  func.func @transform_57(%arg0: i32) -> (i32, i32) {
    %c0_i32 = arith.constant 0 : i32
    %c0_i32_0 = arith.constant 0 : i32
    %c0_i32_1 = arith.constant 0 : i32
    return %c0_i32, %c0_i32_0 : i32, i32
  }
  func.func @transform_58(%arg0: i32) -> (i32, i32) {
    %c0_i32 = arith.constant 0 : i32
    %c0_i32_0 = arith.constant 0 : i32
    %c0_i32_1 = arith.constant 0 : i32
    return %c0_i32, %c0_i32_0 : i32, i32
  }
  func.func @transform_59(%arg0: i32) -> (i32, i32) {
    %c0_i32 = arith.constant 0 : i32
    %c0_i32_0 = arith.constant 0 : i32
    %c0_i32_1 = arith.constant 0 : i32
    return %c0_i32, %c0_i32_0 : i32, i32
  }
  func.func @transform_60(%arg0: i32) -> (i32, i32) {
    %c0_i32 = arith.constant 0 : i32
    %c0_i32_0 = arith.constant 0 : i32
    %c0_i32_1 = arith.constant 0 : i32
    return %c0_i32, %c0_i32_0 : i32, i32
  }
  func.func @transform_61(%arg0: i32) -> (i32, i32) {
    %c0_i32 = arith.constant 0 : i32
    %c0_i32_0 = arith.constant 0 : i32
    %c0_i32_1 = arith.constant 0 : i32
    return %c0_i32, %c0_i32_0 : i32, i32
  }
  func.func @transform_62(%arg0: i32) -> (i32, i32) {
    %c0_i32 = arith.constant 0 : i32
    %c0_i32_0 = arith.constant 0 : i32
    %c0_i32_1 = arith.constant 0 : i32
    return %c0_i32, %c0_i32_0 : i32, i32
  }
  func.func @transform_63(%arg0: i32) -> (i32, i32) {
    %c0_i32 = arith.constant 0 : i32
    %c0_i32_0 = arith.constant 0 : i32
    %c0_i32_1 = arith.constant 0 : i32
    return %c0_i32, %c0_i32_0 : i32, i32
  }
  func.func @transform_64(%arg0: i32) -> (i32, i32) {
    %c0_i32 = arith.constant 0 : i32
    %c0_i32_0 = arith.constant 0 : i32
    %c0_i32_1 = arith.constant 0 : i32
    return %c0_i32, %c0_i32_0 : i32, i32
  }
  func.func @transform_65(%arg0: i32) -> (i32, i32) {
    %c0_i32 = arith.constant 0 : i32
    %c0_i32_0 = arith.constant 0 : i32
    %c0_i32_1 = arith.constant 0 : i32
    return %c0_i32, %c0_i32_0 : i32, i32
  }
  func.func @transform_66(%arg0: i32) -> (i32, i32, i32) {
    %c0_i32 = arith.constant 0 : i32
    %c0_i32_0 = arith.constant 0 : i32
    %c0_i32_1 = arith.constant 0 : i32
    return %arg0, %c0_i32, %c0_i32_0 : i32, i32, i32
  }
}

</mosaic_0001>

<bundles_post_ra>
// kernel: donut_forward.1
= control target key start
LH: loop header
LB: loop body
LE: loop exit
PB: predicated region body
PF: predicated region fallthrough
CT: control target
= control target key end

     0   :  { %s11357_s6 = smov 1   ;;  %s11358_s10 = smov 2   ;;  %s16186_s0 = inlined_call_operand.smem [shape: u32[67], index: -1, kind: input, shape index: {}] }
   0x1   :  { %s11472_s5 = sld [smem:[%s16186_s0]]   ;;  %s11359_s14 = smov 3  }
   0x2   :  { %s11477_s9 = sld [smem:[%s16186_s0 + %s11357_s6]]   ;;  %s11360_s18 = smov 4  }
   0x3   :  { %s11482_s13 = sld [smem:[%s16186_s0 + %s11358_s10]]   ;;  %s11361_s22 = smov 5  }
   0x4   :  { %s11487_s17 = sld [smem:[%s16186_s0 + %s11359_s14]]   ;;  %s11362_s26 = smov 6  }
   0x5   :  { %s11492_s21 = sld [smem:[%s16186_s0 + %s11360_s18]]   ;;  %s11363_s30 = smov 7  }
   0x6   :  { %s11497_s25 = sld [smem:[%s16186_s0 + %s11361_s22]]   ;;  %s11364_s4 = smov 8  }
   0x7   :  { %16345 = sst [smem:[#allocation2_spill]] %s11472_s5  ;;  %s11365_s10 = smov 9  }
   0x8   :  { %16346 = sst [smem:[#allocation3_spill]] %s11477_s9  ;;  %s11366_s15 = smov 10  }
   0x9   :  { %s11502_s29 = sld [smem:[%s16186_s0 + %s11362_s26]]   ;;  %s11367_s20 = smov 11  }
   0xa   :  { %s11507_s3 = sld [smem:[%s16186_s0 + %s11363_s30]]   ;;  %s11368_s26 = smov 12  }
   0xb   :  { %s11512_s8 = sld [smem:[%s16186_s0 + %s11364_s4]]   ;;  %s11369_s1 = smov 13  }
   0xc   :  { %s11517_s14 = sld [smem:[%s16186_s0 + %s11365_s10]]   ;;  %s11370_s7 = smov 14  }
   0xd   :  { %s11522_s19 = sld [smem:[%s16186_s0 + %s11366_s15]]   ;;  %s11371_s15 = smov 15  }
   0xe   :  { %s11527_s24 = sld [smem:[%s16186_s0 + %s11367_s20]]   ;;  %s11372_s22 = smov 16  }
   0xf   :  { %s11532_s30 = sld [smem:[%s16186_s0 + %s11368_s26]]   ;;  %s11373_s28 = smov 17  }
  0x10   :  { %16347 = sst [smem:[#allocation4_spill]] %s11507_s3 }
  0x11   :  { %16348 = sst [smem:[#allocation5_spill]] %s11512_s8 }
  0x12   :  { %s11537_s6 = sld [smem:[%s16186_s0 + %s11369_s1]]  }
  0x13   :  { %s11542_s12 = sld [smem:[%s16186_s0 + %s11370_s7]]   ;;  %s11374_s7 = smov 18  }
  0x14   :  { %s11547_s20 = sld [smem:[%s16186_s0 + %s11371_s15]]   ;;  %s11375_s15 = smov 19  }
  0x15   :  { %s11552_s27 = sld [smem:[%s16186_s0 + %s11372_s22]]   ;;  %s11376_s22 = smov 20  }
  0x16   :  { %s11557_s4 = sld [smem:[%s16186_s0 + %s11373_s28]]   ;;  %s11377_s28 = smov 21  }
  0x18   :  { %16349 = sst [smem:[#allocation6_spill]] %s11537_s6 }
  0x19   :  { %16350 = sst [smem:[#allocation7_spill]] %s11542_s12 }
  0x1a   :  { %16351 = sst [smem:[#allocation8_spill]] %s11547_s20 }
  0x1b   :  { %s11562_s12 = sld [smem:[%s16186_s0 + %s11374_s7]]   ;;  %s11378_s7 = smov 22  }
  0x1c   :  { %16352 = sst [smem:[#allocation9_spill]] %s11557_s4 }
  0x1d   :  { %s11567_s20 = sld [smem:[%s16186_s0 + %s11375_s15]]   ;;  %s11379_s15 = smov 23  }
  0x1e   :  { %s11572_s6 = sld [smem:[%s16186_s0 + %s11376_s22]]   ;;  %s11380_s22 = smov 24  }
  0x1f   :  { %s11577_s4 = sld [smem:[%s16186_s0 + %s11377_s28]]   ;;  %s11381_s28 = smov 25  }
  0x21   :  { %16353 = sst [smem:[#allocation10_spill]] %s11562_s12 }
  0x22   :  { %s11582_s12 = sld [smem:[%s16186_s0 + %s11378_s7]]   ;;  %s11382_s7 = smov 26  }
  0x23   :  { %16354 = sst [smem:[#allocation11_spill]] %s11567_s20 }
  0x24   :  { %16355 = sst [smem:[#allocation12_spill]] %s11572_s6 }
  0x25   :  { %16356 = sst [smem:[#allocation13_spill]] %s11577_s4 }
  0x26   :  { %s11587_s20 = sld [smem:[%s16186_s0 + %s11379_s15]]   ;;  %s11383_s15 = smov 27  }
  0x27   :  { %s11592_s6 = sld [smem:[%s16186_s0 + %s11380_s22]]   ;;  %s11384_s22 = smov 28  }
  0x28   :  { %16357 = sst [smem:[#allocation14_spill]] %s11582_s12 }
  0x29   :  { %s11597_s4 = sld [smem:[%s16186_s0 + %s11381_s28]]   ;;  %s11385_s28 = smov 29  }
  0x2a   :  { %s11602_s12 = sld [smem:[%s16186_s0 + %s11382_s7]]   ;;  %s11386_s7 = smov 30  }
  0x2c   :  { %16358 = sst [smem:[#allocation15_spill]] %s11587_s20 }
  0x2d   :  { %16359 = sst [smem:[#allocation16_spill]] %s11592_s6 }
  0x2e   :  { %s11607_s20 = sld [smem:[%s16186_s0 + %s11383_s15]]   ;;  %s11387_s15 = smov 31  }
  0x2f   :  { %16360 = sst [smem:[#allocation17_spill]] %s11597_s4 }
  0x30   :  { %16361 = sst [smem:[#allocation18_spill]] %s11602_s12 }
  0x31   :  { %s11612_s6 = sld [smem:[%s16186_s0 + %s11384_s22]]   ;;  %s11388_s22 = smov 32  }
  0x32   :  { %s11617_s4 = sld [smem:[%s16186_s0 + %s11385_s28]]   ;;  %s11389_s28 = smov 33  }
  0x33   :  { %s11622_s12 = sld [smem:[%s16186_s0 + %s11386_s7]]   ;;  %s11390_s7 = smov 34  }
  0x34   :  { %16362 = sst [smem:[#allocation19_spill]] %s11607_s20 }
  0x35   :  { %s11627_s20 = sld [smem:[%s16186_s0 + %s11387_s15]]   ;;  %s11391_s15 = smov 35  }
  0x37   :  { %16363 = sst [smem:[#allocation20_spill]] %s11612_s6 }
  0x38   :  { %16364 = sst [smem:[#allocation21_spill]] %s11617_s4 }
  0x39   :  { %16365 = sst [smem:[#allocation22_spill]] %s11622_s12 }
  0x3a   :  { %s11632_s6 = sld [smem:[%s16186_s0 + %s11388_s22]]   ;;  %s11392_s22 = smov 36  }
  0x3b   :  { %16366 = sst [smem:[#allocation23_spill]] %s11627_s20 }
  0x3c   :  { %s11637_s4 = sld [smem:[%s16186_s0 + %s11389_s28]]   ;;  %s11393_s28 = smov 37  }
  0x3d   :  { %s11642_s12 = sld [smem:[%s16186_s0 + %s11390_s7]]   ;;  %s11394_s7 = smov 38  }
  0x3e   :  { %s11647_s20 = sld [smem:[%s16186_s0 + %s11391_s15]]   ;;  %s11395_s15 = smov 39  }
  0x40   :  { %16367 = sst [smem:[#allocation24_spill]] %s11632_s6 }
  0x41   :  { %s11652_s6 = sld [smem:[%s16186_s0 + %s11392_s22]]   ;;  %s11396_s22 = smov 40  }
  0x42   :  { %16368 = sst [smem:[#allocation25_spill]] %s11637_s4 }
  0x43   :  { %16369 = sst [smem:[#allocation26_spill]] %s11642_s12 }
  0x44   :  { %16370 = sst [smem:[#allocation27_spill]] %s11647_s20 }
  0x45   :  { %s11657_s4 = sld [smem:[%s16186_s0 + %s11393_s28]]   ;;  %s11397_s28 = smov 41  }
  0x46   :  { %s11662_s12 = sld [smem:[%s16186_s0 + %s11394_s7]]   ;;  %s11398_s7 = smov 42  }
  0x47   :  { %16371 = sst [smem:[#allocation28_spill]] %s11652_s6 }
  0x48   :  { %s11667_s20 = sld [smem:[%s16186_s0 + %s11395_s15]]   ;;  %s11399_s15 = smov 43  }
  0x49   :  { %s11672_s6 = sld [smem:[%s16186_s0 + %s11396_s22]]   ;;  %s11400_s22 = smov 44  }
  0x4b   :  { %16372 = sst [smem:[#allocation29_spill]] %s11657_s4 }
  0x4c   :  { %16373 = sst [smem:[#allocation30_spill]] %s11662_s12 }
  0x4d   :  { %s11677_s4 = sld [smem:[%s16186_s0 + %s11397_s28]]   ;;  %s11401_s28 = smov 45  }
  0x4e   :  { %16374 = sst [smem:[#allocation31_spill]] %s11667_s20 }
  0x4f   :  { %16375 = sst [smem:[#allocation32_spill]] %s11672_s6 }
  0x50   :  { %s11682_s12 = sld [smem:[%s16186_s0 + %s11398_s7]]   ;;  %s11402_s7 = smov 46  }
  0x51   :  { %s11687_s20 = sld [smem:[%s16186_s0 + %s11399_s15]]   ;;  %s11403_s15 = smov 47  }
  0x52   :  { %s11692_s6 = sld [smem:[%s16186_s0 + %s11400_s22]]   ;;  %s11404_s22 = smov 48  }
  0x53   :  { %16376 = sst [smem:[#allocation33_spill]] %s11677_s4 }
  0x54   :  { %s11697_s4 = sld [smem:[%s16186_s0 + %s11401_s28]]   ;;  %s11405_s28 = smov 49  }
  0x56   :  { %16377 = sst [smem:[#allocation34_spill]] %s11682_s12 }
  0x57   :  { %16378 = sst [smem:[#allocation35_spill]] %s11687_s20 }
  0x58   :  { %16379 = sst [smem:[#allocation36_spill]] %s11692_s6 }
  0x59   :  { %s11702_s12 = sld [smem:[%s16186_s0 + %s11402_s7]]   ;;  %s11406_s7 = smov 50  }
  0x5a   :  { %16380 = sst [smem:[#allocation37_spill]] %s11697_s4 }
  0x5b   :  { %s11707_s20 = sld [smem:[%s16186_s0 + %s11403_s15]]   ;;  %s11407_s15 = smov 51  }
  0x5c   :  { %s11712_s6 = sld [smem:[%s16186_s0 + %s11404_s22]]   ;;  %s11408_s22 = smov 52  }
  0x5d   :  { %s11717_s4 = sld [smem:[%s16186_s0 + %s11405_s28]]   ;;  %s11409_s28 = smov 53  }
  0x5f   :  { %16381 = sst [smem:[#allocation38_spill]] %s11702_s12 }
  0x60   :  { %s11722_s12 = sld [smem:[%s16186_s0 + %s11406_s7]]   ;;  %s11410_s7 = smov 54  }
  0x61   :  { %16382 = sst [smem:[#allocation39_spill]] %s11707_s20 }
  0x62   :  { %16383 = sst [smem:[#allocation40_spill]] %s11712_s6 }
  0x63   :  { %16384 = sst [smem:[#allocation41_spill]] %s11717_s4 }
  0x64   :  { %s11727_s20 = sld [smem:[%s16186_s0 + %s11407_s15]]   ;;  %s11411_s15 = smov 55  }
  0x65   :  { %s11732_s6 = sld [smem:[%s16186_s0 + %s11408_s22]]   ;;  %s11412_s22 = smov 56  }
  0x66   :  { %16385 = sst [smem:[#allocation42_spill]] %s11722_s12 }
  0x67   :  { %s11737_s4 = sld [smem:[%s16186_s0 + %s11409_s28]]   ;;  %s11413_s28 = smov 57  }
  0x68   :  { %s11742_s12 = sld [smem:[%s16186_s0 + %s11410_s7]]   ;;  %s11414_s7 = smov 58  }
  0x6a   :  { %16386 = sst [smem:[#allocation43_spill]] %s11727_s20 }
  0x6b   :  { %16387 = sst [smem:[#allocation44_spill]] %s11732_s6 }
  0x6c   :  { %s11747_s20 = sld [smem:[%s16186_s0 + %s11411_s15]]   ;;  %s11415_s15 = smov 59  }
  0x6d   :  { %16388 = sst [smem:[#allocation45_spill]] %s11737_s4 }
  0x6e   :  { %16389 = sst [smem:[#allocation46_spill]] %s11742_s12 }
  0x6f   :  { %s11752_s6 = sld [smem:[%s16186_s0 + %s11412_s22]]   ;;  %s11416_s22 = smov 60  }
  0x70   :  { %s11757_s4 = sld [smem:[%s16186_s0 + %s11413_s28]]   ;;  %s11417_s28 = smov 61  }
  0x71   :  { %s11762_s12 = sld [smem:[%s16186_s0 + %s11414_s7]]   ;;  %s11418_s7 = smov 62  }
  0x72   :  { %16390 = sst [smem:[#allocation47_spill]] %s11747_s20 }
  0x73   :  { %s11767_s20 = sld [smem:[%s16186_s0 + %s11415_s15]]   ;;  %s11419_s15 = smov 63  }
  0x75   :  { %16391 = sst [smem:[#allocation48_spill]] %s11752_s6 }
  0x76   :  { %16392 = sst [smem:[#allocation49_spill]] %s11757_s4 }
  0x77   :  { %16393 = sst [smem:[#allocation50_spill]] %s11762_s12 }
  0x78   :  { %s11772_s6 = sld [smem:[%s16186_s0 + %s11416_s22]]   ;;  %s11420_s22 = smov 64  }
  0x79   :  { %16394 = sst [smem:[#allocation51_spill]] %s11767_s20 }
  0x7a   :  { %s11777_s4 = sld [smem:[%s16186_s0 + %s11417_s28]]   ;;  %s11421_s28 = smov 65  }
  0x7b   :  { %s11782_s12 = sld [smem:[%s16186_s0 + %s11418_s7]]   ;;  %s11422_s7 = smov 66  }
  0x7c   :  { %s11787_s20 = sld [smem:[%s16186_s0 + %s11419_s15]]   ;;  %s11804_s15 = smov 0  }
  0x7e   :  { %16395 = sst [smem:[#allocation52_spill]] %s11772_s6 }
  0x7f   :  { %s11792_s6 = sld [smem:[%s16186_s0 + %s11420_s22]]  }
  0x80   :  { %16396 = sst [smem:[#allocation53_spill]] %s11777_s4 }
  0x81   :  { %16397 = sst [smem:[#allocation54_spill]] %s11782_s12 }
  0x82   :  { %s11797_s4 = sld [smem:[%s16186_s0 + %s11421_s28]]  }
  0x83   :  { %s11802_s12 = sld [smem:[%s16186_s0 + %s11422_s7]]  }
  0x84 LB: > { %s16398_s8 = sld [smem:[#allocation5_spill]]  ;;  %s16399_s3 = sld [smem:[#allocation4_spill]]  ;;  %s11355_s15 = sphi %s11804_s15, %s143_s15  }
  0x85   : > { %s9496_s16 = sadd.s32 4294967295, %s11355_s15   ;;  %p9500_p0 = scmp.ge.s32.totalorder %s11355_s15, 1 }
  0x86   : > { %p1779_p1 = scmp.lt.s32.totalorder %s11355_s15, 3 }
  0x88   : > { %p1780_p2 = pnand %p9500_p0, %p1779_p1 }
  0x8a   : > { %1783 = sbr.rel (%p1780_p2) target bundleno = 9675 (0x25cb), region = 284 }
  0x91   : > { %p1929_p3 = scmp.lt.s32.totalorder %s9496_s16, 1  ;;  %s16400_s5 = sld [smem:[#allocation2_spill]]  ;;  %v16248_v10 = vmov 0   ;;  %v1951_v19 = vld [vmem:[%s11482_s13] sm:$0xff]  ;;  %v16215_v20 = vlaneseq  ;;  %vm2261_vm8 = vcmask 1043456   ;;  %vm2257_vm9 = vcmask 588800  }
  0x92   : > { %s16302_s22 = smov 126   ;;  %s16288_s23 = smov 127   ;;  %2324 = vmatprep.mubr.bf16.mxu0 %v16248_v10  ;;  %2365 = vmatprep.mubr.bf16.mxu1 %v16248_v10 }
  0x93   : > { %s16569_s16 = smov (!%p1929_p3, %s9496_s16), 1  ;;  %s11425_s26 = smov 94   ;;  %10217 = vset.pattern.permute.xlu0 %v16248_v10  ;;  %10558 = vset.pattern.permute.xlu1 %v16248_v10  ;;  %v11934_v21 = vand.u32 127, %v16215_v20 }
  0x94   : > { %s9941_s0 = smul.u32 80, %s16569_s16  ;;  %s11426_s28 = smov 92  }
  0x95   : > { %s11427_s1 = smov 93   ;;  %s11428_s2 = smov 59   ;;  %vm1974_vm0 = vcmp.lt.s32.totalorder %v11934_v21, 127  ;;  %vm2005_vm1 = vcmp.lt.s32.totalorder %v11934_v21, 126  ;;  %vm2036_vm2 = vcmp.lt.s32.totalorder %v11934_v21, 94  ;;  %vm2067_vm3 = vcmp.lt.s32.totalorder %v11934_v21, 93 }
  0x96   : > { %s11429_s7 = smov 60   ;;  %s11431_s10 = smov 58   ;;  %vm2098_vm4 = vcmp.lt.s32.totalorder %v11934_v21, 92  ;;  %vm2129_vm5 = vcmp.lt.s32.totalorder %v11934_v21, 60  ;;  %vm2160_vm6 = vcmp.lt.s32.totalorder %v11934_v21, 59  ;;  %vm2191_vm7 = vcmp.lt.s32.totalorder %v11934_v21, 58 }
  0x97   : > { %s11816_s18 = scalar_lea.vmem %s16400_s5, %s9941_s0  ;;  %s16401_s9 = sld [smem:[#allocation3_spill]]  ;;  %vm2591_vm10 = vcmp.lt.s32.totalorder %v11934_v21, 35  ;;  %vm4418_vm11 = vcmp.lt.s32.totalorder %v11934_v21, 124  ;;  %vm4647_vm12 = vcmp.lt.s32.totalorder %v11934_v21, 120  ;;  %vm4876_vm13 = vcmp.lt.s32.totalorder %v11934_v21, 78 }
  0x98   : > { %v11819_v0 = vld [vmem:[%s11816_s18 + $0x8] sm:$0xff]  ;;  %v11822_v1 = vld [vmem:[%s11816_s18 + $0x10] sm:$0xff]  ;;  %v11825_v2 = vld [vmem:[%s11816_s18] sm:$0xff]  ;;  %s11432_s11 = smov 35   ;;  %s16286_s0 = smov 124   ;;  %vm5105_vm14 = vcmp.lt.s32.totalorder %v11934_v21, 28 }
  0x99   : > { %v10067_v3 = vpack.i.bf16 %v11822_v1, %v11819_v0  ;;  %v11830_v4 = vld [vmem:[%s11816_s18 + $0x28] sm:$0xff]  ;;  %v11845_v6 = vld [vmem:[%s11816_s18 + $0x20] sm:$0xff]  ;;  %v10127_v8 = vpack.i.bf16 %v11819_v0, %v11825_v2  ;;  %v11856_v9 = vld [vmem:[%s11816_s18 + $0x30] sm:$0xff]  ;;  %vm5323_vm15 = vcmp.lt.s32.totalorder %v11934_v21, 56  ;;  %s16508_s5 = sld [smem:[#allocation13_spill]] }
  0x9a   : > { %v10062_v5 = vpack.i.bf16 %v11830_v4, %v11825_v2  ;;  %v10132_v7 = vpack.i.bf16 %v11845_v6, %v11822_v1  ;;  %v10142_v11 = vpack.i.bf16 %v11845_v6, %v11856_v9  ;;  %v10172_v12 = vpack.i.bf16 %v11856_v9, %v11830_v4  ;;  %v11875_v13 = vld [vmem:[%s11816_s18 + $0x18] sm:$0xff]  ;;  %v11878_v14 = vld [vmem:[%s11816_s18 + $0x48] sm:$0xff]  ;;  %v11885_v16 = vld [vmem:[%s11816_s18 + $0x40] sm:$0xff] }
  0x9b   : > { %10068 = vrot.lane.b32.xlu1 %v10067_v3, %s16302_s22  ;;  %10058 = vrot.lane.b32.xlu0 %v10067_v3, %s16288_s23  ;;  %v10177_v15 = vpack.i.bf16 %v11878_v14, %v11875_v13  ;;  %v10212_v17 = vpack.i.bf16 %v11885_v16, %v11875_v13  ;;  %v11914_v18 = vld [vmem:[%s11816_s18 + $0x38] sm:$0xff]  ;;  %s16284_s18 = smov 120  }
  0x9f   : > { %10073 = vrot.lane.b32.xlu1 %v10067_v3, %s11425_s26  ;;  %10063 = vrot.lane.b32.xlu0 %v10062_v5, %s16288_s23 }
  0xa3   : > { %10083 = vrot.lane.b32.xlu1 %v10062_v5, %s11425_s26  ;;  %10078 = vrot.lane.b32.xlu0 %v10062_v5, %s16302_s22 }
  0xa7   : > { %10093 = vrot.lane.b32.xlu1 %v10067_v3, %s11426_s28  ;;  %10088 = vrot.lane.b32.xlu0 %v10067_v3, %s11427_s1 }
  0xab   : > { %10103 = vrot.lane.b32.xlu1 %v10062_v5, %s11426_s28  ;;  %10098 = vrot.lane.b32.xlu0 %v10062_v5, %s11427_s1 }
  0xaf   : > { %10113 = vrot.lane.b32.xlu1 %v10067_v3, %s11428_s2  ;;  %10108 = vrot.lane.b32.xlu0 %v10067_v3, %s11429_s7 }
  0xb3   : > { %10123 = vrot.lane.b32.xlu1 %v10062_v5, %s11428_s2  ;;  %10118 = vrot.lane.b32.xlu0 %v10062_v5, %s11429_s7 }
  0xb7   : > { %10133 = vrot.lane.b32.xlu1 %v10132_v7, %s11431_s10  ;;  %10128 = vrot.lane.b32.xlu0 %v10127_v8, %s11431_s10 }
  0xbb   : > { %10143 = vrot.lane.b32.xlu1 %v10142_v11, %s16302_s22  ;;  %10138 = vrot.lane.b32.xlu0 %v10142_v11, %s16288_s23 }
  0xbf   : > { %10153 = vrot.lane.b32.xlu1 %v10142_v11, %s11427_s1  ;;  %10148 = vrot.lane.b32.xlu0 %v10142_v11, %s11425_s26 }
  0xc3   : > { %10163 = vrot.lane.b32.xlu1 %v10142_v11, %s11429_s7  ;;  %10158 = vrot.lane.b32.xlu0 %v10142_v11, %s11426_s28 }
  0xc7   : > { %10173 = vrot.lane.b32.xlu1 %v10172_v12, %s11431_s10  ;;  %10168 = vrot.lane.b32.xlu0 %v10142_v11, %s11428_s2 }
  0xcb   : > { %1968 = vrot.lane.b32.xlu1 %v11885_v16, %s16288_s23  ;;  %10178 = vrot.lane.b32.xlu0 %v10177_v15, %s16288_s23 }
  0xcf   : > { %10188 = vrot.lane.b32.xlu1 %v10177_v15, %s11425_s26  ;;  %10183 = vrot.lane.b32.xlu0 %v10177_v15, %s16302_s22 }
  0xd3   : > { %2032 = vrot.lane.b32.xlu1 %v11885_v16, %s11425_s26  ;;  %2001 = vrot.lane.b32.xlu0 %v11885_v16, %s16302_s22 }
  0xd7   : > { %10198 = vrot.lane.b32.xlu1 %v10177_v15, %s11426_s28  ;;  %10193 = vrot.lane.b32.xlu0 %v10177_v15, %s11427_s1 }
  0xdb   : > { %2094 = vrot.lane.b32.xlu1 %v11885_v16, %s11426_s28  ;;  %2063 = vrot.lane.b32.xlu0 %v11885_v16, %s11427_s1 }
  0xdf   : > { %10208 = vrot.lane.b32.xlu1 %v10177_v15, %s11428_s2  ;;  %10203 = vrot.lane.b32.xlu0 %v10177_v15, %s11429_s7 }
  0xe3   : > { %2156 = vrot.lane.b32.xlu1 %v11885_v16, %s11428_s2  ;;  %2125 = vrot.lane.b32.xlu0 %v11885_v16, %s11429_s7 }
  0xe7   : > { %2189 = vrot.lane.b32.xlu1 %v11878_v14, %s11431_s10  ;;  %10213 = vrot.lane.b32.xlu0 %v10212_v17, %s11431_s10 }
  0xeb   : > { %1999 = vrot.lane.b32.xlu1 %v11914_v18, %s16302_s22  ;;  %1966 = vrot.lane.b32.xlu0 %v11914_v18, %s16288_s23 }
  0xef   : > { %2061 = vrot.lane.b32.xlu1 %v11914_v18, %s11427_s1  ;;  %2030 = vrot.lane.b32.xlu0 %v11914_v18, %s11425_s26 }
  0xf3   : > { %2123 = vrot.lane.b32.xlu1 %v11914_v18, %s11429_s7  ;;  %2092 = vrot.lane.b32.xlu0 %v11914_v18, %s11426_s28 }
  0xf7   : > { %2185 = vrot.lane.b32.xlu1 %v11914_v18, %s11431_s10  ;;  %2154 = vrot.lane.b32.xlu0 %v11914_v18, %s11428_s2 }
  0xfb   : > { %2254 = vperm.xlu0 %10217, %v1951_v19  }
 0x10d   : > { %v11936_v22 = vpop.permute.xlu1 %10068  ;;  %v11938_v23 = vpop.permute.xlu0 %10058 }
 0x10e   : > { %v10071_v24 = vunpack.i.h.bf16 %v11936_v22  ;;  %v10070_v25 = vunpack.i.l.bf16 %v11936_v22  ;;  %v10061_v26 = vunpack.i.h.bf16 %v11938_v23  ;;  %v10060_v27 = vunpack.i.l.bf16 %v11938_v23 }
 0x110   : > { %v1982_v28 = vsel %vm1974_vm0, %v10060_v27, %v10061_v26  ;;  %v2013_v35 = vsel %vm2005_vm1, %v10070_v25, %v10071_v24 }
 0x111   : > { %v11950_v29 = vpop.permute.xlu1 %10073  ;;  %v11952_v30 = vpop.permute.xlu0 %10063  ;;  %v2203_v31 = vpack.c.bf16 %v1982_v28, %v11819_v0 }
 0x112   : > { %v10076_v32 = vunpack.i.h.bf16 %v11950_v29  ;;  %v10075_v33 = vunpack.i.l.bf16 %v11950_v29  ;;  %v10065_v34 = vunpack.i.l.bf16 %v11952_v30 }
 0x113   : > { %2292 = vmatprep.subr.bf16.mxu0 %v2203_v31 }
 0x114   : > { %v1983_v36 = vsel %vm1974_vm0, %v10065_v34, %v10060_v27  ;;  %v2044_v37 = vsel %vm2036_vm2, %v10075_v33, %v10076_v32 }
 0x115   : > { %v11971_v38 = vpop.permute.xlu1 %10083  ;;  %v11973_v39 = vpop.permute.xlu0 %10078  ;;  %v2202_v40 = vpack.c.bf16 %v1983_v36, %v11825_v2  ;;  %v2213_v41 = vpack.c.bf16 %v2044_v37, %v2013_v35 }
 0x116   : > { %v10085_v42 = vunpack.i.l.bf16 %v11971_v38  ;;  %v10080_v43 = vunpack.i.l.bf16 %v11973_v39 }
 0x117   : > { %2293 = vmatpush1.bf16.msra.mxu0 %v2202_v40 }
 0x118   : > { %2294 = vmatprep.subr.bf16.mxu0 %v2213_v41  ;;  %v2014_v44 = vsel %vm2005_vm1, %v10080_v43, %v10070_v25  ;;  %v2045_v45 = vsel %vm2036_vm2, %v10085_v42, %v10075_v33 }
 0x119   : > { %v11986_v46 = vpop.permute.xlu1 %10093  ;;  %v11988_v47 = vpop.permute.xlu0 %10088  ;;  %v2212_v48 = vpack.c.bf16 %v2045_v45, %v2014_v44 }
 0x11a   : > { %v16225_v49 = vunpack.i.h.bf16 %v11986_v46  ;;  %v10095_v50 = vunpack.i.l.bf16 %v11986_v46  ;;  %v16231_v51 = vunpack.i.h.bf16 %v11988_v47  ;;  %v10090_v52 = vunpack.i.l.bf16 %v11988_v47 }
 0x11b   : > { %2295 = vmatpush1.bf16.msra.mxu0 %v2212_v48 }
 0x11c   : > { %v2075_v53 = vsel %vm2067_vm3, %v10090_v52, %v16231_v51  ;;  %v2106_v54 = vsel %vm2098_vm4, %v10095_v50, %v16225_v49 }
 0x11d   : > { %v12004_v55 = vpop.permute.xlu1 %10103  ;;  %v12006_v56 = vpop.permute.xlu0 %10098  ;;  %v2223_v57 = vpack.c.bf16 %v2106_v54, %v2075_v53  ;;  %v10066_v53 = vunpack.i.h.bf16 %v11952_v30 }
 0x11e   : > { %v10105_v58 = vunpack.i.l.bf16 %v12004_v55  ;;  %v10100_v59 = vunpack.i.l.bf16 %v12006_v56  ;;  %v10106_v20 = vunpack.i.h.bf16 %v12004_v55 }
 0x11f   : > { %2296 = vmatprep.subr.bf16.mxu0 %v2223_v57 }
 0x120   : > { %v2076_v60 = vsel %vm2067_vm3, %v10100_v59, %v10090_v52  ;;  %v2107_v61 = vsel %vm2098_vm4, %v10105_v58, %v10095_v50 }
 0x121   : > { %v12018_v62 = vpop.permute.xlu1 %10113  ;;  %v12020_v63 = vpop.permute.xlu0 %10108  ;;  %v2222_v0 = vpack.c.bf16 %v2107_v61, %v2076_v60 }
 0x122   : > { %v16221_v2 = vunpack.i.h.bf16 %v12018_v62  ;;  %v10115_v3 = vunpack.i.l.bf16 %v12018_v62  ;;  %v16222_v5 = vunpack.i.h.bf16 %v12020_v63  ;;  %v10110_v7 = vunpack.i.l.bf16 %v12020_v63 }
 0x123   : > { %2297 = vmatpush1.bf16.msra.mxu0 %v2222_v0 }
 0x124   : > { %v2137_v8 = vsel %vm2129_vm5, %v10110_v7, %v16222_v5  ;;  %v2168_v11 = vsel %vm2160_vm6, %v10115_v3, %v16221_v2 }
 0x125   : > { %v12036_v12 = vpop.permute.xlu1 %10123  ;;  %v12038_v15 = vpop.permute.xlu0 %10118  ;;  %v2233_v17 = vpack.c.bf16 %v2168_v11, %v2137_v8  ;;  %v12086_v8 = vld [vmem:[%s16401_s9] sm:$0xf]  ;;  %v10081_v11 = vunpack.i.h.bf16 %v11973_v39  ;;  %s16329_s9 = smov 115  }
 0x126   : > { %v16223_v19 = vunpack.i.l.bf16 %v12036_v12  ;;  %v16224_v25 = vunpack.i.l.bf16 %v12038_v15 }
 0x127   : > { %2298 = vmatprep.subr.bf16.mxu0 %v2233_v17 }
 0x128   : > { %v2138_v27 = vsel %vm2129_vm5, %v16224_v25, %v10110_v7  ;;  %v2169_v28 = vsel %vm2160_vm6, %v16223_v19, %v10115_v3 }
 0x129   : > { %v12050_v31 = vpop.permute.xlu1 %10133  ;;  %v12052_v33 = vpop.permute.xlu0 %10128  ;;  %v2232_v35 = vpack.c.bf16 %v2169_v28, %v2138_v27 }
 0x12a   : > { %v16218_v36 = vunpack.i.l.bf16 %v12050_v31  ;;  %v10131_v37 = vunpack.i.h.bf16 %v12052_v33  ;;  %v16220_v40 = vunpack.i.l.bf16 %v12052_v33 }
 0x12b   : > { %2299 = vmatpush1.bf16.msra.mxu0 %v2232_v35 }
 0x12c   : > { %v2199_v41 = vsel %vm2191_vm7, %v10131_v37, %v16218_v36  ;;  %v2200_v44 = vsel %vm2191_vm7, %v16220_v40, %v10131_v37  ;;  %v10086_v37 = vunpack.i.h.bf16 %v11971_v38  ;;  %v10126_v36 = vunpack.i.h.bf16 %v12036_v12 }
 0x12d   : > { %v12066_v45 = vpop.permute.xlu1 %10143  ;;  %v12068_v48 = vpop.permute.xlu0 %10138  ;;  %v2243_v50 = vpack.c.bf16 %v2199_v41, %v2199_v41  ;;  %v2242_v52 = vpack.c.bf16 %v2200_v44, %v2200_v44  ;;  %v10136_v40 = vunpack.i.h.bf16 %v12050_v31 }
 0x12e   : > { %v10141_v54 = vunpack.i.h.bf16 %v12068_v48  ;;  %v16217_v57 = vunpack.i.l.bf16 %v12068_v48  ;;  %v10146_v60 = vunpack.i.h.bf16 %v12066_v45  ;;  %v16216_v61 = vunpack.i.l.bf16 %v12066_v45 }
 0x12f   : > { %9504 = vmatprep.subr.msk.bf16.mxu0 %vm2261_vm8, %v2243_v50  ;;  %v2263_v0 = vsel %vm2261_vm8, %v2242_v52, 0 }
 0x130   : > { %v1979_v3 = vsel %vm1974_vm0, %v10141_v54, %v10066_v53  ;;  %2301 = vmatpush1.bf16.msra.mxu0 %v2263_v0  ;;  %v1978_v7 = vsel %vm1974_vm0, %v10066_v53, %v16217_v57  ;;  %v2010_v50 = vsel %vm2005_vm1, %v10146_v60, %v10081_v11 }
 0x131   : > { %v12089_v17 = vpop.permute.xlu1 %10153  ;;  %v12091_v27 = vpop.permute.xlu0 %10148  ;;  %v2207_v28 = vpack.c.bf16 %v1978_v7, %v11830_v4  ;;  %v2206_v35 = vpack.c.bf16 %v1979_v3, %v11845_v6  ;;  %v2009_v4 = vsel %vm2005_vm1, %v10081_v11, %v16216_v61  ;;  %v10101_v61 = vunpack.i.h.bf16 %v12006_v56 }
 0x132   : > { %v10151_v41 = vunpack.i.h.bf16 %v12091_v27  ;;  %v16219_v44 = vunpack.i.l.bf16 %v12091_v27  ;;  %v10156_v6 = vunpack.i.h.bf16 %v12089_v17  ;;  %v16226_v52 = vunpack.i.l.bf16 %v12089_v17 }
 0x133   : > { %2374 = vmatprep.subr.bf16.mxu0 %v2207_v28  ;;  %9505 = vmatmul.mubr.msk.bf16.vlgmr.msra.gmra.mrb[0].mxu0 %vm2257_vm9, %v12086_v8  ;;  %v16403_v56 = vunpack.i.h.bf16 %v11986_v46 }
 0x134   : > { %v2041_v53 = vsel %vm2036_vm2, %v10151_v41, %v10086_v37  ;;  %2375 = vmatpush1.bf16.msra.mxu0 %v2206_v35  ;;  %v2040_v0 = vsel %vm2036_vm2, %v10086_v37, %v16219_v44  ;;  %2406 = vmatprep.mubr.bf16.mxu0 %v16248_v10 }
 0x135   : > { %v12118_v3 = vpop.permute.xlu1 %10163  ;;  %v12120_v7 = vpop.permute.xlu0 %10158  ;;  %v2217_v11 = vpack.c.bf16 %v2040_v0, %v2009_v4  ;;  %v2216_v28 = vpack.c.bf16 %v2041_v53, %v2010_v50  ;;  %v2072_v50 = vsel %vm2067_vm3, %v10156_v6, %v10101_v61  ;;  %v2071_v53 = vsel %vm2067_vm3, %v10101_v61, %v16226_v52 }
 0x136   : > { %v10161_v57 = vunpack.i.h.bf16 %v12120_v7  ;;  %v16228_v35 = vunpack.i.l.bf16 %v12120_v7  ;;  %v16230_v37 = vunpack.i.h.bf16 %v12118_v3  ;;  %v16227_v44 = vunpack.i.l.bf16 %v12118_v3 }
 0x137   : > { %2376 = vmatprep.subr.bf16.mxu0 %v2217_v11  ;;  %v10121_v11 = vunpack.i.h.bf16 %v12038_v15 }
 0x138   : > { %v2103_v4 = vsel %vm2098_vm4, %v10161_v57, %v10106_v20  ;;  %2377 = vmatpush1.bf16.msra.mxu0 %v2216_v28  ;;  %v2102_v0 = vsel %vm2098_vm4, %v10106_v20, %v16228_v35 }
 0x139   : > { %v12148_v2 = vpop.permute.xlu1 %10173  ;;  %v12150_v5 = vpop.permute.xlu0 %10168  ;;  %v2227_v19 = vpack.c.bf16 %v2102_v0, %v2071_v53  ;;  %v2226_v28 = vpack.c.bf16 %v2103_v4, %v2072_v50  ;;  %v2134_v20 = vsel %vm2129_vm5, %v16230_v37, %v10121_v11  ;;  %v2133_v53 = vsel %vm2129_vm5, %v10121_v11, %v16227_v44 }
 0x13a   : > { %v16232_v25 = vunpack.i.h.bf16 %v12148_v2  ;;  %v10175_v49 = vunpack.i.l.bf16 %v12148_v2  ;;  %v16229_v61 = vunpack.i.h.bf16 %v12150_v5  ;;  %v10170_v52 = vunpack.i.l.bf16 %v12150_v5 }
 0x13b   : > { %2378 = vmatprep.subr.bf16.mxu0 %v2227_v19 }
 0x13c   : > { %v2165_v50 = vsel %vm2160_vm6, %v16229_v61, %v10126_v36  ;;  %2379 = vmatpush1.bf16.msra.mxu0 %v2226_v28  ;;  %v2164_v4 = vsel %vm2160_vm6, %v10126_v36, %v10170_v52  ;;  %v2195_v19 = vsel %vm2191_vm7, %v10175_v49, %v16232_v25  ;;  %v2196_v0 = vsel %vm2191_vm7, %v10136_v40, %v10175_v49 }
 0x13d   : > { %v12180_v11 = vpop.permute.xlu1 %1968  ;;  %v10179_v44 = vpop.permute.xlu0 %10178  ;;  %v2237_v35 = vpack.c.bf16 %v2164_v4, %v2133_v53  ;;  %v2236_v28 = vpack.c.bf16 %v2165_v50, %v2134_v20  ;;  %v2247_v61 = vpack.c.bf16 %v2195_v19, %v2195_v19  ;;  %v2246_v36 = vpack.c.bf16 %v2196_v0, %v2196_v0 }
 0x13e   : > { %v10181_v37 = vunpack.i.h.bf16 %v10179_v44  ;;  %v10180_v51 = vunpack.i.l.bf16 %v10179_v44 }
 0x13f   : > { %2380 = vmatprep.subr.bf16.mxu0 %v2237_v35  ;;  %v2275_v30 = vsel %vm2261_vm8, %v2246_v36, 0 }
 0x140   : > { %2381 = vmatpush1.bf16.msra.mxu0 %v2236_v28  ;;  %v1980_v25 = vsel %vm1974_vm0, %v10180_v51, %v10141_v54  ;;  %v1981_v49 = vsel %vm1974_vm0, %v10061_v26, %v10180_v51  ;;  %v1984_v20 = vsel %vm1974_vm0, %v10181_v37, %v10065_v34  ;;  %v1975_v26 = vsel %vm1974_vm0, %v12180_v11, %v10181_v37 }
 0x141   : > { %v10189_v53 = vpop.permute.xlu1 %10188  ;;  %v10184_v44 = vpop.permute.xlu0 %10183  ;;  %v2205_v35 = vpack.c.bf16 %v1980_v25, %v11875_v13  ;;  %9508 = vmatprep.subr.msk.bf16.mxu0 %vm2261_vm8, %v2247_v61  ;;  %v2204_v50 = vpack.c.bf16 %v1981_v49, %v11822_v1  ;;  %v2211_v34 = vpack.c.bf16 %v1984_v20, %v11878_v14 }
 0x142   : > { %v10191_v4 = vunpack.i.h.bf16 %v10189_v53  ;;  %v10190_v54 = vunpack.i.l.bf16 %v10189_v53  ;;  %v10186_v19 = vunpack.i.h.bf16 %v10184_v44  ;;  %v10185_v23 = vunpack.i.l.bf16 %v10184_v44 }
 0x143   : > { %2333 = vmatprep.subr.bf16.mxu1 %v2205_v35 }
 0x144   : > { %2334 = vmatpush1.bf16.msra.mxu1 %v2204_v50  ;;  %2383 = vmatpush1.bf16.msra.mxu0 %v2275_v30  ;;  %v2011_v1 = vsel %vm2005_vm1, %v10185_v23, %v10146_v60  ;;  %v2042_v13 = vsel %vm2036_vm2, %v10190_v54, %v10151_v41  ;;  %v2012_v51 = vsel %vm2005_vm1, %v10071_v24, %v10185_v23 }
 0x145   : > { %v12214_v25 = vpop.permute.xlu1 %2032  ;;  %v12216_v14 = vpop.permute.xlu0 %2001  ;;  %2456 = vmatprep.subr.bf16.mxu0 %v2211_v34  ;;  %v2215_v37 = vpack.c.bf16 %v2042_v13, %v2011_v1  ;;  %v2043_v60 = vsel %vm2036_vm2, %v10076_v32, %v10190_v54  ;;  %v2015_v41 = vsel %vm2005_vm1, %v10186_v19, %v10080_v43  ;;  %v2046_v22 = vsel %vm2036_vm2, %v10191_v4, %v10085_v42 }
 0x146   : > { %v2037_v24 = vsel %vm2036_vm2, %v12214_v25, %v10191_v4  ;;  %v2006_v29 = vsel %vm2005_vm1, %v12216_v14, %v10186_v19  ;;  %v2214_v61 = vpack.c.bf16 %v2043_v60, %v2012_v51  ;;  %v2210_v32 = vpack.c.bf16 %v1975_v26, %v11885_v16 }
 0x147   : > { %2335 = vmatprep.subr.bf16.mxu1 %v2215_v37  ;;  %9509 = vmatmul.mubr.msk.bf16.vlgmr.msra.gmra.mrb[4].mxu0 %vm2257_vm9, %v12086_v8  ;;  %v2221_v39 = vpack.c.bf16 %v2046_v22, %v2015_v41  ;;  %v2220_v38 = vpack.c.bf16 %v2037_v24, %v2006_v29  ;;  %v16402_v54 = vunpack.i.h.bf16 %v11988_v47  ;;  %v16404_v13 = vunpack.i.h.bf16 %v12118_v3 }
 0x148   : > { %2336 = vmatpush1.bf16.msra.mxu1 %v2214_v61  ;;  %2457 = vmatpush1.bf16.msra.mxu0 %v2210_v32  ;;  %v16405_v37 = vunpack.i.h.bf16 %v12150_v5  ;;  %v16406_v41 = vunpack.i.l.bf16 %v12038_v15  ;;  %v16407_v24 = vunpack.i.l.bf16 %v12036_v12  ;;  %v16409_v15 = vunpack.i.h.bf16 %v12018_v62 }
 0x149   : > { %v10199_v42 = vpop.permute.xlu1 %10198  ;;  %v10194_v43 = vpop.permute.xlu0 %10193  ;;  %2458 = vmatprep.subr.bf16.mxu0 %v2221_v39  ;;  %2488 = vmatprep.mubr.bf16.mxu0 %v16248_v10  ;;  %v16410_v62 = vunpack.i.l.bf16 %v12052_v33 }
 0x14a   : > { %v10201_v0 = vunpack.i.h.bf16 %v10199_v42  ;;  %v10200_v28 = vunpack.i.l.bf16 %v10199_v42  ;;  %v10196_v36 = vunpack.i.h.bf16 %v10194_v43  ;;  %v10195_v49 = vunpack.i.l.bf16 %v10194_v43 }
 0x14b   : > { %v16408_v42 = vunpack.i.h.bf16 %v12020_v63 }
 0x14c   : > { %2459 = vmatpush1.bf16.msra.mxu0 %v2220_v38  ;;  %v2073_v16 = vsel %vm2067_vm3, %v10195_v49, %v10156_v6  ;;  %v2104_v20 = vsel %vm2098_vm4, %v10200_v28, %v10161_v57  ;;  %v2077_v53 = vsel %vm2067_vm3, %v10196_v36, %v10100_v59  ;;  %v2108_v44 = vsel %vm2098_vm4, %v10201_v0, %v10105_v58 }
 0x14d   : > { %v12256_v35 = vpop.permute.xlu1 %2094  ;;  %v12258_v50 = vpop.permute.xlu0 %2063  ;;  %v2225_v6 = vpack.c.bf16 %v2104_v20, %v2073_v16  ;;  %v2231_v4 = vpack.c.bf16 %v2108_v44, %v2077_v53  ;;  %v2074_v57 = vsel %vm2067_vm3, %v16402_v54, %v10195_v49  ;;  %v2105_v59 = vsel %vm2098_vm4, %v16403_v56, %v10200_v28 }
 0x14e   : > { %v2099_v55 = vsel %vm2098_vm4, %v12256_v35, %v10201_v0  ;;  %v2068_v58 = vsel %vm2067_vm3, %v12258_v50, %v10196_v36  ;;  %v2224_v19 = vpack.c.bf16 %v2105_v59, %v2074_v57  ;;  %v16411_v54 = vunpack.i.l.bf16 %v12050_v31 }
 0x14f   : > { %v2230_v23 = vpack.c.bf16 %v2099_v55, %v2068_v58  ;;  %2337 = vmatprep.subr.bf16.mxu1 %v2225_v6  ;;  %2460 = vmatprep.subr.bf16.mxu0 %v2231_v4 }
 0x150   : > { %2338 = vmatpush1.bf16.msra.mxu1 %v2224_v19 }
 0x151   : > { %v10209_v47 = vpop.permute.xlu1 %10208  ;;  %v10204_v26 = vpop.permute.xlu0 %10203  ;;  %2461 = vmatpush1.bf16.msra.mxu0 %v2230_v23 }
 0x152   : > { %v10211_v46 = vunpack.i.h.bf16 %v10209_v47  ;;  %v10210_v30 = vunpack.i.l.bf16 %v10209_v47  ;;  %v10206_v34 = vunpack.i.h.bf16 %v10204_v26  ;;  %v10205_v1 = vunpack.i.l.bf16 %v10204_v26 }
 0x154   : > { %v2135_v51 = vsel %vm2129_vm5, %v10205_v1, %v16404_v13  ;;  %v2166_v60 = vsel %vm2160_vm6, %v10210_v30, %v16405_v37  ;;  %v2139_v22 = vsel %vm2129_vm5, %v10206_v34, %v16406_v41  ;;  %v2170_v29 = vsel %vm2160_vm6, %v10211_v46, %v16407_v24 }
 0x155   : > { %v12290_v61 = vpop.permute.xlu1 %2156  ;;  %v12292_v32 = vpop.permute.xlu0 %2125  ;;  %v2235_v39 = vpack.c.bf16 %v2166_v60, %v2135_v51  ;;  %v2241_v38 = vpack.c.bf16 %v2170_v29, %v2139_v22  ;;  %v2136_v43 = vsel %vm2129_vm5, %v16408_v42, %v10205_v1  ;;  %v2167_v0 = vsel %vm2160_vm6, %v16409_v15, %v10210_v30 }
 0x156   : > { %v2161_v12 = vsel %vm2160_vm6, %v12290_v61, %v10211_v46  ;;  %v2130_v28 = vsel %vm2129_vm5, %v12292_v32, %v10206_v34  ;;  %v2234_v36 = vpack.c.bf16 %v2167_v0, %v2136_v43  ;;  %v16413_v13 = vunpack.i.l.bf16 %v12091_v27 }
 0x157   : > { %v2240_v49 = vpack.c.bf16 %v2161_v12, %v2130_v28  ;;  %2339 = vmatprep.subr.bf16.mxu1 %v2235_v39  ;;  %2462 = vmatprep.subr.bf16.mxu0 %v2241_v38  ;;  %v16415_v22 = vunpack.i.l.bf16 %v12120_v7  ;;  %v16416_v29 = vunpack.i.l.bf16 %v12089_v17  ;;  %v16417_v0 = vunpack.i.h.bf16 %v12148_v2 }
 0x158   : > { %2340 = vmatpush1.bf16.msra.mxu1 %v2234_v36  ;;  %v16419_v2 = vlaneseq }
 0x159   : > { %v2190_v63 = vpop.permute.xlu1 %2189  ;;  %v10214_v16 = vpop.permute.xlu0 %10213  ;;  %2463 = vmatpush1.bf16.msra.mxu0 %v2240_v49 }
 0x15a   : > { %v2201_v20 = vsel %vm2191_vm7, %v2190_v63, %v16410_v62  ;;  %v10216_v53 = vunpack.i.h.bf16 %v10214_v16  ;;  %v10215_v44 = vunpack.i.l.bf16 %v10214_v16  ;;  %v12400_v16 = vld [vmem:[%s11487_s17] sm:$0xff] }
 0x15b   : > { %v2251_v6 = vpack.c.bf16 %v2201_v20, %v2201_v20 }
 0x15c   : > { %v2197_v4 = vsel %vm2191_vm7, %v10215_v44, %v10136_v40  ;;  %v2198_v57 = vsel %vm2191_vm7, %v16411_v54, %v10215_v44  ;;  %v2192_v56 = vsel %vm2191_vm7, %v10216_v53, %v2190_v63  ;;  %v16412_v40 = vunpack.i.l.bf16 %v12068_v48 }
 0x15d   : > { %v2000_v33 = vpop.permute.xlu1 %1999  ;;  %v1967_v59 = vpop.permute.xlu0 %1966  ;;  %9512 = vmatprep.subr.msk.bf16.mxu0 %vm2261_vm8, %v2251_v6  ;;  %v2245_v55 = vpack.c.bf16 %v2197_v4, %v2197_v4  ;;  %v2244_v58 = vpack.c.bf16 %v2198_v57, %v2198_v57  ;;  %v2250_v19 = vpack.c.bf16 %v2192_v56, %v2192_v56 }
 0x15e   : > { %v1976_v23 = vsel %vm1974_vm0, %v1967_v59, %v12180_v11  ;;  %v1977_v31 = vsel %vm1974_vm0, %v16412_v40, %v1967_v59  ;;  %v2007_v48 = vsel %vm2005_vm1, %v2000_v33, %v12216_v14 }
 0x15f   : > { %9506 = vmatprep.subr.msk.bf16.mxu1 %vm2261_vm8, %v2245_v55  ;;  %v2269_v47 = vsel %vm2261_vm8, %v2244_v58, 0  ;;  %v2287_v26 = vsel %vm2261_vm8, %v2250_v19, 0  ;;  %v2209_v46 = vpack.c.bf16 %v1976_v23, %v11914_v18  ;;  %v2208_v11 = vpack.c.bf16 %v1977_v31, %v11856_v9 }
 0x160   : > { %2342 = vmatpush1.bf16.msra.mxu1 %v2269_v47  ;;  %2465 = vmatpush1.bf16.msra.mxu0 %v2287_v26  ;;  %v16414_v9 = vunpack.i.l.bf16 %v12066_v45  ;;  %v2508_v47 = vld [vmem:[%s11487_s17 + $0x8] sm:$0x3] }
 0x161   : > { %v2062_v30 = vpop.permute.xlu1 %2061  ;;  %v2031_v34 = vpop.permute.xlu0 %2030  ;;  %2415 = vmatprep.subr.bf16.mxu1 %v2209_v46 }
 0x162   : > { %v2038_v1 = vsel %vm2036_vm2, %v2031_v34, %v12214_v25  ;;  %v2039_v18 = vsel %vm2036_vm2, %v16413_v13, %v2031_v34  ;;  %v2008_v25 = vsel %vm2005_vm1, %v16414_v9, %v2000_v33  ;;  %v2069_v37 = vsel %vm2067_vm3, %v2062_v30, %v12258_v50 }
 0x163   : > { %9507 = vmatmul.mubr.msk.bf16.vlgmr.msra.gmra.mrb[0].mxu1 %vm2257_vm9, %v12086_v8  ;;  %9513 = vmatmul.mubr.msk.bf16.vlgmr.msra.gmra.mrb[8].mxu0 %vm2257_vm9, %v12086_v8  ;;  %v2219_v51 = vpack.c.bf16 %v2038_v1, %v2007_v48  ;;  %v2218_v60 = vpack.c.bf16 %v2039_v18, %v2008_v25  ;;  %v2070_v39 = vsel %vm2067_vm3, %v16416_v29, %v2062_v30 }
 0x164   : > { %2416 = vmatpush1.bf16.msra.mxu1 %v2208_v11  ;;  %2447 = vmatprep.mubr.bf16.mxu1 %v16248_v10 }
 0x165   : > { %v2124_v14 = vpop.permute.xlu1 %2123  ;;  %v2093_v27 = vpop.permute.xlu0 %2092  ;;  %2417 = vmatprep.subr.bf16.mxu1 %v2219_v51  ;;  %3005 = vmatprep.mubr.bf16.mxu0 %v16248_v10 }
 0x166   : > { %v2100_v41 = vsel %vm2098_vm4, %v2093_v27, %v12256_v35  ;;  %v2101_v45 = vsel %vm2098_vm4, %v16415_v22, %v2093_v27  ;;  %v2131_v50 = vsel %vm2129_vm5, %v2124_v14, %v12292_v32  ;;  %v16418_v32 = vunpack.i.l.bf16 %v12118_v3 }
 0x167   : > { %v2229_v24 = vpack.c.bf16 %v2100_v41, %v2069_v37  ;;  %v2228_v35 = vpack.c.bf16 %v2101_v45, %v2070_v39  ;;  %v2512_v3 = vshrl.u32 %v16419_v2, 7 }
 0x168   : > { %2418 = vmatpush1.bf16.msra.mxu1 %v2218_v60 }
 0x169   : > { %v2186_v38 = vpop.permute.xlu1 %2185  ;;  %v2155_v42 = vpop.permute.xlu0 %2154  ;;  %2419 = vmatprep.subr.bf16.mxu1 %v2229_v24  ;;  %v12395_v49 = vsub.s32 0, %v2512_v3  ;;  %v12402_v62 = vsub.s32 1, %v2512_v3  ;;  %v12418_v31 = vsub.s32 2, %v2512_v3  ;;  %v12421_v26 = vsub.s32 4, %v2512_v3 }
 0x16a   : > { %v2162_v7 = vsel %vm2160_vm6, %v2155_v42, %v12290_v61  ;;  %v2163_v17 = vsel %vm2160_vm6, %v10170_v52, %v2155_v42  ;;  %v2193_v15 = vsel %vm2191_vm7, %v2186_v38, %v10216_v53  ;;  %v2194_v12 = vsel %vm2191_vm7, %v16417_v0, %v2186_v38 }
 0x16b   : > { %v2239_v43 = vpack.c.bf16 %v2162_v7, %v2131_v50  ;;  %v2132_v61 = vsel %vm2129_vm5, %v16418_v32, %v2124_v14  ;;  %v2248_v28 = vpack.c.bf16 %v2194_v12, %v2194_v12  ;;  %v2249_v52 = vpack.c.bf16 %v2193_v15, %v2193_v15  ;;  %16420 = vst [vmem:[#allocation55_spill] sm:$0xff] %v12395_v49 }
 0x16c   : > { %2420 = vmatpush1.bf16.msra.mxu1 %v2228_v35  ;;  %v2238_v5 = vpack.c.bf16 %v2163_v17, %v2132_v61  ;;  %16421 = vst [vmem:[#allocation56_spill] sm:$0xff] %v12402_v62  ;;  %v12407_v44 = vrot.slane %v12400_v16, %v12395_v49  ;;  %v12412_v57 = vrot.slane %v12400_v16, %v12402_v62  ;;  %16422 = vst [vmem:[#allocation57_spill] sm:$0xff] %v12418_v31 }
 0x16d   : > { %2421 = vmatprep.subr.bf16.mxu1 %v2239_v43  ;;  %v2281_v36 = vsel %vm2261_vm8, %v2248_v28, 0  ;;  %16423 = vst [vmem:[#allocation58_spill] sm:$0xff] %v12421_v26  ;;  %v12424_v48 = vsub.s32 5, %v2512_v3  ;;  %v12429_v1 = vrot.slane %v12400_v16, %v12418_v31  ;;  %v12434_v25 = vrot.slane %v2508_v47, %v12402_v62 }
 0x16e   : > { %v12438_v24 = vrot.slane %v12400_v16, %v12421_v26  ;;  %v12446_v50 = vsub.s32 3, %v2512_v3  ;;  %v12461_v12 = vsub.s32 6, %v2512_v3  ;;  %v12463_v32 = vsub.s32 7, %v2512_v3 }
 0x16f   : > { %16424 = vst [vmem:[#allocation59_spill] sm:$0xff] %v12424_v48  ;;  %v12442_v29 = vrot.slane %v12400_v16, %v12424_v48  ;;  %v16439_v26 = vmov 0  }
 0x170   : > { %2422 = vmatpush1.bf16.msra.mxu1 %v2238_v5  ;;  %16425 = vst [vmem:[#allocation60_spill] sm:$0xff] %v12446_v50  ;;  %v12455_v15 = vrot.slane %v12400_v16, %v12446_v50  ;;  %16426 = vst [vmem:[#allocation61_spill] sm:$0xff] %v12461_v12 }
 0x171   : > { %9510 = vmatprep.subr.msk.bf16.mxu1 %vm2261_vm8, %v2249_v52  ;;  %16427 = vst [vmem:[#allocation62_spill] sm:$0xff] %v12463_v32  ;;  %v12469_v52 = vrot.slane %v12400_v16, %v12461_v12 }
 0x173   : > { %16428 = vst [vmem:[#allocation63_spill] sm:$0xff] %v12469_v52 }
 0x174   : > { %2424 = vmatpush1.bf16.msra.mxu1 %v2281_v36 }
 0x177   : > { %9511 = vmatmul.mubr.msk.bf16.vlgmr.msra.gmra.mrb[4].mxu1 %vm2257_vm9, %v12086_v8 }
 0x178   : > { %2964 = vmatprep.mubr.bf16.mxu1 %v16248_v10 }
 0x17a   : > { %v12397_v63 = vpop.permute.xlu0 %2254 }
 0x206   : > { %v2326_v20 = vpop.f32.mrb[0].mxu0 }
 0x207   : > { %v2327_v53 = vadd.f32 %v2326_v20, %v12397_v63  ;;  %v2328_v8 = vpop.f32.mrb[1].mxu0  ;;  %v12474_v20 = vrot.slane %v12400_v16, %v12463_v32 }
 0x208   : > { %v2329_v6 = vadd.f32 %v2328_v8, %v12397_v63  ;;  %v2330_v4 = vpop.f32.mrb[2].mxu0 }
 0x209   : > { %v2497_v54 = vmax.f32 %v2327_v53, 0.0  ;;  %v2331_v56 = vpop.f32.mrb[3].mxu0  ;;  %16429 = vst [vmem:[#allocation64_spill] sm:$0xff] %v12474_v20 }
 0x20a   : > { %v2498_v33 = vmax.f32 %v2329_v6, 0.0 }
 0x20b   : > { %v2561_v59 = vmul.f32 %v12407_v44, %v2497_v54  ;;  %v12477_v54 = vrot.slane %v2508_v47, %v12395_v49 }
 0x20c   : > { %v2562_v55 = vmul.f32 %v12412_v57, %v2498_v33 }
 0x20d   : > { %2571 = vrot.lane.b32.xlu1 %v2561_v59, %s11432_s11  ;;  %16430 = vst [vmem:[#allocation65_spill] sm:$0xff] %v12477_v54 }
 0x211   : > { %2573 = vrot.lane.b32.xlu1 %v2562_v55, %s11432_s11 }
 0x21a   : > { %v2408_v58 = vpop.f32.mrb[4].mxu0 }
 0x21b   : > { %v2410_v19 = vpop.f32.mrb[5].mxu0  ;;  %v2409_v34 = vadd.f32 %v2408_v58, %v12397_v63 }
 0x21c   : > { %v2412_v23 = vpop.f32.mrb[6].mxu0  ;;  %v2411_v51 = vadd.f32 %v2410_v19, %v12397_v63 }
 0x21d   : > { %v2413_v40 = vpop.f32.mrb[7].mxu0  ;;  %v2501_v45 = vmax.f32 %v2409_v34, 0.0 }
 0x21e   : > { %v2502_v38 = vmax.f32 %v2411_v51, 0.0 }
 0x21f   : > { %v2565_v7 = vmul.f32 %v12438_v24, %v2501_v45 }
 0x220   : > { %v2566_v17 = vmul.f32 %v12442_v29, %v2502_v38 }
 0x236   : > { %v2367_v46 = vpop.f32.mrb[0].mxu1  ;;  %v2490_v30 = vpop.f32.mrb[8].mxu0 }
 0x237   : > { %v2368_v11 = vadd.f32 %v2367_v46, %v12397_v63  ;;  %v2369_v13 = vpop.f32.mrb[1].mxu1  ;;  %v2492_v18 = vpop.f32.mrb[9].mxu0  ;;  %v2491_v5 = vadd.f32 %v2490_v30, %v12397_v63 }
 0x238   : > { %v2493_v9 = vadd.f32 %v2492_v18, %v12397_v63  ;;  %v2371_v14 = vpop.f32.mrb[2].mxu1  ;;  %v2494_v27 = vpop.f32.mrb[10].mxu0  ;;  %v2370_v42 = vadd.f32 %v2369_v13, %v12397_v63 }
 0x239   : > { %v2499_v37 = vmax.f32 %v2368_v11, 0.0  ;;  %v2372_v60 = vpop.f32.mrb[3].mxu1  ;;  %v2495_v41 = vpop.f32.mrb[11].mxu0  ;;  %v2505_v4 = vmax.f32 %v2491_v5, 0.0 }
 0x23a   : > { %v2506_v22 = vmax.f32 %v2493_v9, 0.0  ;;  %v2500_v43 = vmax.f32 %v2370_v42, 0.0 }
 0x23b   : > { %v2563_v39 = vmul.f32 %v12429_v1, %v2499_v37 }
 0x23c   : > { %v2570_v35 = vmul.f32 %v12434_v25, %v2506_v22  ;;  %v2564_v0 = vmul.f32 %v12455_v15, %v2500_v43 }
 0x23d   : > { %2575 = vrot.lane.b32.xlu0 %v2563_v39, %s11432_s11 }
 0x23e   : > { %2589 = vrot.lane.b32.xlu1 %v2570_v35, %s11432_s11 }
 0x241   : > { %2579 = vrot.lane.b32.xlu0 %v2565_v7, %s11432_s11 }
 0x242   : > { %2581 = vrot.lane.b32.xlu1 %v2566_v17, %s11432_s11  ;;  %v2603_v17 = vld [vmem:[%s11497_s25] sm:$0xff] }
 0x246   : > { %2577 = vrot.lane.b32.xlu1 %v2564_v0, %s11432_s11 }
 0x24a   : > { %v2449_v61 = vpop.f32.mrb[4].mxu1 }
 0x24b   : > { %v2450_v28 = vadd.f32 %v2449_v61, %v12397_v63  ;;  %v2451_v36 = vpop.f32.mrb[5].mxu1 }
 0x24c   : > { %v2452_v2 = vadd.f32 %v2451_v36, %v12397_v63  ;;  %v2453_v53 = vpop.f32.mrb[6].mxu1  ;;  %v2569_v63 = vmul.f32 %v12477_v54, %v2505_v4 }
 0x24d   : > { %v2503_v8 = vmax.f32 %v2450_v28, 0.0  ;;  %v2454_v3 = vpop.f32.mrb[7].mxu1 }
 0x24e   : > { %v2504_v6 = vmax.f32 %v2452_v2, 0.0 }
 0x24f   : > { %v2567_v56 = vmul.f32 %v12469_v52, %v2503_v8 }
 0x250   : > { %v2568_v33 = vmul.f32 %v12474_v20, %v2504_v6 }
 0x251   : > { %2583 = vrot.lane.b32.xlu0 %v2567_v56, %s11432_s11 }
 0x252   : > { %2585 = vrot.lane.b32.xlu1 %v2568_v33, %s11432_s11 }
 0x255   : > { %2587 = vrot.lane.b32.xlu0 %v2569_v63, %s11432_s11 }
 0x27f   : > { %v2572_v16 = vpop.permute.xlu1 %2571 }
 0x283   : > { %v2574_v59 = vpop.permute.xlu1 %2573 }
 0x284   : > { %v12488_v58 = vsel %vm2591_vm10, %v2572_v16, %v2574_v59 }
 0x285   : > { %16431 = vst [vmem:[#allocation66_spill] sm:$0xff] %v12488_v58 }
 0x2af   : > { %v2576_v55 = vpop.permute.xlu0 %2575 }
 0x2b0   : > { %v12492_v19 = vsel %vm2591_vm10, %v2574_v59, %v2576_v55  ;;  %v2590_v23 = vpop.permute.xlu1 %2589 }
 0x2b1   : > { %v10228_v40 = vpack.i.bf16 %v12492_v19, %v12488_v58  ;;  %v12524_v14 = vsel %vm2591_vm10, %v2590_v23, %v2572_v16 }
 0x2b2   : > { %16434 = vst [vmem:[#allocation69_spill] sm:$0xff] %v12524_v14  ;;  %v10313_v37 = vpack.i.bf16 %v12488_v58, %v12524_v14 }
 0x2b3   : > { %10229 = vrot.lane.b32.xlu1 %v10228_v40, %s11425_s26  ;;  %10219 = vrot.lane.b32.xlu0 %v10228_v40, %s16288_s23  ;;  %v2580_v30 = vpop.permute.xlu0 %2579 }
 0x2b4   : > { %v2582_v47 = vpop.permute.xlu1 %2581 }
 0x2b5   : > { %v12518_v9 = vsel %vm2591_vm10, %v2580_v30, %v2582_v47 }
 0x2b6   : > { %16433 = vst [vmem:[#allocation68_spill] sm:$0xff] %v12518_v9  ;;  %v10273_v27 = vpack.i.bf16 %v12518_v9, %v12524_v14 }
 0x2b7   : > { %10239 = vrot.lane.b32.xlu1 %v10228_v40, %s11426_s28  ;;  %10224 = vrot.lane.b32.xlu0 %v10228_v40, %s16302_s22 }
 0x2b8   : > { %v2578_v46 = vpop.permute.xlu1 %2577 }
 0x2b9   : > { %v12502_v34 = vsel %vm2591_vm10, %v2578_v46, %v2580_v30  ;;  %v12568_v38 = vsel %vm2591_vm10, %v2576_v55, %v2578_v46 }
 0x2ba   : > { %16432 = vst [vmem:[#allocation67_spill] sm:$0xff] %v12502_v34  ;;  %v10253_v11 = vpack.i.bf16 %v12502_v34, %v12492_v19 }
 0x2bb   : > { %10249 = vrot.lane.b32.xlu1 %v10228_v40, %s11428_s2  ;;  %10234 = vrot.lane.b32.xlu0 %v10228_v40, %s11427_s1 }
 0x2bf   : > { %10244 = vrot.lane.b32.xlu0 %v10228_v40, %s11429_s7  ;;  %10254 = vrot.lane.b32.xlu1 %v10253_v11, %s11431_s10 }
 0x2c3   : > { %v2584_v13 = vpop.permute.xlu0 %2583 }
 0x2c4   : > { %v12512_v18 = vsel %vm2591_vm10, %v2582_v47, %v2584_v13  ;;  %v2586_v22 = vpop.permute.xlu1 %2585 }
 0x2c5   : > { %v10258_v51 = vpack.i.bf16 %v12502_v34, %v12512_v18  ;;  %v10333_v60 = vpack.i.bf16 %v12512_v18, %v12518_v9  ;;  %v12588_v7 = vsel %vm2591_vm10, %v2584_v13, %v2586_v22 }
 0x2c7   : > { %10259 = vrot.lane.b32.xlu0 %v10258_v51, %s16288_s23  ;;  %10264 = vrot.lane.b32.xlu1 %v10258_v51, %s16302_s22  ;;  %v2588_v41 = vpop.permute.xlu0 %2587 }
 0x2c8   : > { %v12548_v45 = vsel %vm2591_vm10, %v2586_v22, %v2588_v41  ;;  %v12560_v39 = vsel %vm2591_vm10, %v2588_v41, %v2590_v23 }
 0x2c9   : > { %16435 = vst [vmem:[#allocation70_spill] sm:$0xff] %v12548_v45  ;;  %16436 = vst [vmem:[#allocation71_spill] sm:$0xff] %v12560_v39  ;;  %v10338_v42 = vpack.i.bf16 %v12560_v39, %v12568_v38  ;;  %v10368_v35 = vpack.i.bf16 %v12548_v45, %v12568_v38 }
 0x2cb   : > { %10269 = vrot.lane.b32.xlu0 %v10258_v51, %s11425_s26  ;;  %10274 = vrot.lane.b32.xlu1 %v10273_v27, %s16288_s23 }
 0x2cf   : > { %10279 = vrot.lane.b32.xlu0 %v10273_v27, %s16302_s22  ;;  %10284 = vrot.lane.b32.xlu1 %v10273_v27, %s11425_s26 }
 0x2d3   : > { %10289 = vrot.lane.b32.xlu0 %v10273_v27, %s11427_s1  ;;  %10294 = vrot.lane.b32.xlu1 %v10273_v27, %s11426_s28 }
 0x2d7   : > { %10299 = vrot.lane.b32.xlu0 %v10273_v27, %s11429_s7  ;;  %10304 = vrot.lane.b32.xlu1 %v10273_v27, %s11428_s2 }
 0x2db   : > { %10314 = vrot.lane.b32.xlu0 %v10313_v37, %s11431_s10  ;;  %10309 = vrot.lane.b32.xlu1 %v10258_v51, %s11427_s1 }
 0x2df   : > { %10319 = vrot.lane.b32.xlu0 %v10258_v51, %s11426_s28  ;;  %10324 = vrot.lane.b32.xlu1 %v10258_v51, %s11429_s7 }
 0x2e3   : > { %10329 = vrot.lane.b32.xlu0 %v10258_v51, %s11428_s2  ;;  %10334 = vrot.lane.b32.xlu1 %v10333_v60, %s11431_s10 }
 0x2e7   : > { %2650 = vrot.lane.b32.xlu0 %v12548_v45, %s16302_s22  ;;  %2620 = vrot.lane.b32.xlu1 %v12548_v45, %s16288_s23 }
 0x2eb   : > { %2710 = vrot.lane.b32.xlu0 %v12548_v45, %s11427_s1  ;;  %2680 = vrot.lane.b32.xlu1 %v12548_v45, %s11425_s26 }
 0x2ef   : > { %2770 = vrot.lane.b32.xlu0 %v12548_v45, %s11429_s7  ;;  %2740 = vrot.lane.b32.xlu1 %v12548_v45, %s11426_s28 }
 0x2f3   : > { %10339 = vrot.lane.b32.xlu0 %v10338_v42, %s16288_s23  ;;  %2800 = vrot.lane.b32.xlu1 %v12548_v45, %s11428_s2 }
 0x2f7   : > { %10344 = vrot.lane.b32.xlu0 %v10338_v42, %s16302_s22  ;;  %10349 = vrot.lane.b32.xlu1 %v10338_v42, %s11425_s26 }
 0x2fb   : > { %10354 = vrot.lane.b32.xlu0 %v10338_v42, %s11427_s1  ;;  %10359 = vrot.lane.b32.xlu1 %v10338_v42, %s11426_s28 }
 0x2ff   : > { %10364 = vrot.lane.b32.xlu0 %v10338_v42, %s11429_s7  ;;  %10374 = vrot.lane.b32.xlu1 %v10338_v42, %s11428_s2 }
 0x303   : > { %10369 = vrot.lane.b32.xlu0 %v10368_v35, %s11431_s10  ;;  %2832 = vrot.lane.b32.xlu1 %v12560_v39, %s11431_s10 }
 0x307   : > { %2618 = vrot.lane.b32.xlu0 %v12588_v7, %s16288_s23  ;;  %2648 = vrot.lane.b32.xlu1 %v12588_v7, %s16302_s22 }
 0x30b   : > { %2678 = vrot.lane.b32.xlu0 %v12588_v7, %s11425_s26  ;;  %2708 = vrot.lane.b32.xlu1 %v12588_v7, %s11427_s1 }
 0x30f   : > { %2738 = vrot.lane.b32.xlu0 %v12588_v7, %s11426_s28  ;;  %2768 = vrot.lane.b32.xlu1 %v12588_v7, %s11429_s7 }
 0x313   : > { %2798 = vrot.lane.b32.xlu0 %v12588_v7, %s11428_s2  ;;  %2828 = vrot.lane.b32.xlu1 %v12588_v7, %s11431_s10 }
 0x317   : > { %2896 = vperm.xlu0 %10217, %v2603_v17  }
 0x325   : > { %v12607_v43 = vpop.permute.xlu0 %10219  ;;  %v12609_v0 = vpop.permute.xlu1 %10229 }
 0x326   : > { %v16247_v61 = vunpack.i.h.bf16 %v12607_v43  ;;  %v10221_v5 = vunpack.i.l.bf16 %v12607_v43  ;;  %v16233_v59 = vunpack.i.h.bf16 %v12609_v0  ;;  %v10231_v55 = vunpack.i.l.bf16 %v12609_v0 }
 0x328   : > { %v2631_v28 = vsel %vm1974_vm0, %v10221_v5, %v16247_v61  ;;  %v2691_v22 = vsel %vm2036_vm2, %v10231_v55, %v16233_v59 }
 0x329   : > { %v12617_v36 = vpop.permute.xlu0 %10224  ;;  %v12619_v2 = vpop.permute.xlu1 %10239  ;;  %v2845_v53 = vpack.c.bf16 %v2631_v28, %v12488_v58 }
 0x32a   : > { %v16234_v63 = vunpack.i.h.bf16 %v12617_v36  ;;  %v10226_v16 = vunpack.i.l.bf16 %v12617_v36  ;;  %v16238_v51 = vunpack.i.h.bf16 %v12619_v2  ;;  %v10241_v27 = vunpack.i.l.bf16 %v12619_v2 }
 0x32b   : > { %2932 = vmatprep.subr.bf16.mxu1 %v2845_v53 }
 0x32c   : > { %v2661_v11 = vsel %vm2005_vm1, %v10226_v16, %v16234_v63 }
 0x32d   : > { %v12622_v8 = vpop.permute.xlu0 %10234  ;;  %v12624_v3 = vpop.permute.xlu1 %10249  ;;  %v2855_v17 = vpack.c.bf16 %v2691_v22, %v2661_v11 }
 0x32e   : > { %v16235_v46 = vunpack.i.h.bf16 %v12622_v8  ;;  %v10236_v30 = vunpack.i.l.bf16 %v12622_v8  ;;  %v16242_v22 = vunpack.i.h.bf16 %v12624_v3 }
 0x330   : > { %v2721_v53 = vsel %vm2067_vm3, %v10236_v30, %v16235_v46 }
 0x331   : > { %v12626_v6 = vpop.permute.xlu0 %10244  ;;  %v12628_v4 = vpop.permute.xlu1 %10254 }
 0x332   : > { %v10246_v28 = vunpack.i.l.bf16 %v12626_v6 }
 0x339   : > { %v12630_v56 = vpop.permute.xlu0 %10259  ;;  %v12632_v33 = vpop.permute.xlu1 %10264 }
 0x33a   : > { %v16257_v10 = vunpack.i.l.bf16 %v12632_v33 }
 0x33d   : > { %v12638_v23 = vpop.permute.xlu0 %10269  ;;  %v12640_v40 = vpop.permute.xlu1 %10274 }
 0x33e   : > { %v16237_v47 = vunpack.i.l.bf16 %v12640_v40  ;;  %v16258_v32 = vunpack.i.l.bf16 %v12638_v23 }
 0x340   : > { %v2632_v13 = vsel %vm1974_vm0, %v16237_v47, %v10221_v5  ;;  %v16239_v5 = vunpack.i.h.bf16 %v12626_v6 }
 0x341   : > { %v12655_v37 = vpop.permute.xlu0 %10279  ;;  %v12657_v60 = vpop.permute.xlu1 %10284  ;;  %v2844_v41 = vpack.c.bf16 %v2632_v13, %v12524_v14 }
 0x342   : > { %v16236_v42 = vunpack.i.l.bf16 %v12655_v37  ;;  %v16241_v35 = vunpack.i.l.bf16 %v12657_v60 }
 0x343   : > { %2933 = vmatpush1.bf16.msra.mxu1 %v2844_v41  ;;  %v10251_v41 = vunpack.i.l.bf16 %v12624_v3 }
 0x344   : > { %v2662_v13 = vsel %vm2005_vm1, %v16236_v42, %v10226_v16  ;;  %v2692_v11 = vsel %vm2036_vm2, %v16241_v35, %v10231_v55  ;;  %2934 = vmatprep.subr.bf16.mxu1 %v2855_v17  ;;  %v2751_v16 = vsel %vm2098_vm4, %v10241_v27, %v16238_v51  ;;  %v2781_v17 = vsel %vm2129_vm5, %v10246_v28, %v16239_v5 }
 0x345   : > { %v12682_v59 = vpop.permute.xlu0 %10289  ;;  %v12684_v63 = vpop.permute.xlu1 %10294  ;;  %v2854_v46 = vpack.c.bf16 %v2692_v11, %v2662_v13  ;;  %v2865_v55 = vpack.c.bf16 %v2751_v16, %v2721_v53  ;;  %v2811_v16 = vsel %vm2160_vm6, %v10251_v41, %v16242_v22  ;;  %v10277_v35 = vunpack.i.h.bf16 %v12640_v40 }
 0x346   : > { %v16240_v42 = vunpack.i.l.bf16 %v12682_v59  ;;  %v16243_v47 = vunpack.i.l.bf16 %v12684_v63  ;;  %v10292_v12 = vunpack.i.h.bf16 %v12682_v59 }
 0x347   : > { %2935 = vmatpush1.bf16.msra.mxu1 %v2854_v46 }
 0x348   : > { %v2722_v13 = vsel %vm2067_vm3, %v16240_v42, %v10236_v30  ;;  %v2752_v11 = vsel %vm2098_vm4, %v16243_v47, %v10241_v27  ;;  %2936 = vmatprep.subr.bf16.mxu1 %v2865_v55  ;;  %v2875_v42 = vpack.c.bf16 %v2811_v16, %v2781_v17 }
 0x349   : > { %v12704_v51 = vpop.permute.xlu0 %10299  ;;  %v12706_v53 = vpop.permute.xlu1 %10304  ;;  %v2864_v46 = vpack.c.bf16 %v2752_v11, %v2722_v13  ;;  %v16245_v13 = vunpack.i.l.bf16 %v12630_v56 }
 0x34a   : > { %v16246_v5 = vunpack.i.l.bf16 %v12704_v51  ;;  %v16244_v30 = vunpack.i.l.bf16 %v12706_v53  ;;  %v10302_v49 = vunpack.i.h.bf16 %v12704_v51 }
 0x34b   : > { %2937 = vmatpush1.bf16.msra.mxu1 %v2864_v46  ;;  %v16252_v46 = vunpack.i.l.bf16 %v12628_v4 }
 0x34c   : > { %v2782_v27 = vsel %vm2129_vm5, %v16246_v5, %v10246_v28  ;;  %v2812_v55 = vsel %vm2160_vm6, %v16244_v30, %v10251_v41  ;;  %2938 = vmatprep.subr.bf16.mxu1 %v2875_v42  ;;  %v2627_v28 = vsel %vm1974_vm0, %v10277_v35, %v16245_v13  ;;  %v10282_v42 = vunpack.i.h.bf16 %v12655_v37 }
 0x34d   : > { %v12724_v11 = vpop.permute.xlu0 %10314  ;;  %v12726_v22 = vpop.permute.xlu1 %10309  ;;  %v2874_v17 = vpack.c.bf16 %v2812_v55, %v2782_v27  ;;  %v10287_v41 = vunpack.i.h.bf16 %v12657_v60 }
 0x34e   : > { %v10317_v16 = vunpack.i.h.bf16 %v12724_v11  ;;  %v16253_v47 = vunpack.i.l.bf16 %v12724_v11  ;;  %v16442_v14 = vunpack.i.h.bf16 %v12726_v22 }
 0x34f   : > { %2939 = vmatpush1.bf16.msra.mxu1 %v2874_v17  ;;  %v16256_v17 = vunpack.i.h.bf16 %v12630_v56 }
 0x350   : > { %v2841_v27 = vsel %vm2191_vm7, %v10317_v16, %v16252_v46  ;;  %v2842_v55 = vsel %vm2191_vm7, %v16253_v47, %v10317_v16  ;;  %v2849_v47 = vpack.c.bf16 %v2627_v28, %v12518_v9 }
 0x351   : > { %v12746_v30 = vpop.permute.xlu0 %10319  ;;  %v12748_v13 = vpop.permute.xlu1 %10324  ;;  %v2885_v5 = vpack.c.bf16 %v2841_v27, %v2841_v27  ;;  %v2884_v61 = vpack.c.bf16 %v2842_v55, %v2842_v55  ;;  %v2628_v46 = vsel %vm1974_vm0, %v16256_v17, %v10277_v35  ;;  %v12761_v27 = vld [vmem:[%s11492_s21] sm:$0xf]  ;;  %v2657_v55 = vsel %vm2005_vm1, %v10282_v42, %v16257_v10 }
 0x352   : > { %v2687_v35 = vsel %vm2036_vm2, %v10287_v41, %v16258_v32  ;;  %v2848_v10 = vpack.c.bf16 %v2628_v46, %v12502_v34  ;;  %v16437_v50 = vunpack.i.l.bf16 %v12746_v30  ;;  %v16438_v46 = vunpack.i.l.bf16 %v12726_v22 }
 0x353   : > { %9514 = vmatprep.subr.msk.bf16.mxu1 %vm2261_vm8, %v2885_v5  ;;  %v2903_v16 = vsel %vm2261_vm8, %v2884_v61, 0  ;;  %v16265_v5 = vunpack.i.h.bf16 %v12632_v33  ;;  %v16268_v61 = vunpack.i.h.bf16 %v12638_v23  ;;  %v16443_v62 = vunpack.i.l.bf16 %v12748_v13 }
 0x354   : > { %2941 = vmatpush1.bf16.msra.mxu1 %v2903_v16  ;;  %v10297_v16 = vunpack.i.h.bf16 %v12684_v63 }
 0x355   : > { %v12773_v28 = vpop.permute.xlu0 %10329  ;;  %v12775_v17 = vpop.permute.xlu1 %10334  ;;  %3014 = vmatprep.subr.bf16.mxu1 %v2849_v47  ;;  %v2658_v32 = vsel %vm2005_vm1, %v16265_v5, %v10282_v42  ;;  %v2688_v48 = vsel %vm2036_vm2, %v16268_v61, %v10287_v41  ;;  %v2859_v47 = vpack.c.bf16 %v2687_v35, %v2657_v55  ;;  %v10307_v61 = vunpack.i.h.bf16 %v12706_v53 }
 0x356   : > { %v2747_v42 = vsel %vm2098_vm4, %v10297_v16, %v16437_v50  ;;  %v2858_v35 = vpack.c.bf16 %v2688_v48, %v2658_v32  ;;  %v16440_v50 = vunpack.i.h.bf16 %v12746_v30  ;;  %v10336_v48 = vunpack.i.l.bf16 %v12775_v17 }
 0x357   : > { %9515 = vmatmul.mubr.msk.bf16.vlgmr.msra.gmra.mrb[8].mxu1 %vm2257_vm9, %v12761_v27  ;;  %v16441_v32 = vunpack.i.l.bf16 %v12773_v28  ;;  %v16276_v55 = vunpack.i.h.bf16 %v12628_v4  ;;  %v16444_v34 = vunpack.i.h.bf16 %v12773_v28 }
 0x358   : > { %3015 = vmatpush1.bf16.msra.mxu1 %v2848_v10  ;;  %v2717_v10 = vsel %vm2067_vm3, %v10292_v12, %v16438_v46  ;;  %3046 = vmatprep.mubr.bf16.mxu1 %v16439_v26  ;;  %v2748_v5 = vsel %vm2098_vm4, %v16440_v50, %v10297_v16  ;;  %v2718_v16 = vsel %vm2067_vm3, %v16442_v14, %v10292_v12  ;;  %v16445_v50 = vunpack.i.h.bf16 %v12775_v17 }
 0x359   : > { %v12798_v31 = vpop.permute.xlu0 %2650  ;;  %v12800_v41 = vpop.permute.xlu1 %2620  ;;  %3016 = vmatprep.subr.bf16.mxu1 %v2859_v47  ;;  %v2869_v47 = vpack.c.bf16 %v2747_v42, %v2717_v10  ;;  %v2807_v46 = vsel %vm2160_vm6, %v10307_v61, %v16441_v32  ;;  %v2777_v32 = vsel %vm2129_vm5, %v10302_v49, %v16443_v62  ;;  %v2808_v12 = vsel %vm2160_vm6, %v16444_v34, %v10307_v61 }
 0x35a   : > { %v2879_v14 = vpack.c.bf16 %v2807_v46, %v2777_v32 }
 0x35c   : > { %3017 = vmatpush1.bf16.msra.mxu1 %v2858_v35  ;;  %v2868_v35 = vpack.c.bf16 %v2748_v5, %v2718_v16  ;;  %v2838_v5 = vsel %vm2191_vm7, %v16276_v55, %v10336_v48  ;;  %v16446_v16 = vunpack.i.h.bf16 %v12748_v13 }
 0x35d   : > { %v12826_v42 = vpop.permute.xlu0 %2710  ;;  %v12828_v10 = vpop.permute.xlu1 %2680  ;;  %3018 = vmatprep.subr.bf16.mxu1 %v2869_v47  ;;  %v2837_v47 = vsel %vm2191_vm7, %v10336_v48, %v16445_v50 }
 0x35e   : > { %v2778_v62 = vsel %vm2129_vm5, %v16446_v16, %v10302_v49  ;;  %v2889_v46 = vpack.c.bf16 %v2837_v47, %v2837_v47  ;;  %v16447_v16 = vunpack.i.h.bf16 %v12607_v43 }
 0x35f   : > { %v2878_v61 = vpack.c.bf16 %v2808_v12, %v2778_v62 }
 0x360   : > { %3019 = vmatpush1.bf16.msra.mxu1 %v2868_v35  ;;  %v2888_v35 = vpack.c.bf16 %v2838_v5, %v2838_v5  ;;  %v16449_v5 = vunpack.i.l.bf16 %v12640_v40 }
 0x361   : > { %v12851_v9 = vpop.permute.xlu0 %2770  ;;  %v12853_v34 = vpop.permute.xlu1 %2740  ;;  %3020 = vmatprep.subr.bf16.mxu1 %v2879_v14  ;;  %v16448_v14 = vunpack.i.h.bf16 %v12630_v56 }
 0x362   : > { %v2915_v58 = vsel %vm2261_vm8, %v2888_v35, 0 }
 0x364   : > { %3021 = vmatpush1.bf16.msra.mxu1 %v2878_v61 }
 0x365   : > { %v10340_v50 = vpop.permute.xlu0 %10339  ;;  %v12855_v32 = vpop.permute.xlu1 %2800  ;;  %9518 = vmatprep.subr.msk.bf16.mxu1 %vm2261_vm8, %v2889_v46 }
 0x366   : > { %v10342_v48 = vunpack.i.h.bf16 %v10340_v50  ;;  %v10341_v55 = vunpack.i.l.bf16 %v10340_v50 }
 0x368   : > { %v2624_v49 = vsel %vm1974_vm0, %v12800_v41, %v10342_v48  ;;  %v2630_v12 = vsel %vm1974_vm0, %v16447_v16, %v10341_v55  ;;  %3023 = vmatpush1.bf16.msra.mxu1 %v2915_v58  ;;  %v2629_v47 = vsel %vm1974_vm0, %v10341_v55, %v16448_v14  ;;  %v2633_v62 = vsel %vm1974_vm0, %v10342_v48, %v16449_v5 }
 0x369   : > { %v10345_v61 = vpop.permute.xlu0 %10344  ;;  %v10350_v46 = vpop.permute.xlu1 %10349  ;;  %v2847_v35 = vpack.c.bf16 %v2629_v47, %v12568_v38  ;;  %v2853_v43 = vpack.c.bf16 %v2633_v62, %v12560_v39  ;;  %v2846_v50 = vpack.c.bf16 %v2630_v12, %v12492_v19  ;;  %v2852_v58 = vpack.c.bf16 %v2624_v49, %v12548_v45 }
 0x36a   : > { %v10347_v16 = vunpack.i.h.bf16 %v10345_v61  ;;  %v10346_v54 = vunpack.i.l.bf16 %v10345_v61  ;;  %v10352_v20 = vunpack.i.h.bf16 %v10350_v46  ;;  %v10351_v52 = vunpack.i.l.bf16 %v10350_v46 }
 0x36b   : > { %2973 = vmatprep.subr.bf16.mxu0 %v2847_v35  ;;  %9519 = vmatmul.mubr.msk.bf16.vlgmr.msra.gmra.mrb[12].mxu1 %vm2257_vm9, %v12761_v27  ;;  %v16450_v55 = vunpack.i.h.bf16 %v12617_v36  ;;  %v16451_v12 = vunpack.i.h.bf16 %v12609_v0  ;;  %v16452_v62 = vunpack.i.h.bf16 %v12632_v33  ;;  %v16453_v61 = vunpack.i.h.bf16 %v12638_v23 }
 0x36c   : > { %v2654_v40 = vsel %vm2005_vm1, %v12798_v31, %v10347_v16  ;;  %v2684_v49 = vsel %vm2036_vm2, %v12828_v10, %v10352_v20  ;;  %3096 = vmatprep.subr.bf16.mxu1 %v2853_v43  ;;  %2974 = vmatpush1.bf16.msra.mxu0 %v2846_v50  ;;  %v16454_v0 = vunpack.i.l.bf16 %v12655_v37  ;;  %v16455_v39 = vunpack.i.l.bf16 %v12657_v60 }
 0x36d   : > { %v2660_v48 = vsel %vm2005_vm1, %v16450_v55, %v10346_v54  ;;  %v2690_v14 = vsel %vm2036_vm2, %v16451_v12, %v10351_v52  ;;  %3097 = vmatpush1.bf16.msra.mxu1 %v2852_v58  ;;  %v10355_v47 = vpop.permute.xlu0 %10354  ;;  %v10360_v5 = vpop.permute.xlu1 %10359  ;;  %v2659_v36 = vsel %vm2005_vm1, %v10346_v54, %v16452_v62  ;;  %v2689_v46 = vsel %vm2036_vm2, %v10351_v52, %v16453_v61 }
 0x36e   : > { %v2663_v35 = vsel %vm2005_vm1, %v10347_v16, %v16454_v0  ;;  %v10357_v43 = vunpack.i.h.bf16 %v10355_v47  ;;  %v10356_v50 = vunpack.i.l.bf16 %v10355_v47  ;;  %v10362_v58 = vunpack.i.h.bf16 %v10360_v5  ;;  %3128 = vmatprep.mubr.bf16.mxu1 %v16439_v26 }
 0x36f   : > { %v10361_v55 = vunpack.i.l.bf16 %v10360_v5  ;;  %v2857_v12 = vpack.c.bf16 %v2689_v46, %v2659_v36  ;;  %v2693_v54 = vsel %vm2036_vm2, %v10352_v20, %v16455_v39  ;;  %v2856_v62 = vpack.c.bf16 %v2690_v14, %v2660_v48 }
 0x370   : > { %v2862_v45 = vpack.c.bf16 %v2684_v49, %v2654_v40  ;;  %v2714_v52 = vsel %vm2067_vm3, %v12826_v42, %v10357_v43  ;;  %v16456_v37 = vunpack.i.h.bf16 %v12622_v8  ;;  %v2744_v47 = vsel %vm2098_vm4, %v12853_v34, %v10362_v58 }
 0x371   : > { %v16457_v60 = vunpack.i.h.bf16 %v12619_v2  ;;  %2975 = vmatprep.subr.bf16.mxu0 %v2857_v12  ;;  %v2863_v39 = vpack.c.bf16 %v2693_v54, %v2663_v35  ;;  %v10365_v40 = vpop.permute.xlu0 %10364  ;;  %v10375_v48 = vpop.permute.xlu1 %10374  ;;  %v16458_v49 = vunpack.i.h.bf16 %v12726_v22  ;;  %v16459_v14 = vunpack.i.h.bf16 %v12746_v30 }
 0x372   : > { %v2720_v16 = vsel %vm2067_vm3, %v16456_v37, %v10356_v50  ;;  %v16460_v36 = vunpack.i.l.bf16 %v12682_v59  ;;  %2976 = vmatpush1.bf16.msra.mxu0 %v2856_v62  ;;  %v10367_v61 = vunpack.i.h.bf16 %v10365_v40  ;;  %v10366_v46 = vunpack.i.l.bf16 %v10365_v40 }
 0x373   : > { %v2750_v20 = vsel %vm2098_vm4, %v16457_v60, %v10361_v55  ;;  %v2719_v8 = vsel %vm2067_vm3, %v10356_v50, %v16458_v49  ;;  %v2749_v5 = vsel %vm2098_vm4, %v10361_v55, %v16459_v14  ;;  %v10377_v0 = vunpack.i.h.bf16 %v10375_v48  ;;  %3098 = vmatprep.subr.bf16.mxu1 %v2863_v39 }
 0x374   : > { %v2723_v2 = vsel %vm2067_vm3, %v10357_v43, %v16460_v36  ;;  %v10376_v35 = vunpack.i.l.bf16 %v10375_v48  ;;  %v2867_v12 = vpack.c.bf16 %v2749_v5, %v2719_v8  ;;  %v16461_v54 = vunpack.i.l.bf16 %v12684_v63  ;;  %3099 = vmatpush1.bf16.msra.mxu1 %v2862_v45 }
 0x375   : > { %v2866_v37 = vpack.c.bf16 %v2750_v20, %v2720_v16  ;;  %v2872_v60 = vpack.c.bf16 %v2744_v47, %v2714_v52  ;;  %v2774_v59 = vsel %vm2129_vm5, %v12851_v9, %v10367_v61  ;;  %v16462_v43 = vunpack.i.h.bf16 %v12626_v6  ;;  %v12955_v52 = vpop.permute.xlu0 %10369  ;;  %v2833_v16 = vpop.permute.xlu1 %2832 }
 0x376   : > { %v2753_v50 = vsel %vm2098_vm4, %v10362_v58, %v16461_v54  ;;  %v2804_v62 = vsel %vm2160_vm6, %v12855_v32, %v10377_v0  ;;  %v16463_v63 = vunpack.i.h.bf16 %v12624_v3  ;;  %2977 = vmatprep.subr.bf16.mxu0 %v2867_v12  ;;  %v16464_v47 = vunpack.i.h.bf16 %v12748_v13 }
 0x377   : > { %v2780_v55 = vsel %vm2129_vm5, %v16462_v43, %v10366_v46  ;;  %v2873_v45 = vpack.c.bf16 %v2753_v50, %v2723_v2  ;;  %v16465_v20 = vunpack.i.h.bf16 %v12773_v28  ;;  %v16466_v3 = vunpack.i.l.bf16 %v12704_v51  ;;  %2978 = vmatpush1.bf16.msra.mxu0 %v2866_v37 }
 0x378   : > { %v2810_v58 = vsel %vm2160_vm6, %v16463_v63, %v10376_v35  ;;  %v2779_v6 = vsel %vm2129_vm5, %v10366_v46, %v16464_v47  ;;  %v10372_v48 = vunpack.i.h.bf16 %v12955_v52  ;;  %v10371_v49 = vunpack.i.l.bf16 %v12955_v52 }
 0x379   : > { %v2809_v39 = vsel %vm2160_vm6, %v10376_v35, %v16465_v20  ;;  %v2783_v40 = vsel %vm2129_vm5, %v10367_v61, %v16466_v3  ;;  %v16467_v8 = vunpack.i.l.bf16 %v12724_v11  ;;  %3100 = vmatprep.subr.bf16.mxu1 %v2873_v45  ;;  %v16468_v36 = vunpack.i.l.bf16 %v12706_v53  ;;  %v2619_v50 = vpop.permute.xlu0 %2618  ;;  %v2649_v37 = vpop.permute.xlu1 %2648 }
 0x37a   : > { %v2877_v5 = vpack.c.bf16 %v2809_v39, %v2779_v6  ;;  %v2876_v2 = vpack.c.bf16 %v2810_v58, %v2780_v55  ;;  %v2882_v46 = vpack.c.bf16 %v2804_v62, %v2774_v59  ;;  %3101 = vmatpush1.bf16.msra.mxu1 %v2872_v60  ;;  %v2834_v61 = vsel %vm2191_vm7, %v10372_v48, %v2833_v16 }
 0x37b   : > { %v2843_v14 = vsel %vm2191_vm7, %v2833_v16, %v16467_v8  ;;  %v2813_v51 = vsel %vm2160_vm6, %v10377_v0, %v16468_v36  ;;  %v16469_v35 = vunpack.i.h.bf16 %v12628_v4  ;;  %v2892_v54 = vpack.c.bf16 %v2834_v61, %v2834_v61 }
 0x37c   : > { %2979 = vmatprep.subr.bf16.mxu0 %v2877_v5  ;;  %v2883_v11 = vpack.c.bf16 %v2813_v51, %v2783_v40  ;;  %v2893_v53 = vpack.c.bf16 %v2843_v14, %v2843_v14  ;;  %v16470_v59 = vunpack.i.l.bf16 %v12628_v4  ;;  %v2625_v43 = vsel %vm1974_vm0, %v2619_v50, %v12800_v41 }
 0x37d   : > { %v2839_v12 = vsel %vm2191_vm7, %v10371_v49, %v16469_v35  ;;  %2980 = vmatpush1.bf16.msra.mxu0 %v2876_v2  ;;  %v2851_v62 = vpack.c.bf16 %v2625_v43, %v12588_v7  ;;  %v16471_v63 = vunpack.i.l.bf16 %v12630_v56  ;;  %v2927_v45 = vsel %vm2261_vm8, %v2892_v54, 0  ;;  %v2679_v16 = vpop.permute.xlu0 %2678  ;;  %v2709_v47 = vpop.permute.xlu1 %2708 }
 0x37e   : > { %v2887_v0 = vpack.c.bf16 %v2839_v12, %v2839_v12  ;;  %v2840_v60 = vsel %vm2191_vm7, %v16470_v59, %v10371_v49  ;;  %3102 = vmatprep.subr.bf16.mxu1 %v2883_v11  ;;  %v2655_v41 = vsel %vm2005_vm1, %v2649_v37, %v12798_v31  ;;  %v2685_v56 = vsel %vm2036_vm2, %v2679_v16, %v12828_v10 }
 0x37f   : > { %v2886_v55 = vpack.c.bf16 %v2840_v60, %v2840_v60  ;;  %3103 = vmatpush1.bf16.msra.mxu1 %v2882_v46  ;;  %v2626_v4 = vsel %vm1974_vm0, %v16471_v63, %v2619_v50  ;;  %v2861_v6 = vpack.c.bf16 %v2685_v56, %v2655_v41  ;;  %v16472_v39 = vunpack.i.l.bf16 %v12638_v23 }
 0x380   : > { %9516 = vmatprep.subr.msk.bf16.mxu0 %vm2261_vm8, %v2887_v0  ;;  %9522 = vmatprep.subr.msk.bf16.mxu1 %vm2261_vm8, %v2893_v53  ;;  %v2850_v20 = vpack.c.bf16 %v2626_v4, %v12512_v18  ;;  %v2715_v49 = vsel %vm2067_vm3, %v2709_v47, %v12826_v42  ;;  %v16473_v8 = vunpack.i.l.bf16 %v12632_v33  ;;  %v16474_v42 = vunpack.i.l.bf16 %v12746_v30 }
 0x381   : > { %v2909_v58 = vsel %vm2261_vm8, %v2886_v55, 0  ;;  %v2686_v3 = vsel %vm2036_vm2, %v16472_v39, %v2679_v16  ;;  %v2739_v40 = vpop.permute.xlu0 %2738  ;;  %v2769_v31 = vpop.permute.xlu1 %2768  ;;  %v16475_v2 = vunpack.i.l.bf16 %v12726_v22  ;;  %v16476_v35 = vunpack.i.l.bf16 %v12773_v28 }
 0x382   : > { %2982 = vmatpush1.bf16.msra.mxu0 %v2909_v58  ;;  %v2745_v10 = vsel %vm2098_vm4, %v2739_v40, %v12853_v34  ;;  %v2656_v23 = vsel %vm2005_vm1, %v16473_v8, %v2649_v37  ;;  %v2746_v34 = vsel %vm2098_vm4, %v16474_v42, %v2739_v40  ;;  %v2775_v33 = vsel %vm2129_vm5, %v2769_v31, %v12851_v9 }
 0x383   : > { %3055 = vmatprep.subr.bf16.mxu0 %v2851_v62  ;;  %3105 = vmatpush1.bf16.msra.mxu1 %v2927_v45  ;;  %v2871_v14 = vpack.c.bf16 %v2745_v10, %v2715_v49  ;;  %v2860_v5 = vpack.c.bf16 %v2686_v3, %v2656_v23  ;;  %v2716_v46 = vsel %vm2067_vm3, %v16475_v2, %v2709_v47  ;;  %v16478_v54 = vunpack.i.l.bf16 %v12748_v13 }
 0x384   : > { %v2870_v11 = vpack.c.bf16 %v2746_v34, %v2716_v46 }
 0x385   : > { %9517 = vmatmul.mubr.msk.bf16.vlgmr.msra.gmra.mrb[12].mxu0 %vm2257_vm9, %v12761_v27  ;;  %v2799_v36 = vpop.permute.xlu0 %2798  ;;  %v2829_v61 = vpop.permute.xlu1 %2828  ;;  %v2776_v53 = vsel %vm2129_vm5, %v16478_v54, %v2769_v31  ;;  %v16480_v54 = vld [vmem:[#allocation64_spill] sm:$0xff] }
 0x386   : > { %3056 = vmatpush1.bf16.msra.mxu0 %v2850_v20  ;;  %9523 = vmatmul.mubr.msk.bf16.vlgmr.msra.gmra.mrb[16].mxu1 %vm2257_vm9, %v12761_v27  ;;  %v2805_v51 = vsel %vm2160_vm6, %v2799_v36, %v12855_v32  ;;  %v2806_v12 = vsel %vm2160_vm6, %v16476_v35, %v2799_v36  ;;  %v2835_v9 = vsel %vm2191_vm7, %v2829_v61, %v10372_v48  ;;  %v16477_v32 = vunpack.i.h.bf16 %v12775_v17 }
 0x387   : > { %3057 = vmatprep.subr.bf16.mxu0 %v2861_v6  ;;  %3087 = vmatprep.mubr.bf16.mxu0 %v16439_v26  ;;  %v2881_v30 = vpack.c.bf16 %v2805_v51, %v2775_v33  ;;  %v2880_v28 = vpack.c.bf16 %v2806_v12, %v2776_v53  ;;  %v2891_v37 = vpack.c.bf16 %v2835_v9, %v2835_v9 }
 0x388   : > { %3614 = vmatprep.mubr.bf16.mxu1 %v16439_v26  ;;  %v2836_v22 = vsel %vm2191_vm7, %v16477_v32, %v2829_v61  ;;  %v16479_v32 = vld [vmem:[#allocation63_spill] sm:$0xff] }
 0x389   : > { %v2890_v50 = vpack.c.bf16 %v2836_v22, %v2836_v22 }
 0x38a   : > { %3058 = vmatpush1.bf16.msra.mxu0 %v2860_v5 }
 0x38b   : > { %3059 = vmatprep.subr.bf16.mxu0 %v2871_v14  ;;  %v2921_v52 = vsel %vm2261_vm8, %v2890_v50, 0 }
 0x38e   : > { %3060 = vmatpush1.bf16.msra.mxu0 %v2870_v11 }
 0x38f   : > { %3061 = vmatprep.subr.bf16.mxu0 %v2881_v30 }
 0x392   : > { %3062 = vmatpush1.bf16.msra.mxu0 %v2880_v28 }
 0x393   : > { %9520 = vmatprep.subr.msk.bf16.mxu0 %vm2261_vm8, %v2891_v37 }
 0x396   : > { %3064 = vmatpush1.bf16.msra.mxu0 %v2921_v52  ;;  %v2897_v17 = vpop.permute.xlu0 %2896 }
 0x399   : > { %9521 = vmatmul.mubr.msk.bf16.vlgmr.msra.gmra.mrb[16].mxu0 %vm2257_vm9, %v12761_v27 }
 0x39a   : > { %3571 = vmatprep.mubr.bf16.mxu0 %v16439_v26 }
 0x42a   : > { %v2966_v13 = vpop.f32.mrb[8].mxu1 }
 0x42b   : > { %v2967_v48 = vadd.f32 %v2966_v13, %v2897_v17  ;;  %v2968_v0 = vpop.f32.mrb[9].mxu1  ;;  %v16482_v13 = vld [vmem:[#allocation66_spill] sm:$0xff] }
 0x42c   : > { %v2969_v59 = vadd.f32 %v2968_v0, %v2897_v17  ;;  %v2970_v60 = vpop.f32.mrb[10].mxu1 }
 0x42d   : > { %v3137_v43 = vmax.f32 %v2967_v48, 0.0  ;;  %v2971_v55 = vpop.f32.mrb[11].mxu1 }
 0x42e   : > { %v3138_v62 = vmax.f32 %v2969_v59, 0.0 }
 0x42f   : > { %v3147_v63 = vmul.f32 %v3137_v43, %v12407_v44 }
 0x430   : > { %v3148_v4 = vmul.f32 %v3138_v62, %v12412_v57 }
 0x431   : > { %3157 = vrot.lane.b32.xlu1 %v3147_v63, %s11432_s11 }
 0x432   : > { %3159 = vrot.lane.b32.xlu0 %v3148_v4, %s11432_s11 }
 0x43e   : > { %v3048_v27 = vpop.f32.mrb[12].mxu1 }
 0x43f   : > { %v3050_v58 = vpop.f32.mrb[13].mxu1  ;;  %v3049_v44 = vadd.f32 %v3048_v27, %v2897_v17 }
 0x440   : > { %v3052_v45 = vpop.f32.mrb[14].mxu1  ;;  %v3051_v10 = vadd.f32 %v3050_v58, %v2897_v17  ;;  %v16483_v58 = vld [vmem:[#allocation68_spill] sm:$0xff] }
 0x441   : > { %v3053_v16 = vpop.f32.mrb[15].mxu1  ;;  %v3141_v42 = vmax.f32 %v3049_v44, 0.0  ;;  %v16485_v44 = vld [vmem:[#allocation69_spill] sm:$0xff] }
 0x442   : > { %v3142_v36 = vmax.f32 %v3051_v10, 0.0 }
 0x443   : > { %v3151_v51 = vmul.f32 %v3141_v42, %v12438_v24  ;;  %v16487_v42 = vld [vmem:[#allocation71_spill] sm:$0xff] }
 0x444   : > { %v3152_v2 = vmul.f32 %v3142_v36, %v12442_v29  ;;  %v16481_v29 = vld [vmem:[#allocation65_spill] sm:$0xff] }
 0x458   : > { %v3007_v47 = vpop.f32.mrb[12].mxu0 }
 0x459   : > { %v3008_v41 = vadd.f32 %v3007_v47, %v2897_v17  ;;  %v3009_v56 = vpop.f32.mrb[13].mxu0  ;;  %v3130_v6 = vpop.f32.mrb[16].mxu1  ;;  %v16484_v47 = vld [vmem:[#allocation67_spill] sm:$0xff] }
 0x45a   : > { %v3010_v20 = vadd.f32 %v3009_v56, %v2897_v17  ;;  %v3011_v39 = vpop.f32.mrb[14].mxu0  ;;  %v3132_v40 = vpop.f32.mrb[17].mxu1  ;;  %v3131_v46 = vadd.f32 %v3130_v6, %v2897_v17 }
 0x45b   : > { %v3139_v3 = vmax.f32 %v3008_v41, 0.0  ;;  %v3012_v31 = vpop.f32.mrb[15].mxu0  ;;  %v3133_v49 = vadd.f32 %v3132_v40, %v2897_v17  ;;  %v3134_v57 = vpop.f32.mrb[18].mxu1 }
 0x45c   : > { %v3140_v23 = vmax.f32 %v3010_v20, 0.0  ;;  %v3135_v14 = vpop.f32.mrb[19].mxu1  ;;  %v3145_v9 = vmax.f32 %v3131_v46, 0.0 }
 0x45d   : > { %v3149_v8 = vmul.f32 %v3139_v3, %v12429_v1  ;;  %v3146_v5 = vmax.f32 %v3133_v49, 0.0 }
 0x45e   : > { %v3150_v33 = vmul.f32 %v3140_v23, %v12455_v15  ;;  %v3155_v53 = vmul.f32 %v3145_v9, %v16481_v29  ;;  %v16486_v23 = vld [vmem:[#allocation70_spill] sm:$0xff] }
 0x45f   : > { %3161 = vrot.lane.b32.xlu1 %v3149_v8, %s11432_s11  ;;  %v3156_v34 = vmul.f32 %v3146_v5, %v12434_v25 }
 0x461   : > { %3175 = vrot.lane.b32.xlu0 %v3156_v34, %s11432_s11 }
 0x463   : > { %3163 = vrot.lane.b32.xlu1 %v3150_v33, %s11432_s11 }
 0x465   : > { %3165 = vrot.lane.b32.xlu0 %v3151_v51, %s11432_s11  ;;  %v3200_v51 = vld [vmem:[%s16399_s3 + $0x8] sm:$0xff] }
 0x467   : > { %3167 = vrot.lane.b32.xlu1 %v3152_v2, %s11432_s11  ;;  %v3199_v2 = vld [vmem:[%s16399_s3] sm:$0xff]  ;;  %s16507_s3 = sld [smem:[#allocation12_spill]] }
 0x46c   : > { %v3089_v1 = vpop.f32.mrb[16].mxu0 }
 0x46d   : > { %v3090_v61 = vadd.f32 %v3089_v1, %v2897_v17  ;;  %v3091_v30 = vpop.f32.mrb[17].mxu0 }
 0x46e   : > { %v3092_v25 = vadd.f32 %v3091_v30, %v2897_v17  ;;  %v3093_v11 = vpop.f32.mrb[18].mxu0 }
 0x46f   : > { %v3143_v35 = vmax.f32 %v3090_v61, 0.0  ;;  %v3094_v15 = vpop.f32.mrb[19].mxu0 }
 0x470   : > { %v3144_v12 = vmax.f32 %v3092_v25, 0.0 }
 0x471   : > { %v3153_v22 = vmul.f32 %v3143_v35, %v16479_v32 }
 0x472   : > { %v3154_v24 = vmul.f32 %v3144_v12, %v16480_v54 }
 0x473   : > { %3169 = vrot.lane.b32.xlu0 %v3153_v22, %s11432_s11 }
 0x474   : > { %3171 = vrot.lane.b32.xlu1 %v3154_v24, %s11432_s11 }
 0x477   : > { %3173 = vrot.lane.b32.xlu0 %v3155_v53, %s11432_s11  ;;  %s16499_s11 = sld [smem:[#allocation8_spill]] }
 0x4a3   : > { %v3158_v28 = vpop.permute.xlu1 %3157 }
 0x4a4   : > { %v3160_v50 = vpop.permute.xlu0 %3159 }
 0x4a5   : > { %v3185_v37 = vsel %vm2591_vm10, %v3158_v28, %v3160_v50 }
 0x4a6   : > { %v13090_v48 = vadd.f32 %v3185_v37, %v16482_v13 }
 0x4d1   : > { %v3162_v52 = vpop.permute.xlu1 %3161 }
 0x4d2   : > { %v3184_v17 = vsel %vm2591_vm10, %v3160_v50, %v3162_v52 }
 0x4d3   : > { %v13093_v0 = vadd.f32 %v3184_v17, %v12492_v19  ;;  %v3176_v43 = vpop.permute.xlu0 %3175 }
 0x4d5   : > { %v3164_v59 = vpop.permute.xlu1 %3163  ;;  %v10388_v60 = vpack.i.bf16 %v13093_v0, %v13090_v48 }
 0x4d6   : > { %v3183_v55 = vsel %vm2591_vm10, %v3162_v52, %v3164_v59 }
 0x4d7   : > { %10389 = vrot.lane.b32.xlu0 %v10388_v60, %s11425_s26  ;;  %10379 = vrot.lane.b32.xlu1 %v10388_v60, %s16288_s23  ;;  %v13104_v19 = vadd.f32 %v3183_v55, %v12568_v38  ;;  %v3166_v63 = vpop.permute.xlu0 %3165 }
 0x4d8   : > { %v3182_v27 = vsel %vm2591_vm10, %v3164_v59, %v3166_v63 }
 0x4d9   : > { %v3168_v62 = vpop.permute.xlu1 %3167  ;;  %v10413_v16 = vpack.i.bf16 %v13104_v19, %v13093_v0  ;;  %v13118_v38 = vadd.f32 %v3182_v27, %v16484_v47 }
 0x4da   : > { %v3181_v4 = vsel %vm2591_vm10, %v3166_v63, %v3168_v62 }
 0x4db   : > { %10399 = vrot.lane.b32.xlu0 %v10388_v60, %s11426_s28  ;;  %10384 = vrot.lane.b32.xlu1 %v10388_v60, %s16302_s22  ;;  %v13113_v45 = vadd.f32 %v3181_v4, %v16483_v58 }
 0x4dd   : > { %v10418_v56 = vpack.i.bf16 %v13113_v45, %v13118_v38 }
 0x4df   : > { %10409 = vrot.lane.b32.xlu0 %v10388_v60, %s11428_s2  ;;  %10394 = vrot.lane.b32.xlu1 %v10388_v60, %s11427_s1 }
 0x4e3   : > { %10404 = vrot.lane.b32.xlu1 %v10388_v60, %s11429_s7  ;;  %10414 = vrot.lane.b32.xlu0 %v10413_v16, %s11431_s10 }
 0x4e5   : > { %v3170_v41 = vpop.permute.xlu0 %3169 }
 0x4e6   : > { %v3180_v6 = vsel %vm2591_vm10, %v3168_v62, %v3170_v41  ;;  %v3172_v20 = vpop.permute.xlu1 %3171 }
 0x4e7   : > { %v13127_v39 = vadd.f32 %v3180_v6, %v12512_v18  ;;  %v3179_v3 = vsel %vm2591_vm10, %v3170_v41, %v3172_v20  ;;  %10419 = vrot.lane.b32.xlu1 %v10418_v56, %s16288_s23  ;;  %v3186_v18 = vsel %vm2591_vm10, %v3176_v43, %v3158_v28 }
 0x4e8   : > { %v13133_v40 = vadd.f32 %v3179_v3, %v12588_v7  ;;  %v13144_v49 = vadd.f32 %v3186_v18, %v16485_v44 }
 0x4e9   : > { %v3174_v10 = vpop.permute.xlu0 %3173 }
 0x4ea   : > { %v10423_v31 = vpack.i.bf16 %v13133_v40, %v13127_v39  ;;  %v10458_v7 = vpack.i.bf16 %v13104_v19, %v13144_v49  ;;  %v10493_v57 = vpack.i.bf16 %v13090_v48, %v13144_v49  ;;  %v3178_v8 = vsel %vm2591_vm10, %v3172_v20, %v3174_v10 }
 0x4eb   : > { %10429 = vrot.lane.b32.xlu1 %v10418_v56, %s16302_s22  ;;  %v13171_v14 = vadd.f32 %v3178_v8, %v16486_v23  ;;  %v3177_v5 = vsel %vm2591_vm10, %v3174_v10, %v3176_v43  ;;  %vm5692_vm10 = vcmp.lt.s32.totalorder %v11934_v21, 90 }
 0x4ec   : > { %10424 = vrot.lane.b32.xlu0 %v10423_v31, %s16288_s23  ;;  %v13179_v34 = vadd.f32 %v3177_v5, %v16487_v42 }
 0x4ed   : > { %v10518_v36 = vpack.i.bf16 %v13171_v14, %v13133_v40 }
 0x4ee   : > { %v10523_v33 = vpack.i.bf16 %v13179_v34, %v13171_v14 }
 0x4ef   : > { %10439 = vrot.lane.b32.xlu1 %v10418_v56, %s11425_s26 }
 0x4f0   : > { %10434 = vrot.lane.b32.xlu0 %v10423_v31, %s16302_s22 }
 0x4f3   : > { %10449 = vrot.lane.b32.xlu1 %v10418_v56, %s11427_s1 }
 0x4f4   : > { %10444 = vrot.lane.b32.xlu0 %v10423_v31, %s11425_s26 }
 0x4f7   : > { %10459 = vrot.lane.b32.xlu1 %v10458_v7, %s16302_s22 }
 0x4f8   : > { %10454 = vrot.lane.b32.xlu0 %v10458_v7, %s16288_s23 }
 0x4fb   : > { %10469 = vrot.lane.b32.xlu1 %v10458_v7, %s11427_s1 }
 0x4fc   : > { %10464 = vrot.lane.b32.xlu0 %v10458_v7, %s11425_s26 }
 0x4ff   : > { %10479 = vrot.lane.b32.xlu1 %v10458_v7, %s11429_s7 }
 0x500   : > { %10474 = vrot.lane.b32.xlu0 %v10458_v7, %s11426_s28 }
 0x503   : > { %10494 = vrot.lane.b32.xlu1 %v10493_v57, %s11431_s10 }
 0x504   : > { %10484 = vrot.lane.b32.xlu0 %v10458_v7, %s11428_s2 }
 0x507   : > { %10499 = vrot.lane.b32.xlu1 %v10418_v56, %s11426_s28 }
 0x508   : > { %10489 = vrot.lane.b32.xlu0 %v10423_v31, %s11427_s1 }
 0x50b   : > { %10504 = vrot.lane.b32.xlu1 %v10418_v56, %s11429_s7 }
 0x50c   : > { %3333 = vrot.lane.b32.xlu0 %v13127_v39, %s11426_s28 }
 0x50f   : > { %10509 = vrot.lane.b32.xlu1 %v10418_v56, %s11428_s2 }
 0x510   : > { %3363 = vrot.lane.b32.xlu0 %v13127_v39, %s11429_s7 }
 0x513   : > { %10514 = vrot.lane.b32.xlu1 %v10418_v56, %s11431_s10 }
 0x514   : > { %3393 = vrot.lane.b32.xlu0 %v13127_v39, %s11428_s2 }
 0x517   : > { %10519 = vrot.lane.b32.xlu1 %v10518_v36, %s11426_s28 }
 0x518   : > { %3423 = vrot.lane.b32.xlu0 %v13127_v39, %s11431_s10 }
 0x51b   : > { %10524 = vrot.lane.b32.xlu1 %v10523_v33, %s16288_s23 }
 0x51c   : > { %10529 = vrot.lane.b32.xlu0 %v10523_v33, %s16302_s22 }
 0x51f   : > { %10534 = vrot.lane.b32.xlu1 %v10523_v33, %s11425_s26  ;;  %s11435_s26 = smov 78  }
 0x520   : > { %10554 = vrot.lane.b32.xlu0 %v10523_v33, %s11427_s1  ;;  %s16497_s1 = sld [smem:[#allocation6_spill]] }
 0x523   : > { %10539 = vrot.lane.b32.xlu1 %v10518_v36, %s11429_s7 }
 0x524   : > { %3339 = vrot.lane.b32.xlu0 %v13179_v34, %s11426_s28 }
 0x527   : > { %10544 = vrot.lane.b32.xlu1 %v10518_v36, %s11428_s2 }
 0x528   : > { %3369 = vrot.lane.b32.xlu0 %v13179_v34, %s11429_s7  ;;  %s16498_s7 = sld [smem:[#allocation7_spill]] }
 0x52b   : > { %10549 = vrot.lane.b32.xlu1 %v10518_v36, %s11431_s10 }
 0x52c   : > { %3399 = vrot.lane.b32.xlu0 %v13179_v34, %s11428_s2  ;;  %s11436_s2 = smov 28  }
 0x52f   : > { %3493 = vperm.xlu1 %10558, %v3199_v2  }
 0x530   : > { %3429 = vrot.lane.b32.xlu0 %v13179_v34, %s11431_s10  ;;  %s11437_s10 = smov 56  }
 0x534   : > { %3498 = vperm.xlu0 %10217, %v3200_v51  }
 0x549   : > { %v13205_v1 = vpop.permute.xlu0 %10389  ;;  %v10380_v46 = vpop.permute.xlu1 %10379 }
 0x54a   : > { %v10382_v61 = vunpack.i.h.bf16 %v10380_v46  ;;  %v10381_v30 = vunpack.i.l.bf16 %v10380_v46  ;;  %v10392_v17 = vunpack.i.h.bf16 %v13205_v1  ;;  %v10391_v13 = vunpack.i.l.bf16 %v13205_v1 }
 0x54c   : > { %v3228_v25 = vsel %vm1974_vm0, %v10381_v30, %v10382_v61  ;;  %v3288_v4 = vsel %vm2036_vm2, %v10391_v13, %v10392_v17 }
 0x54d   : > { %v13209_v11 = vpop.permute.xlu1 %10384  ;;  %v3442_v35 = vpack.c.bf16 %v3228_v25, %v13090_v48  ;;  %v13212_v15 = vpop.permute.xlu0 %10399 }
 0x54e   : > { %v10387_v50 = vunpack.i.h.bf16 %v13209_v11  ;;  %v10386_v37 = vunpack.i.l.bf16 %v13209_v11  ;;  %v10402_v43 = vunpack.i.h.bf16 %v13212_v15  ;;  %v10401_v27 = vunpack.i.l.bf16 %v13212_v15 }
 0x54f   : > { %3539 = vmatprep.subr.bf16.mxu0 %v3442_v35 }
 0x550   : > { %v3258_v60 = vsel %vm2005_vm1, %v10386_v37, %v10387_v50 }
 0x551   : > { %v13214_v12 = vpop.permute.xlu1 %10394  ;;  %v13216_v9 = vpop.permute.xlu0 %10409  ;;  %v3452_v20 = vpack.c.bf16 %v3288_v4, %v3258_v60 }
 0x552   : > { %v10397_v55 = vunpack.i.h.bf16 %v13214_v12  ;;  %v10396_v62 = vunpack.i.l.bf16 %v13214_v12  ;;  %v10412_v41 = vunpack.i.h.bf16 %v13216_v9  ;;  %v10411_v3 = vunpack.i.l.bf16 %v13216_v9 }
 0x554   : > { %v3318_v5 = vsel %vm2067_vm3, %v10396_v62, %v10397_v55 }
 0x555   : > { %v13218_v32 = vpop.permute.xlu1 %10404  ;;  %v13222_v54 = vpop.permute.xlu0 %10414 }
 0x556   : > { %v10407_v2 = vunpack.i.h.bf16 %v13218_v32  ;;  %v10406_v1 = vunpack.i.l.bf16 %v13218_v32 }
 0x559   : > { %v13220_v22 = vpop.permute.xlu1 %10419 }
 0x55a   : > { %v10421_v58 = vunpack.i.l.bf16 %v13220_v22 }
 0x55d   : > { %v13224_v24 = vpop.permute.xlu1 %10429 }
 0x55e   : > { %v13226_v29 = vpop.permute.xlu0 %10424  ;;  %v10431_v57 = vunpack.i.l.bf16 %v13224_v24 }
 0x561   : > { %v13228_v53 = vpop.permute.xlu1 %10439 }
 0x562   : > { %v13230_v28 = vpop.permute.xlu0 %10434  ;;  %v10441_v42 = vunpack.i.l.bf16 %v13228_v53 }
 0x565   : > { %v13234_v52 = vpop.permute.xlu1 %10449 }
 0x566   : > { %v13238_v48 = vpop.permute.xlu0 %10444 }
 0x569   : > { %v13240_v59 = vpop.permute.xlu1 %10459 }
 0x56a   : > { %v13247_v63 = vpop.permute.xlu0 %10454  ;;  %v10462_v56 = vunpack.i.h.bf16 %v13240_v59  ;;  %v10461_v6 = vunpack.i.l.bf16 %v13240_v59 }
 0x56b   : > { %v10457_v16 = vunpack.i.h.bf16 %v13247_v63  ;;  %v10456_v47 = vunpack.i.l.bf16 %v13247_v63 }
 0x56c   : > { %v3257_v11 = vsel %vm2005_vm1, %v10387_v50, %v10462_v56  ;;  %v3378_v50 = vsel %vm2129_vm5, %v10406_v1, %v10407_v2 }
 0x56d   : > { %v3227_v31 = vsel %vm1974_vm0, %v10382_v61, %v10457_v16  ;;  %v3229_v18 = vsel %vm1974_vm0, %v10456_v47, %v10381_v30  ;;  %v13265_v44 = vpop.permute.xlu1 %10469  ;;  %v3226_v7 = vsel %vm1974_vm0, %v10457_v16, %v10421_v58 }
 0x56e   : > { %v13272_v10 = vpop.permute.xlu0 %10464  ;;  %v3441_v8 = vpack.c.bf16 %v3229_v18, %v13144_v49  ;;  %v3444_v23 = vpack.c.bf16 %v3226_v7, %v13104_v19  ;;  %v3443_v51 = vpack.c.bf16 %v3227_v31, %v13093_v0  ;;  %v3259_v19 = vsel %vm2005_vm1, %v10461_v6, %v10386_v37 }
 0x56f   : > { %v10467_v36 = vunpack.i.h.bf16 %v13272_v10  ;;  %v10466_v33 = vunpack.i.l.bf16 %v13272_v10  ;;  %v3256_v49 = vsel %vm2005_vm1, %v10462_v56, %v10431_v57  ;;  %v10471_v46 = vunpack.i.l.bf16 %v13265_v44 }
 0x570   : > { %3540 = vmatpush1.bf16.msra.mxu0 %v3441_v8  ;;  %3582 = vmatprep.subr.bf16.mxu1 %v3444_v23  ;;  %v3408_v7 = vsel %vm2160_vm6, %v10411_v3, %v10412_v41  ;;  %v10416_v8 = vunpack.i.l.bf16 %v13222_v54 }
 0x571   : > { %v3287_v0 = vsel %vm2036_vm2, %v10392_v17, %v10467_v36  ;;  %v3289_v61 = vsel %vm2036_vm2, %v10466_v33, %v10391_v13  ;;  %v13301_v30 = vpop.permute.xlu1 %10479  ;;  %3541 = vmatprep.subr.bf16.mxu0 %v3452_v20  ;;  %3583 = vmatpush1.bf16.msra.mxu1 %v3443_v51  ;;  %v3286_v25 = vsel %vm2036_vm2, %v10467_v36, %v10441_v42 }
 0x572   : > { %v13309_v35 = vpop.permute.xlu0 %10474  ;;  %v3451_v37 = vpack.c.bf16 %v3289_v61, %v3259_v19  ;;  %v3454_v17 = vpack.c.bf16 %v3286_v25, %v3256_v49  ;;  %v3348_v13 = vsel %vm2098_vm4, %v10401_v27, %v10402_v43  ;;  %v3453_v16 = vpack.c.bf16 %v3287_v0, %v3257_v11 }
 0x573   : > { %v10476_v60 = vunpack.i.l.bf16 %v13309_v35  ;;  %v3462_v4 = vpack.c.bf16 %v3348_v13, %v3318_v5  ;;  %v3319_v56 = vsel %vm2067_vm3, %v10471_v46, %v10396_v62  ;;  %v10481_v20 = vunpack.i.l.bf16 %v13301_v30 }
 0x574   : > { %3542 = vmatpush1.bf16.msra.mxu0 %v3451_v37  ;;  %3584 = vmatprep.subr.bf16.mxu1 %v3454_v17  ;;  %v3472_v19 = vpack.c.bf16 %v3408_v7, %v3378_v50  ;;  %v10426_v49 = vunpack.i.l.bf16 %v13226_v29  ;;  %v10472_v0 = vunpack.i.h.bf16 %v13265_v44  ;;  %v10422_v13 = vunpack.i.h.bf16 %v13220_v22 }
 0x575   : > { %v3349_v31 = vsel %vm2098_vm4, %v10476_v60, %v10401_v27  ;;  %v13329_v18 = vpop.permute.xlu1 %10494  ;;  %3543 = vmatprep.subr.bf16.mxu0 %v3462_v4  ;;  %3585 = vmatpush1.bf16.msra.mxu1 %v3453_v16  ;;  %v10477_v27 = vunpack.i.h.bf16 %v13309_v35  ;;  %v3379_v11 = vsel %vm2129_vm5, %v10481_v20, %v10406_v1  ;;  %v10451_v4 = vunpack.i.l.bf16 %v13234_v52 }
 0x576   : > { %v10497_v62 = vunpack.i.h.bf16 %v13329_v18  ;;  %v16283_v23 = vunpack.i.l.bf16 %v13329_v18  ;;  %v13338_v5 = vpop.permute.xlu0 %10484  ;;  %v3461_v36 = vpack.c.bf16 %v3349_v31, %v3319_v56  ;;  %v3224_v15 = vsel %vm1974_vm0, %v10422_v13, %v10426_v49 }
 0x577   : > { %v10486_v51 = vunpack.i.l.bf16 %v13338_v5  ;;  %v3347_v1 = vsel %vm2098_vm4, %v10402_v43, %v10477_v27  ;;  %v10442_v43 = vunpack.i.h.bf16 %v13228_v53 }
 0x578   : > { %3544 = vmatpush1.bf16.msra.mxu0 %v3461_v36  ;;  %v3438_v61 = vsel %vm2191_vm7, %v10497_v62, %v10416_v8  ;;  %v3439_v25 = vsel %vm2191_vm7, %v16283_v23, %v10497_v62  ;;  %v3316_v62 = vsel %vm2067_vm3, %v10472_v0, %v10451_v4  ;;  %v10432_v23 = vunpack.i.h.bf16 %v13224_v24 }
 0x579   : > { %v3409_v37 = vsel %vm2160_vm6, %v10486_v51, %v10411_v3  ;;  %v13360_v17 = vpop.permute.xlu1 %10499  ;;  %3545 = vmatprep.subr.bf16.mxu0 %v3472_v19  ;;  %v3482_v31 = vpack.c.bf16 %v3438_v61, %v3438_v61  ;;  %v3481_v7 = vpack.c.bf16 %v3439_v25, %v3439_v25  ;;  %v10446_v3 = vunpack.i.l.bf16 %v13238_v48 }
 0x57a   : > { %v10501_v16 = vunpack.i.l.bf16 %v13360_v17  ;;  %v13365_v50 = vpop.permute.xlu0 %10489  ;;  %v3471_v56 = vpack.c.bf16 %v3409_v37, %v3379_v11  ;;  %v3317_v19 = vsel %vm2067_vm3, %v10397_v55, %v10472_v0  ;;  %v3225_v11 = vsel %vm1974_vm0, %v10421_v58, %v10422_v13 }
 0x57b   : > { %v10436_v37 = vunpack.i.l.bf16 %v13230_v28  ;;  %v3463_v12 = vpack.c.bf16 %v3347_v1, %v3317_v19  ;;  %v10487_v55 = vunpack.i.h.bf16 %v13338_v5  ;;  %v3510_v0 = vsel %vm2261_vm8, %v3481_v7, 0 }
 0x57c   : > { %3546 = vmatpush1.bf16.msra.mxu0 %v3471_v56  ;;  %v3346_v36 = vsel %vm2098_vm4, %v10477_v27, %v10501_v16  ;;  %v10417_v27 = vunpack.i.h.bf16 %v13222_v54  ;;  %v3284_v58 = vsel %vm2036_vm2, %v10442_v43, %v10446_v3  ;;  %v3285_v13 = vsel %vm2036_vm2, %v10441_v42, %v10442_v43 }
 0x57d   : > { %v13389_v61 = vpop.permute.xlu1 %10504  ;;  %9525 = vmatprep.subr.msk.bf16.mxu0 %vm2261_vm8, %v3482_v31  ;;  %v3464_v25 = vpack.c.bf16 %v3346_v36, %v3316_v62  ;;  %v3446_v31 = vpack.c.bf16 %v3224_v15, %v13113_v45  ;;  %v13405_v62 = vld [vmem:[%s11502_s29] sm:$0xff]   ;;  %v10482_v1 = vunpack.i.h.bf16 %v13301_v30  ;;  %v3445_v45 = vpack.c.bf16 %v3225_v11, %v13118_v38 }
 0x57e   : > { %v13398_v56 = vpop.permute.xlu0 %3333  ;;  %v10506_v22 = vunpack.i.l.bf16 %v13389_v61  ;;  %v10502_v36 = vunpack.i.h.bf16 %v13360_v17  ;;  %v10491_v15 = vunpack.i.l.bf16 %v13365_v50  ;;  %v3254_v53 = vsel %vm2005_vm1, %v10432_v23, %v10436_v37 }
 0x57f   : > { %3586 = vmatprep.subr.bf16.mxu1 %v3464_v25  ;;  %v3255_v42 = vsel %vm2005_vm1, %v10431_v57, %v10432_v23  ;;  %v3407_v38 = vsel %vm2160_vm6, %v10412_v41, %v10487_v55  ;;  %v3456_v43 = vpack.c.bf16 %v3284_v58, %v3254_v53  ;;  %v3437_v11 = vsel %vm2191_vm7, %v10416_v8, %v10417_v27 }
 0x580   : > { %3548 = vmatpush1.bf16.msra.mxu0 %v3510_v0  ;;  %3587 = vmatpush1.bf16.msra.mxu1 %v3463_v12  ;;  %v10452_v12 = vunpack.i.h.bf16 %v13234_v52  ;;  %v3344_v24 = vsel %vm2098_vm4, %v10502_v36, %v13398_v56  ;;  %v3376_v9 = vsel %vm2129_vm5, %v10482_v1, %v10506_v22  ;;  %v3377_v54 = vsel %vm2129_vm5, %v10407_v2, %v10482_v1 }
 0x581   : > { %v10510_v7 = vpop.permute.xlu1 %10509  ;;  %3625 = vmatprep.subr.bf16.mxu0 %v3446_v31  ;;  %v3455_v23 = vpack.c.bf16 %v3285_v13, %v3255_v42  ;;  %v10427_v53 = vunpack.i.h.bf16 %v13226_v29  ;;  %v3345_v32 = vsel %vm2098_vm4, %v10501_v16, %v10502_v36  ;;  %v3483_v13 = vpack.c.bf16 %v3437_v11, %v3437_v11 }
 0x582   : > { %v10511_v19 = vunpack.i.l.bf16 %v10510_v7  ;;  %v13420_v25 = vpop.permute.xlu0 %3363  ;;  %v10512_v0 = vunpack.i.h.bf16 %v10510_v7  ;;  %v10507_v1 = vunpack.i.h.bf16 %v13389_v61  ;;  %v3315_v17 = vsel %vm2067_vm3, %v10451_v4, %v10452_v12 }
 0x583   : > { %9526 = vmatmul.mubr.msk.bf16.vlgmr.msra.gmra.mrb[20].mxu0 %vm2257_vm9, %v13405_v62  ;;  %v3516_v52 = vsel %vm2261_vm8, %v3483_v13, 0 }
 0x584   : > { %3626 = vmatpush1.bf16.msra.mxu0 %v3445_v45  ;;  %v3406_v41 = vsel %vm2160_vm6, %v10487_v55, %v10511_v19  ;;  %3657 = vmatprep.mubr.bf16.mxu0 %v16439_v26  ;;  %v3473_v45 = vpack.c.bf16 %v3407_v38, %v3377_v54  ;;  %v3314_v55 = vsel %vm2067_vm3, %v10452_v12, %v10491_v15 }
 0x585   : > { %v10515_v57 = vpop.permute.xlu1 %10514  ;;  %3627 = vmatprep.subr.bf16.mxu0 %v3456_v43  ;;  %v3474_v8 = vpack.c.bf16 %v3406_v41, %v3376_v9  ;;  %v3466_v2 = vpack.c.bf16 %v3344_v24, %v3314_v55  ;;  %v10447_v43 = vunpack.i.h.bf16 %v13238_v48  ;;  %v3374_v11 = vsel %vm2129_vm5, %v10507_v1, %v13420_v25 }
 0x586   : > { %v10516_v31 = vunpack.i.l.bf16 %v10515_v57  ;;  %v13455_v58 = vpop.permute.xlu0 %3393  ;;  %v10517_v7 = vunpack.i.h.bf16 %v10515_v57  ;;  %v3465_v9 = vpack.c.bf16 %v3345_v32, %v3315_v17  ;;  %v3223_v12 = vsel %vm1974_vm0, %v10426_v49, %v10427_v53 }
 0x587   : > { %3588 = vmatprep.subr.bf16.mxu1 %v3474_v8  ;;  %v3404_v42 = vsel %vm2160_vm6, %v10512_v0, %v13455_v58  ;;  %v10437_v41 = vunpack.i.h.bf16 %v13230_v28  ;;  %v3375_v57 = vsel %vm2129_vm5, %v10506_v22, %v10507_v1  ;;  %v3283_v49 = vsel %vm2036_vm2, %v10446_v3, %v10447_v43 }
 0x588   : > { %3589 = vmatpush1.bf16.msra.mxu1 %v3473_v45  ;;  %3628 = vmatpush1.bf16.msra.mxu0 %v3455_v23  ;;  %v3436_v38 = vsel %vm2191_vm7, %v10417_v27, %v10516_v31  ;;  %v3405_v27 = vsel %vm2160_vm6, %v10511_v19, %v10512_v0  ;;  %v3476_v4 = vpack.c.bf16 %v3404_v42, %v3374_v11  ;;  %v10492_v1 = vunpack.i.h.bf16 %v13365_v50 }
 0x589   : > { %v13476_v16 = vpop.permute.xlu1 %10519  ;;  %3629 = vmatprep.subr.bf16.mxu0 %v3466_v2  ;;  %v3484_v36 = vpack.c.bf16 %v3436_v38, %v3436_v38  ;;  %v3435_v19 = vsel %vm2191_vm7, %v10516_v31, %v10517_v7  ;;  %v3475_v45 = vpack.c.bf16 %v3405_v27, %v3375_v57  ;;  %v3447_v61 = vpack.c.bf16 %v3223_v12, %v13127_v39 }
 0x58a   : > { %v13482_v24 = vpop.permute.xlu0 %3423  ;;  %v3485_v31 = vpack.c.bf16 %v3435_v19, %v3435_v19  ;;  %v3253_v22 = vsel %vm2005_vm1, %v10436_v37, %v10437_v41  ;;  %v10522_v2 = vunpack.i.h.bf16 %v13476_v16  ;;  %v10521_v39 = vunpack.i.l.bf16 %v13476_v16 }
 0x58b   : > { %9527 = vmatprep.subr.msk.bf16.mxu1 %vm2261_vm8, %v3484_v36  ;;  %v3434_v54 = vsel %vm2191_vm7, %v10517_v7, %v13482_v24  ;;  %v3457_v13 = vpack.c.bf16 %v3283_v49, %v3253_v22 }
 0x58c   : > { %3591 = vmatpush1.bf16.msra.mxu1 %v3516_v52  ;;  %3630 = vmatpush1.bf16.msra.mxu0 %v3465_v9  ;;  %v3486_v55 = vpack.c.bf16 %v3434_v54, %v3434_v54  ;;  %v3522_v17 = vsel %vm2261_vm8, %v3485_v31, 0  ;;  %v3343_v9 = vsel %vm2098_vm4, %v13398_v56, %v10521_v39 }
 0x58d   : > { %v10525_v29 = vpop.permute.xlu1 %10524  ;;  %3631 = vmatprep.subr.bf16.mxu0 %v3476_v4  ;;  %v3342_v4 = vsel %vm2098_vm4, %v10521_v39, %v10522_v2 }
 0x58e   : > { %v10527_v8 = vunpack.i.h.bf16 %v10525_v29  ;;  %v10526_v23 = vunpack.i.l.bf16 %v10525_v29  ;;  %v10530_v0 = vpop.permute.xlu0 %10529 }
 0x58f   : > { %9528 = vmatmul.mubr.msk.bf16.vlgmr.msra.gmra.mrb[20].mxu1 %vm2257_vm9, %v13405_v62  ;;  %v10531_v48 = vunpack.i.l.bf16 %v10530_v0 }
 0x590   : > { %3632 = vmatpush1.bf16.msra.mxu0 %v3475_v45  ;;  %v3222_v3 = vsel %vm1974_vm0, %v10427_v53, %v10526_v23  ;;  %v3230_v32 = vsel %vm1974_vm0, %v10527_v8, %v10456_v47  ;;  %3700 = vmatprep.mubr.bf16.mxu1 %v16439_v26  ;;  %v10532_v53 = vunpack.i.h.bf16 %v10530_v0  ;;  %v3221_v47 = vsel %vm1974_vm0, %v10526_v23, %v10527_v8 }
 0x591   : > { %v10535_v28 = vpop.permute.xlu1 %10534  ;;  %9529 = vmatprep.subr.msk.bf16.mxu0 %vm2261_vm8, %v3486_v55  ;;  %v3448_v37 = vpack.c.bf16 %v3222_v3, %v13133_v40  ;;  %v3450_v16 = vpack.c.bf16 %v3230_v32, %v13179_v34  ;;  %v3252_v40 = vsel %vm2005_vm1, %v10437_v41, %v10531_v48  ;;  %v3449_v10 = vpack.c.bf16 %v3221_v47, %v13171_v14 }
 0x592   : > { %v10537_v7 = vunpack.i.h.bf16 %v10535_v28  ;;  %v10536_v63 = vunpack.i.l.bf16 %v10535_v28  ;;  %v10555_v42 = vpop.permute.xlu0 %10554  ;;  %v3313_v14 = vsel %vm2067_vm3, %v10491_v15, %v10492_v1 }
 0x593   : > { %v10556_v38 = vunpack.i.l.bf16 %v10555_v42  ;;  %3668 = vmatprep.subr.bf16.mxu1 %v3448_v37  ;;  %v10557_v12 = vunpack.i.h.bf16 %v10555_v42  ;;  %v3467_v49 = vpack.c.bf16 %v3343_v9, %v3313_v14 }
 0x594   : > { %3634 = vmatpush1.bf16.msra.mxu0 %v3522_v17  ;;  %3669 = vmatpush1.bf16.msra.mxu1 %v3447_v61  ;;  %v3282_v36 = vsel %vm2036_vm2, %v10447_v43, %v10536_v63  ;;  %v3290_v11 = vsel %vm2036_vm2, %v10537_v7, %v10466_v33  ;;  %v3260_v33 = vsel %vm2005_vm1, %v10532_v53, %v10461_v6 }
 0x595   : > { %v10540_v27 = vpop.permute.xlu1 %10539  ;;  %3711 = vmatprep.subr.bf16.mxu0 %v3450_v16  ;;  %v3458_v34 = vpack.c.bf16 %v3282_v36, %v3252_v40  ;;  %v3312_v52 = vsel %vm2067_vm3, %v10492_v1, %v10556_v38  ;;  %v3281_v56 = vsel %vm2036_vm2, %v10536_v63, %v10537_v7  ;;  %v3460_v19 = vpack.c.bf16 %v3290_v11, %v3260_v33  ;;  %v13618_v40 = vld [vmem:[%s11552_s27] sm:$0xff] }
 0x596   : > { %v3340_v43 = vpop.permute.xlu0 %3339  ;;  %v3468_v41 = vpack.c.bf16 %v3342_v4, %v3312_v52  ;;  %v10541_v54 = vunpack.i.l.bf16 %v10540_v27  ;;  %v10542_v57 = vunpack.i.h.bf16 %v10540_v27  ;;  %v3251_v6 = vsel %vm2005_vm1, %v10531_v48, %v10532_v53 }
 0x597   : > { %9530 = vmatmul.mubr.msk.bf16.vlgmr.msra.gmra.mrb[24].mxu0 %vm2257_vm9, %v13405_v62  ;;  %3670 = vmatprep.subr.bf16.mxu1 %v3458_v34  ;;  %v3350_v59 = vsel %vm2098_vm4, %v3340_v43, %v10476_v60  ;;  %v3459_v0 = vpack.c.bf16 %v3281_v56, %v3251_v6  ;;  %v3320_v35 = vsel %vm2067_vm3, %v10557_v12, %v10471_v46  ;;  %v16488_v63 = vunpack.i.l.bf16 %v13329_v18  ;;  %v13615_v18 = vld [vmem:[%s16398_s8] sm:$0xff]  ;;  %v16490_v56 = vld [vmem:[#allocation56_spill] sm:$0xff] }
 0x598   : > { %3671 = vmatpush1.bf16.msra.mxu1 %v3457_v13  ;;  %3712 = vmatpush1.bf16.msra.mxu0 %v3449_v10  ;;  %v3373_v60 = vsel %vm2129_vm5, %v13420_v25, %v10541_v54  ;;  %v3341_v15 = vsel %vm2098_vm4, %v10522_v2, %v3340_v43  ;;  %v3470_v45 = vpack.c.bf16 %v3350_v59, %v3320_v35  ;;  %v13623_v9 = vsub.f32 1.0, %v13615_v18 }
 0x599   : > { %v10545_v29 = vpop.permute.xlu1 %10544  ;;  %3672 = vmatprep.subr.bf16.mxu1 %v3468_v41  ;;  %3713 = vmatprep.subr.bf16.mxu0 %v3460_v19  ;;  %v3372_v44 = vsel %vm2129_vm5, %v10541_v54, %v10542_v57  ;;  %v3311_v31 = vsel %vm2067_vm3, %v10556_v38, %v10557_v12  ;;  %v16489_v12 = vld [vmem:[#allocation55_spill] sm:$0xff]  ;;  %v3785_v54 = vrot.slane %v13618_v40, %v16490_v56  ;;  %vm5474_vm2 = vcmp.lt.s32.totalorder %v11934_v21, 112 }
 0x59a   : > { %v10547_v8 = vunpack.i.h.bf16 %v10545_v29  ;;  %v10546_v50 = vunpack.i.l.bf16 %v10545_v29  ;;  %v3370_v23 = vpop.permute.xlu0 %3369  ;;  %3743 = vmatprep.mubr.bf16.mxu0 %v16439_v26  ;;  %v3469_v48 = vpack.c.bf16 %v3341_v15, %v3311_v31  ;;  %v3781_v43 = vrot.slane %v13618_v40, %v16489_v12 }
 0x59b   : > { %v3371_v30 = vsel %vm2129_vm5, %v10542_v57, %v3370_v23  ;;  %v3989_v57 = vrot.slane %v13623_v9, %v16489_v12  ;;  %v3993_v29 = vrot.slane %v13623_v9, %v16490_v56  ;;  %vm5539_vm3 = vcmp.lt.s32.totalorder %v11934_v21, 19 }
 0x59c   : > { %v3403_v55 = vsel %vm2160_vm6, %v13455_v58, %v10546_v50  ;;  %3673 = vmatpush1.bf16.msra.mxu1 %v3467_v49  ;;  %3714 = vmatpush1.bf16.msra.mxu0 %v3459_v0  ;;  %v3402_v46 = vsel %vm2160_vm6, %v10546_v50, %v10547_v8  ;;  %v3380_v58 = vsel %vm2129_vm5, %v3370_v23, %v10481_v20  ;;  %vm5745_vm5 = vcmask 130048  }
 0x59d   : > { %v10550_v25 = vpop.permute.xlu1 %10549  ;;  %3715 = vmatprep.subr.bf16.mxu0 %v3470_v45  ;;  %v3478_v61 = vpack.c.bf16 %v3402_v46, %v3372_v44  ;;  %v3477_v22 = vpack.c.bf16 %v3403_v55, %v3373_v60  ;;  %v16491_v55 = vld [vmem:[#allocation57_spill] sm:$0xff] }
 0x59e   : > { %v10552_v3 = vunpack.i.h.bf16 %v10550_v25  ;;  %v10551_v32 = vunpack.i.l.bf16 %v10550_v25  ;;  %v3400_v2 = vpop.permute.xlu0 %3399  ;;  %v3789_v44 = vrot.slane %v13618_v40, %v16491_v55  ;;  %v16492_v25 = vld [vmem:[#allocation60_spill] sm:$0xff] }
 0x59f   : > { %v3401_v39 = vsel %vm2160_vm6, %v10547_v8, %v3400_v2  ;;  %v3410_v28 = vsel %vm2160_vm6, %v3400_v2, %v10486_v51  ;;  %3674 = vmatprep.subr.bf16.mxu1 %v3478_v61  ;;  %v3793_v61 = vrot.slane %v13618_v40, %v16492_v25  ;;  %vm5598_vm6 = vcmp.lt.s32.totalorder %v11934_v21, 110 }
 0x5a0   : > { %3675 = vmatpush1.bf16.msra.mxu1 %v3477_v22  ;;  %3716 = vmatpush1.bf16.msra.mxu0 %v3469_v48  ;;  %v3480_v37 = vpack.c.bf16 %v3410_v28, %v3380_v58  ;;  %v3432_v13 = vsel %vm2191_vm7, %v10551_v32, %v10552_v3  ;;  %v3433_v20 = vsel %vm2191_vm7, %v13482_v24, %v10551_v32 }
 0x5a1   : > { %v3488_v1 = vpack.c.bf16 %v3432_v13, %v3432_v13  ;;  %v3479_v53 = vpack.c.bf16 %v3401_v39, %v3371_v30  ;;  %v3487_v51 = vpack.c.bf16 %v3433_v20, %v3433_v20  ;;  %v3867_v13 = vrot.slane %v13615_v18, %v16492_v25 }
 0x5a2   : > { %v3430_v5 = vpop.permute.xlu0 %3429  ;;  %3717 = vmatprep.subr.bf16.mxu0 %v3480_v37  ;;  %v3997_v37 = vrot.slane %v13623_v9, %v16491_v55  ;;  %v4001_v20 = vrot.slane %v13623_v9, %v16492_v25 }
 0x5a3   : > { %v3431_v7 = vsel %vm2191_vm7, %v10552_v3, %v3430_v5  ;;  %v3440_v42 = vsel %vm2191_vm7, %v3430_v5, %v16488_v63  ;;  %9531 = vmatprep.subr.msk.bf16.mxu1 %vm2261_vm8, %v3488_v1  ;;  %v3528_v24 = vsel %vm2261_vm8, %v3487_v51, 0  ;;  %v3863_v3 = vrot.slane %v13615_v18, %v16491_v55 }
 0x5a4   : > { %v3489_v47 = vpack.c.bf16 %v3431_v7, %v3431_v7  ;;  %v3490_v38 = vpack.c.bf16 %v3440_v42, %v3440_v42  ;;  %3718 = vmatpush1.bf16.msra.mxu0 %v3479_v53  ;;  %3677 = vmatpush1.bf16.msra.mxu1 %v3528_v24  ;;  %vm5617_vm7 = vcmp.lt.s32.totalorder %v11934_v21, 109 }
 0x5a6   : > { %9533 = vmatprep.subr.msk.bf16.mxu0 %vm2261_vm8, %v3490_v38  ;;  %v3534_v17 = vsel %vm2261_vm8, %v3489_v47, 0  ;;  %vm5636_vm8 = vcmp.lt.s32.totalorder %v11934_v21, 108 }
 0x5a7   : > { %9532 = vmatmul.mubr.msk.bf16.vlgmr.msra.gmra.mrb[24].mxu1 %vm2257_vm9, %v13405_v62 }
 0x5a8   : > { %3720 = vmatpush1.bf16.msra.mxu0 %v3534_v17 }
 0x5a9   : > { %5792 = vmatprep.subr.bf16.mxu0 %v16439_v26 }
 0x5ab   : > { %9534 = vmatmul.mubr.msk.bf16.vlgmr.msra.gmra.mrb[28].mxu0 %vm2257_vm9, %v13405_v62  ;;  %vm5673_vm9 = vcmp.lt.s32.totalorder %v11934_v21, 91 }
 0x5ae   : > { %v13620_v36 = vpop.permute.xlu1 %3493 }
 0x5b3   : > { %v13626_v34 = vpop.permute.xlu0 %3498 }
 0x656   : > { %v3573_v16 = vpop.f32.mrb[20].mxu0 }
 0x657   : > { %v3575_v11 = vpop.f32.mrb[21].mxu0  ;;  %v3574_v27 = vadd.f32 %v3573_v16, %v13620_v36 }
 0x658   : > { %v3577_v52 = vpop.f32.mrb[22].mxu0  ;;  %v3576_v4 = vadd.f32 %v3575_v11, %v13620_v36 }
 0x659   : > { %v3578_v62 = vadd.f32 %v3577_v52, %v13626_v34  ;;  %v3579_v10 = vpop.f32.mrb[23].mxu0  ;;  %v3754_v41 = vmax.f32 %v3574_v27, 0.0 }
 0x65a   : > { %v3580_v33 = vadd.f32 %v3579_v10, %v13626_v34  ;;  %v3755_v19 = vmax.f32 %v3576_v4, 0.0  ;;  %v16493_v10 = vld [vmem:[#allocation58_spill] sm:$0xff] }
 0x65b   : > { %v3764_v14 = vmax.f32 %v3578_v62, 0.0  ;;  %v3828_v59 = vmul.f32 %v3781_v43, %v3754_v41  ;;  %v3855_v62 = vrot.slane %v13615_v18, %v16489_v12  ;;  %v3797_v41 = vrot.slane %v13618_v40, %v16493_v10 }
 0x65c   : > { %v3765_v6 = vmax.f32 %v3580_v33, 0.0  ;;  %v13639_v49 = vmul.f32 %v3785_v54, %v3755_v19  ;;  %v4005_v19 = vrot.slane %v13623_v9, %v16493_v10 }
 0x65d   : > { %v13641_v8 = vmul.f32 %v3781_v43, %v3764_v14  ;;  %v13643_v50 = vmul.f32 %v3989_v57, %v3828_v59 }
 0x65e   : > { %v13645_v23 = vmul.f32 %v3785_v54, %v3765_v6  ;;  %v13648_v0 = vmul.f32 %v3993_v29, %v13639_v49 }
 0x65f   : > { %v13651_v35 = vmul.f32 %v3989_v57, %v13641_v8  ;;  %v16494_v57 = vld [vmem:[#allocation59_spill] sm:$0xff] }
 0x660   : > { %v13654_v60 = vmul.f32 %v3993_v29, %v13645_v23  ;;  %v3801_v6 = vrot.slane %v13618_v40, %v16494_v57 }
 0x662   : > { %v3616_v15 = vpop.f32.mrb[20].mxu1 }
 0x663   : > { %v3617_v45 = vadd.f32 %v3616_v15, %v13620_v36  ;;  %v3618_v46 = vpop.f32.mrb[21].mxu1 }
 0x664   : > { %v3619_v31 = vadd.f32 %v3618_v46, %v13620_v36  ;;  %v3620_v22 = vpop.f32.mrb[22].mxu1  ;;  %v3902_v46 = vmul.f32 %v3855_v62, %v3828_v59  ;;  %v3912_v59 = vmul.f32 %v3855_v62, %v13641_v8 }
 0x665   : > { %v3756_v48 = vmax.f32 %v3617_v45, 0.0  ;;  %v3621_v32 = vadd.f32 %v3620_v22, %v13626_v34  ;;  %v3622_v2 = vpop.f32.mrb[23].mxu1 }
 0x666   : > { %v3757_v58 = vmax.f32 %v3619_v31, 0.0  ;;  %v3623_v39 = vadd.f32 %v3622_v2, %v13626_v34 }
 0x667   : > { %v3830_v28 = vmul.f32 %v3789_v44, %v3756_v48  ;;  %v3766_v30 = vmax.f32 %v3621_v32, 0.0 }
 0x668   : > { %v3831_v1 = vmul.f32 %v3793_v61, %v3757_v58  ;;  %v3767_v53 = vmax.f32 %v3623_v39, 0.0 }
 0x669   : > { %v3904_v5 = vmul.f32 %v3863_v3, %v3830_v28  ;;  %v13672_v51 = vmul.f32 %v3997_v37, %v3830_v28  ;;  %v3840_v7 = vmul.f32 %v3789_v44, %v3766_v30  ;;  %v13722_v28 = vld [vmem:[%s16398_s8 + $0x8] sm:$0x3]  ;;  %s16529_s8 = smov 118  }
 0x66a   : > { %v13674_v63 = vmul.f32 %v4001_v20, %v3831_v1  ;;  %v3841_v42 = vmul.f32 %v3793_v61, %v3767_v53  ;;  %v3659_v47 = vpop.f32.mrb[24].mxu0  ;;  %v3905_v38 = vmul.f32 %v3867_v13, %v3831_v1  ;;  %v4009_v61 = vrot.slane %v13623_v9, %v16494_v57 }
 0x66b   : > { %v3914_v24 = vmul.f32 %v3863_v3, %v3840_v7  ;;  %v13676_v17 = vmul.f32 %v3997_v37, %v3840_v7  ;;  %v3660_v16 = vadd.f32 %v3659_v47, %v13620_v36  ;;  %3930 = vrot.lane.b32.xlu1 %v3904_v5, %s16288_s23  ;;  %v3661_v11 = vpop.f32.mrb[25].mxu0  ;;  %v3983_v30 = vsub.f32 1.0, %v13722_v28  ;;  %v16496_v47 = vld [vmem:[#allocation62_spill] sm:$0xff] }
 0x66c   : > { %v13680_v27 = vmul.f32 %v4001_v20, %v3841_v42  ;;  %v3662_v52 = vadd.f32 %v3661_v11, %v13620_v36  ;;  %v3663_v4 = vpop.f32.mrb[26].mxu0  ;;  %v3915_v15 = vmul.f32 %v3867_v13, %v3841_v42  ;;  %v3775_v13 = vld [vmem:[%s11552_s27 + $0x8] sm:$0x3]  ;;  %v16495_v20 = vld [vmem:[#allocation61_spill] sm:$0xff] }
 0x66d   : > { %v3758_v43 = vmax.f32 %v3660_v16, 0.0  ;;  %v3664_v33 = vadd.f32 %v3663_v4, %v13626_v34  ;;  %3932 = vrot.lane.b32.xlu0 %v3914_v24, %s16288_s23  ;;  %v3665_v54 = vpop.f32.mrb[27].mxu0  ;;  %v3805_v8 = vrot.slane %v13618_v40, %v16495_v20  ;;  %v3879_v53 = vrot.slane %v13615_v18, %v16495_v20 }
 0x66e   : > { %v3759_v14 = vmax.f32 %v3662_v52, 0.0  ;;  %v3666_v29 = vadd.f32 %v3665_v54, %v13626_v34  ;;  %v4013_v7 = vrot.slane %v13623_v9, %v16495_v20  ;;  %v4017_v24 = vrot.slane %v13623_v9, %v16496_v47 }
 0x66f   : > { %v13694_v45 = vmul.f32 %v3797_v41, %v3758_v43  ;;  %v3768_v44 = vmax.f32 %v3664_v33, 0.0  ;;  %3934 = vrot.lane.b32.xlu1 %v3905_v38, %s16288_s23  ;;  %v3809_v38 = vrot.slane %v13618_v40, %v16496_v47  ;;  %v3813_v43 = vrot.slane %v3775_v13, %v16489_v12 }
 0x670   : > { %v13697_v31 = vmul.f32 %v3801_v6, %v3759_v14  ;;  %v3769_v22 = vmax.f32 %v3666_v29, 0.0  ;;  %v4021_v40 = vrot.slane %v3983_v30, %v16489_v12 }
 0x671   : > { %v13702_v48 = vmul.f32 %v4005_v19, %v13694_v45  ;;  %v13704_v3 = vmul.f32 %v3797_v41, %v3768_v44  ;;  %3936 = vrot.lane.b32.xlu0 %v3915_v15, %s16288_s23  ;;  %v3817_v41 = vrot.slane %v3775_v13, %v16490_v56  ;;  %v4025_v15 = vrot.slane %v3983_v30, %v16490_v56 }
 0x672   : > { %v13708_v32 = vmul.f32 %v4009_v61, %v13697_v31  ;;  %v13710_v2 = vmul.f32 %v3801_v6, %v3769_v22 }
 0x673   : > { %v13714_v58 = vmul.f32 %v4005_v19, %v13704_v3  ;;  %3922 = vrot.lane.b32.xlu1 %v3902_v46, %s16288_s23 }
 0x674   : > { %v13718_v39 = vmul.f32 %v4009_v61, %v13710_v2 }
 0x675   : > { %3924 = vrot.lane.b32.xlu0 %v3912_v59, %s16288_s23 }
 0x67a   : > { %v3702_v37 = vpop.f32.mrb[24].mxu1 }
 0x67b   : > { %v3703_v1 = vadd.f32 %v3702_v37, %v13620_v36  ;;  %v3704_v5 = vpop.f32.mrb[25].mxu1 }
 0x67c   : > { %v3705_v42 = vadd.f32 %v3704_v5, %v13620_v36  ;;  %v3706_v16 = vpop.f32.mrb[26].mxu1 }
 0x67d   : > { %v3760_v11 = vmax.f32 %v3703_v1, 0.0  ;;  %v3707_v52 = vadd.f32 %v3706_v16, %v13626_v34  ;;  %v3708_v4 = vpop.f32.mrb[27].mxu1  ;;  %v3859_v16 = vrot.slane %v13615_v18, %v16490_v56 }
 0x67e   : > { %v3745_v62 = vpop.f32.mrb[28].mxu0  ;;  %v3761_v33 = vmax.f32 %v3705_v42, 0.0  ;;  %v3709_v54 = vadd.f32 %v3708_v4, %v13626_v34 }
 0x67f   : > { %v3746_v19 = vadd.f32 %v3745_v62, %v13620_v36  ;;  %v3747_v14 = vpop.f32.mrb[29].mxu0  ;;  %v3834_v6 = vmul.f32 %v3805_v8, %v3760_v11  ;;  %v3770_v9 = vmax.f32 %v3707_v52, 0.0 }
 0x680   : > { %v3748_v29 = vadd.f32 %v3747_v14, %v13620_v36  ;;  %v3749_v44 = vpop.f32.mrb[30].mxu0  ;;  %v3835_v46 = vmul.f32 %v3809_v38, %v3761_v33  ;;  %v3771_v61 = vmax.f32 %v3709_v54, 0.0  ;;  %v3883_v54 = vrot.slane %v13615_v18, %v16496_v47 }
 0x681   : > { %v3762_v22 = vmax.f32 %v3746_v19, 0.0  ;;  %v3750_v59 = vadd.f32 %v3749_v44, %v13626_v34  ;;  %v3751_v37 = vpop.f32.mrb[31].mxu0  ;;  %v3908_v13 = vmul.f32 %v3879_v53, %v3834_v6  ;;  %v13747_v1 = vmul.f32 %v4013_v7, %v3834_v6 }
 0x682   : > { %v3844_v5 = vmul.f32 %v3805_v8, %v3770_v9  ;;  %v3763_v42 = vmax.f32 %v3748_v29, 0.0  ;;  %v13751_v11 = vmul.f32 %v4017_v24, %v3835_v46  ;;  %v3845_v36 = vmul.f32 %v3809_v38, %v3771_v61 }
 0x683   : > { %v3836_v52 = vmul.f32 %v3813_v43, %v3762_v22  ;;  %v3772_v33 = vmax.f32 %v3750_v59, 0.0  ;;  %3946 = vrot.lane.b32.xlu1 %v3908_v13, %s16288_s23  ;;  %v3752_v38 = vadd.f32 %v3751_v37, %v13626_v34 }
 0x684   : > { %v3918_v30 = vmul.f32 %v3879_v53, %v3844_v5  ;;  %v13753_v4 = vmul.f32 %v4013_v7, %v3844_v5  ;;  %v3837_v62 = vmul.f32 %v3817_v41, %v3763_v42  ;;  %v13758_v19 = vmul.f32 %v4017_v24, %v3845_v36 }
 0x685   : > { %v13760_v8 = vmul.f32 %v4021_v40, %v3836_v52  ;;  %v3846_v6 = vmul.f32 %v3813_v43, %v3772_v33  ;;  %v3903_v53 = vmul.f32 %v3859_v16, %v13639_v49  ;;  %v3913_v7 = vmul.f32 %v3859_v16, %v13645_v23 }
 0x686   : > { %v13762_v14 = vmul.f32 %v4025_v15, %v3837_v62  ;;  %3948 = vrot.lane.b32.xlu0 %v3918_v30, %s16288_s23  ;;  %v3773_v29 = vmax.f32 %v3752_v38, 0.0  ;;  %v3909_v24 = vmul.f32 %v3883_v54, %v3835_v46  ;;  %v3871_v43 = vrot.slane %v13615_v18, %v16493_v10 }
 0x687   : > { %v13768_v9 = vmul.f32 %v4021_v40, %v3846_v6  ;;  %3926 = vrot.lane.b32.xlu1 %v3903_v53, %s16288_s23  ;;  %v3919_v61 = vmul.f32 %v3883_v54, %v3845_v36  ;;  %v3875_v23 = vrot.slane %v13615_v18, %v16494_v57  ;;  %v3891_v18 = vrot.slane %v13722_v28, %v16490_v56 }
 0x688   : > { %v3847_v44 = vmul.f32 %v3817_v41, %v3773_v29  ;;  %v3906_v49 = vmul.f32 %v3871_v43, %v13694_v45  ;;  %v3916_v40 = vmul.f32 %v3871_v43, %v13704_v3 }
 0x689   : > { %v3907_v41 = vmul.f32 %v3875_v23, %v13697_v31  ;;  %v3917_v46 = vmul.f32 %v3875_v23, %v13710_v2  ;;  %v3911_v22 = vmul.f32 %v3891_v18, %v3837_v62  ;;  %v13797_v2 = vld [vmem:[%s11517_s14] sm:$0xff] }
 0x68a   : > { %3928 = vrot.lane.b32.xlu0 %v3913_v7, %s16288_s23  ;;  %v13774_v34 = vmul.f32 %v4025_v15, %v3847_v44  ;;  %v3887_v15 = vrot.slane %v13722_v28, %v16489_v12  ;;  %v3921_v31 = vmul.f32 %v3891_v18, %v3847_v44  ;;  %v13800_v37 = vsub.f32 1.0, %v13797_v2 }
 0x68b   : > { %3950 = vrot.lane.b32.xlu1 %v3909_v24, %s16288_s23  ;;  %v4091_v13 = vrot.slane %v13797_v2, %v16491_v55  ;;  %v4083_v24 = vrot.slane %v13797_v2, %v16489_v12 }
 0x68c   : > { %v3910_v45 = vmul.f32 %v3887_v15, %v3836_v52  ;;  %v3920_v3 = vmul.f32 %v3887_v15, %v3846_v6  ;;  %v4225_v42 = vrot.slane %v13800_v37, %v16491_v55  ;;  %v4087_v15 = vrot.slane %v13797_v2, %v16490_v56 }
 0x68e   : > { %3952 = vrot.lane.b32.xlu0 %v3919_v61, %s16288_s23  ;;  %v4217_v61 = vrot.slane %v13800_v37, %v16489_v12 }
 0x68f   : > { %3938 = vrot.lane.b32.xlu1 %v3906_v49, %s16288_s23  ;;  %v4221_v49 = vrot.slane %v13800_v37, %v16490_v56 }
 0x692   : > { %3940 = vrot.lane.b32.xlu0 %v3916_v40, %s16288_s23 }
 0x693   : > { %3942 = vrot.lane.b32.xlu1 %v3907_v41, %s16288_s23 }
 0x696   : > { %3944 = vrot.lane.b32.xlu0 %v3917_v46, %s16288_s23 }
 0x697   : > { %3954 = vrot.lane.b32.xlu1 %v3910_v45, %s16288_s23 }
 0x69a   : > { %3956 = vrot.lane.b32.xlu0 %v3920_v3, %s16288_s23 }
 0x69b   : > { %3958 = vrot.lane.b32.xlu1 %v3911_v22, %s16288_s23 }
 0x69e   : > { %3960 = vrot.lane.b32.xlu0 %v3921_v31, %s16288_s23 }
 0x6dd   : > { %v3931_v59 = vpop.permute.xlu1 %3930 }
 0x6df   : > { %v3933_v28 = vpop.permute.xlu0 %3932 }
 0x6e1   : > { %v3935_v5 = vpop.permute.xlu1 %3934 }
 0x6e2   : > { %v3974_v16 = vsel %vm1974_vm0, %v3931_v59, %v3935_v5 }
 0x6e3   : > { %v4058_v36 = vadd.f32 %v13672_v51, %v3974_v16  ;;  %v3937_v52 = vpop.permute.xlu0 %3936 }
 0x6e4   : > { %v3975_v30 = vsel %vm1974_vm0, %v3933_v28, %v3937_v52 }
 0x6e5   : > { %v4132_v62 = vmul.f32 %v4091_v13, %v4058_v36  ;;  %v4068_v33 = vadd.f32 %v13676_v17, %v3975_v30  ;;  %v13812_v54 = vmul.f32 %v4225_v42, %v4058_v36  ;;  %v13818_v53 = vpop.permute.xlu1 %3922 }
 0x6e7   : > { %v4142_v6 = vmul.f32 %v4091_v13, %v4068_v33  ;;  %4158 = vrot.lane.b32.xlu1 %v4132_v62, %s16302_s22  ;;  %v13815_v38 = vmul.f32 %v4225_v42, %v4068_v33  ;;  %v13820_v7 = vpop.permute.xlu0 %3924 }
 0x6e9   : > { %4160 = vrot.lane.b32.xlu0 %v4142_v6, %s16302_s22 }
 0x6f5   : > { %v3947_v51 = vpop.permute.xlu1 %3946 }
 0x6f8   : > { %v3949_v29 = vpop.permute.xlu0 %3948 }
 0x6f9   : > { %v3927_v44 = vpop.permute.xlu1 %3926 }
 0x6fa   : > { %v3976_v17 = vsel %vm1974_vm0, %v3927_v44, %v3931_v59  ;;  %v3978_v43 = vsel %vm1974_vm0, %v13818_v53, %v3927_v44 }
 0x6fb   : > { %v4056_v23 = vadd.f32 %v13643_v50, %v3978_v43  ;;  %v4057_v40 = vadd.f32 %v13648_v0, %v3976_v17  ;;  %v4241_v50 = vrot.slane %v13800_v37, %v16495_v20 }
 0x6fc   : > { %v3929_v41 = vpop.permute.xlu0 %3928 }
 0x6fd   : > { %v3977_v46 = vsel %vm1974_vm0, %v3929_v41, %v3933_v28  ;;  %v3979_v45 = vsel %vm1974_vm0, %v13820_v7, %v3929_v41  ;;  %v4130_v18 = vmul.f32 %v4083_v24, %v4056_v23  ;;  %v3951_v31 = vpop.permute.xlu1 %3950  ;;  %v13848_v59 = vmul.f32 %v4217_v61, %v4056_v23 }
 0x6fe   : > { %v4066_v3 = vadd.f32 %v13651_v35, %v3979_v45  ;;  %v4067_v22 = vadd.f32 %v13654_v60, %v3977_v46  ;;  %v3966_v0 = vsel %vm1974_vm0, %v3947_v51, %v3951_v31  ;;  %v13850_v13 = vmul.f32 %v4221_v49, %v4057_v40 }
 0x6ff   : > { %v4062_v42 = vadd.f32 %v13747_v1, %v3966_v0  ;;  %4150 = vrot.lane.b32.xlu1 %v4130_v18, %s16302_s22  ;;  %v4107_v60 = vrot.slane %v13797_v2, %v16495_v20  ;;  %v4131_v62 = vmul.f32 %v4087_v15, %v4057_v40  ;;  %v4229_v1 = vrot.slane %v13800_v37, %v16492_v25 }
 0x700   : > { %v4140_v28 = vmul.f32 %v4083_v24, %v4066_v3  ;;  %v3953_v16 = vpop.permute.xlu0 %3952  ;;  %v13854_v35 = vmul.f32 %v4217_v61, %v4066_v3  ;;  %v13860_v30 = vmul.f32 %v4221_v49, %v4067_v22  ;;  %v4141_v17 = vmul.f32 %v4087_v15, %v4067_v22 }
 0x701   : > { %v3967_v36 = vsel %vm1974_vm0, %v3949_v29, %v3953_v16  ;;  %v3939_v6 = vpop.permute.xlu1 %3938  ;;  %v13866_v24 = vmul.f32 %v4241_v50, %v4062_v42  ;;  %v4136_v23 = vmul.f32 %v4107_v60, %v4062_v42  ;;  %v4095_v40 = vrot.slane %v13797_v2, %v16492_v25 }
 0x702   : > { %v4072_v33 = vadd.f32 %v13753_v4, %v3967_v36  ;;  %4152 = vrot.lane.b32.xlu0 %v4140_v28, %s16302_s22  ;;  %v3972_v44 = vsel %vm1974_vm0, %v3935_v5, %v3939_v6  ;;  %v4237_v45 = vrot.slane %v13800_v37, %v16494_v57 }
 0x703   : > { %v4059_v43 = vadd.f32 %v13674_v63, %v3972_v44  ;;  %4154 = vrot.lane.b32.xlu1 %v4131_v62, %s16302_s22  ;;  %v4245_v62 = vrot.slane %v13800_v37, %v16496_v47 }
 0x704   : > { %v3941_v61 = vpop.permute.xlu0 %3940  ;;  %v13872_v49 = vmul.f32 %v4241_v50, %v4072_v33  ;;  %v4146_v18 = vmul.f32 %v4107_v60, %v4072_v33  ;;  %v4077_v50 = vld [vmem:[%s11517_s14 + $0x8] sm:$0x3] }
 0x705   : > { %v3973_v4 = vsel %vm1974_vm0, %v3937_v52, %v3941_v61  ;;  %v3943_v5 = vpop.permute.xlu1 %3942  ;;  %v13880_v15 = vmul.f32 %v4229_v1, %v4059_v43  ;;  %v4233_v52 = vrot.slane %v13800_v37, %v16493_v10  ;;  %v4133_v60 = vmul.f32 %v4095_v40, %v4059_v43 }
 0x706   : > { %v4069_v41 = vadd.f32 %v13680_v27, %v3973_v4  ;;  %4156 = vrot.lane.b32.xlu0 %v4141_v17, %s16302_s22  ;;  %v3968_v63 = vsel %vm1974_vm0, %v3943_v5, %v3947_v51  ;;  %v3970_v46 = vsel %vm1974_vm0, %v3939_v6, %v3943_v5  ;;  %v4099_v51 = vrot.slane %v13797_v2, %v16493_v10 }
 0x707   : > { %v4060_v27 = vadd.f32 %v13702_v48, %v3970_v46  ;;  %v4061_v3 = vadd.f32 %v13708_v32, %v3968_v63  ;;  %4174 = vrot.lane.b32.xlu1 %v4136_v23, %s16302_s22 }
 0x708   : > { %v3945_v22 = vpop.permute.xlu0 %3944  ;;  %v13894_v0 = vmul.f32 %v4229_v1, %v4069_v41  ;;  %v4211_v1 = vsub.f32 1.0, %v4077_v50  ;;  %v4143_v44 = vmul.f32 %v4095_v40, %v4069_v41 }
 0x709   : > { %v3969_v28 = vsel %vm1974_vm0, %v3945_v22, %v3949_v29  ;;  %v3971_v42 = vsel %vm1974_vm0, %v3941_v61, %v3945_v22  ;;  %v3955_v36 = vpop.permute.xlu1 %3954  ;;  %v13909_v6 = vmul.f32 %v4233_v52, %v4060_v27  ;;  %v13911_v29 = vmul.f32 %v4237_v45, %v4061_v3 }
 0x70a   : > { %v4070_v48 = vadd.f32 %v13714_v58, %v3971_v42  ;;  %v4071_v32 = vadd.f32 %v13718_v39, %v3969_v28  ;;  %4176 = vrot.lane.b32.xlu0 %v4146_v18, %s16302_s22  ;;  %v3964_v33 = vsel %vm1974_vm0, %v3951_v31, %v3955_v36  ;;  %v4103_v31 = vrot.slane %v13797_v2, %v16494_v57 }
 0x70b   : > { %v4063_v17 = vadd.f32 %v13751_v11, %v3964_v33  ;;  %4162 = vrot.lane.b32.xlu1 %v4133_v60, %s16302_s22  ;;  %v4134_v61 = vmul.f32 %v4099_v51, %v4060_v27  ;;  %v4249_v41 = vrot.slane %v4211_v1, %v16489_v12  ;;  %v4253_v5 = vrot.slane %v4211_v1, %v16490_v56 }
 0x70c   : > { %v3957_v58 = vpop.permute.xlu0 %3956  ;;  %v13915_v39 = vmul.f32 %v4233_v52, %v4070_v48  ;;  %v13919_v37 = vmul.f32 %v4237_v45, %v4071_v32  ;;  %v4144_v63 = vmul.f32 %v4099_v51, %v4070_v48  ;;  %v4135_v27 = vmul.f32 %v4103_v31, %v4061_v3 }
 0x70d   : > { %v3965_v43 = vsel %vm1974_vm0, %v3953_v16, %v3957_v58  ;;  %v3959_v23 = vpop.permute.xlu1 %3958  ;;  %v13925_v11 = vmul.f32 %v4245_v62, %v4063_v17  ;;  %v4111_v22 = vrot.slane %v13797_v2, %v16496_v47  ;;  %v4145_v42 = vmul.f32 %v4103_v31, %v4071_v32 }
 0x70e   : > { %v4073_v4 = vadd.f32 %v13758_v19, %v3965_v43  ;;  %4164 = vrot.lane.b32.xlu0 %v4143_v44, %s16302_s22  ;;  %v3962_v40 = vsel %vm1974_vm0, %v3955_v36, %v3959_v23  ;;  %v3980_v16 = vsel %vm1974_vm0, %v3959_v23, %v13818_v53  ;;  %v4115_v2 = vrot.slane %v4077_v50, %v16489_v12  ;;  %v13968_v44 = vld [vmem:[%s11522_s19] sm:$0xff] }
 0x70f   : > { %v4064_v46 = vadd.f32 %v13760_v8, %v3962_v40  ;;  %v4065_v19 = vadd.f32 %v13762_v14, %v3980_v16  ;;  %4166 = vrot.lane.b32.xlu1 %v4134_v61, %s16302_s22  ;;  %v4137_v3 = vmul.f32 %v4111_v22, %v4063_v17  ;;  %v4311_v43 = vrot.slane %v13968_v44, %v16489_v12 }
 0x710   : > { %v3961_v52 = vpop.permute.xlu0 %3960  ;;  %v13942_v53 = vmul.f32 %v4245_v62, %v4073_v4 }
 0x711   : > { %v3963_v45 = vsel %vm1974_vm0, %v3957_v58, %v3961_v52  ;;  %v3981_v18 = vsel %vm1974_vm0, %v3961_v52, %v13820_v7  ;;  %v13949_v51 = vmul.f32 %v4249_v41, %v4064_v46  ;;  %v13951_v28 = vmul.f32 %v4253_v5, %v4065_v19 }
 0x712   : > { %v4074_v8 = vadd.f32 %v13768_v9, %v3963_v45  ;;  %v4075_v14 = vadd.f32 %v13774_v34, %v3981_v18  ;;  %4168 = vrot.lane.b32.xlu0 %v4144_v63, %s16302_s22  ;;  %v4147_v9 = vmul.f32 %v4111_v22, %v4073_v4  ;;  %v4119_v34 = vrot.slane %v4077_v50, %v16490_v56 }
 0x713   : > { %4170 = vrot.lane.b32.xlu1 %v4135_v27, %s16302_s22  ;;  %v4138_v48 = vmul.f32 %v4115_v2, %v4064_v46  ;;  %v13973_v50 = vsub.f32 1.0, %v13968_v44 }
 0x714   : > { %v13954_v7 = vmul.f32 %v4249_v41, %v4074_v8  ;;  %v13956_v60 = vmul.f32 %v4253_v5, %v4075_v14  ;;  %v4148_v32 = vmul.f32 %v4115_v2, %v4074_v8  ;;  %v4139_v36 = vmul.f32 %v4119_v34, %v4065_v19 }
 0x715   : > { %v4149_v62 = vmul.f32 %v4119_v34, %v4075_v14  ;;  %v4446_v23 = vrot.slane %v13973_v50, %v16489_v12  ;;  %v4450_v40 = vrot.slane %v13973_v50, %v16490_v56  ;;  %v4315_v19 = vrot.slane %v13968_v44, %v16490_v56 }
 0x716   : > { %4172 = vrot.lane.b32.xlu0 %v4145_v42, %s16302_s22  ;;  %v4454_v2 = vrot.slane %v13973_v50, %v16491_v55 }
 0x717   : > { %4178 = vrot.lane.b32.xlu1 %v4137_v3, %s16302_s22 }
 0x71a   : > { %4180 = vrot.lane.b32.xlu0 %v4147_v9, %s16302_s22 }
 0x71b   : > { %4182 = vrot.lane.b32.xlu1 %v4138_v48, %s16302_s22 }
 0x71e   : > { %4184 = vrot.lane.b32.xlu0 %v4148_v32, %s16302_s22 }
 0x71f   : > { %4186 = vrot.lane.b32.xlu1 %v4139_v36, %s16302_s22 }
 0x722   : > { %4188 = vrot.lane.b32.xlu0 %v4149_v62, %s16302_s22 }
 0x759   : > { %v4159_v33 = vpop.permute.xlu1 %4158 }
 0x75b   : > { %v4161_v1 = vpop.permute.xlu0 %4160 }
 0x771   : > { %v13970_v17 = vpop.permute.xlu1 %4150 }
 0x774   : > { %v13975_v58 = vpop.permute.xlu0 %4152 }
 0x775   : > { %v4155_v31 = vpop.permute.xlu1 %4154 }
 0x776   : > { %v4204_v61 = vsel %vm2005_vm1, %v4155_v31, %v4159_v33  ;;  %v4206_v4 = vsel %vm2005_vm1, %v13970_v17, %v4155_v31 }
 0x777   : > { %v4284_v16 = vadd.f32 %v13848_v59, %v4206_v4  ;;  %v4285_v41 = vadd.f32 %v13850_v13, %v4204_v61  ;;  %v4458_v61 = vrot.slane %v13973_v50, %v16492_v25 }
 0x778   : > { %v4157_v5 = vpop.permute.xlu0 %4156 }
 0x779   : > { %v4205_v63 = vsel %vm2005_vm1, %v4157_v5, %v4161_v1  ;;  %v4207_v46 = vsel %vm2005_vm1, %v13975_v58, %v4157_v5  ;;  %v4358_v52 = vmul.f32 %v4311_v43, %v4284_v16  ;;  %v4175_v27 = vpop.permute.xlu1 %4174  ;;  %v13999_v59 = vmul.f32 %v4446_v23, %v4284_v16 }
 0x77a   : > { %v4294_v45 = vadd.f32 %v13854_v35, %v4207_v46  ;;  %v4295_v18 = vadd.f32 %v13860_v30, %v4205_v63  ;;  %v14001_v13 = vmul.f32 %v4450_v40, %v4285_v41  ;;  %v4359_v3 = vmul.f32 %v4315_v19, %v4285_v41 }
 0x77b   : > { %4378 = vrot.lane.b32.xlu1 %v4358_v52, %s16286_s0  ;;  %v4319_v35 = vrot.slane %v13968_v44, %v16491_v55  ;;  %v4327_v41 = vrot.slane %v13968_v44, %v16493_v10 }
 0x77c   : > { %v4368_v22 = vmul.f32 %v4311_v43, %v4294_v45  ;;  %v4177_v8 = vpop.permute.xlu0 %4176  ;;  %v14004_v14 = vmul.f32 %v4446_v23, %v4294_v45  ;;  %v14006_v42 = vmul.f32 %v4450_v40, %v4295_v18  ;;  %v4369_v34 = vmul.f32 %v4315_v19, %v4295_v18 }
 0x77d   : > { %v4163_v30 = vpop.permute.xlu1 %4162  ;;  %v4462_v19 = vrot.slane %v13973_v50, %v16493_v10 }
 0x77e   : > { %4380 = vrot.lane.b32.xlu0 %v4368_v22, %s16286_s0  ;;  %v4202_v9 = vsel %vm2005_vm1, %v4159_v33, %v4163_v30  ;;  %v4331_v22 = vrot.slane %v13968_v44, %v16494_v57 }
 0x77f   : > { %v4286_v48 = vadd.f32 %v13812_v54, %v4202_v9  ;;  %4382 = vrot.lane.b32.xlu1 %v4359_v3, %s16286_s0 }
 0x780   : > { %v4165_v32 = vpop.permute.xlu0 %4164 }
 0x781   : > { %v4203_v36 = vsel %vm2005_vm1, %v4161_v1, %v4165_v32  ;;  %v4360_v62 = vmul.f32 %v4319_v35, %v4286_v48  ;;  %v4167_v31 = vpop.permute.xlu1 %4166  ;;  %v14023_v4 = vmul.f32 %v4454_v2, %v4286_v48 }
 0x782   : > { %v4296_v43 = vadd.f32 %v13815_v38, %v4203_v36  ;;  %4384 = vrot.lane.b32.xlu0 %v4369_v34, %s16286_s0  ;;  %v4200_v54 = vsel %vm2005_vm1, %v4163_v30, %v4167_v31  ;;  %v4470_v34 = vrot.slane %v13973_v50, %v16495_v20 }
 0x783   : > { %v14028_v23 = vadd.f32 %v13880_v15, %v4200_v54  ;;  %4386 = vrot.lane.b32.xlu1 %v4360_v62, %s16286_s0 }
 0x784   : > { %v4370_v33 = vmul.f32 %v4319_v35, %v4296_v43  ;;  %v4169_v40 = vpop.permute.xlu0 %4168  ;;  %v14031_v1 = vmul.f32 %v4454_v2, %v4296_v43 }
 0x785   : > { %v4201_v38 = vsel %vm2005_vm1, %v4165_v32, %v4169_v40  ;;  %v4171_v5 = vpop.permute.xlu1 %4170  ;;  %v14042_v15 = vmul.f32 %v4458_v61, %v14028_v23 }
 0x786   : > { %v14036_v16 = vadd.f32 %v13894_v0, %v4201_v38  ;;  %4388 = vrot.lane.b32.xlu0 %v4370_v33, %s16286_s0  ;;  %v4196_v63 = vsel %vm2005_vm1, %v4171_v5, %v4175_v27  ;;  %v4198_v46 = vsel %vm2005_vm1, %v4167_v31, %v4171_v5  ;;  %v4466_v0 = vrot.slane %v13973_v50, %v16494_v57 }
 0x787   : > { %v4288_v52 = vadd.f32 %v13909_v6, %v4198_v46  ;;  %v4289_v45 = vadd.f32 %v13911_v29, %v4196_v63 }
 0x788   : > { %v4173_v18 = vpop.permute.xlu0 %4172  ;;  %v14061_v30 = vmul.f32 %v4458_v61, %v14036_v16 }
 0x789   : > { %v4197_v3 = vsel %vm2005_vm1, %v4173_v18, %v4177_v8  ;;  %v4199_v35 = vsel %vm2005_vm1, %v4169_v40, %v4173_v18  ;;  %v4362_v2 = vmul.f32 %v4327_v41, %v4288_v52  ;;  %v4179_v29 = vpop.permute.xlu1 %4178  ;;  %v14069_v32 = vmul.f32 %v4462_v19, %v4288_v52 }
 0x78a   : > { %v4298_v9 = vadd.f32 %v13915_v39, %v4199_v35  ;;  %v4299_v6 = vadd.f32 %v13919_v37, %v4197_v3  ;;  %v4194_v48 = vsel %vm2005_vm1, %v4175_v27, %v4179_v29  ;;  %v14071_v36 = vmul.f32 %v4466_v0, %v4289_v45  ;;  %v4305_v39 = vld [vmem:[%s11522_s19 + $0x8] sm:$0x3] }
 0x78b   : > { %v4290_v43 = vadd.f32 %v13866_v24, %v4194_v48  ;;  %4394 = vrot.lane.b32.xlu1 %v4362_v2, %s16286_s0  ;;  %v4335_v37 = vrot.slane %v13968_v44, %v16495_v20  ;;  %v4363_v33 = vmul.f32 %v4331_v22, %v4289_v45  ;;  %v4440_v63 = vsub.f32 1.0, %v4305_v39 }
 0x78c   : > { %v4372_v62 = vmul.f32 %v4327_v41, %v4298_v9  ;;  %v4181_v31 = vpop.permute.xlu0 %4180  ;;  %v14076_v61 = vmul.f32 %v4462_v19, %v4298_v9  ;;  %v14082_v27 = vmul.f32 %v4466_v0, %v4299_v6  ;;  %v4474_v41 = vrot.slane %v13973_v50, %v16496_v47 }
 0x78d   : > { %v4195_v54 = vsel %vm2005_vm1, %v4177_v8, %v4181_v31  ;;  %v4183_v24 = vpop.permute.xlu1 %4182  ;;  %v14086_v38 = vmul.f32 %v4470_v34, %v4290_v43  ;;  %v4373_v46 = vmul.f32 %v4331_v22, %v4299_v6  ;;  %v4364_v52 = vmul.f32 %v4335_v37, %v4290_v43 }
 0x78e   : > { %v4300_v40 = vadd.f32 %v13872_v49, %v4195_v54  ;;  %4396 = vrot.lane.b32.xlu0 %v4372_v62, %s16286_s0  ;;  %v4192_v5 = vsel %vm2005_vm1, %v4179_v29, %v4183_v24  ;;  %v4339_v45 = vrot.slane %v13968_v44, %v16496_v47  ;;  %v4478_v35 = vrot.slane %v4440_v63, %v16489_v12 }
 0x78f   : > { %v4291_v8 = vadd.f32 %v13925_v11, %v4192_v5  ;;  %4398 = vrot.lane.b32.xlu1 %v4363_v33, %s16286_s0  ;;  %v4482_v2 = vrot.slane %v4440_v63, %v16490_v56  ;;  %v4343_v43 = vrot.slane %v4305_v39, %v16489_v12 }
 0x790   : > { %v4185_v19 = vpop.permute.xlu0 %4184  ;;  %v14094_v0 = vmul.f32 %v4470_v34, %v4300_v40  ;;  %v4374_v9 = vmul.f32 %v4335_v37, %v4300_v40 }
 0x791   : > { %v4193_v49 = vsel %vm2005_vm1, %v4181_v31, %v4185_v19  ;;  %v4187_v18 = vpop.permute.xlu1 %4186  ;;  %v14102_v22 = vmul.f32 %v4474_v41, %v4291_v8  ;;  %v4365_v62 = vmul.f32 %v4339_v45, %v4291_v8 }
 0x792   : > { %v4301_v50 = vadd.f32 %v13942_v53, %v4193_v49  ;;  %4400 = vrot.lane.b32.xlu0 %v4373_v46, %s16286_s0  ;;  %v4190_v11 = vsel %vm2005_vm1, %v4183_v24, %v4187_v18  ;;  %v4208_v3 = vsel %vm2005_vm1, %v4187_v18, %v13970_v17  ;;  %v14147_v46 = vld [vmem:[%s11527_s24] sm:$0xff] }
 0x793   : > { %v4292_v6 = vadd.f32 %v13949_v51, %v4190_v11  ;;  %v4293_v53 = vadd.f32 %v13951_v28, %v4208_v3  ;;  %4402 = vrot.lane.b32.xlu1 %v4364_v52, %s16286_s0  ;;  %v4544_v11 = vrot.slane %v14147_v46, %v16490_v56 }
 0x794   : > { %v4189_v29 = vpop.permute.xlu0 %4188  ;;  %v14114_v34 = vmul.f32 %v4474_v41, %v4301_v50  ;;  %v4375_v54 = vmul.f32 %v4339_v45, %v4301_v50 }
 0x795   : > { %v4191_v48 = vsel %vm2005_vm1, %v4185_v19, %v4189_v29  ;;  %v4209_v17 = vsel %vm2005_vm1, %v4189_v29, %v13975_v58  ;;  %v14125_v28 = vmul.f32 %v4478_v35, %v4292_v6  ;;  %v14127_v37 = vmul.f32 %v4482_v2, %v4293_v53 }
 0x796   : > { %v4302_v31 = vadd.f32 %v13954_v7, %v4191_v48  ;;  %v4303_v51 = vadd.f32 %v13956_v60, %v4209_v17  ;;  %4404 = vrot.lane.b32.xlu0 %v4374_v9, %s16286_s0  ;;  %v4347_v58 = vrot.slane %v4305_v39, %v16490_v56  ;;  %v4366_v24 = vmul.f32 %v4343_v43, %v4292_v6 }
 0x797   : > { %4406 = vrot.lane.b32.xlu1 %v4365_v62, %s16286_s0  ;;  %v4323_v60 = vrot.slane %v13968_v44, %v16492_v25  ;;  %v14152_v44 = vsub.f32 1.0, %v14147_v46 }
 0x798   : > { %v14130_v33 = vmul.f32 %v4478_v35, %v4302_v31  ;;  %v14132_v40 = vmul.f32 %v4482_v2, %v4303_v51  ;;  %v4376_v7 = vmul.f32 %v4343_v43, %v4302_v31  ;;  %v4367_v41 = vmul.f32 %v4347_v58, %v4293_v53 }
 0x799   : > { %v4377_v5 = vmul.f32 %v4347_v58, %v4303_v51  ;;  %v4361_v63 = vmul.f32 %v4323_v60, %v14028_v23  ;;  %v4371_v39 = vmul.f32 %v4323_v60, %v14036_v16  ;;  %v4540_v23 = vrot.slane %v14147_v46, %v16489_v12 }
 0x79a   : > { %4408 = vrot.lane.b32.xlu0 %v4375_v54, %s16286_s0  ;;  %v4675_v16 = vrot.slane %v14152_v44, %v16489_v12  ;;  %v4679_v6 = vrot.slane %v14152_v44, %v16490_v56 }
 0x79b   : > { %4410 = vrot.lane.b32.xlu1 %v4366_v24, %s16286_s0  ;;  %v4556_v24 = vrot.slane %v14147_v46, %v16493_v10 }
 0x79e   : > { %4412 = vrot.lane.b32.xlu0 %v4376_v7, %s16286_s0 }
 0x79f   : > { %4414 = vrot.lane.b32.xlu1 %v4367_v41, %s16286_s0 }
 0x7a2   : > { %4416 = vrot.lane.b32.xlu0 %v4377_v5, %s16286_s0 }
 0x7a3   : > { %4390 = vrot.lane.b32.xlu1 %v4361_v63, %s16286_s0 }
 0x7a6   : > { %4392 = vrot.lane.b32.xlu0 %v4371_v39, %s16286_s0  ;;  %v4560_v39 = vrot.slane %v14147_v46, %v16494_v57  ;;  %s16308_s0 = smov 108  }
 0x7ed   : > { %v14149_v8 = vpop.permute.xlu1 %4378 }
 0x7f0   : > { %v14154_v19 = vpop.permute.xlu0 %4380 }
 0x7f1   : > { %v4383_v49 = vpop.permute.xlu1 %4382 }
 0x7f2   : > { %v4435_v52 = vsel %vm4418_vm11, %v14149_v8, %v4383_v49 }
 0x7f3   : > { %v4513_v45 = vadd.f32 %v13999_v59, %v4435_v52 }
 0x7f4   : > { %v4385_v50 = vpop.permute.xlu0 %4384 }
 0x7f5   : > { %v4436_v18 = vsel %vm4418_vm11, %v14154_v19, %v4385_v50  ;;  %v4587_v3 = vmul.f32 %v4540_v23, %v4513_v45  ;;  %v14171_v2 = vpop.permute.xlu1 %4386  ;;  %v14173_v9 = vmul.f32 %v4675_v16, %v4513_v45  ;;  %v4695_v45 = vrot.slane %v14152_v44, %v16494_v57 }
 0x7f6   : > { %v4523_v35 = vadd.f32 %v14004_v14, %v4436_v18  ;;  %v4433_v59 = vsel %vm4418_vm11, %v4383_v49, %v14171_v2 }
 0x7f7   : > { %v4514_v29 = vadd.f32 %v14001_v13, %v4433_v59  ;;  %4607 = vrot.lane.b32.xlu1 %v4587_v3, %s16284_s18 }
 0x7f8   : > { %v4597_v53 = vmul.f32 %v4540_v23, %v4523_v35  ;;  %v14181_v48 = vpop.permute.xlu0 %4388  ;;  %v14184_v14 = vmul.f32 %v4675_v16, %v4523_v35  ;;  %v4564_v35 = vrot.slane %v14147_v46, %v16495_v20 }
 0x7f9   : > { %v4434_v17 = vsel %vm4418_vm11, %v4385_v50, %v14181_v48  ;;  %v4588_v62 = vmul.f32 %v4544_v11, %v4514_v29  ;;  %v14191_v31 = vmul.f32 %v4679_v6, %v4514_v29 }
 0x7fa   : > { %v4524_v43 = vadd.f32 %v14006_v42, %v4434_v17  ;;  %4609 = vrot.lane.b32.xlu0 %v4597_v53, %s16284_s18  ;;  %v4691_v42 = vrot.slane %v14152_v44, %v16493_v10 }
 0x7fb   : > { %4611 = vrot.lane.b32.xlu1 %v4588_v62, %s16284_s18 }
 0x7fc   : > { %v4598_v51 = vmul.f32 %v4544_v11, %v4524_v43  ;;  %v14194_v13 = vmul.f32 %v4679_v6, %v4524_v43 }
 0x7fd   : > { %v14197_v54 = vpop.permute.xlu1 %4394 }
 0x7fe   : > { %4613 = vrot.lane.b32.xlu0 %v4598_v51, %s16284_s18 }
 0x800   : > { %v14199_v58 = vpop.permute.xlu0 %4396 }
 0x801   : > { %v4399_v7 = vpop.permute.xlu1 %4398 }
 0x802   : > { %v4427_v60 = vsel %vm4418_vm11, %v14197_v54, %v4399_v7 }
 0x803   : > { %v4517_v41 = vadd.f32 %v14069_v32, %v4427_v60 }
 0x804   : > { %v4401_v5 = vpop.permute.xlu0 %4400 }
 0x805   : > { %v4428_v63 = vsel %vm4418_vm11, %v14199_v58, %v4401_v5  ;;  %v4591_v23 = vmul.f32 %v4556_v24, %v4517_v41  ;;  %v4403_v16 = vpop.permute.xlu1 %4402  ;;  %v14215_v52 = vmul.f32 %v4691_v42, %v4517_v41 }
 0x806   : > { %v4527_v49 = vadd.f32 %v14076_v61, %v4428_v63  ;;  %v4425_v32 = vsel %vm4418_vm11, %v4399_v7, %v4403_v16 }
 0x807   : > { %v4518_v18 = vadd.f32 %v14071_v36, %v4425_v32  ;;  %4623 = vrot.lane.b32.xlu1 %v4591_v23, %s16284_s18  ;;  %v4699_v36 = vrot.slane %v14152_v44, %v16495_v20 }
 0x808   : > { %v4601_v50 = vmul.f32 %v4556_v24, %v4527_v49  ;;  %v4405_v11 = vpop.permute.xlu0 %4404  ;;  %v14223_v3 = vmul.f32 %v4691_v42, %v4527_v49  ;;  %v4534_v24 = vld [vmem:[%s11527_s24 + $0x8] sm:$0x3]  ;;  %v4568_v42 = vrot.slane %v14147_v46, %v16496_v47 }
 0x809   : > { %v4426_v61 = vsel %vm4418_vm11, %v4401_v5, %v4405_v11  ;;  %v4592_v6 = vmul.f32 %v4560_v39, %v4518_v18  ;;  %v4407_v53 = vpop.permute.xlu1 %4406  ;;  %v14231_v29 = vmul.f32 %v4695_v45, %v4518_v18  ;;  %v4669_v23 = vsub.f32 1.0, %v4534_v24 }
 0x80a   : > { %v4528_v59 = vadd.f32 %v14082_v27, %v4426_v61  ;;  %4625 = vrot.lane.b32.xlu0 %v4601_v50, %s16284_s18  ;;  %v4423_v17 = vsel %vm4418_vm11, %v4403_v16, %v4407_v53 }
 0x80b   : > { %v4519_v43 = vadd.f32 %v14086_v38, %v4423_v17  ;;  %4627 = vrot.lane.b32.xlu1 %v4592_v6, %s16284_s18  ;;  %v4703_v38 = vrot.slane %v14152_v44, %v16496_v47 }
 0x80c   : > { %v4602_v62 = vmul.f32 %v4560_v39, %v4528_v59  ;;  %v4409_v51 = vpop.permute.xlu0 %4408  ;;  %v14240_v7 = vmul.f32 %v4695_v45, %v4528_v59  ;;  %v4707_v59 = vrot.slane %v4669_v23, %v16489_v12 }
 0x80d   : > { %v4424_v27 = vsel %vm4418_vm11, %v4405_v11, %v4409_v51  ;;  %v4593_v60 = vmul.f32 %v4564_v35, %v4519_v43  ;;  %v4411_v5 = vpop.permute.xlu1 %4410  ;;  %v14248_v63 = vmul.f32 %v4699_v36, %v4519_v43  ;;  %v4572_v11 = vrot.slane %v4534_v24, %v16489_v12 }
 0x80e   : > { %v4529_v41 = vadd.f32 %v14094_v0, %v4424_v27  ;;  %4629 = vrot.lane.b32.xlu0 %v4602_v62, %s16284_s18  ;;  %v4421_v39 = vsel %vm4418_vm11, %v4407_v53, %v4411_v5  ;;  %v4711_v53 = vrot.slane %v4669_v23, %v16490_v56 }
 0x80f   : > { %v4520_v16 = vadd.f32 %v14102_v22, %v4421_v39  ;;  %4631 = vrot.lane.b32.xlu1 %v4593_v60, %s16284_s18 }
 0x810   : > { %v4603_v49 = vmul.f32 %v4564_v35, %v4529_v41  ;;  %v4413_v45 = vpop.permute.xlu0 %4412  ;;  %v14256_v32 = vmul.f32 %v4699_v36, %v4529_v41 }
 0x811   : > { %v4422_v0 = vsel %vm4418_vm11, %v4409_v51, %v4413_v45  ;;  %v4594_v50 = vmul.f32 %v4568_v42, %v4520_v16  ;;  %v4415_v61 = vpop.permute.xlu1 %4414  ;;  %v14263_v6 = vmul.f32 %v4703_v38, %v4520_v16  ;;  %v4576_v51 = vrot.slane %v4534_v24, %v16490_v56 }
 0x812   : > { %v4530_v18 = vadd.f32 %v14114_v34, %v4422_v0  ;;  %4633 = vrot.lane.b32.xlu0 %v4603_v49, %s16284_s18  ;;  %v4419_v22 = vsel %vm4418_vm11, %v4411_v5, %v4415_v61  ;;  %v4437_v35 = vsel %vm4418_vm11, %v4415_v61, %v14149_v8  ;;  %v4683_v24 = vrot.slane %v14152_v44, %v16491_v55 }
 0x813   : > { %v4521_v34 = vadd.f32 %v14125_v28, %v4419_v22  ;;  %v4522_v17 = vadd.f32 %v14127_v37, %v4437_v35  ;;  %4635 = vrot.lane.b32.xlu1 %v4594_v50, %s16284_s18  ;;  %v4548_v61 = vrot.slane %v14147_v46, %v16491_v55 }
 0x814   : > { %v4604_v36 = vmul.f32 %v4568_v42, %v4530_v18  ;;  %v4417_v62 = vpop.permute.xlu0 %4416  ;;  %v14275_v43 = vmul.f32 %v4703_v38, %v4530_v18  ;;  %v4687_v42 = vrot.slane %v14152_v44, %v16492_v25 }
 0x815   : > { %v4420_v27 = vsel %vm4418_vm11, %v4413_v45, %v4417_v62  ;;  %v4438_v8 = vsel %vm4418_vm11, %v4417_v62, %v14154_v19  ;;  %v4595_v28 = vmul.f32 %v4572_v11, %v4521_v34  ;;  %v4391_v41 = vpop.permute.xlu1 %4390  ;;  %v14296_v38 = vmul.f32 %v4707_v59, %v4521_v34 }
 0x816   : > { %v4531_v37 = vadd.f32 %v14130_v33, %v4420_v27  ;;  %v4532_v60 = vadd.f32 %v14132_v40, %v4438_v8  ;;  %4637 = vrot.lane.b32.xlu0 %v4604_v36, %s16284_s18  ;;  %v4429_v5 = vsel %vm4418_vm11, %v4391_v41, %v14197_v54  ;;  %v4431_v19 = vsel %vm4418_vm11, %v14171_v2, %v4391_v41 }
 0x817   : > { %v14298_v39 = vmul.f32 %v4711_v53, %v4522_v17  ;;  %v4515_v40 = vadd.f32 %v14023_v4, %v4431_v19  ;;  %v4516_v23 = vadd.f32 %v14042_v15, %v4429_v5  ;;  %4639 = vrot.lane.b32.xlu1 %v4595_v28, %s16284_s18  ;;  %v4596_v45 = vmul.f32 %v4576_v51, %v4522_v17 }
 0x818   : > { %v4605_v33 = vmul.f32 %v4572_v11, %v4531_v37  ;;  %v4393_v49 = vpop.permute.xlu0 %4392  ;;  %v14309_v54 = vmul.f32 %v4707_v59, %v4531_v37  ;;  %v14311_v16 = vmul.f32 %v4711_v53, %v4532_v60  ;;  %v4552_v4 = vrot.slane %v14147_v46, %v16492_v25  ;;  %v14335_v59 = vld [vmem:[%s11532_s30] sm:$0xff] }
 0x819   : > { %v4430_v44 = vsel %vm4418_vm11, %v4393_v49, %v14199_v58  ;;  %v4432_v2 = vsel %vm4418_vm11, %v14181_v48, %v4393_v49  ;;  %v14318_v50 = vmul.f32 %v4687_v42, %v4516_v23  ;;  %v14320_v58 = vmul.f32 %v4683_v24, %v4515_v40 }
 0x81a   : > { %v4525_v15 = vadd.f32 %v14031_v1, %v4432_v2  ;;  %v4526_v0 = vadd.f32 %v14061_v30, %v4430_v44  ;;  %4641 = vrot.lane.b32.xlu0 %v4605_v33, %s16284_s18  ;;  %v4606_v48 = vmul.f32 %v4576_v51, %v4532_v60  ;;  %v4590_v1 = vmul.f32 %v4552_v4, %v4516_v23 }
 0x81b   : > { %4643 = vrot.lane.b32.xlu1 %v4596_v45, %s16284_s18  ;;  %v4589_v22 = vmul.f32 %v4548_v61, %v4515_v40  ;;  %v14340_v46 = vsub.f32 1.0, %v14335_v59  ;;  %v4769_v34 = vrot.slane %v14335_v59, %v16489_v12  ;;  %v4785_v19 = vrot.slane %v14335_v59, %v16493_v10 }
 0x81c   : > { %v14323_v18 = vmul.f32 %v4687_v42, %v4526_v0  ;;  %v14325_v11 = vmul.f32 %v4683_v24, %v4525_v15  ;;  %v4600_v30 = vmul.f32 %v4552_v4, %v4526_v0  ;;  %v4599_v35 = vmul.f32 %v4548_v61, %v4525_v15 }
 0x81d   : > { %v4904_v62 = vrot.slane %v14340_v46, %v16489_v12  ;;  %v4789_v2 = vrot.slane %v14335_v59, %v16494_v57 }
 0x81e   : > { %4645 = vrot.lane.b32.xlu0 %v4606_v48, %s16284_s18  ;;  %v4924_v48 = vrot.slane %v14340_v46, %v16494_v57 }
 0x81f   : > { %4619 = vrot.lane.b32.xlu1 %v4590_v1, %s16284_s18 }
 0x822   : > { %4621 = vrot.lane.b32.xlu0 %v4600_v30, %s16284_s18 }
 0x823   : > { %4615 = vrot.lane.b32.xlu1 %v4589_v22, %s16284_s18 }
 0x826   : > { %4617 = vrot.lane.b32.xlu0 %v4599_v35, %s16284_s18  ;;  %v4793_v35 = vrot.slane %v14335_v59, %v16495_v20  ;;  %s16292_s18 = smov 109  }
 0x869   : > { %v14337_v53 = vpop.permute.xlu1 %4607 }
 0x86c   : > { %v14342_v36 = vpop.permute.xlu0 %4609 }
 0x86d   : > { %v14347_v17 = vpop.permute.xlu1 %4611 }
 0x86e   : > { %v4664_v51 = vsel %vm4647_vm12, %v14337_v53, %v14347_v17 }
 0x86f   : > { %v4742_v27 = vadd.f32 %v14173_v9, %v4664_v51 }
 0x870   : > { %v14356_v8 = vpop.permute.xlu0 %4613 }
 0x871   : > { %v4665_v42 = vsel %vm4647_vm12, %v14342_v36, %v14356_v8  ;;  %v4816_v28 = vmul.f32 %v4769_v34, %v4742_v27  ;;  %v14363_v60 = vmul.f32 %v4904_v62, %v4742_v27 }
 0x872   : > { %v4752_v37 = vadd.f32 %v14184_v14, %v4665_v42  ;;  %v4920_v14 = vrot.slane %v14340_v46, %v16493_v10 }
 0x873   : > { %4836 = vrot.lane.b32.xlu1 %v4816_v28, %s11435_s26 }
 0x874   : > { %v4826_v41 = vmul.f32 %v4769_v34, %v4752_v37  ;;  %v14366_v24 = vmul.f32 %v4904_v62, %v4752_v37 }
 0x876   : > { %4838 = vrot.lane.b32.xlu0 %v4826_v41, %s11435_s26 }
 0x879   : > { %v14369_v9 = vpop.permute.xlu1 %4623 }
 0x87c   : > { %v14371_v5 = vpop.permute.xlu0 %4625 }
 0x87d   : > { %v4628_v33 = vpop.permute.xlu1 %4627 }
 0x87e   : > { %v4656_v40 = vsel %vm4647_vm12, %v14369_v9, %v4628_v33 }
 0x87f   : > { %v4746_v23 = vadd.f32 %v14215_v52, %v4656_v40 }
 0x880   : > { %v4630_v49 = vpop.permute.xlu0 %4629 }
 0x881   : > { %v4657_v44 = vsel %vm4647_vm12, %v14371_v5, %v4630_v49  ;;  %v4820_v45 = vmul.f32 %v4785_v19, %v4746_v23  ;;  %v4632_v15 = vpop.permute.xlu1 %4631  ;;  %v14387_v0 = vmul.f32 %v4920_v14, %v4746_v23 }
 0x882   : > { %v4756_v4 = vadd.f32 %v14223_v3, %v4657_v44  ;;  %v4654_v52 = vsel %vm4647_vm12, %v4628_v33, %v4632_v15 }
 0x883   : > { %v4747_v1 = vadd.f32 %v14231_v29, %v4654_v52  ;;  %4852 = vrot.lane.b32.xlu1 %v4820_v45, %s11435_s26  ;;  %v4928_v29 = vrot.slane %v14340_v46, %v16495_v20 }
 0x884   : > { %v4830_v61 = vmul.f32 %v4785_v19, %v4756_v4  ;;  %v4634_v30 = vpop.permute.xlu0 %4633  ;;  %v14395_v22 = vmul.f32 %v4920_v14, %v4756_v4  ;;  %v4763_v19 = vld [vmem:[%s11532_s30 + $0x8] sm:$0x3]  ;;  %v4797_v14 = vrot.slane %v14335_v59, %v16496_v47 }
 0x885   : > { %v4655_v3 = vsel %vm4647_vm12, %v4630_v49, %v4634_v30  ;;  %v4821_v34 = vmul.f32 %v4789_v2, %v4747_v1  ;;  %v4636_v51 = vpop.permute.xlu1 %4635  ;;  %v14403_v27 = vmul.f32 %v4924_v48, %v4747_v1  ;;  %v4898_v45 = vsub.f32 1.0, %v4763_v19 }
 0x886   : > { %v4757_v62 = vadd.f32 %v14240_v7, %v4655_v3  ;;  %4854 = vrot.lane.b32.xlu0 %v4830_v61, %s11435_s26  ;;  %v4652_v42 = vsel %vm4647_vm12, %v4632_v15, %v4636_v51 }
 0x887   : > { %v4748_v37 = vadd.f32 %v14248_v63, %v4652_v42  ;;  %4856 = vrot.lane.b32.xlu1 %v4821_v34, %s11435_s26  ;;  %v4932_v63 = vrot.slane %v14340_v46, %v16496_v47 }
 0x888   : > { %v4831_v28 = vmul.f32 %v4789_v2, %v4757_v62  ;;  %v4638_v41 = vpop.permute.xlu0 %4637  ;;  %v14412_v33 = vmul.f32 %v4924_v48, %v4757_v62  ;;  %v4936_v62 = vrot.slane %v4898_v45, %v16489_v12 }
 0x889   : > { %v4653_v7 = vsel %vm4647_vm12, %v4634_v30, %v4638_v41  ;;  %v4822_v40 = vmul.f32 %v4793_v35, %v4748_v37  ;;  %v4640_v49 = vpop.permute.xlu1 %4639  ;;  %v14420_v44 = vmul.f32 %v4928_v29, %v4748_v37  ;;  %v4801_v30 = vrot.slane %v4763_v19, %v16489_v12 }
 0x88a   : > { %v4758_v23 = vadd.f32 %v14256_v32, %v4653_v7  ;;  %4858 = vrot.lane.b32.xlu0 %v4831_v28, %s11435_s26  ;;  %v4650_v2 = vsel %vm4647_vm12, %v4636_v51, %v4640_v49  ;;  %v4940_v51 = vrot.slane %v4898_v45, %v16490_v56 }
 0x88b   : > { %v4749_v15 = vadd.f32 %v14263_v6, %v4650_v2  ;;  %4860 = vrot.lane.b32.xlu1 %v4822_v40, %s11435_s26 }
 0x88c   : > { %v4832_v4 = vmul.f32 %v4793_v35, %v4758_v23  ;;  %v4642_v48 = vpop.permute.xlu0 %4641  ;;  %v14428_v52 = vmul.f32 %v4928_v29, %v4758_v23  ;;  %v4916_v23 = vrot.slane %v14340_v46, %v16492_v25 }
 0x88d   : > { %v4651_v32 = vsel %vm4647_vm12, %v4638_v41, %v4642_v48  ;;  %v4823_v61 = vmul.f32 %v4797_v14, %v4749_v15  ;;  %v4644_v3 = vpop.permute.xlu1 %4643  ;;  %v14435_v34 = vmul.f32 %v4932_v63, %v4749_v15  ;;  %v4805_v41 = vrot.slane %v4763_v19, %v16490_v56 }
 0x88e   : > { %v4759_v1 = vadd.f32 %v14275_v43, %v4651_v32  ;;  %4862 = vrot.lane.b32.xlu0 %v4832_v4, %s11435_s26  ;;  %v4648_v6 = vsel %vm4647_vm12, %v4640_v49, %v4644_v3  ;;  %v4666_v35 = vsel %vm4647_vm12, %v4644_v3, %v14337_v53 }
 0x88f   : > { %v4750_v43 = vadd.f32 %v14296_v38, %v4648_v6  ;;  %v4751_v42 = vadd.f32 %v14298_v39, %v4666_v35  ;;  %4864 = vrot.lane.b32.xlu1 %v4823_v61, %s11435_s26 }
 0x890   : > { %v4833_v29 = vmul.f32 %v4797_v14, %v4759_v1  ;;  %v4646_v28 = vpop.permute.xlu0 %4645  ;;  %v14447_v37 = vmul.f32 %v4932_v63, %v4759_v1  ;;  %v4908_v1 = vrot.slane %v14340_v46, %v16490_v56 }
 0x891   : > { %v4649_v7 = vsel %vm4647_vm12, %v4642_v48, %v4646_v28  ;;  %v4667_v53 = vsel %vm4647_vm12, %v4646_v28, %v14342_v36  ;;  %v4824_v40 = vmul.f32 %v4801_v30, %v4750_v43  ;;  %v4620_v39 = vpop.permute.xlu1 %4619  ;;  %v14463_v49 = vmul.f32 %v4936_v62, %v4750_v43 }
 0x892   : > { %v4760_v14 = vadd.f32 %v14309_v54, %v4649_v7  ;;  %v4761_v38 = vadd.f32 %v14311_v16, %v4667_v53  ;;  %4866 = vrot.lane.b32.xlu0 %v4833_v29, %s11435_s26  ;;  %v4658_v19 = vsel %vm4647_vm12, %v4620_v39, %v14369_v9  ;;  %v14465_v63 = vmul.f32 %v4940_v51, %v4751_v42 }
 0x893   : > { %v4745_v2 = vadd.f32 %v14318_v50, %v4658_v19  ;;  %4868 = vrot.lane.b32.xlu1 %v4824_v40, %s11435_s26  ;;  %v4825_v15 = vmul.f32 %v4805_v41, %v4751_v42  ;;  %v4781_v9 = vrot.slane %v14335_v59, %v16492_v25  ;;  %v4777_v7 = vrot.slane %v14335_v59, %v16491_v55 }
 0x894   : > { %v4834_v36 = vmul.f32 %v4801_v30, %v4760_v14  ;;  %v4622_v54 = vpop.permute.xlu0 %4621  ;;  %v14469_v16 = vmul.f32 %v4936_v62, %v4760_v14  ;;  %v14474_v4 = vmul.f32 %v4940_v51, %v4761_v38  ;;  %v4912_v30 = vrot.slane %v14340_v46, %v16491_v55 }
 0x895   : > { %v4659_v45 = vsel %vm4647_vm12, %v4622_v54, %v14371_v5  ;;  %v4616_v50 = vpop.permute.xlu1 %4615  ;;  %v14480_v32 = vmul.f32 %v4916_v23, %v4745_v2  ;;  %v4835_v3 = vmul.f32 %v4805_v41, %v4761_v38  ;;  %v4819_v29 = vmul.f32 %v4781_v9, %v4745_v2  ;;  %v14525_v38 = vld [vmem:[%s16497_s1] sm:$0xff] }
 0x896   : > { %v4755_v48 = vadd.f32 %v14323_v18, %v4659_v45  ;;  %4870 = vrot.lane.b32.xlu0 %v4834_v36, %s11435_s26  ;;  %v4660_v61 = vsel %vm4647_vm12, %v4616_v50, %v4620_v39  ;;  %v4662_v5 = vsel %vm4647_vm12, %v14347_v17, %v4616_v50  ;;  %v4773_v46 = vrot.slane %v14335_v59, %v16490_v56 }
 0x897   : > { %v4743_v18 = vadd.f32 %v14191_v31, %v4662_v5  ;;  %v4744_v6 = vadd.f32 %v14320_v58, %v4660_v61  ;;  %4872 = vrot.lane.b32.xlu1 %v4825_v15, %s11435_s26  ;;  %v5014_v36 = vrot.slane %v14525_v38, %v16493_v10  ;;  %v5018_v50 = vrot.slane %v14525_v38, %v16494_v57 }
 0x898   : > { %v4618_v35 = vpop.permute.xlu0 %4617  ;;  %v14494_v62 = vmul.f32 %v4916_v23, %v4755_v48  ;;  %v4829_v28 = vmul.f32 %v4781_v9, %v4755_v48  ;;  %v14532_v23 = vsub.f32 1.0, %v14525_v38 }
 0x899   : > { %v4661_v51 = vsel %vm4647_vm12, %v4618_v35, %v4622_v54  ;;  %v4663_v17 = vsel %vm4647_vm12, %v14356_v8, %v4618_v35  ;;  %v14506_v43 = vmul.f32 %v4908_v1, %v4743_v18  ;;  %v14508_v42 = vmul.f32 %v4912_v30, %v4744_v6 }
 0x89a   : > { %v4753_v31 = vadd.f32 %v14194_v13, %v4663_v17  ;;  %v4754_v58 = vadd.f32 %v14325_v11, %v4661_v51  ;;  %4874 = vrot.lane.b32.xlu0 %v4835_v3, %s11435_s26  ;;  %v4817_v13 = vmul.f32 %v4773_v46, %v4743_v18  ;;  %v4818_v53 = vmul.f32 %v4777_v7, %v4744_v6 }
 0x89b   : > { %4848 = vrot.lane.b32.xlu1 %v4819_v29, %s11435_s26  ;;  %v5149_v54 = vrot.slane %v14532_v23, %v16493_v10  ;;  %v5153_v3 = vrot.slane %v14532_v23, %v16494_v57  ;;  %v5022_v17 = vrot.slane %v14525_v38, %v16495_v20  ;;  %vm7039_vm12 = vcmask 261120  }
 0x89c   : > { %v14511_v41 = vmul.f32 %v4908_v1, %v4753_v31  ;;  %v14513_v8 = vmul.f32 %v4912_v30, %v4754_v58  ;;  %v4827_v11 = vmul.f32 %v4773_v46, %v4753_v31  ;;  %v4828_v40 = vmul.f32 %v4777_v7, %v4754_v58 }
 0x89d   : > { %v5157_v58 = vrot.slane %v14532_v23, %v16495_v20 }
 0x89e   : > { %4850 = vrot.lane.b32.xlu0 %v4829_v28, %s11435_s26 }
 0x89f   : > { %4840 = vrot.lane.b32.xlu1 %v4817_v13, %s11435_s26 }
 0x8a2   : > { %4842 = vrot.lane.b32.xlu0 %v4827_v11, %s11435_s26 }
 0x8a3   : > { %4844 = vrot.lane.b32.xlu1 %v4818_v53, %s11435_s26  ;;  %v4992_v53 = vld [vmem:[%s16497_s1 + $0x8] sm:$0x3]  ;;  %s16506_s1 = smov 91  }
 0x8a6   : > { %4846 = vrot.lane.b32.xlu0 %v4828_v40, %s11435_s26  ;;  %s11438_s26 = smov 112  }
 0x8e5   : > { %v14522_v14 = vpop.permute.xlu1 %4836 }
 0x8e8   : > { %v14527_v39 = vpop.permute.xlu0 %4838 }
 0x8f5   : > { %v14529_v59 = vpop.permute.xlu1 %4852 }
 0x8f8   : > { %v14534_v19 = vpop.permute.xlu0 %4854 }
 0x8f9   : > { %v4857_v2 = vpop.permute.xlu1 %4856 }
 0x8fa   : > { %v4885_v45 = vsel %vm4876_vm13, %v14529_v59, %v4857_v2 }
 0x8fb   : > { %v4975_v15 = vadd.f32 %v14387_v0, %v4885_v45 }
 0x8fc   : > { %v4859_v9 = vpop.permute.xlu0 %4858 }
 0x8fd   : > { %v4886_v48 = vsel %vm4876_vm13, %v14534_v19, %v4859_v9  ;;  %v5049_v61 = vmul.f32 %v5014_v36, %v4975_v15  ;;  %v4861_v1 = vpop.permute.xlu1 %4860  ;;  %v14551_v30 = vmul.f32 %v5149_v54, %v4975_v15 }
 0x8fe   : > { %v4985_v5 = vadd.f32 %v14395_v22, %v4886_v48  ;;  %v4883_v0 = vsel %vm4876_vm13, %v4857_v2, %v4861_v1  ;;  %v5127_v48 = vsub.f32 1.0, %v4992_v53 }
 0x8ff   : > { %v4976_v6 = vadd.f32 %v14403_v27, %v4883_v0  ;;  %5081 = vrot.lane.b32.xlu1 %v5049_v61, %s11436_s2 }
 0x900   : > { %v5059_v18 = vmul.f32 %v5014_v36, %v4985_v5  ;;  %v4863_v35 = vpop.permute.xlu0 %4862  ;;  %v14559_v51 = vmul.f32 %v5149_v54, %v4985_v5  ;;  %v5026_v36 = vrot.slane %v14525_v38, %v16496_v47 }
 0x901   : > { %v4884_v22 = vsel %vm4876_vm13, %v4859_v9, %v4863_v35  ;;  %v5050_v29 = vmul.f32 %v5018_v50, %v4976_v6  ;;  %v4865_v31 = vpop.permute.xlu1 %4864  ;;  %v14567_v27 = vmul.f32 %v5153_v3, %v4976_v6 }
 0x902   : > { %v4986_v46 = vadd.f32 %v14412_v33, %v4884_v22  ;;  %5083 = vrot.lane.b32.xlu0 %v5059_v18, %s11436_s2  ;;  %v4881_v28 = vsel %vm4876_vm13, %v4861_v1, %v4865_v31  ;;  %v5030_v18 = vrot.slane %v4992_v53, %v16489_v12 }
 0x903   : > { %v4977_v13 = vadd.f32 %v14420_v44, %v4881_v28  ;;  %5085 = vrot.lane.b32.xlu1 %v5050_v29, %s11436_s2  ;;  %v5161_v44 = vrot.slane %v14532_v23, %v16496_v47  ;;  %v5169_v29 = vrot.slane %v5127_v48, %v16490_v56 }
 0x904   : > { %v5060_v7 = vmul.f32 %v5018_v50, %v4986_v46  ;;  %v4867_v11 = vpop.permute.xlu0 %4866  ;;  %v14576_v40 = vmul.f32 %v5153_v3, %v4986_v46 }
 0x905   : > { %v4882_v33 = vsel %vm4876_vm13, %v4863_v35, %v4867_v11  ;;  %v5051_v2 = vmul.f32 %v5022_v17, %v4977_v13  ;;  %v4869_v45 = vpop.permute.xlu1 %4868  ;;  %v14584_v15 = vmul.f32 %v5157_v58, %v4977_v13 }
 0x906   : > { %v4987_v54 = vadd.f32 %v14428_v52, %v4882_v33  ;;  %5087 = vrot.lane.b32.xlu0 %v5060_v7, %s11436_s2  ;;  %v4879_v9 = vsel %vm4876_vm13, %v4865_v31, %v4869_v45  ;;  %v5034_v7 = vrot.slane %v4992_v53, %v16490_v56 }
 0x907   : > { %v4978_v61 = vadd.f32 %v14435_v34, %v4879_v9  ;;  %5089 = vrot.lane.b32.xlu1 %v5051_v2, %s11436_s2  ;;  %v5145_v2 = vrot.slane %v14532_v23, %v16492_v25 }
 0x908   : > { %v5061_v50 = vmul.f32 %v5022_v17, %v4987_v54  ;;  %v4871_v5 = vpop.permute.xlu0 %4870  ;;  %v14592_v1 = vmul.f32 %v5157_v58, %v4987_v54  ;;  %v5165_v17 = vrot.slane %v5127_v48, %v16489_v12  ;;  %v5010_v48 = vrot.slane %v14525_v38, %v16492_v25 }
 0x909   : > { %v4880_v52 = vsel %vm4876_vm13, %v4867_v11, %v4871_v5  ;;  %v5052_v3 = vmul.f32 %v5026_v36, %v4978_v61  ;;  %v4873_v6 = vpop.permute.xlu1 %4872  ;;  %v14599_v35 = vmul.f32 %v5161_v44, %v4978_v61 }
 0x90a   : > { %v4988_v0 = vadd.f32 %v14447_v37, %v4880_v52  ;;  %5091 = vrot.lane.b32.xlu0 %v5061_v50, %s11436_s2  ;;  %v4877_v34 = vsel %vm4876_vm13, %v4869_v45, %v4873_v6  ;;  %v4895_v22 = vsel %vm4876_vm13, %v4873_v6, %v14522_v14 }
 0x90b   : > { %v4979_v37 = vadd.f32 %v14463_v49, %v4877_v34  ;;  %v4980_v31 = vadd.f32 %v14465_v63, %v4895_v22  ;;  %5093 = vrot.lane.b32.xlu1 %v5052_v3, %s11436_s2  ;;  %v5133_v3 = vrot.slane %v14532_v23, %v16489_v12 }
 0x90c   : > { %v5062_v46 = vmul.f32 %v5026_v36, %v4988_v0  ;;  %v4875_v58 = vpop.permute.xlu0 %4874  ;;  %v14611_v28 = vmul.f32 %v5161_v44, %v4988_v0 }
 0x90d   : > { %v4878_v13 = vsel %vm4876_vm13, %v4871_v5, %v4875_v58  ;;  %v4896_v11 = vsel %vm4876_vm13, %v4875_v58, %v14527_v39  ;;  %v5053_v33 = vmul.f32 %v5030_v18, %v4979_v37  ;;  %v4849_v63 = vpop.permute.xlu1 %4848  ;;  %v14627_v54 = vmul.f32 %v5165_v17, %v4979_v37 }
 0x90e   : > { %v4989_v36 = vadd.f32 %v14469_v16, %v4878_v13  ;;  %v4990_v49 = vadd.f32 %v14474_v4, %v4896_v11  ;;  %5095 = vrot.lane.b32.xlu0 %v5062_v46, %s11436_s2  ;;  %v4887_v53 = vsel %vm4876_vm13, %v4849_v63, %v14529_v59  ;;  %v14629_v45 = vmul.f32 %v5169_v29, %v4980_v31 }
 0x90f   : > { %v4974_v9 = vadd.f32 %v14480_v32, %v4887_v53  ;;  %5097 = vrot.lane.b32.xlu1 %v5053_v33, %s11436_s2  ;;  %v5054_v61 = vmul.f32 %v5034_v7, %v4980_v31 }
 0x910   : > { %v5063_v44 = vmul.f32 %v5030_v18, %v4989_v36  ;;  %v4851_v16 = vpop.permute.xlu0 %4850  ;;  %v14633_v4 = vmul.f32 %v5165_v17, %v4989_v36  ;;  %v14640_v59 = vmul.f32 %v5169_v29, %v4990_v49  ;;  %v5064_v18 = vmul.f32 %v5034_v7, %v4990_v49 }
 0x911   : > { %v4888_v50 = vsel %vm4876_vm13, %v4851_v16, %v14534_v19  ;;  %v4841_v32 = vpop.permute.xlu1 %4840  ;;  %v14644_v52 = vmul.f32 %v5145_v2, %v4974_v9  ;;  %v5048_v22 = vmul.f32 %v5010_v48, %v4974_v9  ;;  %v5006_v49 = vrot.slane %v14525_v38, %v16491_v55 }
 0x912   : > { %v4984_v5 = vadd.f32 %v14494_v62, %v4888_v50  ;;  %5099 = vrot.lane.b32.xlu0 %v5063_v44, %s11436_s2  ;;  %v4893_v0 = vsel %vm4876_vm13, %v14522_v14, %v4841_v32  ;;  %v5002_v14 = vrot.slane %v14525_v38, %v16490_v56 }
 0x913   : > { %v4971_v19 = vadd.f32 %v14363_v60, %v4893_v0  ;;  %5101 = vrot.lane.b32.xlu1 %v5054_v61, %s11436_s2  ;;  %v14703_v61 = vld [vmem:[%s16498_s7] sm:$0xff] }
 0x914   : > { %v4843_v6 = vpop.permute.xlu0 %4842  ;;  %v14653_v34 = vmul.f32 %v5145_v2, %v4984_v5  ;;  %v5058_v31 = vmul.f32 %v5010_v48, %v4984_v5 }
 0x915   : > { %v4894_v62 = vsel %vm4876_vm13, %v14527_v39, %v4843_v6  ;;  %v4845_v29 = vpop.permute.xlu1 %4844  ;;  %v14662_v46 = vmul.f32 %v5133_v3, %v4971_v19  ;;  %v5137_v39 = vrot.slane %v14532_v23, %v16490_v56 }
 0x916   : > { %v4981_v17 = vadd.f32 %v14366_v24, %v4894_v62  ;;  %5103 = vrot.lane.b32.xlu0 %v5064_v18, %s11436_s2  ;;  %v4889_v60 = vsel %vm4876_vm13, %v4845_v29, %v4849_v63  ;;  %v4891_v37 = vsel %vm4876_vm13, %v4841_v32, %v4845_v29  ;;  %v5141_v24 = vrot.slane %v14532_v23, %v16491_v55 }
 0x917   : > { %v4972_v58 = vadd.f32 %v14506_v43, %v4891_v37  ;;  %v4973_v7 = vadd.f32 %v14508_v42, %v4889_v60  ;;  %5077 = vrot.lane.b32.xlu1 %v5048_v22, %s11436_s2 }
 0x918   : > { %v4847_v13 = vpop.permute.xlu0 %4846  ;;  %v14679_v36 = vmul.f32 %v5133_v3, %v4981_v17  ;;  %v5243_v3 = vrot.slane %v14703_v61, %v16493_v10 }
 0x919   : > { %v4890_v11 = vsel %vm4876_vm13, %v4847_v13, %v4851_v16  ;;  %v4892_v33 = vsel %vm4876_vm13, %v4843_v6, %v4847_v13  ;;  %v5046_v23 = vmul.f32 %v5002_v14, %v4972_v58  ;;  %v14686_v42 = vmul.f32 %v5137_v39, %v4972_v58 }
 0x91a   : > { %v4982_v63 = vadd.f32 %v14511_v41, %v4892_v33  ;;  %v4983_v43 = vadd.f32 %v14513_v8, %v4890_v11  ;;  %5079 = vrot.lane.b32.xlu0 %v5058_v31, %s11436_s2  ;;  %v14688_v2 = vmul.f32 %v5141_v24, %v4973_v7  ;;  %v4998_v16 = vrot.slane %v14525_v38, %v16489_v12 }
 0x91b   : > { %5069 = vrot.lane.b32.xlu1 %v5046_v23, %s11436_s2  ;;  %v5047_v41 = vmul.f32 %v5006_v49, %v4973_v7  ;;  %v14708_v38 = vsub.f32 1.0, %v14703_v61  ;;  %v5251_v13 = vrot.slane %v14703_v61, %v16495_v20 }
 0x91c   : > { %v5056_v53 = vmul.f32 %v5002_v14, %v4982_v63  ;;  %v14691_v44 = vmul.f32 %v5137_v39, %v4982_v63  ;;  %v14693_v9 = vmul.f32 %v5141_v24, %v4983_v43  ;;  %v5057_v8 = vmul.f32 %v5006_v49, %v4983_v43 }
 0x91d   : > { %v5045_v48 = vmul.f32 %v4998_v16, %v4971_v19  ;;  %v5055_v50 = vmul.f32 %v4998_v16, %v4981_v17  ;;  %v5363_v18 = vrot.slane %v14708_v38, %v16493_v10  ;;  %v5247_v17 = vrot.slane %v14703_v61, %v16494_v57 }
 0x91e   : > { %5071 = vrot.lane.b32.xlu0 %v5056_v53, %s11436_s2  ;;  %v5367_v39 = vrot.slane %v14708_v38, %v16494_v57 }
 0x91f   : > { %5073 = vrot.lane.b32.xlu1 %v5047_v41, %s11436_s2 }
 0x922   : > { %5075 = vrot.lane.b32.xlu0 %v5057_v8, %s11436_s2 }
 0x923   : > { %5065 = vrot.lane.b32.xlu1 %v5045_v48, %s11436_s2 }
 0x926   : > { %5067 = vrot.lane.b32.xlu0 %v5055_v50, %s11436_s2  ;;  %v5255_v50 = vrot.slane %v14703_v61, %v16496_v47  ;;  %s11439_s2 = smov 19  }
 0x971   : > { %v14705_v5 = vpop.permute.xlu1 %5081 }
 0x974   : > { %v14710_v32 = vpop.permute.xlu0 %5083 }
 0x975   : > { %v5086_v0 = vpop.permute.xlu1 %5085 }
 0x976   : > { %v5114_v19 = vsel %vm5105_vm14, %v14705_v5, %v5086_v0 }
 0x977   : > { %v5204_v6 = vadd.f32 %v14551_v30, %v5114_v19 }
 0x978   : > { %v5088_v62 = vpop.permute.xlu0 %5087 }
 0x979   : > { %v5115_v22 = vsel %vm5105_vm14, %v14710_v32, %v5088_v62  ;;  %v5273_v14 = vmul.f32 %v5243_v3, %v5204_v6  ;;  %v5090_v60 = vpop.permute.xlu1 %5089  ;;  %v14727_v37 = vmul.f32 %v5363_v18, %v5204_v6 }
 0x97a   : > { %v5214_v29 = vadd.f32 %v14559_v51, %v5115_v22  ;;  %v5112_v30 = vsel %vm5105_vm14, %v5086_v0, %v5090_v60 }
 0x97b   : > { %v5205_v31 = vadd.f32 %v14567_v27, %v5112_v30  ;;  %5303 = vrot.lane.b32.xlu1 %v5273_v14, %s11437_s10  ;;  %v5371_v27 = vrot.slane %v14708_v38, %v16495_v20 }
 0x97c   : > { %v5282_v24 = vmul.f32 %v5243_v3, %v5214_v29  ;;  %v5092_v58 = vpop.permute.xlu0 %5091  ;;  %v14735_v7 = vmul.f32 %v5363_v18, %v5214_v29  ;;  %v5221_v18 = vld [vmem:[%s16498_s7 + $0x8] sm:$0x3]  ;;  %s16527_s7 = smov 107  }
 0x97d   : > { %v5113_v51 = vsel %vm5105_vm14, %v5088_v62, %v5092_v58  ;;  %v5274_v11 = vmul.f32 %v5247_v17, %v5205_v31  ;;  %v5094_v49 = vpop.permute.xlu1 %5093  ;;  %v14743_v23 = vmul.f32 %v5367_v39, %v5205_v31  ;;  %v5259_v14 = vrot.slane %v5221_v18, %v16489_v12 }
 0x97e   : > { %v5215_v33 = vadd.f32 %v14576_v40, %v5113_v51  ;;  %5305 = vrot.lane.b32.xlu0 %v5282_v24, %s11437_s10  ;;  %v5110_v63 = vsel %vm5105_vm14, %v5090_v60, %v5094_v49 }
 0x97f   : > { %v5206_v53 = vadd.f32 %v14584_v15, %v5110_v63  ;;  %5307 = vrot.lane.b32.xlu1 %v5274_v11, %s11437_s10 }
 0x980   : > { %v5283_v43 = vmul.f32 %v5247_v17, %v5215_v33  ;;  %v5096_v16 = vpop.permute.xlu0 %5095  ;;  %v14751_v41 = vmul.f32 %v5367_v39, %v5215_v33 }
 0x981   : > { %v5111_v40 = vsel %vm5105_vm14, %v5092_v58, %v5096_v16  ;;  %v5275_v8 = vmul.f32 %v5251_v13, %v5206_v53  ;;  %v5098_v3 = vpop.permute.xlu1 %5097  ;;  %v14759_v0 = vmul.f32 %v5371_v27, %v5206_v53  ;;  %v5239_v58 = vrot.slane %v14703_v61, %v16492_v25 }
 0x982   : > { %v5216_v48 = vadd.f32 %v14592_v1, %v5111_v40  ;;  %5309 = vrot.lane.b32.xlu0 %v5283_v43, %s11437_s10  ;;  %v5108_v15 = vsel %vm5105_vm14, %v5094_v49, %v5098_v3 }
 0x983   : > { %v5207_v6 = vadd.f32 %v14599_v35, %v5108_v15  ;;  %5311 = vrot.lane.b32.xlu1 %v5275_v8, %s11437_s10 }
 0x984   : > { %v5284_v19 = vmul.f32 %v5251_v13, %v5216_v48  ;;  %v5100_v62 = vpop.permute.xlu0 %5099  ;;  %v14766_v22 = vmul.f32 %v5371_v27, %v5216_v48  ;;  %v5359_v13 = vrot.slane %v14708_v38, %v16492_v25  ;;  %v5341_v48 = vsub.f32 1.0, %v5221_v18 }
 0x985   : > { %v5109_v1 = vsel %vm5105_vm14, %v5096_v16, %v5100_v62  ;;  %v5276_v17 = vmul.f32 %v5255_v50, %v5207_v6  ;;  %v5102_v29 = vpop.permute.xlu1 %5101  ;;  %v5235_v18 = vrot.slane %v14703_v61, %v16491_v55 }
 0x986   : > { %v5217_v47 = vadd.f32 %v14611_v28, %v5109_v1  ;;  %5313 = vrot.lane.b32.xlu0 %v5284_v19, %s11437_s10  ;;  %v5106_v60 = vsel %vm5105_vm14, %v5098_v3, %v5102_v29  ;;  %v5351_v3 = vrot.slane %v14708_v38, %v16490_v56 }
 0x987   : > { %v5208_v39 = vadd.f32 %v14627_v54, %v5106_v60  ;;  %5315 = vrot.lane.b32.xlu1 %v5276_v17, %s11437_s10  ;;  %v5347_v17 = vrot.slane %v14708_v38, %v16489_v12 }
 0x988   : > { %v5285_v35 = vmul.f32 %v5255_v50, %v5217_v47  ;;  %v5104_v30 = vpop.permute.xlu0 %5103  ;;  %v5355_v50 = vrot.slane %v14708_v38, %v16491_v55  ;;  %v5227_v38 = vrot.slane %v14703_v61, %v16489_v12 }
 0x989   : > { %v5107_v24 = vsel %vm5105_vm14, %v5100_v62, %v5104_v30  ;;  %v5277_v31 = vmul.f32 %v5259_v14, %v5208_v39  ;;  %v5078_v51 = vpop.permute.xlu1 %5077 }
 0x98a   : > { %v5218_v28 = vadd.f32 %v14633_v4, %v5107_v24  ;;  %5317 = vrot.lane.b32.xlu0 %v5285_v35, %s11437_s10  ;;  %v5116_v54 = vsel %vm5105_vm14, %v5078_v51, %v14705_v5 }
 0x98b   : > { %v5203_v33 = vadd.f32 %v14644_v52, %v5116_v54  ;;  %5319 = vrot.lane.b32.xlu1 %v5277_v31, %s11437_s10  ;;  %v5231_v52 = vrot.slane %v14703_v61, %v16490_v56 }
 0x98c   : > { %v5286_v11 = vmul.f32 %v5259_v14, %v5218_v28  ;;  %v5080_v49 = vpop.permute.xlu0 %5079 }
 0x98d   : > { %v5117_v4 = vsel %vm5105_vm14, %v5080_v49, %v14710_v32  ;;  %v5272_v27 = vmul.f32 %v5239_v58, %v5203_v33  ;;  %v5070_v43 = vpop.permute.xlu1 %5069  ;;  %v5387_v53 = vmul.f32 %v5359_v13, %v5203_v33 }
 0x98e   : > { %v5213_v63 = vadd.f32 %v14653_v34, %v5117_v4  ;;  %5321 = vrot.lane.b32.xlu0 %v5286_v11, %s11437_s10 }
 0x98f   : > { %5299 = vrot.lane.b32.xlu1 %v5272_v27, %s11437_s10 }
 0x990   : > { %v5281_v16 = vmul.f32 %v5239_v58, %v5213_v63  ;;  %v5072_v40 = vpop.permute.xlu0 %5071  ;;  %v5395_v5 = vmul.f32 %v5359_v13, %v5213_v63 }
 0x991   : > { %v5074_v8 = vpop.permute.xlu1 %5073 }
 0x992   : > { %5301 = vrot.lane.b32.xlu0 %v5281_v16, %s11437_s10  ;;  %v5118_v32 = vsel %vm5105_vm14, %v5074_v8, %v5078_v51  ;;  %v5120_v34 = vsel %vm5105_vm14, %v5070_v43, %v5074_v8 }
 0x993   : > { %v5201_v15 = vadd.f32 %v14686_v42, %v5120_v34  ;;  %v5202_v19 = vadd.f32 %v14688_v2, %v5118_v32  ;;  %v5375_v2 = vrot.slane %v5341_v48, %v16490_v56 }
 0x994   : > { %v5076_v6 = vpop.permute.xlu0 %5075 }
 0x995   : > { %v5119_v62 = vsel %vm5105_vm14, %v5076_v6, %v5080_v49  ;;  %v5121_v1 = vsel %vm5105_vm14, %v5072_v40, %v5076_v6  ;;  %v5270_v47 = vmul.f32 %v5231_v52, %v5201_v15  ;;  %v5066_v60 = vpop.permute.xlu1 %5065  ;;  %v14824_v24 = vmul.f32 %v5355_v50, %v5202_v19 }
 0x996   : > { %v5211_v14 = vadd.f32 %v14691_v44, %v5121_v1  ;;  %v5212_v42 = vadd.f32 %v14693_v9, %v5119_v62  ;;  %v5122_v35 = vsel %vm5105_vm14, %v5066_v60, %v5070_v43  ;;  %v5124_v39 = vsel %vm5105_vm14, %v5102_v29, %v5066_v60 }
 0x997   : > { %v14826_v31 = vmul.f32 %v5351_v3, %v5201_v15  ;;  %v5200_v44 = vadd.f32 %v14662_v46, %v5122_v35  ;;  %v5209_v9 = vadd.f32 %v14629_v45, %v5124_v39  ;;  %5291 = vrot.lane.b32.xlu1 %v5270_v47, %s11437_s10  ;;  %v5271_v11 = vmul.f32 %v5235_v18, %v5202_v19 }
 0x998   : > { %v5279_v28 = vmul.f32 %v5231_v52, %v5211_v14  ;;  %v5068_v58 = vpop.permute.xlu0 %5067  ;;  %v14837_v13 = vmul.f32 %v5355_v50, %v5212_v42  ;;  %v14839_v54 = vmul.f32 %v5351_v3, %v5211_v14  ;;  %v5280_v49 = vmul.f32 %v5235_v18, %v5212_v42 }
 0x999   : > { %v5123_v51 = vsel %vm5105_vm14, %v5068_v58, %v5072_v40  ;;  %v5125_v29 = vsel %vm5105_vm14, %v5104_v30, %v5068_v58  ;;  %v14844_v45 = vmul.f32 %v5347_v17, %v5200_v44  ;;  %v14846_v33 = vmul.f32 %v5375_v2, %v5209_v9 }
 0x99a   : > { %v5210_v61 = vadd.f32 %v14679_v36, %v5123_v51  ;;  %v5219_v46 = vadd.f32 %v14640_v59, %v5125_v29  ;;  %5293 = vrot.lane.b32.xlu0 %v5279_v28, %s11437_s10  ;;  %v5269_v27 = vmul.f32 %v5227_v38, %v5200_v44  ;;  %v5416_v36 = vld [vmem:[%s16499_s11] sm:$0xff] }
 0x99b   : > { %5295 = vrot.lane.b32.xlu1 %v5271_v11, %s11437_s10  ;;  %v5426_v16 = vrot.slane %v5416_v36, %v16492_v25  ;;  %v5430_v3 = vrot.slane %v5416_v36, %v16493_v10  ;;  %v5434_v10 = vrot.slane %v5416_v36, %v16494_v57  ;;  %v5438_v57 = vrot.slane %v5416_v36, %v16495_v20 }
 0x99c   : > { %v14849_v30 = vmul.f32 %v5347_v17, %v5210_v61  ;;  %v14851_v4 = vmul.f32 %v5375_v2, %v5219_v46  ;;  %v5278_v63 = vmul.f32 %v5227_v38, %v5210_v61  ;;  %v5483_v35 = vsub.f32 1.0, %v5416_v36 }
 0x99d   : > { %v5422_v20 = vrot.slane %v5416_v36, %v16491_v55 }
 0x99e   : > { %5297 = vrot.lane.b32.xlu0 %v5280_v49, %s11437_s10  ;;  %v5498_v51 = vrot.slane %v5483_v35, %v16491_v55 }
 0x99f   : > { %5287 = vrot.lane.b32.xlu1 %v5269_v27, %s11437_s10 }
 0x9a2   : > { %5289 = vrot.lane.b32.xlu0 %v5278_v63, %s11437_s10  ;;  %s16290_s10 = smov 110  }
 0x9ed   : > { %v5304_v59 = vpop.permute.xlu1 %5303 }
 0x9f0   : > { %v5306_v43 = vpop.permute.xlu0 %5305 }
 0x9f1   : > { %v5308_v40 = vpop.permute.xlu1 %5307 }
 0x9f2   : > { %v5330_v52 = vsel %vm5323_vm15, %v5304_v59, %v5308_v40 }
 0x9f3   : > { %v5403_v8 = vadd.f32 %v5387_v53, %v5330_v52  ;;  %v5494_v52 = vrot.slane %v5483_v35, %v16490_v56 }
 0x9f4   : > { %v5310_v48 = vpop.permute.xlu0 %5309 }
 0x9f5   : > { %v5331_v32 = vsel %vm5323_vm15, %v5306_v43, %v5310_v48  ;;  %v5445_v34 = vmul.f32 %v5426_v16, %v5403_v8  ;;  %v5312_v15 = vpop.permute.xlu1 %5311 }
 0x9f6   : > { %v5411_v50 = vadd.f32 %v5395_v5, %v5331_v32  ;;  %v5328_v19 = vsel %vm5323_vm15, %v5308_v40, %v5312_v15  ;;  %v5490_v40 = vrot.slane %v5483_v35, %v16489_v12 }
 0x9f7   : > { %v5404_v25 = vadd.f32 %v14727_v37, %v5328_v19  ;;  %5458 = vrot.lane.b32.xlu1 %v5445_v34, %s11438_s26 }
 0x9f8   : > { %v5450_v6 = vmul.f32 %v5426_v16, %v5411_v50  ;;  %v5314_v18 = vpop.permute.xlu0 %5313 }
 0x9f9   : > { %v5329_v53 = vsel %vm5323_vm15, %v5310_v48, %v5314_v18  ;;  %v5446_v62 = vmul.f32 %v5430_v3, %v5404_v25  ;;  %v5316_v5 = vpop.permute.xlu1 %5315 }
 0x9fa   : > { %v5412_v1 = vadd.f32 %v14735_v7, %v5329_v53  ;;  %5460 = vrot.lane.b32.xlu0 %v5450_v6, %s11438_s26  ;;  %v5326_v17 = vsel %vm5323_vm15, %v5312_v15, %v5316_v5 }
 0x9fb   : > { %v5405_v37 = vadd.f32 %v14743_v23, %v5326_v17  ;;  %5462 = vrot.lane.b32.xlu1 %v5446_v62, %s11438_s26 }
 0x9fc   : > { %v5451_v47 = vmul.f32 %v5430_v3, %v5412_v1  ;;  %v5318_v14 = vpop.permute.xlu0 %5317 }
 0x9fd   : > { %v5327_v42 = vsel %vm5323_vm15, %v5314_v18, %v5318_v14  ;;  %v5447_v60 = vmul.f32 %v5434_v10, %v5405_v37  ;;  %v5320_v2 = vpop.permute.xlu1 %5319 }
 0x9fe   : > { %v5413_v7 = vadd.f32 %v14751_v41, %v5327_v42  ;;  %5464 = vrot.lane.b32.xlu0 %v5451_v47, %s11438_s26  ;;  %v5324_v39 = vsel %vm5323_vm15, %v5316_v5, %v5320_v2  ;;  %v5417_v47 = vld [vmem:[%s16499_s11 + $0x8] sm:$0x3] }
 0x9ff   : > { %v5406_v23 = vadd.f32 %v14759_v0, %v5324_v39  ;;  %5466 = vrot.lane.b32.xlu1 %v5447_v60, %s11438_s26 }
 0xa00   : > { %v5452_v28 = vmul.f32 %v5434_v10, %v5413_v7  ;;  %v5322_v38 = vpop.permute.xlu0 %5321 }
 0xa01   : > { %v5325_v44 = vsel %vm5323_vm15, %v5318_v14, %v5322_v38  ;;  %v5448_v9 = vmul.f32 %v5438_v57, %v5406_v23  ;;  %v5300_v58 = vpop.permute.xlu1 %5299 }
 0xa02   : > { %v5414_v41 = vadd.f32 %v14766_v22, %v5325_v44  ;;  %5468 = vrot.lane.b32.xlu0 %v5452_v28, %s11438_s26  ;;  %v5332_v29 = vsel %vm5323_vm15, %v5300_v58, %v5304_v59 }
 0xa03   : > { %v5402_v11 = vadd.f32 %v14824_v24, %v5332_v29  ;;  %5470 = vrot.lane.b32.xlu1 %v5448_v9, %s11438_s26 }
 0xa04   : > { %v5453_v0 = vmul.f32 %v5438_v57, %v5414_v41  ;;  %v5302_v61 = vpop.permute.xlu0 %5301 }
 0xa05   : > { %v5333_v46 = vsel %vm5323_vm15, %v5302_v61, %v5306_v43  ;;  %v5444_v22 = vmul.f32 %v5422_v20, %v5402_v11  ;;  %v5509_v27 = vmul.f32 %v5498_v51, %v5402_v11 }
 0xa06   : > { %v5410_v49 = vadd.f32 %v14837_v13, %v5333_v46  ;;  %5472 = vrot.lane.b32.xlu0 %v5453_v0, %s11438_s26 }
 0xa07   : > { %5454 = vrot.lane.b32.xlu1 %v5444_v22, %s11438_s26 }
 0xa08   : > { %v5449_v63 = vmul.f32 %v5422_v20, %v5410_v49  ;;  %v5513_v36 = vmul.f32 %v5498_v51, %v5410_v49 }
 0xa09   : > { %v5292_v59 = vpop.permute.xlu1 %5291 }
 0xa0a   : > { %5456 = vrot.lane.b32.xlu0 %v5449_v63, %s11438_s26  ;;  %s16500_s26 = sld [smem:[#allocation9_spill]] }
 0xa0c   : > { %v5294_v24 = vpop.permute.xlu0 %5293 }
 0xa0d   : > { %v5296_v16 = vpop.permute.xlu1 %5295 }
 0xa0e   : > { %v5334_v43 = vsel %vm5323_vm15, %v5296_v16, %v5300_v58  ;;  %v5336_v13 = vsel %vm5323_vm15, %v5292_v59, %v5296_v16 }
 0xa0f   : > { %v5400_v8 = vadd.f32 %v14844_v45, %v5336_v13  ;;  %v5401_v48 = vadd.f32 %v14826_v31, %v5334_v43 }
 0xa10   : > { %v5298_v32 = vpop.permute.xlu0 %5297 }
 0xa11   : > { %v5335_v34 = vsel %vm5323_vm15, %v5298_v32, %v5302_v61  ;;  %v5337_v50 = vsel %vm5323_vm15, %v5294_v24, %v5298_v32  ;;  %v5288_v19 = vpop.permute.xlu1 %5287  ;;  %v5507_v6 = vmul.f32 %v5490_v40, %v5400_v8  ;;  %v5508_v25 = vmul.f32 %v5494_v52, %v5401_v48 }
 0xa12   : > { %v5408_v3 = vadd.f32 %v14849_v30, %v5337_v50  ;;  %v5409_v15 = vadd.f32 %v14839_v54, %v5335_v34  ;;  %v5338_v45 = vsel %vm5323_vm15, %v5288_v19, %v5292_v59 }
 0xa13   : > { %v5407_v31 = vadd.f32 %v14846_v33, %v5338_v45 }
 0xa14   : > { %v5290_v18 = vpop.permute.xlu0 %5289  ;;  %v5511_v53 = vmul.f32 %v5490_v40, %v5408_v3  ;;  %v5512_v62 = vmul.f32 %v5494_v52, %v5409_v15 }
 0xa15   : > { %v5339_v1 = vsel %vm5323_vm15, %v5290_v18, %v5294_v24 }
 0xa16   : > { %v5415_v10 = vadd.f32 %v14851_v4, %v5339_v1  ;;  %v5484_v4 = vsub.f32 1.0, %v5417_v47 }
 0xa18   : > { %v5502_v23 = vrot.slane %v5484_v4, %v16490_v56 }
 0xa1a   : > { %v5510_v58 = vmul.f32 %v5502_v23, %v5407_v31  ;;  %v5514_v11 = vmul.f32 %v5502_v23, %v5415_v10 }
 0xa69   : > { %v5459_v30 = vpop.permute.xlu1 %5458 }
 0xa6c   : > { %v5461_v5 = vpop.permute.xlu0 %5460 }
 0xa6d   : > { %v5463_v54 = vpop.permute.xlu1 %5462 }
 0xa6e   : > { %v5479_v17 = vsel %vm5474_vm2, %v5459_v30, %v5463_v54 }
 0xa6f   : > { %v5515_v37 = vadd.f32 %v5507_v6, %v5479_v17 }
 0xa70   : > { %v5465_v14 = vpop.permute.xlu0 %5464 }
 0xa71   : > { %v5480_v33 = vsel %vm5474_vm2, %v5461_v5, %v5465_v14  ;;  %5523 = vrot.lane.b32.xlu1 %v5515_v37, %s11439_s2  ;;  %v5467_v60 = vpop.permute.xlu1 %5466 }
 0xa72   : > { %v5519_v42 = vadd.f32 %v5511_v53, %v5480_v33  ;;  %v5477_v7 = vsel %vm5474_vm2, %v5463_v54, %v5467_v60 }
 0xa73   : > { %v5516_v57 = vadd.f32 %v5508_v25, %v5477_v7  ;;  %v11280_v25 = vld [vmem:[%s16500_s26 + $0x4] ss:$8 sps:$4 sm:$0xff]  }
 0xa74   : > { %5525 = vrot.lane.b32.xlu0 %v5519_v42, %s11439_s2  ;;  %v5469_v2 = vpop.permute.xlu0 %5468  ;;  %9538 = vmatprep.mubr.msk.bf16.mxu0 %vm5745_vm5, %v11280_v25 }
 0xa75   : > { %v5478_v35 = vsel %vm5474_vm2, %v5465_v14, %v5469_v2  ;;  %5527 = vrot.lane.b32.xlu1 %v5516_v57, %s11439_s2  ;;  %v5471_v28 = vpop.permute.xlu1 %5470  ;;  %9537 = vmatprep.mubr.msk.bf16.mxu1 %vm5745_vm5, %v11280_v25 }
 0xa76   : > { %v5520_v39 = vadd.f32 %v5512_v62, %v5478_v35  ;;  %v5475_v38 = vsel %vm5474_vm2, %v5467_v60, %v5471_v28 }
 0xa77   : > { %v5517_v44 = vadd.f32 %v5509_v27, %v5475_v38 }
 0xa78   : > { %5529 = vrot.lane.b32.xlu0 %v5520_v39, %s11439_s2  ;;  %v5473_v9 = vpop.permute.xlu0 %5472 }
 0xa79   : > { %v5476_v41 = vsel %vm5474_vm2, %v5469_v2, %v5473_v9  ;;  %5531 = vrot.lane.b32.xlu1 %v5517_v44, %s11439_s2  ;;  %v5455_v51 = vpop.permute.xlu1 %5454 }
 0xa7a   : > { %v5521_v20 = vadd.f32 %v5513_v36, %v5476_v41  ;;  %v5481_v29 = vsel %vm5474_vm2, %v5455_v51, %v5459_v30 }
 0xa7b   : > { %v5518_v0 = vadd.f32 %v5510_v58, %v5481_v29 }
 0xa7c   : > { %5533 = vrot.lane.b32.xlu0 %v5521_v20, %s11439_s2  ;;  %v5457_v61 = vpop.permute.xlu0 %5456 }
 0xa7d   : > { %v5482_v46 = vsel %vm5474_vm2, %v5457_v61, %v5461_v5  ;;  %5535 = vrot.lane.b32.xlu1 %v5518_v0, %s11439_s2 }
 0xa7e   : > { %v5522_v22 = vadd.f32 %v5514_v11, %v5482_v46 }
 0xa80   : > { %5537 = vrot.lane.b32.xlu0 %v5522_v22, %s11439_s2 }
 0xae3   : > { %v5524_v49 = vpop.permute.xlu1 %5523 }
 0xae6   : > { %v5526_v27 = vpop.permute.xlu0 %5525 }
 0xae7   : > { %v5528_v63 = vpop.permute.xlu1 %5527 }
 0xae8   : > { %v14952_v59 = vsel %vm5539_vm3, %v5524_v49, %v5528_v63 }
 0xaea   : > { %v5530_v36 = vpop.permute.xlu0 %5529 }
 0xaeb   : > { %v14956_v24 = vsel %vm5539_vm3, %v5526_v27, %v5530_v36  ;;  %v5532_v16 = vpop.permute.xlu1 %5531 }
 0xaec   : > { %v10559_v40 = vpack.i.bf16 %v14956_v24, %v14952_v59  ;;  %v5700_v52 = vpack.c.bf16 %v14956_v24, %v14952_v59  ;;  %v14965_v13 = vsel %vm5539_vm3, %v5528_v63, %v5532_v16 }
 0xaee   : > { %v5534_v43 = vpop.permute.xlu0 %5533  ;;  %10560 = vrot.lane.b32.xlu1 %v10559_v40, %s16288_s23  ;;  %5749 = vmatprep.subr.bf16.mxu1 %v5700_v52 }
 0xaef   : > { %v14969_v8 = vsel %vm5539_vm3, %v5530_v36, %v5534_v43  ;;  %v5536_v48 = vpop.permute.xlu1 %5535 }
 0xaf0   : > { %v10564_v32 = vpack.i.bf16 %v14969_v8, %v14965_v13  ;;  %v5701_v34 = vpack.c.bf16 %v14969_v8, %v14965_v13  ;;  %v14978_v3 = vsel %vm5539_vm3, %v5536_v48, %v5524_v49 }
 0xaf2   : > { %v5538_v50 = vpop.permute.xlu0 %5537  ;;  %10565 = vrot.lane.b32.xlu0 %v10564_v32, %s16288_s23  ;;  %5793 = vmatpush1.bf16.msra.mxu0 %v5701_v34 }
 0xaf3   : > { %v14982_v15 = vsel %vm5539_vm3, %v5538_v50, %v5526_v27  ;;  %5794 = vmatprep.subr.bf16.mxu0 %v16439_v26 }
 0xaf4   : > { %v10569_v19 = vpack.i.bf16 %v14982_v15, %v14978_v3  ;;  %v5699_v6 = vpack.c.bf16 %v14982_v15, %v14978_v3 }
 0xaf6   : > { %10575 = vrot.lane.b32.xlu0 %v10559_v40, %s16302_s22  ;;  %10570 = vrot.lane.b32.xlu1 %v10569_v19, %s16288_s23  ;;  %s16501_s23 = sld [smem:[#allocation10_spill]] }
 0xaf7   : > { %5750 = vmatpush1.bf16.msra.mxu1 %v5699_v6 }
 0xafa   : > { %10585 = vrot.lane.b32.xlu0 %v10569_v19, %s16302_s22  ;;  %10580 = vrot.lane.b32.xlu1 %v10564_v32, %s16302_s22 }
 0xafc   : > { %v5549_v45 = vld [vmem:[%s16501_s23 + $0x8] sm:$0xff]  ;;  %v5548_v31 = vld [vmem:[%s16501_s23] sm:$0xff] }
 0xafe   : > { %10595 = vrot.lane.b32.xlu0 %v10564_v32, %s16290_s10  ;;  %10590 = vrot.lane.b32.xlu1 %v10559_v40, %s16290_s10 }
 0xb02   : > { %10605 = vrot.lane.b32.xlu0 %v10559_v40, %s16292_s18  ;;  %10600 = vrot.lane.b32.xlu1 %v10569_v19, %s16290_s10  ;;  %s16296_s10 = smov 91  }
 0xb06   : > { %10615 = vrot.lane.b32.xlu0 %v10569_v19, %s16292_s18  ;;  %10610 = vrot.lane.b32.xlu1 %v10564_v32, %s16292_s18  ;;  %s16294_s18 = smov 90  }
 0xb0a   : > { %10625 = vrot.lane.b32.xlu0 %v10564_v32, %s16308_s0  ;;  %10620 = vrot.lane.b32.xlu1 %v10559_v40, %s16308_s0 }
 0xb0e   : > { %10635 = vrot.lane.b32.xlu0 %v10559_v40, %s11426_s28  ;;  %10630 = vrot.lane.b32.xlu1 %v10569_v19, %s16308_s0 }
 0xb12   : > { %10645 = vrot.lane.b32.xlu0 %v10569_v19, %s11426_s28  ;;  %10640 = vrot.lane.b32.xlu1 %v10564_v32, %s11426_s28 }
 0xb16   : > { %10655 = vrot.lane.b32.xlu0 %v10564_v32, %s16296_s10  ;;  %10650 = vrot.lane.b32.xlu1 %v10559_v40, %s16296_s10 }
 0xb1a   : > { %10665 = vrot.lane.b32.xlu0 %v10559_v40, %s16294_s18  ;;  %10660 = vrot.lane.b32.xlu1 %v10569_v19, %s16296_s10  ;;  %s16505_s10 = smov 110  }
 0xb1e   : > { %10675 = vrot.lane.b32.xlu0 %v10569_v19, %s16294_s18  ;;  %10670 = vrot.lane.b32.xlu1 %v10564_v32, %s16294_s18  ;;  %s16502_s18 = sld [smem:[#allocation11_spill]] }
 0xb22   : > { %5733 = vperm.xlu0 %10217, %v5549_v45   ;;  %5728 = vperm.xlu1 %10558, %v5548_v31  }
 0xb60   : > { %v10561_v18 = vpop.permute.xlu1 %10560 }
 0xb61   : > { %v10563_v62 = vunpack.i.h.bf16 %v10561_v18  ;;  %v10562_v1 = vunpack.i.l.bf16 %v10561_v18 }
 0xb64   : > { %v10566_v53 = vpop.permute.xlu0 %10565 }
 0xb65   : > { %v10568_v10 = vunpack.i.h.bf16 %v10566_v53  ;;  %v10567_v30 = vunpack.i.l.bf16 %v10566_v53 }
 0xb67   : > { %v5562_v5 = vsel %vm1974_vm0, %v10562_v1, %v10567_v30  ;;  %v5563_v54 = vsel %vm1974_vm0, %v10563_v62, %v10568_v10 }
 0xb68   : > { %v10576_v17 = vpop.permute.xlu0 %10575  ;;  %v10571_v47 = vpop.permute.xlu1 %10570  ;;  %v5703_v37 = vpack.c.bf16 %v5563_v54, %v5562_v5 }
 0xb69   : > { %v10573_v14 = vunpack.i.h.bf16 %v10571_v47  ;;  %v10572_v33 = vunpack.i.l.bf16 %v10571_v47  ;;  %v10578_v57 = vunpack.i.h.bf16 %v10576_v17  ;;  %v10577_v2 = vunpack.i.l.bf16 %v10576_v17 }
 0xb6a   : > { %5751 = vmatprep.subr.bf16.mxu1 %v5703_v37 }
 0xb6b   : > { %v5567_v42 = vsel %vm1974_vm0, %v10568_v10, %v10573_v14  ;;  %v5564_v60 = vsel %vm1974_vm0, %v10572_v33, %v10562_v1  ;;  %v5565_v4 = vsel %vm1974_vm0, %v10573_v14, %v10563_v62  ;;  %v5566_v7 = vsel %vm1974_vm0, %v10567_v30, %v10572_v33 }
 0xb6c   : > { %v10586_v35 = vpop.permute.xlu0 %10585  ;;  %v10581_v39 = vpop.permute.xlu1 %10580  ;;  %v5702_v28 = vpack.c.bf16 %v5565_v4, %v5564_v60  ;;  %v5704_v23 = vpack.c.bf16 %v5567_v42, %v5566_v7 }
 0xb6d   : > { %v10588_v38 = vunpack.i.h.bf16 %v10586_v35  ;;  %v10587_v44 = vunpack.i.l.bf16 %v10586_v35  ;;  %v10583_v9 = vunpack.i.h.bf16 %v10581_v39  ;;  %v10582_v41 = vunpack.i.l.bf16 %v10581_v39 }
 0xb6e   : > { %5752 = vmatpush1.bf16.msra.mxu1 %v5702_v28  ;;  %5795 = vmatpush1.bf16.msra.mxu0 %v5704_v23 }
 0xb6f   : > { %v5583_v20 = vsel %vm2005_vm1, %v10588_v38, %v10578_v57  ;;  %v5582_v58 = vsel %vm2005_vm1, %v10587_v44, %v10577_v2  ;;  %v5585_v51 = vsel %vm2005_vm1, %v10583_v9, %v10588_v38  ;;  %v5584_v29 = vsel %vm2005_vm1, %v10582_v41, %v10587_v44  ;;  %5796 = vmatprep.subr.bf16.mxu0 %v16439_v26 }
 0xb70   : > { %v10596_v0 = vpop.permute.xlu0 %10595  ;;  %v10591_v11 = vpop.permute.xlu1 %10590  ;;  %v5580_v61 = vsel %vm2005_vm1, %v10577_v2, %v10582_v41  ;;  %v5581_v46 = vsel %vm2005_vm1, %v10578_v57, %v10583_v9  ;;  %v5707_v22 = vpack.c.bf16 %v5585_v51, %v5584_v29  ;;  %v5705_v49 = vpack.c.bf16 %v5583_v20, %v5582_v58 }
 0xb71   : > { %v10598_v27 = vunpack.i.h.bf16 %v10596_v0  ;;  %v10597_v63 = vunpack.i.l.bf16 %v10596_v0  ;;  %v10593_v36 = vunpack.i.h.bf16 %v10591_v11  ;;  %v10592_v16 = vunpack.i.l.bf16 %v10591_v11 }
 0xb72   : > { %v5706_v40 = vpack.c.bf16 %v5581_v46, %v5580_v61  ;;  %5797 = vmatpush1.bf16.msra.mxu0 %v5707_v22 }
 0xb73   : > { %v5599_v52 = vsel %vm5598_vm6, %v10592_v16, %v10597_v63  ;;  %v5600_v43 = vsel %vm5598_vm6, %v10593_v36, %v10598_v27  ;;  %5798 = vmatprep.subr.bf16.mxu0 %v16439_v26 }
 0xb74   : > { %5753 = vmatprep.subr.bf16.mxu1 %v5706_v40  ;;  %v10606_v48 = vpop.permute.xlu0 %10605  ;;  %v10601_v32 = vpop.permute.xlu1 %10600  ;;  %v5709_v34 = vpack.c.bf16 %v5600_v43, %v5599_v52 }
 0xb75   : > { %5754 = vmatpush1.bf16.msra.mxu1 %v5705_v49  ;;  %v10603_v50 = vunpack.i.h.bf16 %v10601_v32  ;;  %v10602_v19 = vunpack.i.l.bf16 %v10601_v32  ;;  %v10608_v18 = vunpack.i.h.bf16 %v10606_v48  ;;  %v10607_v53 = vunpack.i.l.bf16 %v10606_v48 }
 0xb76   : > { %5755 = vmatprep.subr.bf16.mxu1 %v5709_v34 }
 0xb77   : > { %v5604_v6 = vsel %vm5598_vm6, %v10598_v27, %v10603_v50  ;;  %v5601_v25 = vsel %vm5598_vm6, %v10602_v19, %v10592_v16  ;;  %v5602_v45 = vsel %vm5598_vm6, %v10603_v50, %v10593_v36  ;;  %v5603_v31 = vsel %vm5598_vm6, %v10597_v63, %v10602_v19 }
 0xb78   : > { %v10616_v62 = vpop.permute.xlu0 %10615  ;;  %v10611_v1 = vpop.permute.xlu1 %10610  ;;  %v5708_v10 = vpack.c.bf16 %v5602_v45, %v5601_v25  ;;  %v5710_v30 = vpack.c.bf16 %v5604_v6, %v5603_v31 }
 0xb79   : > { %v10618_v5 = vunpack.i.h.bf16 %v10616_v62  ;;  %v10617_v54 = vunpack.i.l.bf16 %v10616_v62  ;;  %v10613_v17 = vunpack.i.h.bf16 %v10611_v1  ;;  %v10612_v47 = vunpack.i.l.bf16 %v10611_v1 }
 0xb7a   : > { %5756 = vmatpush1.bf16.msra.mxu1 %v5708_v10  ;;  %5799 = vmatpush1.bf16.msra.mxu0 %v5710_v30 }
 0xb7b   : > { %v5620_v37 = vsel %vm5617_vm7, %v10617_v54, %v10607_v53  ;;  %v5621_v14 = vsel %vm5617_vm7, %v10618_v5, %v10608_v18  ;;  %v5623_v33 = vsel %vm5617_vm7, %v10613_v17, %v10618_v5  ;;  %v5622_v42 = vsel %vm5617_vm7, %v10612_v47, %v10617_v54  ;;  %5800 = vmatprep.subr.bf16.mxu0 %v16439_v26 }
 0xb7c   : > { %v10626_v60 = vpop.permute.xlu0 %10625  ;;  %v10621_v4 = vpop.permute.xlu1 %10620  ;;  %v5618_v7 = vsel %vm5617_vm7, %v10607_v53, %v10612_v47  ;;  %v5619_v57 = vsel %vm5617_vm7, %v10608_v18, %v10613_v17  ;;  %v5713_v2 = vpack.c.bf16 %v5623_v33, %v5622_v42  ;;  %v5711_v35 = vpack.c.bf16 %v5621_v14, %v5620_v37 }
 0xb7d   : > { %v10628_v39 = vunpack.i.h.bf16 %v10626_v60  ;;  %v10627_v28 = vunpack.i.l.bf16 %v10626_v60  ;;  %v10623_v23 = vunpack.i.h.bf16 %v10621_v4  ;;  %v10622_v38 = vunpack.i.l.bf16 %v10621_v4 }
 0xb7e   : > { %v5712_v44 = vpack.c.bf16 %v5619_v57, %v5618_v7  ;;  %5801 = vmatpush1.bf16.msra.mxu0 %v5713_v2 }
 0xb7f   : > { %v5637_v9 = vsel %vm5636_vm8, %v10622_v38, %v10627_v28  ;;  %v5638_v41 = vsel %vm5636_vm8, %v10623_v23, %v10628_v39  ;;  %5802 = vmatprep.subr.bf16.mxu0 %v16439_v26 }
 0xb80   : > { %5757 = vmatprep.subr.bf16.mxu1 %v5712_v44  ;;  %v10636_v20 = vpop.permute.xlu0 %10635  ;;  %v10631_v58 = vpop.permute.xlu1 %10630  ;;  %v5715_v51 = vpack.c.bf16 %v5638_v41, %v5637_v9 }
 0xb81   : > { %5758 = vmatpush1.bf16.msra.mxu1 %v5711_v35  ;;  %v10633_v29 = vunpack.i.h.bf16 %v10631_v58  ;;  %v10632_v0 = vunpack.i.l.bf16 %v10631_v58  ;;  %v10638_v49 = vunpack.i.h.bf16 %v10636_v20  ;;  %v10637_v27 = vunpack.i.l.bf16 %v10636_v20 }
 0xb82   : > { %5759 = vmatprep.subr.bf16.mxu1 %v5715_v51 }
 0xb83   : > { %v5642_v11 = vsel %vm5636_vm8, %v10628_v39, %v10633_v29  ;;  %v5639_v61 = vsel %vm5636_vm8, %v10632_v0, %v10622_v38  ;;  %v5640_v46 = vsel %vm5636_vm8, %v10633_v29, %v10623_v23  ;;  %v5641_v22 = vsel %vm5636_vm8, %v10627_v28, %v10632_v0 }
 0xb84   : > { %v10646_v63 = vpop.permute.xlu0 %10645  ;;  %v10641_v36 = vpop.permute.xlu1 %10640  ;;  %v5714_v16 = vpack.c.bf16 %v5640_v46, %v5639_v61  ;;  %v5716_v40 = vpack.c.bf16 %v5642_v11, %v5641_v22 }
 0xb85   : > { %v10648_v52 = vunpack.i.h.bf16 %v10646_v63  ;;  %v10647_v43 = vunpack.i.l.bf16 %v10646_v63  ;;  %v10643_v48 = vunpack.i.h.bf16 %v10641_v36  ;;  %v10642_v32 = vunpack.i.l.bf16 %v10641_v36  ;;  %v11282_v63 = vld [vmem:[%s16500_s26] ss:$8 sps:$4 sm:$0xff]  }
 0xb86   : > { %5760 = vmatpush1.bf16.msra.mxu1 %v5714_v16  ;;  %5803 = vmatpush1.bf16.msra.mxu0 %v5716_v40  ;;  %v5839_v16 = vld [vmem:[%s16502_s18] sm:$0x7]  ;;  %s16503_s18 = smov 127  }
 0xb87   : > { %v5657_v34 = vsel %vm2098_vm4, %v10647_v43, %v10637_v27  ;;  %v5658_v50 = vsel %vm2098_vm4, %v10648_v52, %v10638_v49  ;;  %v5660_v19 = vsel %vm2098_vm4, %v10643_v48, %v10648_v52  ;;  %v5659_v6 = vsel %vm2098_vm4, %v10642_v32, %v10647_v43  ;;  %5804 = vmatprep.subr.bf16.mxu0 %v16439_v26 }
 0xb88   : > { %v10656_v25 = vpop.permute.xlu0 %10655  ;;  %v10651_v45 = vpop.permute.xlu1 %10650  ;;  %v5655_v31 = vsel %vm2098_vm4, %v10637_v27, %v10642_v32  ;;  %v5656_v18 = vsel %vm2098_vm4, %v10638_v49, %v10643_v48  ;;  %v5719_v53 = vpack.c.bf16 %v5660_v19, %v5659_v6  ;;  %v5717_v62 = vpack.c.bf16 %v5658_v50, %v5657_v34 }
 0xb89   : > { %v10658_v1 = vunpack.i.h.bf16 %v10656_v25  ;;  %v10657_v10 = vunpack.i.l.bf16 %v10656_v25  ;;  %v10653_v30 = vunpack.i.h.bf16 %v10651_v45  ;;  %v10652_v5 = vunpack.i.l.bf16 %v10651_v45 }
 0xb8a   : > { %v5718_v54 = vpack.c.bf16 %v5656_v18, %v5655_v31  ;;  %5805 = vmatpush1.bf16.msra.mxu0 %v5719_v53  ;;  %v5844_v34 = vrot.slane %v5839_v16, %v16489_v12 }
 0xb8b   : > { %v5674_v17 = vsel %vm5673_vm9, %v10652_v5, %v10657_v10  ;;  %v5675_v47 = vsel %vm5673_vm9, %v10653_v30, %v10658_v1  ;;  %5806 = vmatprep.subr.bf16.mxu0 %v16439_v26 }
 0xb8c   : > { %5761 = vmatprep.subr.bf16.mxu1 %v5718_v54  ;;  %v10666_v37 = vpop.permute.xlu0 %10665  ;;  %v10661_v14 = vpop.permute.xlu1 %10660  ;;  %v5721_v33 = vpack.c.bf16 %v5675_v47, %v5674_v17 }
 0xb8d   : > { %5762 = vmatpush1.bf16.msra.mxu1 %v5717_v62  ;;  %v10663_v42 = vunpack.i.h.bf16 %v10661_v14  ;;  %v10662_v60 = vunpack.i.l.bf16 %v10661_v14  ;;  %v10668_v35 = vunpack.i.h.bf16 %v10666_v37  ;;  %v10667_v39 = vunpack.i.l.bf16 %v10666_v37 }
 0xb8e   : > { %5763 = vmatprep.subr.bf16.mxu1 %v5721_v33  ;;  %v5848_v62 = vrot.slane %v5839_v16, %v16490_v56  ;;  %v5852_v33 = vrot.slane %v5839_v16, %v16491_v55  ;;  %v5893_v16 = vld [vmem:[%s16508_s5 + $0x18] sm:$0xff] }
 0xb8f   : > { %v5679_v4 = vsel %vm5673_vm9, %v10658_v1, %v10663_v42  ;;  %v5676_v7 = vsel %vm5673_vm9, %v10662_v60, %v10652_v5  ;;  %v5677_v57 = vsel %vm5673_vm9, %v10663_v42, %v10653_v30  ;;  %v5678_v2 = vsel %vm5673_vm9, %v10657_v10, %v10662_v60 }
 0xb90   : > { %v10676_v28 = vpop.permute.xlu0 %10675  ;;  %v10671_v23 = vpop.permute.xlu1 %10670  ;;  %v5720_v38 = vpack.c.bf16 %v5677_v57, %v5676_v7  ;;  %v5722_v44 = vpack.c.bf16 %v5679_v4, %v5678_v2 }
 0xb91   : > { %v10678_v9 = vunpack.i.h.bf16 %v10676_v28  ;;  %v10677_v41 = vunpack.i.l.bf16 %v10676_v28  ;;  %v10673_v20 = vunpack.i.h.bf16 %v10671_v23  ;;  %v10672_v58 = vunpack.i.l.bf16 %v10671_v23 }
 0xb92   : > { %5764 = vmatpush1.bf16.msra.mxu1 %v5720_v38  ;;  %5807 = vmatpush1.bf16.msra.mxu0 %v5722_v44 }
 0xb93   : > { %v5695_v51 = vsel %vm5692_vm10, %v10677_v41, %v10667_v39  ;;  %v5696_v29 = vsel %vm5692_vm10, %v10678_v9, %v10668_v35  ;;  %v5698_v0 = vsel %vm5692_vm10, %v10673_v20, %v10678_v9  ;;  %v5697_v11 = vsel %vm5692_vm10, %v10672_v58, %v10677_v41  ;;  %5808 = vmatprep.subr.bf16.mxu0 %v16439_v26 }
 0xb94   : > { %v5693_v61 = vsel %vm5692_vm10, %v10667_v39, %v10672_v58  ;;  %v5694_v46 = vsel %vm5692_vm10, %v10668_v35, %v10673_v20  ;;  %v5725_v22 = vpack.c.bf16 %v5698_v0, %v5697_v11  ;;  %v5723_v49 = vpack.c.bf16 %v5696_v29, %v5695_v51 }
 0xb95   : > { %v5724_v27 = vpack.c.bf16 %v5694_v46, %v5693_v61 }
 0xb96   : > { %5809 = vmatpush1.bf16.msra.mxu0 %v5725_v22 }
 0xb97   : > { %5765 = vmatprep.subr.bf16.mxu1 %v5724_v27  ;;  %6162 = vmatprep.subr.bf16.mxu0 %v16439_v26 }
 0xb98   : > { %5766 = vmatpush1.bf16.msra.mxu1 %v5723_v49 }
 0xb99   : > { %5825 = vmatmul.mubr.bf16.vlgmr.msra.gmra.mrb[32].mxu0 %v11282_v63 }
 0xb9b   : > { %5782 = vmatmul.mubr.bf16.vlgmr.msra.gmra.mrb[28].mxu1 %v11282_v63  ;;  %v5891_v63 = vld [vmem:[%s16508_s5 + $0x8] sm:$0xff] }
 0xba1   : > { %v5729_v40 = vpop.permute.xlu1 %5728  ;;  %v5734_v6 = vpop.permute.xlu0 %5733 }
 0xc6c   : > { %v5826_v36 = vpop.f32.mrb[32].mxu0 }
 0xc6d   : > { %v5828_v52 = vpop.f32.mrb[33].mxu0  ;;  %v5827_v10 = vadd.f32 %v5826_v36, %v5729_v40  ;;  %v5892_v36 = vld [vmem:[%s16508_s5 + $0x10] sm:$0xff] }
 0xc6e   : > { %v5783_v43 = vpop.f32.mrb[28].mxu1  ;;  %v5829_v48 = vpop.f32.mrb[34].mxu0 }
 0xc6f   : > { %v5784_v32 = vadd.f32 %v5783_v43, %v5729_v40  ;;  %v5785_v50 = vpop.f32.mrb[29].mxu1  ;;  %v5831_v19 = vpop.f32.mrb[35].mxu0  ;;  %v5830_v17 = vadd.f32 %v5829_v48, %v5734_v6  ;;  %v5835_v14 = vmax.f32 %v5827_v10, 0.0 }
 0xc70   : > { %v5786_v25 = vadd.f32 %v5785_v50, %v5729_v40  ;;  %v5787_v45 = vpop.f32.mrb[30].mxu1 }
 0xc71   : > { %v5833_v31 = vmax.f32 %v5784_v32, 0.0  ;;  %v5788_v18 = vadd.f32 %v5787_v45, %v5734_v6  ;;  %v5789_v53 = vpop.f32.mrb[31].mxu1  ;;  %v5838_v60 = vmax.f32 %v5830_v17, 0.0  ;;  %v5858_v7 = vmul.f32 %v5852_v33, %v5835_v14 }
 0xc72   : > { %v5790_v1 = vadd.f32 %v5789_v53, %v5734_v6  ;;  %v5834_v5 = vmax.f32 %v5786_v25, 0.0 }
 0xc73   : > { %v5856_v30 = vmul.f32 %v5844_v34, %v5833_v31  ;;  %v5836_v54 = vmax.f32 %v5788_v18, 0.0  ;;  %v5861_v57 = vmul.f32 %v5852_v33, %v5838_v60 }
 0xc74   : > { %v5837_v37 = vmax.f32 %v5790_v1, 0.0  ;;  %v5857_v42 = vmul.f32 %v5848_v62, %v5834_v5 }
 0xc75   : > { %v5859_v47 = vmul.f32 %v5844_v34, %v5836_v54  ;;  %5862 = vrot.lane.b32.xlu1 %v5856_v30, %s11439_s2 }
 0xc76   : > { %v5860_v4 = vmul.f32 %v5848_v62, %v5837_v37 }
 0xc77   : > { %5864 = vrot.lane.b32.xlu0 %v5859_v47, %s11439_s2 }
 0xc79   : > { %5866 = vrot.lane.b32.xlu1 %v5857_v42, %s11439_s2 }
 0xc7b   : > { %5868 = vrot.lane.b32.xlu0 %v5860_v4, %s11439_s2 }
 0xc7d   : > { %5870 = vrot.lane.b32.xlu1 %v5858_v7, %s11439_s2 }
 0xc7f   : > { %5872 = vrot.lane.b32.xlu0 %v5861_v57, %s11439_s2  ;;  %s16504_s2 = smov 109  }
 0xce7   : > { %v5863_v2 = vpop.permute.xlu1 %5862 }
 0xce9   : > { %v5865_v35 = vpop.permute.xlu0 %5864 }
 0xceb   : > { %v5867_v39 = vpop.permute.xlu1 %5866 }
 0xcec   : > { %v5876_v28 = vsel %vm5539_vm3, %v5863_v2, %v5867_v39 }
 0xced   : > { %v5869_v23 = vpop.permute.xlu0 %5868  ;;  %v5881_v44 = vadd.f32 %v5876_v28, %v14952_v59 }
 0xcee   : > { %v5877_v38 = vsel %vm5539_vm3, %v5865_v35, %v5869_v23 }
 0xcef   : > { %v5884_v9 = vadd.f32 %v5877_v38, %v14956_v24  ;;  %v5871_v41 = vpop.permute.xlu1 %5870 }
 0xcf0   : > { %v5874_v20 = vsel %vm5539_vm3, %v5867_v39, %v5871_v41  ;;  %v5878_v58 = vsel %vm5539_vm3, %v5871_v41, %v5863_v2 }
 0xcf1   : > { %v5873_v51 = vpop.permute.xlu0 %5872  ;;  %v6039_v29 = vpack.c.bf16 %v5884_v9, %v5881_v44  ;;  %v5880_v61 = vadd.f32 %v5878_v58, %v14978_v3  ;;  %v5882_v59 = vadd.f32 %v5874_v20, %v14965_v13  ;;  %v11283_v3 = vld [vmem:[%s16507_s3 + $0x4] ss:$8 sps:$4 sm:$0xff]  }
 0xcf2   : > { %v5875_v0 = vsel %vm5539_vm3, %v5869_v23, %v5873_v51  ;;  %v5879_v11 = vsel %vm5539_vm3, %v5873_v51, %v5865_v35  ;;  %9545 = vmatprep.mubr.msk.bf16.mxu0 %vm5745_vm5, %v11283_v3  ;;  %9543 = vmatprep.mubr.msk.bf16.mxu1 %vm5745_vm5, %v11283_v3 }
 0xcf3   : > { %v5883_v24 = vadd.f32 %v5879_v11, %v14982_v15  ;;  %v5885_v46 = vadd.f32 %v5875_v0, %v14969_v8  ;;  %6109 = vmatprep.subr.bf16.mxu1 %v6039_v29  ;;  %v10714_v8 = vpack.i.bf16 %v5884_v9, %v5881_v44  ;;  %v5890_v15 = vld [vmem:[%s16508_s5] sm:$0xff]  ;;  %s16520_s5 = smov 126  }
 0xcf5   : > { %v10684_v22 = vpack.i.bf16 %v5883_v24, %v5880_v61  ;;  %v6038_v49 = vpack.c.bf16 %v5883_v24, %v5880_v61  ;;  %v6040_v27 = vpack.c.bf16 %v5885_v46, %v5882_v59  ;;  %v10719_v13 = vpack.i.bf16 %v5885_v46, %v5882_v59 }
 0xcf7   : > { %10685 = vrot.lane.b32.xlu0 %v10684_v22, %s16302_s22  ;;  %10680 = vrot.lane.b32.xlu1 %v10684_v22, %s16503_s18 }
 0xcf8   : > { %6110 = vmatpush1.bf16.msra.mxu1 %v6038_v49  ;;  %6163 = vmatpush1.bf16.msra.mxu0 %v6040_v27 }
 0xcf9   : > { %6164 = vmatprep.subr.bf16.mxu0 %v16439_v26 }
 0xcfb   : > { %10695 = vrot.lane.b32.xlu0 %v10684_v22, %s16504_s2  ;;  %10690 = vrot.lane.b32.xlu1 %v10684_v22, %s16505_s10 }
 0xcff   : > { %10705 = vrot.lane.b32.xlu0 %v10684_v22, %s11426_s28  ;;  %10700 = vrot.lane.b32.xlu1 %v10684_v22, %s16308_s0 }
 0xd03   : > { %10710 = vrot.lane.b32.xlu1 %v10684_v22, %s16506_s1  ;;  %10720 = vrot.lane.b32.xlu0 %v10719_v13, %s16503_s18 }
 0xd07   : > { %10715 = vrot.lane.b32.xlu1 %v10714_v8, %s16503_s18  ;;  %10725 = vrot.lane.b32.xlu0 %v10714_v8, %s16302_s22 }
 0xd0b   : > { %10730 = vrot.lane.b32.xlu1 %v10719_v13, %s16302_s22  ;;  %10740 = vrot.lane.b32.xlu0 %v10719_v13, %s16505_s10 }
 0xd0f   : > { %10735 = vrot.lane.b32.xlu1 %v10714_v8, %s16505_s10  ;;  %10745 = vrot.lane.b32.xlu0 %v10714_v8, %s16504_s2  ;;  %s16509_s10 = smov 90  }
 0xd13   : > { %10750 = vrot.lane.b32.xlu1 %v10719_v13, %s16504_s2  ;;  %10760 = vrot.lane.b32.xlu0 %v10719_v13, %s16308_s0  ;;  %s16512_s2 = sld [smem:[#allocation15_spill]] }
 0xd17   : > { %10755 = vrot.lane.b32.xlu1 %v10714_v8, %s16308_s0  ;;  %10765 = vrot.lane.b32.xlu0 %v10714_v8, %s11426_s28 }
 0xd1b   : > { %10770 = vrot.lane.b32.xlu1 %v10719_v13, %s11426_s28  ;;  %10780 = vrot.lane.b32.xlu0 %v10719_v13, %s16506_s1  ;;  %s16510_s28 = sld [smem:[#allocation14_spill]] }
 0xd1f   : > { %10775 = vrot.lane.b32.xlu1 %v10714_v8, %s16506_s1  ;;  %10785 = vrot.lane.b32.xlu0 %v10714_v8, %s16509_s10  ;;  %s16511_s1 = sld [smem:[#allocation20_spill]] }
 0xd23   : > { %10790 = vrot.lane.b32.xlu1 %v10719_v13, %s16509_s10  ;;  %10795 = vrot.lane.b32.xlu0 %v10684_v22, %s16509_s10  ;;  %s16513_s10 = sld [smem:[#allocation16_spill]] }
 0xd27   : > { %6067 = vperm.xlu1 %10558, %v5890_v15   ;;  %6072 = vperm.xlu0 %10217, %v5891_v63  }
 0xd2b   : > { %6077 = vperm.xlu1 %10558, %v5892_v36   ;;  %6082 = vperm.xlu0 %10217, %v5893_v16  }
 0xd69   : > { %v10686_v40 = vpop.permute.xlu0 %10685  ;;  %v10681_v52 = vpop.permute.xlu1 %10680 }
 0xd6a   : > { %v10683_v6 = vunpack.i.h.bf16 %v10681_v52  ;;  %v10682_v25 = vunpack.i.l.bf16 %v10681_v52  ;;  %v10688_v54 = vunpack.i.h.bf16 %v10686_v40  ;;  %v10687_v47 = vunpack.i.l.bf16 %v10686_v40 }
 0xd6d   : > { %v15186_v43 = vpop.permute.xlu0 %10695  ;;  %v10691_v48 = vpop.permute.xlu1 %10690 }
 0xd6e   : > { %v10693_v42 = vunpack.i.h.bf16 %v10691_v48  ;;  %v10692_v38 = vunpack.i.l.bf16 %v10691_v48  ;;  %v10698_v49 = vunpack.i.h.bf16 %v15186_v43  ;;  %v10697_v27 = vunpack.i.l.bf16 %v15186_v43 }
 0xd71   : > { %v15188_v32 = vpop.permute.xlu0 %10705  ;;  %v15190_v34 = vpop.permute.xlu1 %10700 }
 0xd75   : > { %v15192_v50 = vpop.permute.xlu1 %10710  ;;  %v10721_v19 = vpop.permute.xlu0 %10720 }
 0xd76   : > { %v10723_v45 = vunpack.i.h.bf16 %v10721_v19  ;;  %v10722_v31 = vunpack.i.l.bf16 %v10721_v19 }
 0xd78   : > { %v5911_v18 = vsel %vm1974_vm0, %v10723_v45, %v10683_v6  ;;  %v5910_v53 = vsel %vm1974_vm0, %v10722_v31, %v10682_v25 }
 0xd79   : > { %v10716_v62 = vpop.permute.xlu1 %10715  ;;  %v10726_v1 = vpop.permute.xlu0 %10725  ;;  %v6043_v10 = vpack.c.bf16 %v5911_v18, %v5910_v53  ;;  %v10708_v18 = vunpack.i.h.bf16 %v15188_v32  ;;  %v10707_v53 = vunpack.i.l.bf16 %v15188_v32 }
 0xd7a   : > { %v10718_v30 = vunpack.i.h.bf16 %v10716_v62  ;;  %v10717_v5 = vunpack.i.l.bf16 %v10716_v62  ;;  %v10728_v17 = vunpack.i.h.bf16 %v10726_v1  ;;  %v10727_v33 = vunpack.i.l.bf16 %v10726_v1 }
 0xd7b   : > { %6165 = vmatpush1.bf16.msra.mxu0 %v6043_v10  ;;  %v10703_v62 = vunpack.i.h.bf16 %v15190_v34  ;;  %v10702_v10 = vunpack.i.l.bf16 %v15190_v34 }
 0xd7c   : > { %v5908_v37 = vsel %vm1974_vm0, %v10682_v25, %v10717_v5  ;;  %v5909_v14 = vsel %vm1974_vm0, %v10683_v6, %v10718_v30  ;;  %6166 = vmatprep.subr.bf16.mxu0 %v16439_v26  ;;  %v5906_v7 = vsel %vm1974_vm0, %v10717_v5, %v10722_v31  ;;  %v5907_v57 = vsel %vm1974_vm0, %v10718_v30, %v10723_v45 }
 0xd7d   : > { %v10731_v60 = vpop.permute.xlu1 %10730  ;;  %v10741_v4 = vpop.permute.xlu0 %10740  ;;  %v6041_v2 = vpack.c.bf16 %v5909_v14, %v5908_v37  ;;  %v5927_v44 = vsel %vm2005_vm1, %v10688_v54, %v10728_v17  ;;  %v6042_v9 = vpack.c.bf16 %v5907_v57, %v5906_v7  ;;  %v5926_v41 = vsel %vm2005_vm1, %v10687_v47, %v10727_v33 }
 0xd7e   : > { %v10733_v35 = vunpack.i.h.bf16 %v10731_v60  ;;  %v10732_v39 = vunpack.i.l.bf16 %v10731_v60  ;;  %v10743_v28 = vunpack.i.h.bf16 %v10741_v4  ;;  %v10742_v23 = vunpack.i.l.bf16 %v10741_v4 }
 0xd7f   : > { %6111 = vmatprep.subr.bf16.mxu1 %v6042_v9  ;;  %v6044_v8 = vpack.c.bf16 %v5927_v44, %v5926_v41  ;;  %v10713_v7 = vunpack.i.h.bf16 %v15192_v50 }
 0xd80   : > { %v5929_v20 = vsel %vm2005_vm1, %v10733_v35, %v10688_v54  ;;  %v5928_v58 = vsel %vm2005_vm1, %v10732_v39, %v10687_v47  ;;  %v5947_v51 = vsel %vm5598_vm6, %v10743_v28, %v10693_v42  ;;  %v5946_v29 = vsel %vm5598_vm6, %v10742_v23, %v10692_v38  ;;  %6112 = vmatpush1.bf16.msra.mxu1 %v6041_v2 }
 0xd81   : > { %v10736_v0 = vpop.permute.xlu1 %10735  ;;  %v10746_v11 = vpop.permute.xlu0 %10745  ;;  %v5924_v61 = vsel %vm2005_vm1, %v10727_v33, %v10732_v39  ;;  %v5925_v59 = vsel %vm2005_vm1, %v10728_v17, %v10733_v35  ;;  %v6046_v24 = vpack.c.bf16 %v5929_v20, %v5928_v58  ;;  %v6049_v36 = vpack.c.bf16 %v5947_v51, %v5946_v29 }
 0xd82   : > { %v10738_v46 = vunpack.i.h.bf16 %v10736_v0  ;;  %v10737_v22 = vunpack.i.l.bf16 %v10736_v0  ;;  %v6045_v13 = vpack.c.bf16 %v5925_v59, %v5924_v61  ;;  %v10748_v63 = vunpack.i.h.bf16 %v10746_v11 }
 0xd83   : > { %6167 = vmatpush1.bf16.msra.mxu0 %v6046_v24  ;;  %v10747_v16 = vunpack.i.l.bf16 %v10746_v11  ;;  %v10712_v39 = vunpack.i.l.bf16 %v15192_v50 }
 0xd84   : > { %v5945_v3 = vsel %vm5598_vm6, %v10693_v42, %v10738_v46  ;;  %v5944_v15 = vsel %vm5598_vm6, %v10692_v38, %v10737_v22  ;;  %6168 = vmatprep.subr.bf16.mxu0 %v16439_v26  ;;  %6113 = vmatprep.subr.bf16.mxu1 %v6045_v13  ;;  %v5942_v43 = vsel %vm5598_vm6, %v10737_v22, %v10742_v23 }
 0xd85   : > { %v10751_v40 = vpop.permute.xlu1 %10750  ;;  %v10761_v52 = vpop.permute.xlu0 %10760  ;;  %v5943_v48 = vsel %vm5598_vm6, %v10738_v46, %v10743_v28  ;;  %v6047_v19 = vpack.c.bf16 %v5945_v3, %v5944_v15  ;;  %6114 = vmatpush1.bf16.msra.mxu1 %v6044_v8  ;;  %v5963_v30 = vsel %vm5617_vm7, %v10698_v49, %v10748_v63  ;;  %v5962_v32 = vsel %vm5617_vm7, %v10697_v27, %v10747_v16 }
 0xd86   : > { %v10753_v6 = vunpack.i.h.bf16 %v10751_v40  ;;  %v10752_v25 = vunpack.i.l.bf16 %v10751_v40  ;;  %v10763_v45 = vunpack.i.h.bf16 %v10761_v52  ;;  %v10762_v31 = vunpack.i.l.bf16 %v10761_v52 }
 0xd87   : > { %v6048_v1 = vpack.c.bf16 %v5943_v48, %v5942_v43  ;;  %6169 = vmatpush1.bf16.msra.mxu0 %v6049_v36  ;;  %v6050_v38 = vpack.c.bf16 %v5963_v30, %v5962_v32 }
 0xd88   : > { %v5965_v5 = vsel %vm5617_vm7, %v10753_v6, %v10698_v49  ;;  %v5964_v54 = vsel %vm5617_vm7, %v10752_v25, %v10697_v27  ;;  %6170 = vmatprep.subr.bf16.mxu0 %v16439_v26  ;;  %v5960_v34 = vsel %vm5617_vm7, %v10747_v16, %v10752_v25  ;;  %v5961_v37 = vsel %vm5617_vm7, %v10748_v63, %v10753_v6 }
 0xd89   : > { %6115 = vmatprep.subr.bf16.mxu1 %v6048_v1  ;;  %v10756_v17 = vpop.permute.xlu1 %10755  ;;  %v10766_v47 = vpop.permute.xlu0 %10765  ;;  %v6052_v14 = vpack.c.bf16 %v5965_v5, %v5964_v54  ;;  %v5983_v33 = vsel %vm5636_vm8, %v10763_v45, %v10703_v62  ;;  %v5982_v42 = vsel %vm5636_vm8, %v10762_v31, %v10702_v10  ;;  %v6051_v35 = vpack.c.bf16 %v5961_v37, %v5960_v34 }
 0xd8a   : > { %6116 = vmatpush1.bf16.msra.mxu1 %v6047_v19  ;;  %v10758_v60 = vunpack.i.h.bf16 %v10756_v17  ;;  %v10757_v4 = vunpack.i.l.bf16 %v10756_v17  ;;  %v10768_v57 = vunpack.i.h.bf16 %v10766_v47  ;;  %v10767_v2 = vunpack.i.l.bf16 %v10766_v47 }
 0xd8b   : > { %6171 = vmatpush1.bf16.msra.mxu0 %v6052_v14  ;;  %6117 = vmatprep.subr.bf16.mxu1 %v6051_v35  ;;  %v6055_v58 = vpack.c.bf16 %v5983_v33, %v5982_v42 }
 0xd8c   : > { %v5981_v28 = vsel %vm5636_vm8, %v10703_v62, %v10758_v60  ;;  %v5980_v23 = vsel %vm5636_vm8, %v10702_v10, %v10757_v4  ;;  %6172 = vmatprep.subr.bf16.mxu0 %v16439_v26  ;;  %v5978_v41 = vsel %vm5636_vm8, %v10757_v4, %v10762_v31  ;;  %v5979_v20 = vsel %vm5636_vm8, %v10758_v60, %v10763_v45  ;;  %v11285_v4 = vld [vmem:[%s16507_s3] ss:$8 sps:$4 sm:$0xff]  }
 0xd8d   : > { %v10771_v44 = vpop.permute.xlu1 %10770  ;;  %v10781_v9 = vpop.permute.xlu0 %10780  ;;  %v6053_v50 = vpack.c.bf16 %v5981_v28, %v5980_v23  ;;  %v5999_v61 = vsel %vm2098_vm4, %v10708_v18, %v10768_v57  ;;  %v5998_v59 = vsel %vm2098_vm4, %v10707_v53, %v10767_v2  ;;  %v6054_v24 = vpack.c.bf16 %v5979_v20, %v5978_v41 }
 0xd8e   : > { %6118 = vmatpush1.bf16.msra.mxu1 %v6050_v38  ;;  %v10773_v51 = vunpack.i.h.bf16 %v10771_v44  ;;  %v10772_v29 = vunpack.i.l.bf16 %v10771_v44  ;;  %v10783_v0 = vunpack.i.h.bf16 %v10781_v9  ;;  %v10782_v11 = vunpack.i.l.bf16 %v10781_v9 }
 0xd8f   : > { %6173 = vmatpush1.bf16.msra.mxu0 %v6055_v58  ;;  %6119 = vmatprep.subr.bf16.mxu1 %v6054_v24  ;;  %v6056_v52 = vpack.c.bf16 %v5999_v61, %v5998_v59 }
 0xd90   : > { %v6001_v46 = vsel %vm2098_vm4, %v10773_v51, %v10708_v18  ;;  %v6000_v22 = vsel %vm2098_vm4, %v10772_v29, %v10707_v53  ;;  %v6019_v49 = vsel %vm5673_vm9, %v10783_v0, %v10713_v7  ;;  %v6018_v27 = vsel %vm5673_vm9, %v10782_v11, %v10712_v39  ;;  %6174 = vmatprep.subr.bf16.mxu0 %v16439_v26 }
 0xd91   : > { %v10776_v13 = vpop.permute.xlu1 %10775  ;;  %v10786_v8 = vpop.permute.xlu0 %10785  ;;  %v5996_v3 = vsel %vm2098_vm4, %v10767_v2, %v10772_v29  ;;  %v5997_v15 = vsel %vm2098_vm4, %v10768_v57, %v10773_v51  ;;  %v6058_v63 = vpack.c.bf16 %v6001_v46, %v6000_v22  ;;  %v6061_v43 = vpack.c.bf16 %v6019_v49, %v6018_v27  ;;  %v6252_v57 = vld [vmem:[%s16510_s28] sm:$0x7]  ;;  %s16514_s28 = smov 124  }
 0xd92   : > { %6120 = vmatpush1.bf16.msra.mxu1 %v6053_v50  ;;  %v10778_v36 = vunpack.i.h.bf16 %v10776_v13  ;;  %v10777_v16 = vunpack.i.l.bf16 %v10776_v13  ;;  %v6057_v40 = vpack.c.bf16 %v5997_v15, %v5996_v3  ;;  %v10788_v45 = vunpack.i.h.bf16 %v10786_v8  ;;  %v6223_v2 = vld [vmem:[%s16511_s1] sm:$0x7]  ;;  %s16515_s1 = sld [smem:[#allocation17_spill]] }
 0xd93   : > { %6175 = vmatpush1.bf16.msra.mxu0 %v6058_v63  ;;  %v10787_v31 = vunpack.i.l.bf16 %v10786_v8  ;;  %v6317_v35 = vsub.f32 1.0, %v6252_v57  ;;  %v15313_v38 = vrot.slane %v6223_v2, %v16491_v55  ;;  %v15316_v58 = vrot.slane %v6252_v57, %v16491_v55 }
 0xd94   : > { %v6017_v48 = vsel %vm5673_vm9, %v10713_v7, %v10778_v36  ;;  %v6016_v19 = vsel %vm5673_vm9, %v10712_v39, %v10777_v16  ;;  %6176 = vmatprep.subr.bf16.mxu0 %v16439_v26  ;;  %v6014_v6 = vsel %vm5673_vm9, %v10777_v16, %v10782_v11  ;;  %v6015_v25 = vsel %vm5673_vm9, %v10778_v36, %v10783_v0  ;;  %v11286_v7 = vld [vmem:[%s16507_s3 + $0x14] ss:$8 sps:$4 sm:$0xff]  }
 0xd95   : > { %6121 = vmatprep.subr.bf16.mxu1 %v6057_v40  ;;  %v10791_v18 = vpop.permute.xlu1 %10790  ;;  %v10796_v53 = vpop.permute.xlu0 %10795  ;;  %v6060_v62 = vpack.c.bf16 %v6015_v25, %v6014_v6  ;;  %v6059_v1 = vpack.c.bf16 %v6017_v48, %v6016_v19  ;;  %v15319_v50 = vrot.slane %v6317_v35, %v16491_v55  ;;  %v15322_v61 = vrot.slane %v6223_v2, %v16489_v12 }
 0xd96   : > { %6122 = vmatpush1.bf16.msra.mxu1 %v6056_v52  ;;  %v10793_v10 = vunpack.i.h.bf16 %v10791_v18  ;;  %v10792_v30 = vunpack.i.l.bf16 %v10791_v18  ;;  %v10798_v5 = vunpack.i.h.bf16 %v10796_v53  ;;  %v10797_v54 = vunpack.i.l.bf16 %v10796_v53 }
 0xd97   : > { %6123 = vmatprep.subr.bf16.mxu1 %v6060_v62  ;;  %6177 = vmatpush1.bf16.msra.mxu0 %v6061_v43  ;;  %v15325_v59 = vrot.slane %v6252_v57, %v16489_v12  ;;  %v15329_v49 = vrot.slane %v6223_v2, %v16490_v56  ;;  %v15332_v3 = vrot.slane %v6317_v35, %v16489_v12  ;;  %vm6837_vm4 = vcmp.lt.s32.totalorder %v11934_v21, 24 }
 0xd98   : > { %v6037_v32 = vsel %vm5692_vm10, %v10793_v10, %v10798_v5  ;;  %v6034_v17 = vsel %vm5692_vm10, %v10797_v54, %v10787_v31  ;;  %v6035_v47 = vsel %vm5692_vm10, %v10798_v5, %v10788_v45  ;;  %v6036_v34 = vsel %vm5692_vm10, %v10792_v30, %v10797_v54  ;;  %6178 = vmatprep.subr.bf16.mxu0 %v16439_v26  ;;  %v11288_v26 = vld [vmem:[%s16507_s3 + $0x10] ss:$8 sps:$4 sm:$0xff]   ;;  %s16314_s3 = smov 107  }
 0xd99   : > { %v6032_v37 = vsel %vm5692_vm10, %v10787_v31, %v10792_v30  ;;  %v6033_v14 = vsel %vm5692_vm10, %v10788_v45, %v10793_v10  ;;  %v6064_v33 = vpack.c.bf16 %v6037_v32, %v6036_v34  ;;  %v6062_v60 = vpack.c.bf16 %v6035_v47, %v6034_v17 }
 0xd9a   : > { %6124 = vmatpush1.bf16.msra.mxu1 %v6059_v1  ;;  %v6063_v42 = vpack.c.bf16 %v6033_v14, %v6032_v37  ;;  %v15335_v15 = vrot.slane %v6317_v35, %v16490_v56  ;;  %v6261_v5 = vrot.slane %v6252_v57, %v16490_v56 }
 0xd9b   : > { %6179 = vmatpush1.bf16.msra.mxu0 %v6064_v33 }
 0xd9c   : > { %6125 = vmatprep.subr.bf16.mxu1 %v6063_v42 }
 0xd9e   : > { %6126 = vmatpush1.bf16.msra.mxu1 %v6062_v60  ;;  %6195 = vmatmul.mubr.bf16.vlgmr.msra.gmra.mrb[36].mxu0 %v11285_v4 }
 0xd9f   : > { %9546 = vmatprep.mubr.msk.bf16.mxu0 %vm5745_vm5, %v11286_v7 }
 0xda1   : > { %6142 = vmatmul.mubr.bf16.vlgmr.msra.gmra.mrb[32].mxu1 %v11285_v4 }
 0xda2   : > { %9544 = vmatprep.mubr.msk.bf16.mxu1 %vm5745_vm5, %v11286_v7 }
 0xda6   : > { %6203 = vmatmul.mubr.bf16.gmra.mrb[40].mxu0 %v11288_v26  ;;  %v6068_v39 = vpop.permute.xlu1 %6067  ;;  %v6073_v9 = vpop.permute.xlu0 %6072 }
 0xda9   : > { %6152 = vmatmul.mubr.bf16.gmra.mrb[36].mxu1 %v11288_v26 }
 0xdaa   : > { %v6078_v48 = vpop.permute.xlu1 %6077  ;;  %v6083_v10 = vpop.permute.xlu0 %6082 }
 0xe71   : > { %v6196_v28 = vpop.f32.mrb[36].mxu0 }
 0xe72   : > { %v6197_v23 = vadd.f32 %v6196_v28, %v6068_v39  ;;  %v6198_v44 = vpop.f32.mrb[37].mxu0 }
 0xe73   : > { %v6199_v41 = vpop.f32.mrb[38].mxu0 }
 0xe74   : > { %v6213_v20 = vmax.f32 %v6197_v23, 0.0  ;;  %v6143_v51 = vpop.f32.mrb[32].mxu1  ;;  %v6200_v29 = vadd.f32 %v6199_v41, %v6073_v9  ;;  %v6201_v0 = vpop.f32.mrb[39].mxu0 }
 0xe75   : > { %v6144_v11 = vadd.f32 %v6143_v51, %v6068_v39  ;;  %v6145_v24 = vpop.f32.mrb[33].mxu1 }
 0xe76   : > { %v6242_v46 = vmul.f32 %v15313_v38, %v6213_v20  ;;  %v6146_v22 = vadd.f32 %v6145_v24, %v6068_v39  ;;  %v6216_v27 = vmax.f32 %v6200_v29, 0.0  ;;  %v6147_v13 = vpop.f32.mrb[34].mxu1 }
 0xe77   : > { %v6211_v8 = vmax.f32 %v6144_v11, 0.0  ;;  %v6148_v63 = vadd.f32 %v6147_v13, %v6073_v9  ;;  %v6149_v36 = vpop.f32.mrb[35].mxu1 }
 0xe78   : > { %v6271_v16 = vmul.f32 %v15316_v58, %v6242_v46  ;;  %v15339_v40 = vmul.f32 %v15319_v50, %v6242_v46  ;;  %v6212_v52 = vmax.f32 %v6146_v22, 0.0  ;;  %v6245_v43 = vmul.f32 %v15313_v38, %v6216_v27 }
 0xe79   : > { %v6240_v19 = vmul.f32 %v15322_v61, %v6211_v8  ;;  %v6214_v6 = vmax.f32 %v6148_v63, 0.0  ;;  %v6150_v25 = vadd.f32 %v6149_v36, %v6073_v9  ;;  %v6204_v45 = vpop.f32.mrb[40].mxu0 }
 0xe7a   : > { %v6241_v31 = vmul.f32 %v15329_v49, %v6212_v52  ;;  %v6274_v18 = vmul.f32 %v15316_v58, %v6245_v43  ;;  %v15346_v53 = vmul.f32 %v15319_v50, %v6245_v43  ;;  %v6205_v62 = vadd.f32 %v6204_v45, %v6078_v48  ;;  %v6206_v1 = vpop.f32.mrb[41].mxu0  ;;  %6297 = vrot.lane.b32.xlu1 %v6271_v16, %s16503_s18 }
 0xe7b   : > { %v15350_v30 = vmul.f32 %v15332_v3, %v6240_v19  ;;  %v6243_v54 = vmul.f32 %v15322_v61, %v6214_v6  ;;  %v6215_v32 = vmax.f32 %v6150_v25, 0.0  ;;  %v6207_v17 = vpop.f32.mrb[42].mxu0  ;;  %v6269_v47 = vmul.f32 %v15325_v59, %v6240_v19 }
 0xe7c   : > { %v15356_v34 = vmul.f32 %v15335_v15, %v6241_v31  ;;  %v6219_v37 = vmax.f32 %v6205_v62, 0.0  ;;  %v6153_v14 = vpop.f32.mrb[36].mxu1  ;;  %v6208_v33 = vadd.f32 %v6207_v17, %v6083_v10  ;;  %6299 = vrot.lane.b32.xlu0 %v6274_v18, %s16503_s18  ;;  %v6209_v42 = vpop.f32.mrb[43].mxu0  ;;  %v6270_v20 = vmul.f32 %v6261_v5, %v6241_v31 }
 0xe7d   : > { %v15360_v60 = vmul.f32 %v15332_v3, %v6243_v54  ;;  %v6244_v4 = vmul.f32 %v15329_v49, %v6215_v32  ;;  %v6154_v7 = vadd.f32 %v6153_v14, %v6078_v48  ;;  %v6155_v26 = vpop.f32.mrb[37].mxu1  ;;  %v6272_v57 = vmul.f32 %v15325_v59, %v6243_v54 }
 0xe7e   : > { %v6248_v2 = vmul.f32 %v15313_v38, %v6219_v37  ;;  %v6156_v35 = vadd.f32 %v6155_v26, %v6078_v48  ;;  %v6222_v39 = vmax.f32 %v6208_v33, 0.0  ;;  %v6157_v28 = vpop.f32.mrb[38].mxu1  ;;  %6281 = vrot.lane.b32.xlu1 %v6269_v47, %s16503_s18 }
 0xe7f   : > { %v15367_v23 = vmul.f32 %v15335_v15, %v6244_v4  ;;  %v6217_v44 = vmax.f32 %v6154_v7, 0.0  ;;  %v6158_v9 = vadd.f32 %v6157_v28, %v6083_v10  ;;  %v6159_v41 = vpop.f32.mrb[39].mxu1  ;;  %v6273_v22 = vmul.f32 %v6261_v5, %v6244_v4 }
 0xe80   : > { %v15370_v51 = vmul.f32 %v15319_v50, %v6248_v2  ;;  %v6218_v29 = vmax.f32 %v6156_v35, 0.0  ;;  %v6251_v0 = vmul.f32 %v15313_v38, %v6222_v39  ;;  %6283 = vrot.lane.b32.xlu0 %v6272_v57, %s16503_s18  ;;  %v6160_v46 = vadd.f32 %v6159_v41, %v6083_v10 }
 0xe81   : > { %v6246_v11 = vmul.f32 %v15322_v61, %v6217_v44  ;;  %v6220_v24 = vmax.f32 %v6158_v9, 0.0  ;;  %v6277_v6 = vmul.f32 %v15316_v58, %v6248_v2 }
 0xe82   : > { %v6247_v27 = vmul.f32 %v15329_v49, %v6218_v29  ;;  %v15377_v13 = vmul.f32 %v15319_v50, %v6251_v0  ;;  %6289 = vrot.lane.b32.xlu1 %v6270_v20, %s16503_s18  ;;  %v6221_v38 = vmax.f32 %v6160_v46, 0.0 }
 0xe83   : > { %v15381_v8 = vmul.f32 %v15332_v3, %v6246_v11  ;;  %v6249_v63 = vmul.f32 %v15322_v61, %v6220_v24  ;;  %v6275_v36 = vmul.f32 %v15325_v59, %v6246_v11 }
 0xe84   : > { %v15386_v16 = vmul.f32 %v15335_v15, %v6247_v27  ;;  %6291 = vrot.lane.b32.xlu0 %v6273_v22, %s16503_s18  ;;  %v6250_v50 = vmul.f32 %v15329_v49, %v6221_v38  ;;  %v6276_v48 = vmul.f32 %v6261_v5, %v6247_v27 }
 0xe85   : > { %v15390_v52 = vmul.f32 %v15332_v3, %v6249_v63  ;;  %v6278_v43 = vmul.f32 %v15325_v59, %v6249_v63  ;;  %v6280_v3 = vmul.f32 %v15316_v58, %v6251_v0  ;;  %v6358_v59 = vld [vmem:[%s16512_s2] sm:$0x7]  ;;  %s11445_s2 = smov 102  }
 0xe86   : > { %6285 = vrot.lane.b32.xlu1 %v6275_v36, %s16503_s18  ;;  %v15396_v61 = vmul.f32 %v15335_v15, %v6250_v50  ;;  %v6279_v19 = vmul.f32 %v6261_v5, %v6250_v50  ;;  %v6423_v15 = vsub.f32 1.0, %v6358_v59  ;;  %v15407_v45 = vrot.slane %v6358_v59, %v16491_v55 }
 0xe87   : > { %v6363_v32 = vrot.slane %v6358_v59, %v16489_v12  ;;  %v6367_v35 = vrot.slane %v6358_v59, %v16490_v56 }
 0xe88   : > { %6287 = vrot.lane.b32.xlu0 %v6278_v43, %s16503_s18  ;;  %v15410_v18 = vrot.slane %v6423_v15, %v16491_v55  ;;  %v6428_v14 = vrot.slane %v6423_v15, %v16489_v12  ;;  %v6432_v33 = vrot.slane %v6423_v15, %v16490_v56 }
 0xe8a   : > { %6293 = vrot.lane.b32.xlu1 %v6276_v48, %s16503_s18 }
 0xe8c   : > { %6295 = vrot.lane.b32.xlu0 %v6279_v19, %s16503_s18 }
 0xe8e   : > { %6301 = vrot.lane.b32.xlu1 %v6277_v6, %s16503_s18 }
 0xe90   : > { %6303 = vrot.lane.b32.xlu0 %v6280_v3, %s16503_s18 }
 0xeec   : > { %v6298_v49 = vpop.permute.xlu1 %6297 }
 0xeee   : > { %v6300_v25 = vpop.permute.xlu0 %6299 }
 0xef0   : > { %v6282_v31 = vpop.permute.xlu1 %6281 }
 0xef1   : > { %v6313_v62 = vsel %vm1974_vm0, %v6298_v49, %v6282_v31 }
 0xef2   : > { %v6348_v58 = vadd.f32 %v15339_v40, %v6313_v62  ;;  %v6284_v1 = vpop.permute.xlu0 %6283 }
 0xef3   : > { %v6314_v10 = vsel %vm1974_vm0, %v6300_v25, %v6284_v1 }
 0xef4   : > { %v6377_v5 = vmul.f32 %v15407_v45, %v6348_v58  ;;  %v6351_v54 = vadd.f32 %v15346_v53, %v6314_v10  ;;  %v6290_v17 = vpop.permute.xlu1 %6289  ;;  %v15421_v47 = vmul.f32 %v15410_v18, %v6348_v58 }
 0xef5   : > { %v6305_v37 = vsel %vm1974_vm0, %v6290_v17, %v6298_v49  ;;  %v6309_v40 = vsel %vm1974_vm0, %v6282_v31, %v6290_v17 }
 0xef6   : > { %v6380_v42 = vmul.f32 %v15407_v45, %v6351_v54  ;;  %v6346_v53 = vadd.f32 %v15350_v30, %v6309_v40  ;;  %v6347_v4 = vadd.f32 %v15356_v34, %v6305_v37  ;;  %v6292_v7 = vpop.permute.xlu0 %6291  ;;  %6403 = vrot.lane.b32.xlu1 %v6377_v5, %s16302_s22  ;;  %v15434_v26 = vmul.f32 %v15410_v18, %v6351_v54 }
 0xef7   : > { %v6306_v57 = vsel %vm1974_vm0, %v6292_v7, %v6300_v25  ;;  %v6310_v2 = vsel %vm1974_vm0, %v6284_v1, %v6292_v7 }
 0xef8   : > { %v6375_v39 = vmul.f32 %v6363_v32, %v6346_v53  ;;  %v6349_v28 = vadd.f32 %v15360_v60, %v6310_v2  ;;  %v6350_v30 = vadd.f32 %v15367_v23, %v6306_v57  ;;  %6405 = vrot.lane.b32.xlu0 %v6380_v42, %s16302_s22  ;;  %v6286_v34 = vpop.permute.xlu1 %6285  ;;  %v15444_v44 = vmul.f32 %v6428_v14, %v6346_v53 }
 0xef9   : > { %v15446_v9 = vmul.f32 %v6432_v33, %v6347_v4  ;;  %v6376_v11 = vmul.f32 %v6367_v35, %v6347_v4 }
 0xefa   : > { %v6378_v41 = vmul.f32 %v6363_v32, %v6349_v28  ;;  %v6288_v20 = vpop.permute.xlu0 %6287  ;;  %6387 = vrot.lane.b32.xlu1 %v6375_v39, %s16302_s22  ;;  %v15449_v29 = vmul.f32 %v6428_v14, %v6349_v28  ;;  %v15451_v0 = vmul.f32 %v6432_v33, %v6350_v30  ;;  %v6379_v24 = vmul.f32 %v6367_v35, %v6350_v30 }
 0xefc   : > { %6389 = vrot.lane.b32.xlu0 %v6378_v41, %s16302_s22  ;;  %v6294_v60 = vpop.permute.xlu1 %6293 }
 0xefd   : > { %v6311_v23 = vsel %vm1974_vm0, %v6286_v34, %v6294_v60 }
 0xefe   : > { %v6352_v46 = vadd.f32 %v15381_v8, %v6311_v23  ;;  %v6296_v22 = vpop.permute.xlu0 %6295  ;;  %6395 = vrot.lane.b32.xlu1 %v6376_v11, %s16302_s22 }
 0xeff   : > { %v6312_v27 = vsel %vm1974_vm0, %v6288_v20, %v6296_v22 }
 0xf00   : > { %v6381_v63 = vmul.f32 %v6363_v32, %v6352_v46  ;;  %v6355_v38 = vadd.f32 %v15390_v52, %v6312_v27  ;;  %6397 = vrot.lane.b32.xlu0 %v6379_v24, %s16302_s22  ;;  %v6302_v36 = vpop.permute.xlu1 %6301  ;;  %v15462_v50 = vmul.f32 %v6428_v14, %v6352_v46 }
 0xf01   : > { %v6307_v43 = vsel %vm1974_vm0, %v6294_v60, %v6302_v36  ;;  %v6315_v8 = vsel %vm1974_vm0, %v6302_v36, %v6286_v34 }
 0xf02   : > { %v6384_v48 = vmul.f32 %v6363_v32, %v6355_v38  ;;  %v6353_v19 = vadd.f32 %v15386_v16, %v6307_v43  ;;  %v6354_v6 = vadd.f32 %v15370_v51, %v6315_v8  ;;  %v6304_v3 = vpop.permute.xlu0 %6303  ;;  %6391 = vrot.lane.b32.xlu1 %v6381_v63, %s16302_s22  ;;  %v15471_v52 = vmul.f32 %v6428_v14, %v6355_v38 }
 0xf03   : > { %v6308_v59 = vsel %vm1974_vm0, %v6296_v22, %v6304_v3  ;;  %v6316_v49 = vsel %vm1974_vm0, %v6304_v3, %v6288_v20  ;;  %vm6623_vm0 = vcmp.lt.s32.totalorder %v11934_v21, 102 }
 0xf04   : > { %v6382_v15 = vmul.f32 %v6367_v35, %v6353_v19  ;;  %v6356_v25 = vadd.f32 %v15396_v61, %v6308_v59  ;;  %v6357_v31 = vadd.f32 %v15377_v13, %v6316_v49  ;;  %6393 = vrot.lane.b32.xlu0 %v6384_v48, %s16302_s22  ;;  %v15480_v51 = vmul.f32 %v6432_v33, %v6353_v19  ;;  %v6464_v61 = vld [vmem:[%s16513_s10] sm:$0x7]  ;;  %s16516_s10 = sld [smem:[#allocation18_spill]] }
 0xf05   : > { %v15483_v16 = vmul.f32 %v15410_v18, %v6354_v6  ;;  %v6383_v10 = vmul.f32 %v15407_v45, %v6354_v6  ;;  %v6529_v54 = vsub.f32 1.0, %v6464_v61  ;;  %v6469_v42 = vrot.slane %v6464_v61, %v16489_v12 }
 0xf06   : > { %v6385_v62 = vmul.f32 %v6367_v35, %v6356_v25  ;;  %6399 = vrot.lane.b32.xlu1 %v6382_v15, %s16302_s22  ;;  %v15486_v58 = vmul.f32 %v6432_v33, %v6356_v25  ;;  %v15489_v1 = vmul.f32 %v15410_v18, %v6357_v31  ;;  %v6386_v13 = vmul.f32 %v15407_v45, %v6357_v31 }
 0xf07   : > { %v15498_v37 = vrot.slane %v6529_v54, %v16491_v55  ;;  %v6538_v2 = vrot.slane %v6529_v54, %v16490_v56  ;;  %v6473_v41 = vrot.slane %v6464_v61, %v16490_v56  ;;  %v6477_v63 = vrot.slane %v6464_v61, %v16491_v55 }
 0xf08   : > { %6401 = vrot.lane.b32.xlu0 %v6385_v62, %s16302_s22 }
 0xf0a   : > { %6407 = vrot.lane.b32.xlu1 %v6383_v10, %s16302_s22 }
 0xf0c   : > { %6409 = vrot.lane.b32.xlu0 %v6386_v13, %s16302_s22  ;;  %s16519_s22 = sld [smem:[#allocation22_spill]] }
 0xf68   : > { %v6404_v5 = vpop.permute.xlu1 %6403 }
 0xf6a   : > { %v6406_v32 = vpop.permute.xlu0 %6405 }
 0xf6c   : > { %v6388_v17 = vpop.permute.xlu1 %6387 }
 0xf6d   : > { %v6419_v18 = vsel %vm2005_vm1, %v6404_v5, %v6388_v17 }
 0xf6e   : > { %v6454_v40 = vadd.f32 %v15421_v47, %v6419_v18  ;;  %v6390_v14 = vpop.permute.xlu0 %6389  ;;  %v6534_v47 = vrot.slane %v6529_v54, %v16489_v12 }
 0xf6f   : > { %v6420_v45 = vsel %vm2005_vm1, %v6406_v32, %v6390_v14 }
 0xf70   : > { %v6457_v33 = vadd.f32 %v15434_v26, %v6420_v45  ;;  %v6396_v53 = vpop.permute.xlu1 %6395  ;;  %v15508_v4 = vmul.f32 %v15498_v37, %v6454_v40  ;;  %v6483_v19 = vmul.f32 %v6477_v63, %v6454_v40  ;;  %v6570_v45 = vld [vmem:[%s16515_s1] sm:$0x7]  ;;  %s11446_s1 = smov 76  }
 0xf71   : > { %v6411_v7 = vsel %vm2005_vm1, %v6396_v53, %v6404_v5  ;;  %v6415_v57 = vsel %vm2005_vm1, %v6388_v17, %v6396_v53 }
 0xf72   : > { %v6452_v35 = vadd.f32 %v15444_v44, %v6415_v57  ;;  %v6453_v26 = vadd.f32 %v15446_v9, %v6411_v7  ;;  %v6398_v39 = vpop.permute.xlu0 %6397  ;;  %v15523_v34 = vmul.f32 %v15498_v37, %v6457_v33  ;;  %v6486_v15 = vmul.f32 %v6477_v63, %v6457_v33 }
 0xf73   : > { %v6412_v28 = vsel %vm2005_vm1, %v6398_v39, %v6406_v32  ;;  %v6416_v30 = vsel %vm2005_vm1, %v6390_v14, %v6398_v39 }
 0xf74   : > { %v6481_v20 = vmul.f32 %v6469_v42, %v6452_v35  ;;  %v6455_v11 = vadd.f32 %v15449_v29, %v6416_v30  ;;  %v6456_v60 = vadd.f32 %v15451_v0, %v6412_v28  ;;  %v6392_v44 = vpop.permute.xlu1 %6391  ;;  %v6546_v23 = vmul.f32 %v6534_v47, %v6452_v35 }
 0xf75   : > { %v15528_v9 = vmul.f32 %v6538_v2, %v6453_v26  ;;  %v6482_v38 = vmul.f32 %v6473_v41, %v6453_v26  ;;  %v6579_v30 = vrot.slane %v6570_v45, %v16490_v56 }
 0xf76   : > { %v6484_v24 = vmul.f32 %v6469_v42, %v6455_v11  ;;  %v6394_v46 = vpop.permute.xlu0 %6393  ;;  %6493 = vrot.lane.b32.xlu1 %v6481_v20, %s16514_s28  ;;  %v6549_v22 = vmul.f32 %v6534_v47, %v6455_v11  ;;  %v15531_v27 = vmul.f32 %v6538_v2, %v6456_v60  ;;  %v6485_v0 = vmul.f32 %v6473_v41, %v6456_v60 }
 0xf78   : > { %6495 = vrot.lane.b32.xlu0 %v6484_v24, %s16514_s28  ;;  %v6400_v36 = vpop.permute.xlu1 %6399 }
 0xf79   : > { %v6417_v29 = vsel %vm2005_vm1, %v6392_v44, %v6400_v36 }
 0xf7a   : > { %v6458_v43 = vadd.f32 %v15462_v50, %v6417_v29  ;;  %v6402_v8 = vpop.permute.xlu0 %6401  ;;  %6501 = vrot.lane.b32.xlu1 %v6482_v38, %s16514_s28 }
 0xf7b   : > { %v6418_v48 = vsel %vm2005_vm1, %v6394_v46, %v6402_v8 }
 0xf7c   : > { %v6461_v6 = vadd.f32 %v15471_v52, %v6418_v48  ;;  %6503 = vrot.lane.b32.xlu0 %v6485_v0, %s16514_s28  ;;  %v6408_v3 = vpop.permute.xlu1 %6407  ;;  %v15543_v59 = vmul.f32 %v6534_v47, %v6458_v43  ;;  %v6487_v61 = vmul.f32 %v6469_v42, %v6458_v43  ;;  %v6583_v0 = vrot.slane %v6570_v45, %v16491_v55 }
 0xf7d   : > { %v6413_v49 = vsel %vm2005_vm1, %v6400_v36, %v6408_v3  ;;  %v6421_v50 = vsel %vm2005_vm1, %v6408_v3, %v6392_v44 }
 0xf7e   : > { %v6459_v25 = vadd.f32 %v15480_v51, %v6413_v49  ;;  %v6460_v31 = vadd.f32 %v15483_v16, %v6421_v50  ;;  %v6410_v62 = vpop.permute.xlu0 %6409  ;;  %6509 = vrot.lane.b32.xlu1 %v6483_v19, %s16514_s28  ;;  %v15552_v52 = vmul.f32 %v6534_v47, %v6461_v6  ;;  %v6490_v32 = vmul.f32 %v6469_v42, %v6461_v6 }
 0xf7f   : > { %v6414_v10 = vsel %vm2005_vm1, %v6402_v8, %v6410_v62  ;;  %v6422_v13 = vsel %vm2005_vm1, %v6410_v62, %v6394_v46  ;;  %v6636_v42 = vsub.f32 1.0, %v6570_v45  ;;  %vm6730_vm1 = vcmp.lt.s32.totalorder %v11934_v21, 76 }
 0xf80   : > { %v6462_v5 = vadd.f32 %v15486_v58, %v6414_v10  ;;  %v6463_v54 = vadd.f32 %v15489_v1, %v6422_v13  ;;  %6511 = vrot.lane.b32.xlu0 %v6486_v15, %s16514_s28  ;;  %v15561_v51 = vmul.f32 %v6538_v2, %v6459_v25  ;;  %v15564_v16 = vmul.f32 %v15498_v37, %v6460_v31 }
 0xf81   : > { %v6488_v40 = vmul.f32 %v6473_v41, %v6459_v25  ;;  %v6489_v1 = vmul.f32 %v6477_v63, %v6460_v31  ;;  %v6641_v57 = vrot.slane %v6636_v42, %v16489_v12  ;;  %v6645_v44 = vrot.slane %v6636_v42, %v16490_v56 }
 0xf82   : > { %6497 = vrot.lane.b32.xlu1 %v6487_v61, %s16514_s28  ;;  %v15567_v17 = vmul.f32 %v6538_v2, %v6462_v5  ;;  %v15570_v18 = vmul.f32 %v15498_v37, %v6463_v54  ;;  %v6491_v58 = vmul.f32 %v6473_v41, %v6462_v5  ;;  %v6492_v14 = vmul.f32 %v6477_v63, %v6463_v54 }
 0xf83   : > { %v6575_v37 = vrot.slane %v6570_v45, %v16489_v12 }
 0xf84   : > { %6499 = vrot.lane.b32.xlu0 %v6490_v32, %s16514_s28 }
 0xf86   : > { %6505 = vrot.lane.b32.xlu1 %v6488_v40, %s16514_s28 }
 0xf88   : > { %6507 = vrot.lane.b32.xlu0 %v6491_v58, %s16514_s28 }
 0xf8a   : > { %6513 = vrot.lane.b32.xlu1 %v6489_v1, %s16514_s28 }
 0xf8c   : > { %6515 = vrot.lane.b32.xlu0 %v6492_v14, %s16514_s28 }
 0xfe8   : > { %v6494_v33 = vpop.permute.xlu1 %6493 }
 0xfea   : > { %v6496_v53 = vpop.permute.xlu0 %6495 }
 0xfec   : > { %v6502_v7 = vpop.permute.xlu1 %6501 }
 0xfed   : > { %v6521_v47 = vsel %vm4418_vm11, %v6494_v33, %v6502_v7 }
 0xfee   : > { %v6558_v2 = vadd.f32 %v6546_v23, %v6521_v47  ;;  %v6504_v35 = vpop.permute.xlu0 %6503  ;;  %v6649_v23 = vrot.slane %v6636_v42, %v16491_v55 }
 0xfef   : > { %v6522_v26 = vsel %vm4418_vm11, %v6496_v53, %v6504_v35 }
 0xff0   : > { %v6587_v39 = vmul.f32 %v6575_v37, %v6558_v2  ;;  %v6561_v28 = vadd.f32 %v6549_v22, %v6522_v26  ;;  %v6510_v41 = vpop.permute.xlu1 %6509  ;;  %v15585_v20 = vmul.f32 %v6641_v57, %v6558_v2 }
 0xff1   : > { %v6517_v11 = vsel %vm4418_vm11, %v6502_v7, %v6510_v41  ;;  %v6525_v60 = vsel %vm4418_vm11, %v6510_v41, %v6494_v33 }
 0xff2   : > { %v6590_v24 = vmul.f32 %v6575_v37, %v6561_v28  ;;  %v6559_v46 = vadd.f32 %v15528_v9, %v6517_v11  ;;  %v6560_v22 = vadd.f32 %v15508_v4, %v6525_v60  ;;  %v6512_v63 = vpop.permute.xlu0 %6511  ;;  %6599 = vrot.lane.b32.xlu1 %v6587_v39, %s11445_s2  ;;  %v15596_v38 = vmul.f32 %v6641_v57, %v6561_v28 }
 0xff3   : > { %v6518_v36 = vsel %vm4418_vm11, %v6504_v35, %v6512_v63  ;;  %v6526_v29 = vsel %vm4418_vm11, %v6512_v63, %v6496_v53 }
 0xff4   : > { %v6588_v43 = vmul.f32 %v6579_v30, %v6559_v46  ;;  %v6562_v8 = vadd.f32 %v15531_v27, %v6518_v36  ;;  %v6563_v9 = vadd.f32 %v15523_v34, %v6526_v29  ;;  %6601 = vrot.lane.b32.xlu0 %v6590_v24, %s11445_s2  ;;  %v6498_v4 = vpop.permute.xlu1 %6497  ;;  %v15606_v48 = vmul.f32 %v6645_v44, %v6559_v46 }
 0xff5   : > { %v15608_v19 = vmul.f32 %v6649_v23, %v6560_v22  ;;  %v6589_v15 = vmul.f32 %v6583_v0, %v6560_v22 }
 0xff6   : > { %v6591_v6 = vmul.f32 %v6579_v30, %v6562_v8  ;;  %v6500_v3 = vpop.permute.xlu0 %6499  ;;  %6607 = vrot.lane.b32.xlu1 %v6588_v43, %s11445_s2  ;;  %v15611_v49 = vmul.f32 %v6645_v44, %v6562_v8  ;;  %v15613_v50 = vmul.f32 %v6649_v23, %v6563_v9  ;;  %v6592_v25 = vmul.f32 %v6583_v0, %v6563_v9 }
 0xff8   : > { %6609 = vrot.lane.b32.xlu0 %v6591_v6, %s11445_s2  ;;  %v6506_v27 = vpop.permute.xlu1 %6505 }
 0xff9   : > { %v6523_v34 = vsel %vm4418_vm11, %v6498_v4, %v6506_v27 }
 0xffa   : > { %v6564_v31 = vadd.f32 %v15543_v59, %v6523_v34  ;;  %v6508_v62 = vpop.permute.xlu0 %6507  ;;  %6615 = vrot.lane.b32.xlu1 %v6589_v15, %s11445_s2 }
 0xffb   : > { %v6524_v10 = vsel %vm4418_vm11, %v6500_v3, %v6508_v62 }
 0xffc   : > { %v6593_v13 = vmul.f32 %v6575_v37, %v6564_v31  ;;  %v6567_v61 = vadd.f32 %v15552_v52, %v6524_v10  ;;  %6617 = vrot.lane.b32.xlu0 %v6592_v25, %s11445_s2  ;;  %v6514_v5 = vpop.permute.xlu1 %6513  ;;  %v15624_v54 = vmul.f32 %v6641_v57, %v6564_v31 }
 0xffd   : > { %v6519_v32 = vsel %vm4418_vm11, %v6506_v27, %v6514_v5  ;;  %v6527_v59 = vsel %vm4418_vm11, %v6514_v5, %v6498_v4 }
 0xffe   : > { %v6596_v40 = vmul.f32 %v6575_v37, %v6567_v61  ;;  %v6565_v58 = vadd.f32 %v15561_v51, %v6519_v32  ;;  %v6566_v1 = vadd.f32 %v15564_v16, %v6527_v59  ;;  %v6516_v14 = vpop.permute.xlu0 %6515  ;;  %6603 = vrot.lane.b32.xlu1 %v6593_v13, %s11445_s2  ;;  %v15633_v52 = vmul.f32 %v6641_v57, %v6567_v61 }
 0xfff   : > { %v6520_v45 = vsel %vm4418_vm11, %v6508_v62, %v6516_v14  ;;  %v6528_v33 = vsel %vm4418_vm11, %v6516_v14, %v6500_v3  ;;  %vm6890_vm11 = vcmp.lt.s32.totalorder %v11934_v21, 11 }
0x1000   : > { %v6594_v42 = vmul.f32 %v6579_v30, %v6565_v58  ;;  %v6568_v53 = vadd.f32 %v15567_v17, %v6520_v45  ;;  %v6569_v37 = vadd.f32 %v15570_v18, %v6528_v33  ;;  %6605 = vrot.lane.b32.xlu0 %v6596_v40, %s11445_s2  ;;  %v15642_v51 = vmul.f32 %v6645_v44, %v6565_v58  ;;  %v6677_v17 = vld [vmem:[%s16516_s10] sm:$0x7]  ;;  %s11447_s10 = smov 24  }
0x1001   : > { %v15644_v16 = vmul.f32 %v6649_v23, %v6566_v1  ;;  %v6595_v2 = vmul.f32 %v6583_v0, %v6566_v1  ;;  %v6743_v26 = vsub.f32 1.0, %v6677_v17  ;;  %v6682_v28 = vrot.slane %v6677_v17, %v16489_v12 }
0x1002   : > { %v6597_v7 = vmul.f32 %v6579_v30, %v6568_v53  ;;  %6611 = vrot.lane.b32.xlu1 %v6594_v42, %s11445_s2  ;;  %v15647_v57 = vmul.f32 %v6645_v44, %v6568_v53  ;;  %v15649_v47 = vmul.f32 %v6649_v23, %v6569_v37  ;;  %v6598_v35 = vmul.f32 %v6583_v0, %v6569_v37 }
0x1003   : > { %v6748_v41 = vrot.slane %v6743_v26, %v16489_v12  ;;  %v6686_v22 = vrot.slane %v6677_v17, %v16490_v56  ;;  %v6756_v43 = vrot.slane %v6743_v26, %v16491_v55  ;;  %v6690_v27 = vrot.slane %v6677_v17, %v16491_v55 }
0x1004   : > { %6613 = vrot.lane.b32.xlu0 %v6597_v7, %s11445_s2 }
0x1006   : > { %6619 = vrot.lane.b32.xlu1 %v6595_v2, %s11445_s2 }
0x1008   : > { %6621 = vrot.lane.b32.xlu0 %v6598_v35, %s11445_s2  ;;  %s16517_s2 = sld [smem:[#allocation19_spill]] }
0x1064   : > { %v6600_v18 = vpop.permute.xlu1 %6599 }
0x1066   : > { %v6602_v39 = vpop.permute.xlu0 %6601 }
0x1068   : > { %v6608_v30 = vpop.permute.xlu1 %6607 }
0x1069   : > { %v6628_v11 = vsel %vm6623_vm0, %v6600_v18, %v6608_v30 }
0x106a   : > { %v6665_v60 = vadd.f32 %v15585_v20, %v6628_v11  ;;  %v6610_v44 = vpop.permute.xlu0 %6609  ;;  %v6752_v20 = vrot.slane %v6743_v26, %v16490_v56 }
0x106b   : > { %v6629_v23 = vsel %vm6623_vm0, %v6602_v39, %v6610_v44 }
0x106c   : > { %v6694_v24 = vmul.f32 %v6682_v28, %v6665_v60  ;;  %v6668_v46 = vadd.f32 %v15596_v38, %v6629_v23  ;;  %v6616_v63 = vpop.permute.xlu1 %6615  ;;  %v15665_v36 = vmul.f32 %v6748_v41, %v6665_v60 }
0x106d   : > { %v6624_v29 = vsel %vm6623_vm0, %v6608_v30, %v6616_v63  ;;  %v6632_v0 = vsel %vm6623_vm0, %v6616_v63, %v6600_v18 }
0x106e   : > { %v6697_v8 = vmul.f32 %v6682_v28, %v6668_v46  ;;  %v6666_v9 = vadd.f32 %v15606_v48, %v6624_v29  ;;  %v6667_v38 = vadd.f32 %v15608_v19, %v6632_v0  ;;  %v6618_v4 = vpop.permute.xlu0 %6617  ;;  %6706 = vrot.lane.b32.xlu1 %v6694_v24, %s11446_s1  ;;  %v15676_v6 = vmul.f32 %v6748_v41, %v6668_v46 }
0x106f   : > { %v6625_v3 = vsel %vm6623_vm0, %v6610_v44, %v6618_v4  ;;  %v6633_v15 = vsel %vm6623_vm0, %v6618_v4, %v6602_v39 }
0x1070   : > { %v6695_v34 = vmul.f32 %v6686_v22, %v6666_v9  ;;  %v6669_v25 = vadd.f32 %v15611_v49, %v6625_v3  ;;  %v6670_v48 = vadd.f32 %v15613_v50, %v6633_v15  ;;  %6708 = vrot.lane.b32.xlu0 %v6697_v8, %s11446_s1  ;;  %v6604_v19 = vpop.permute.xlu1 %6603  ;;  %v15686_v31 = vmul.f32 %v6752_v20, %v6666_v9 }
0x1071   : > { %v15688_v62 = vmul.f32 %v6756_v43, %v6667_v38  ;;  %v6696_v32 = vmul.f32 %v6690_v27, %v6667_v38 }
0x1072   : > { %v6698_v10 = vmul.f32 %v6686_v22, %v6669_v25  ;;  %v6606_v13 = vpop.permute.xlu0 %6605  ;;  %6714 = vrot.lane.b32.xlu1 %v6695_v34, %s11446_s1  ;;  %v15691_v61 = vmul.f32 %v6752_v20, %v6669_v25  ;;  %v15693_v5 = vmul.f32 %v6756_v43, %v6670_v48  ;;  %v6699_v59 = vmul.f32 %v6690_v27, %v6670_v48 }
0x1074   : > { %6716 = vrot.lane.b32.xlu0 %v6698_v10, %s11446_s1  ;;  %v6612_v49 = vpop.permute.xlu1 %6611 }
0x1075   : > { %v6630_v50 = vsel %vm6623_vm0, %v6604_v19, %v6612_v49 }
0x1076   : > { %v6671_v40 = vadd.f32 %v15624_v54, %v6630_v50  ;;  %v6614_v58 = vpop.permute.xlu0 %6613  ;;  %6722 = vrot.lane.b32.xlu1 %v6696_v32, %s11446_s1 }
0x1077   : > { %v6631_v1 = vsel %vm6623_vm0, %v6606_v13, %v6614_v58 }
0x1078   : > { %v6700_v14 = vmul.f32 %v6682_v28, %v6671_v40  ;;  %v6674_v45 = vadd.f32 %v15633_v52, %v6631_v1  ;;  %6724 = vrot.lane.b32.xlu0 %v6699_v59, %s11446_s1  ;;  %v6620_v33 = vpop.permute.xlu1 %6619  ;;  %v15704_v42 = vmul.f32 %v6748_v41, %v6671_v40 }
0x1079   : > { %v6626_v53 = vsel %vm6623_vm0, %v6612_v49, %v6620_v33  ;;  %v6634_v54 = vsel %vm6623_vm0, %v6620_v33, %v6604_v19 }
0x107a   : > { %v6703_v37 = vmul.f32 %v6682_v28, %v6674_v45  ;;  %v6672_v7 = vadd.f32 %v15642_v51, %v6626_v53  ;;  %v6673_v2 = vadd.f32 %v15644_v16, %v6634_v54  ;;  %v6622_v35 = vpop.permute.xlu0 %6621  ;;  %6710 = vrot.lane.b32.xlu1 %v6700_v14, %s11446_s1  ;;  %v15713_v52 = vmul.f32 %v6748_v41, %v6674_v45 }
0x107b   : > { %v6627_v17 = vsel %vm6623_vm0, %v6614_v58, %v6622_v35  ;;  %v6635_v18 = vsel %vm6623_vm0, %v6622_v35, %v6606_v13 }
0x107c   : > { %v6701_v26 = vmul.f32 %v6686_v22, %v6672_v7  ;;  %v6675_v39 = vadd.f32 %v15647_v57, %v6627_v17  ;;  %v6676_v28 = vadd.f32 %v15649_v47, %v6635_v18  ;;  %6712 = vrot.lane.b32.xlu0 %v6703_v37, %s11446_s1  ;;  %v15722_v51 = vmul.f32 %v6752_v20, %v6672_v7  ;;  %v6784_v57 = vld [vmem:[%s16517_s2] sm:$0x7]  ;;  %s11449_s2 = smov 117  }
0x107d   : > { %v15724_v16 = vmul.f32 %v6756_v43, %v6673_v2  ;;  %v6702_v60 = vmul.f32 %v6690_v27, %v6673_v2  ;;  %v6846_v23 = vsub.f32 1.0, %v6784_v57  ;;  %v6789_v46 = vrot.slane %v6784_v57, %v16489_v12 }
0x107e   : > { %v6704_v30 = vmul.f32 %v6686_v22, %v6675_v39  ;;  %6718 = vrot.lane.b32.xlu1 %v6701_v26, %s11446_s1  ;;  %v15727_v41 = vmul.f32 %v6752_v20, %v6675_v39  ;;  %v15729_v11 = vmul.f32 %v6756_v43, %v6676_v28  ;;  %v6705_v44 = vmul.f32 %v6690_v27, %v6676_v28 }
0x107f   : > { %v6851_v63 = vrot.slane %v6846_v23, %v16489_v12  ;;  %v6793_v38 = vrot.slane %v6784_v57, %v16490_v56  ;;  %v6797_v13 = vrot.slane %v6784_v57, %v16491_v55 }
0x1080   : > { %6720 = vrot.lane.b32.xlu0 %v6704_v30, %s11446_s1 }
0x1082   : > { %6726 = vrot.lane.b32.xlu1 %v6702_v60, %s11446_s1 }
0x1084   : > { %6728 = vrot.lane.b32.xlu0 %v6705_v44, %s11446_s1  ;;  %s16300_s1 = smov 11  }
0x10e0   : > { %v6707_v47 = vpop.permute.xlu1 %6706 }
0x10e2   : > { %v6709_v24 = vpop.permute.xlu0 %6708 }
0x10e4   : > { %v6715_v22 = vpop.permute.xlu1 %6714 }
0x10e5   : > { %v6735_v29 = vsel %vm6730_vm1, %v6707_v47, %v6715_v22 }
0x10e6   : > { %v6772_v0 = vadd.f32 %v15665_v36, %v6735_v29  ;;  %v6717_v20 = vpop.permute.xlu0 %6716  ;;  %v6855_v36 = vrot.slane %v6846_v23, %v16491_v55 }
0x10e7   : > { %v6736_v43 = vsel %vm6730_vm1, %v6709_v24, %v6717_v20 }
0x10e8   : > { %v6801_v8 = vmul.f32 %v6789_v46, %v6772_v0  ;;  %v6775_v9 = vadd.f32 %v15676_v6, %v6736_v43  ;;  %v6723_v4 = vpop.permute.xlu1 %6722  ;;  %v15745_v3 = vmul.f32 %v6851_v63, %v6772_v0 }
0x10e9   : > { %v6731_v15 = vsel %vm6730_vm1, %v6715_v22, %v6723_v4  ;;  %v6739_v27 = vsel %vm6730_vm1, %v6723_v4, %v6707_v47 }
0x10ea   : > { %v6804_v34 = vmul.f32 %v6789_v46, %v6775_v9  ;;  %v6773_v25 = vadd.f32 %v15686_v31, %v6731_v15  ;;  %v6774_v48 = vadd.f32 %v15688_v62, %v6739_v27  ;;  %v6725_v19 = vpop.permute.xlu0 %6724  ;;  %6813 = vrot.lane.b32.xlu1 %v6801_v8, %s11447_s10  ;;  %v6860_v56 = vmul.f32 %v6851_v63, %v6775_v9 }
0x10eb   : > { %v6732_v6 = vsel %vm6730_vm1, %v6717_v20, %v6725_v19  ;;  %v6740_v10 = vsel %vm6730_vm1, %v6725_v19, %v6709_v24 }
0x10ec   : > { %v6802_v32 = vmul.f32 %v6793_v38, %v6773_v25  ;;  %v6776_v49 = vadd.f32 %v15691_v61, %v6732_v6  ;;  %v6777_v31 = vadd.f32 %v15693_v5, %v6740_v10  ;;  %6815 = vrot.lane.b32.xlu0 %v6804_v34, %s11447_s10  ;;  %v6711_v62 = vpop.permute.xlu1 %6710  ;;  %v6859_v50 = vmul.f32 %v6855_v36, %v6774_v48 }
0x10ed   : > { %v6803_v1 = vmul.f32 %v6797_v13, %v6774_v48 }
0x10ee   : > { %v6805_v59 = vmul.f32 %v6793_v38, %v6776_v49  ;;  %v6713_v40 = vpop.permute.xlu0 %6712  ;;  %6821 = vrot.lane.b32.xlu1 %v6802_v32, %s11447_s10  ;;  %v6861_v58 = vmul.f32 %v6855_v36, %v6777_v31  ;;  %v6806_v45 = vmul.f32 %v6797_v13, %v6777_v31 }
0x10f0   : > { %6823 = vrot.lane.b32.xlu0 %v6805_v59, %s11447_s10  ;;  %v6719_v14 = vpop.permute.xlu1 %6718 }
0x10f1   : > { %v6737_v55 = vsel %vm6730_vm1, %v6711_v62, %v6719_v14 }
0x10f2   : > { %v6778_v61 = vadd.f32 %v15704_v42, %v6737_v55  ;;  %v6721_v5 = vpop.permute.xlu0 %6720  ;;  %6829 = vrot.lane.b32.xlu1 %v6803_v1, %s11447_s10 }
0x10f3   : > { %v6738_v33 = vsel %vm6730_vm1, %v6713_v40, %v6721_v5 }
0x10f4   : > { %v6807_v53 = vmul.f32 %v6789_v46, %v6778_v61  ;;  %v6781_v54 = vadd.f32 %v15713_v52, %v6738_v33  ;;  %6831 = vrot.lane.b32.xlu0 %v6806_v45, %s11447_s10  ;;  %v6727_v37 = vpop.permute.xlu1 %6726  ;;  %v6862_v7 = vmul.f32 %v6851_v63, %v6778_v61 }
0x10f5   : > { %v6733_v2 = vsel %vm6730_vm1, %v6719_v14, %v6727_v37  ;;  %v6741_v35 = vsel %vm6730_vm1, %v6727_v37, %v6711_v62  ;;  %v6903_v37 = vld [vmem:[%s16519_s22] sm:$0xff] }
0x10f6   : > { %v6810_v42 = vmul.f32 %v6789_v46, %v6781_v54  ;;  %v6779_v17 = vadd.f32 %v15722_v51, %v6733_v2  ;;  %v6780_v18 = vadd.f32 %v15724_v16, %v6741_v35  ;;  %v6729_v26 = vpop.permute.xlu0 %6728  ;;  %6817 = vrot.lane.b32.xlu1 %v6807_v53, %s11447_s10  ;;  %v6864_v39 = vmul.f32 %v6851_v63, %v6781_v54  ;;  %v6904_v2 = vld [vmem:[%s16519_s22 + $0x8] sm:$0xff]  ;;  %v6906_v35 = vld [vmem:[%s16519_s22 + $0x18] sm:$0xff] }
0x10f7   : > { %v6734_v52 = vsel %vm6730_vm1, %v6721_v5, %v6729_v26  ;;  %v6742_v28 = vsel %vm6730_vm1, %v6729_v26, %v6713_v40 }
0x10f8   : > { %v6808_v30 = vmul.f32 %v6793_v38, %v6779_v17  ;;  %v6782_v60 = vadd.f32 %v15727_v41, %v6734_v52  ;;  %v6783_v44 = vadd.f32 %v15729_v11, %v6742_v28  ;;  %6819 = vrot.lane.b32.xlu0 %v6810_v42, %s11447_s10  ;;  %v6863_v51 = vmul.f32 %v6855_v36, %v6780_v18 }
0x10f9   : > { %v6809_v47 = vmul.f32 %v6797_v13, %v6780_v18 }
0x10fa   : > { %v6811_v57 = vmul.f32 %v6793_v38, %v6782_v60  ;;  %6825 = vrot.lane.b32.xlu1 %v6808_v30, %s11447_s10  ;;  %v6865_v16 = vmul.f32 %v6855_v36, %v6783_v44  ;;  %v6812_v23 = vmul.f32 %v6797_v13, %v6783_v44 }
0x10fc   : > { %6827 = vrot.lane.b32.xlu0 %v6811_v57, %s11447_s10 }
0x10fe   : > { %6833 = vrot.lane.b32.xlu1 %v6809_v47, %s11447_s10 }
0x1100   : > { %6835 = vrot.lane.b32.xlu0 %v6812_v23, %s11447_s10  ;;  %s16306_s10 = smov 116  }
0x115c   : > { %v6814_v24 = vpop.permute.xlu1 %6813 }
0x115e   : > { %v6816_v46 = vpop.permute.xlu0 %6815 }
0x1160   : > { %v6822_v41 = vpop.permute.xlu1 %6821 }
0x1161   : > { %v6838_v11 = vsel %vm6837_vm4, %v6814_v24, %v6822_v41 }
0x1162   : > { %v6866_v22 = vadd.f32 %v15745_v3, %v6838_v11  ;;  %v6824_v63 = vpop.permute.xlu0 %6823 }
0x1163   : > { %v6839_v29 = vsel %vm6837_vm4, %v6816_v46, %v6824_v63 }
0x1164   : > { %v6868_v0 = vadd.f32 %v6860_v56, %v6839_v29  ;;  %6874 = vrot.lane.b32.xlu1 %v6866_v22, %s16300_s1  ;;  %v6830_v20 = vpop.permute.xlu1 %6829 }
0x1165   : > { %v6842_v43 = vsel %vm6837_vm4, %v6830_v20, %v6814_v24 }
0x1166   : > { %v6867_v8 = vadd.f32 %v6859_v50, %v6842_v43  ;;  %6876 = vrot.lane.b32.xlu0 %v6868_v0, %s16300_s1  ;;  %v6832_v9 = vpop.permute.xlu0 %6831 }
0x1167   : > { %v6843_v38 = vsel %vm6837_vm4, %v6832_v9, %v6816_v46 }
0x1168   : > { %v6869_v4 = vadd.f32 %v6861_v58, %v6843_v38  ;;  %6882 = vrot.lane.b32.xlu1 %v6867_v8, %s16300_s1  ;;  %v6818_v3 = vpop.permute.xlu1 %6817 }
0x116a   : > { %6884 = vrot.lane.b32.xlu0 %v6869_v4, %s16300_s1  ;;  %v6820_v15 = vpop.permute.xlu0 %6819 }
0x116c   : > { %v6826_v27 = vpop.permute.xlu1 %6825 }
0x116d   : > { %v6840_v36 = vsel %vm6837_vm4, %v6818_v3, %v6826_v27 }
0x116e   : > { %v6870_v34 = vadd.f32 %v6862_v7, %v6840_v36  ;;  %v6828_v25 = vpop.permute.xlu0 %6827  ;;  %v6905_v7 = vld [vmem:[%s16519_s22 + $0x10] sm:$0xff] }
0x116f   : > { %v6841_v48 = vsel %vm6837_vm4, %v6820_v15, %v6828_v25 }
0x1170   : > { %v6872_v19 = vadd.f32 %v6864_v39, %v6841_v48  ;;  %6878 = vrot.lane.b32.xlu1 %v6870_v34, %s16300_s1  ;;  %v6834_v56 = vpop.permute.xlu1 %6833 }
0x1171   : > { %v6844_v6 = vsel %vm6837_vm4, %v6834_v56, %v6818_v3 }
0x1172   : > { %v6871_v10 = vadd.f32 %v6863_v51, %v6844_v6  ;;  %6880 = vrot.lane.b32.xlu0 %v6872_v19, %s16300_s1  ;;  %v6836_v13 = vpop.permute.xlu0 %6835 }
0x1173   : > { %v6845_v32 = vsel %vm6837_vm4, %v6836_v13, %v6820_v15 }
0x1174   : > { %v6873_v49 = vadd.f32 %v6865_v16, %v6845_v32  ;;  %6886 = vrot.lane.b32.xlu1 %v6871_v10, %s16300_s1 }
0x1176   : > { %6888 = vrot.lane.b32.xlu0 %v6873_v49, %s16300_s1  ;;  %s16518_s1 = sld [smem:[#allocation21_spill]] }
0x117c   : > { %v11291_v53 = vld [vmem:[%s16518_s1 + $0x4] ss:$12 sps:$4 sm:$0xff]   ;;  %v11292_v54 = vld [vmem:[%s16518_s1 + $0x8] ss:$12 sps:$4 sm:$0xff]  }
0x117d   : > { %7078 = vmatprep.mubr.bf16.mxu1 %v11291_v53  ;;  %9849 = vmatprep.mubr.msk.bf16.mxu0 %vm7039_vm12, %v11292_v54 }
0x11d6   : > { %v6875_v31 = vpop.permute.xlu1 %6874 }
0x11d8   : > { %v6877_v62 = vpop.permute.xlu0 %6876 }
0x11da   : > { %v6883_v50 = vpop.permute.xlu1 %6882 }
0x11db   : > { %v15818_v40 = vsel %vm6890_vm11, %v6883_v50, %v6875_v31 }
0x11dc   : > { %v6885_v59 = vpop.permute.xlu0 %6884 }
0x11dd   : > { %v15820_v58 = vsel %vm6890_vm11, %v6885_v59, %v6877_v62 }
0x11de   : > { %v10799_v1 = vpack.i.bf16 %v15820_v58, %v15818_v40  ;;  %v6971_v39 = vpack.c.bf16 %v15820_v58, %v15818_v40 }
0x11e0   : > { %10800 = vrot.lane.b32.xlu1 %v10799_v1, %s11449_s2 }
0x11e2   : > { %v6879_v14 = vpop.permute.xlu1 %6878 }
0x11e4   : > { %v6881_v55 = vpop.permute.xlu0 %6880  ;;  %10810 = vrot.lane.b32.xlu1 %v10799_v1, %s16306_s10 }
0x11e6   : > { %v6887_v45 = vpop.permute.xlu1 %6886 }
0x11e7   : > { %v15826_v61 = vsel %vm6890_vm11, %v6887_v45, %v6879_v14 }
0x11e8   : > { %v6889_v21 = vpop.permute.xlu0 %6888 }
0x11e9   : > { %v15828_v5 = vsel %vm6890_vm11, %v6889_v21, %v6881_v55 }
0x11ea   : > { %v10819_v33 = vpack.i.bf16 %v15828_v5, %v15826_v61  ;;  %v6972_v24 = vpack.c.bf16 %v15828_v5, %v15826_v61 }
0x11ec   : > { %10820 = vrot.lane.b32.xlu1 %v10819_v33, %s16306_s10  ;;  %10805 = vrot.lane.b32.xlu0 %v10819_v33, %s11449_s2  ;;  %s16312_s10 = smov 106  }
0x11f0   : > { %10825 = vrot.lane.b32.xlu1 %v10799_v1, %s16308_s0  ;;  %10815 = vrot.lane.b32.xlu0 %v10799_v1, %s16503_s18 }
0x11f4   : > { %10840 = vrot.lane.b32.xlu1 %v10819_v33, %s16308_s0  ;;  %10830 = vrot.lane.b32.xlu0 %v10819_v33, %s16503_s18  ;;  %s16310_s0 = smov 118  }
0x11f8   : > { %10845 = vrot.lane.b32.xlu1 %v10799_v1, %s16314_s3  ;;  %10835 = vrot.lane.b32.xlu0 %v10799_v1, %s16520_s5 }
0x11fc   : > { %10860 = vrot.lane.b32.xlu1 %v10819_v33, %s16314_s3  ;;  %10850 = vrot.lane.b32.xlu0 %v10819_v33, %s16520_s5  ;;  %s16524_s3 = smov 116  }
0x1200   : > { %10870 = vrot.lane.b32.xlu1 %v10799_v1, %s16312_s10  ;;  %10855 = vrot.lane.b32.xlu0 %v10799_v1, %s16310_s0 }
0x1204   : > { %6991 = vperm.xlu1 %10558, %v6903_v37   ;;  %10865 = vrot.lane.b32.xlu0 %v10819_v33, %s16310_s0  ;;  %s16521_s0 = sld [smem:[#allocation23_spill]] }
0x1208   : > { %7001 = vperm.xlu1 %10558, %v6905_v7   ;;  %10875 = vrot.lane.b32.xlu0 %v10819_v33, %s16312_s10  ;;  %s16522_s10 = smov 11  }
0x120c   : > { %6996 = vperm.xlu0 %10217, %v6904_v2  }
0x1210   : > { %7006 = vperm.xlu0 %10217, %v6906_v35  }
0x1252   : > { %v10801_v42 = vpop.permute.xlu1 %10800 }
0x1253   : > { %v10803_v17 = vunpack.i.h.bf16 %v10801_v42  ;;  %v10802_v18 = vunpack.i.l.bf16 %v10801_v42 }
0x1255   : > { %v6979_v26 = vpack.c.bf16 %v10803_v17, %v10802_v18 }
0x1256   : > { %v10811_v52 = vpop.permute.xlu1 %10810 }
0x1257   : > { %9629 = vmatprep.subr.bf16.mxu1 %v6979_v26  ;;  %v10813_v28 = vunpack.i.h.bf16 %v10811_v52  ;;  %v10812_v30 = vunpack.i.l.bf16 %v10811_v52 }
0x1258   : > { %9630 = vmatpush3.bf16.msra.mxu1 %v6971_v39 }
0x1259   : > { %v6981_v46 = vpack.c.bf16 %v10813_v28, %v10812_v30  ;;  %v11289_v28 = vld [vmem:[%s16518_s1] ss:$12 sps:$4 sm:$0xff]   ;;  %v11294_v30 = vld [vmem:[%s16518_s1 + $0x1c] ss:$12 sps:$4 sm:$0xff]  }
0x125e   : > { %v10806_v60 = vpop.permute.xlu0 %10805  ;;  %v10821_v44 = vpop.permute.xlu1 %10820 }
0x125f   : > { %v10808_v51 = vunpack.i.h.bf16 %v10806_v60  ;;  %v10807_v57 = vunpack.i.l.bf16 %v10806_v60  ;;  %v10823_v41 = vunpack.i.h.bf16 %v10821_v44  ;;  %v10822_v11 = vunpack.i.l.bf16 %v10821_v44  ;;  %v11293_v44 = vld [vmem:[%s16518_s1 + $0x20] ss:$12 sps:$4 sm:$0xff]  }
0x1261   : > { %v6980_v16 = vpack.c.bf16 %v10808_v51, %v10807_v57  ;;  %v6982_v4 = vpack.c.bf16 %v10823_v41, %v10822_v11  ;;  %v11296_v51 = vld [vmem:[%s16518_s1 + $0x18] ss:$12 sps:$4 sm:$0xff]   ;;  %s16526_s1 = smov 108  }
0x1262   : > { %v10816_v47 = vpop.permute.xlu0 %10815  ;;  %v10826_v23 = vpop.permute.xlu1 %10825 }
0x1263   : > { %v10818_v22 = vunpack.i.h.bf16 %v10816_v47  ;;  %v10817_v63 = vunpack.i.l.bf16 %v10816_v47  ;;  %9631 = vmatprep.subr.bf16.mxu1 %v6980_v16  ;;  %v10828_v0 = vunpack.i.h.bf16 %v10826_v23  ;;  %v10827_v20 = vunpack.i.l.bf16 %v10826_v23 }
0x1264   : > { %9632 = vmatpush3.bf16.msra.mxu1 %v6972_v24 }
0x1265   : > { %v6973_v29 = vpack.c.bf16 %v10818_v22, %v10817_v63  ;;  %9633 = vmatprep.subr.bf16.mxu1 %v6981_v46  ;;  %v6983_v36 = vpack.c.bf16 %v10828_v0, %v10827_v20 }
0x1266   : > { %v10831_v43 = vpop.permute.xlu0 %10830  ;;  %v10841_v8 = vpop.permute.xlu1 %10840 }
0x1267   : > { %v10833_v9 = vunpack.i.h.bf16 %v10831_v43  ;;  %v10832_v38 = vunpack.i.l.bf16 %v10831_v43  ;;  %v10843_v34 = vunpack.i.h.bf16 %v10841_v8  ;;  %v10842_v25 = vunpack.i.l.bf16 %v10841_v8  ;;  %v9555_v8 = vld [vmem:[%s16521_s0] ss:$0 sm:$0xff]  ;;  %s16523_s0 = sld [smem:[#allocation24_spill]] }
0x1268   : > { %9634 = vmatpush3.bf16.msra.mxu1 %v6973_v29 }
0x1269   : > { %v6974_v3 = vpack.c.bf16 %v10833_v9, %v10832_v38  ;;  %9635 = vmatprep.subr.bf16.mxu1 %v6982_v4  ;;  %v6984_v62 = vpack.c.bf16 %v10843_v34, %v10842_v25 }
0x126a   : > { %v10836_v15 = vpop.permute.xlu0 %10835  ;;  %v10846_v27 = vpop.permute.xlu1 %10845 }
0x126b   : > { %v10838_v48 = vunpack.i.h.bf16 %v10836_v15  ;;  %v10837_v19 = vunpack.i.l.bf16 %v10836_v15  ;;  %v10848_v6 = vunpack.i.h.bf16 %v10846_v27  ;;  %v10847_v10 = vunpack.i.l.bf16 %v10846_v27 }
0x126c   : > { %9636 = vmatpush3.bf16.msra.mxu1 %v6974_v3 }
0x126d   : > { %v6975_v56 = vpack.c.bf16 %v10838_v48, %v10837_v19  ;;  %9637 = vmatprep.subr.bf16.mxu1 %v6983_v36  ;;  %v6985_v45 = vpack.c.bf16 %v10848_v6, %v10847_v10 }
0x126e   : > { %v10851_v13 = vpop.permute.xlu0 %10850  ;;  %v10861_v32 = vpop.permute.xlu1 %10860 }
0x126f   : > { %v10853_v49 = vunpack.i.h.bf16 %v10851_v13  ;;  %v10852_v31 = vunpack.i.l.bf16 %v10851_v13  ;;  %v10863_v59 = vunpack.i.h.bf16 %v10861_v32  ;;  %v10862_v1 = vunpack.i.l.bf16 %v10861_v32 }
0x1270   : > { %9638 = vmatpush3.bf16.msra.mxu1 %v6975_v56 }
0x1271   : > { %v6976_v50 = vpack.c.bf16 %v10853_v49, %v10852_v31  ;;  %9639 = vmatprep.subr.bf16.mxu1 %v6984_v62  ;;  %v6986_v17 = vpack.c.bf16 %v10863_v59, %v10862_v1 }
0x1272   : > { %v10856_v14 = vpop.permute.xlu0 %10855  ;;  %v10871_v55 = vpop.permute.xlu1 %10870 }
0x1273   : > { %v10858_v21 = vunpack.i.h.bf16 %v10856_v14  ;;  %v10857_v33 = vunpack.i.l.bf16 %v10856_v14  ;;  %v10873_v53 = vunpack.i.h.bf16 %v10871_v55  ;;  %v10872_v54 = vunpack.i.l.bf16 %v10871_v55 }
0x1274   : > { %9640 = vmatpush3.bf16.msra.mxu1 %v6976_v50 }
0x1275   : > { %v6977_v37 = vpack.c.bf16 %v10858_v21, %v10857_v33  ;;  %9641 = vmatprep.subr.bf16.mxu1 %v6985_v45  ;;  %v6987_v7 = vpack.c.bf16 %v10873_v53, %v10872_v54 }
0x1276   : > { %v10866_v2 = vpop.permute.xlu0 %10865 }
0x1277   : > { %v10868_v35 = vunpack.i.h.bf16 %v10866_v2  ;;  %v10867_v42 = vunpack.i.l.bf16 %v10866_v2  ;;  %9845 = vmatprep.subr.bf16.mxu0 %v6987_v7 }
0x1278   : > { %9642 = vmatpush3.bf16.msra.mxu1 %v6977_v37  ;;  %9846 = vmatpush3.bf16.msra.mxu0 %v6987_v7 }
0x1279   : > { %v6978_v18 = vpack.c.bf16 %v10868_v35, %v10867_v42  ;;  %9643 = vmatprep.subr.bf16.mxu1 %v6986_v17 }
0x127a   : > { %v10876_v26 = vpop.permute.xlu0 %10875 }
0x127b   : > { %v10878_v39 = vunpack.i.h.bf16 %v10876_v26  ;;  %v10877_v52 = vunpack.i.l.bf16 %v10876_v26 }
0x127c   : > { %9644 = vmatpush3.bf16.msra.mxu1 %v6978_v18 }
0x127d   : > { %v6988_v60 = vpack.c.bf16 %v10878_v39, %v10877_v52 }
0x127f   : > { %7079 = vmatmul.mubr.bf16.vlgmr.msra.gmra.mrb[40].mxu1 %v11289_v28  ;;  %9847 = vmatprep.subr.bf16.mxu0 %v6988_v60 }
0x1280   : > { %9848 = vmatpush3.bf16.msra.mxu0 %v6988_v60  ;;  %7086 = vmatprep.mubr.bf16.mxu1 %v11294_v30 }
0x1283   : > { %9850 = vmatmul.mubr.msk.bf16.vlgmr.msra.gmra.mrb[44].mxu0 %vm7039_vm12, %v11293_v44  ;;  %v6992_v24 = vpop.permute.xlu1 %6991 }
0x1287   : > { %7087 = vmatmul.mubr.bf16.gmra.mrb[44].mxu1 %v11296_v51  ;;  %v7002_v48 = vpop.permute.xlu1 %7001 }
0x128b   : > { %v6997_v63 = vpop.permute.xlu0 %6996 }
0x128f   : > { %v7007_v13 = vpop.permute.xlu0 %7006 }
0x1352   : > { %v9645_v57 = vpop.f32.mrb[40].mxu1 }
0x1353   : > { %v9646_v16 = vpop.f32.mrb[41].mxu1 }
0x1354   : > { %v9647_v47 = vadd.f32 %v9646_v16, %v9645_v57  ;;  %v9648_v23 = vpop.f32.mrb[42].mxu1 }
0x1355   : > { %v9649_v46 = vpop.f32.mrb[43].mxu1 }
0x1356   : > { %v9650_v41 = vadd.f32 %v9649_v46, %v9648_v23  ;;  %v9851_v11 = vpop.f32.mrb[44].mxu0  ;;  %v7081_v22 = vadd.f32 %v9647_v47, %v6992_v24 }
0x1357   : > { %v7129_v29 = vpop.f32.mrb[45].mxu0 }
0x1358   : > { %v7130_v0 = vadd.f32 %v7129_v29, %v7081_v22  ;;  %v9852_v20 = vpop.f32.mrb[46].mxu0  ;;  %v7084_v43 = vadd.f32 %v9650_v41, %v6997_v63 }
0x1359   : > { %v7132_v9 = vpop.f32.mrb[47].mxu0 }
0x135a   : > { %v7144_v38 = vmax.f32 %v7130_v0, 0.0  ;;  %v7133_v4 = vadd.f32 %v7132_v9, %v7084_v43  ;;  %v9651_v3 = vpop.f32.mrb[44].mxu1 }
0x135b   : > { %v9652_v15 = vpop.f32.mrb[45].mxu1 }
0x135c   : > { %v7155_v27 = vmul.f32 %v9555_v8, %v7144_v38  ;;  %v7145_v36 = vmax.f32 %v7133_v4, 0.0  ;;  %v9653_v34 = vadd.f32 %v9652_v15, %v9651_v3  ;;  %v9654_v25 = vpop.f32.mrb[46].mxu1 }
0x135d   : > { %v9655_v19 = vpop.f32.mrb[47].mxu1 }
0x135e   : > { %v7156_v56 = vmul.f32 %v9555_v8, %v7145_v36  ;;  %v7089_v6 = vadd.f32 %v9653_v34, %v7002_v48  ;;  %v9656_v10 = vadd.f32 %v9655_v19, %v9654_v25  ;;  %7159 = vrot.lane.b32.xlu1 %v7155_v27, %s16522_s10 }
0x1360   : > { %v7138_v32 = vadd.f32 %v9851_v11, %v7089_v6  ;;  %v7092_v49 = vadd.f32 %v9656_v10, %v7007_v13  ;;  %7161 = vrot.lane.b32.xlu0 %v7156_v56, %s16522_s10 }
0x1362   : > { %v7146_v31 = vmax.f32 %v7138_v32, 0.0  ;;  %v7141_v62 = vadd.f32 %v9852_v20, %v7092_v49 }
0x1364   : > { %v7157_v50 = vmul.f32 %v9555_v8, %v7146_v31  ;;  %v7147_v59 = vmax.f32 %v7141_v62, 0.0 }
0x1366   : > { %v7158_v1 = vmul.f32 %v9555_v8, %v7147_v59  ;;  %7163 = vrot.lane.b32.xlu1 %v7157_v50, %s16522_s10 }
0x1368   : > { %7165 = vrot.lane.b32.xlu0 %v7158_v1, %s16522_s10  ;;  %s16525_s10 = sld [smem:[#allocation25_spill]] }
0x136e   : > { %v7181_v42 = vld [vmem:[%s16525_s10 + $0x10] sm:$0xff]  ;;  %v7180_v17 = vld [vmem:[%s16525_s10 + $0x8] sm:$0xff]  ;;  %v7182_v18 = vld [vmem:[%s16525_s10 + $0x18] sm:$0xff] }
0x13d0   : > { %v7160_v14 = vpop.permute.xlu1 %7159 }
0x13d1   : > { %v7167_v45 = vadd.f32 %v7160_v14, %v15818_v40 }
0x13d2   : > { %v7162_v55 = vpop.permute.xlu0 %7161 }
0x13d3   : > { %v7168_v21 = vadd.f32 %v7162_v55, %v15820_v58  ;;  %v11299_v58 = vld [vmem:[%s16523_s0 + $0x4] ss:$12 sps:$4 sm:$0xff]  }
0x13d4   : > { %7353 = vmatprep.mubr.bf16.mxu1 %v11299_v58 }
0x13d5   : > { %v10879_v33 = vpack.i.bf16 %v7168_v21, %v7167_v45  ;;  %v7247_v53 = vpack.c.bf16 %v7168_v21, %v7167_v45 }
0x13d7   : > { %10880 = vrot.lane.b32.xlu1 %v10879_v33, %s11449_s2 }
0x13d8   : > { %v7164_v54 = vpop.permute.xlu1 %7163 }
0x13d9   : > { %v7169_v7 = vadd.f32 %v7164_v54, %v15826_v61  ;;  %v11300_v61 = vld [vmem:[%s16523_s0 + $0x8] ss:$12 sps:$4 sm:$0xff]  }
0x13da   : > { %v7166_v37 = vpop.permute.xlu0 %7165  ;;  %9857 = vmatprep.mubr.msk.bf16.mxu0 %vm7039_vm12, %v11300_v61 }
0x13db   : > { %v7170_v2 = vadd.f32 %v7166_v37, %v15828_v5  ;;  %10890 = vrot.lane.b32.xlu1 %v10879_v33, %s16524_s3  ;;  %v7179_v5 = vld [vmem:[%s16525_s10] sm:$0xff]  ;;  %s16327_s10 = smov 122  }
0x13dd   : > { %v10899_v35 = vpack.i.bf16 %v7170_v2, %v7169_v7  ;;  %v7248_v40 = vpack.c.bf16 %v7170_v2, %v7169_v7 }
0x13df   : > { %10900 = vrot.lane.b32.xlu1 %v10899_v35, %s16524_s3  ;;  %10885 = vrot.lane.b32.xlu0 %v10899_v35, %s11449_s2  ;;  %s16528_s2 = smov 106  }
0x13e3   : > { %10905 = vrot.lane.b32.xlu1 %v10879_v33, %s16526_s1  ;;  %10895 = vrot.lane.b32.xlu0 %v10879_v33, %s16503_s18 }
0x13e7   : > { %10920 = vrot.lane.b32.xlu1 %v10899_v35, %s16526_s1  ;;  %10910 = vrot.lane.b32.xlu0 %v10899_v35, %s16503_s18  ;;  %s16531_s1 = sld [smem:[#allocation30_spill]] }
0x13eb   : > { %10925 = vrot.lane.b32.xlu1 %v10879_v33, %s16527_s7  ;;  %10915 = vrot.lane.b32.xlu0 %v10879_v33, %s16520_s5 }
0x13ef   : > { %10940 = vrot.lane.b32.xlu1 %v10899_v35, %s16527_s7  ;;  %10930 = vrot.lane.b32.xlu0 %v10899_v35, %s16520_s5  ;;  %s16530_s7 = sld [smem:[#allocation26_spill]] }
0x13f3   : > { %10950 = vrot.lane.b32.xlu1 %v10879_v33, %s16528_s2  ;;  %10935 = vrot.lane.b32.xlu0 %v10879_v33, %s16529_s8 }
0x13f7   : > { %7267 = vperm.xlu1 %10558, %v7179_v5   ;;  %10945 = vrot.lane.b32.xlu0 %v10899_v35, %s16529_s8 }
0x13fb   : > { %7277 = vperm.xlu1 %10558, %v7181_v42   ;;  %10955 = vrot.lane.b32.xlu0 %v10899_v35, %s16528_s2  ;;  %s16532_s2 = sld [smem:[#allocation27_spill]] }
0x13ff   : > { %7272 = vperm.xlu0 %10217, %v7180_v17  }
0x1403   : > { %7282 = vperm.xlu0 %10217, %v7182_v18  }
0x1449   : > { %v10881_v26 = vpop.permute.xlu1 %10880 }
0x144a   : > { %v10883_v39 = vunpack.i.h.bf16 %v10881_v26  ;;  %v10882_v52 = vunpack.i.l.bf16 %v10881_v26  ;;  %v11297_v26 = vld [vmem:[%s16523_s0] ss:$12 sps:$4 sm:$0xff]  }
0x144c   : > { %v7255_v28 = vpack.c.bf16 %v10883_v39, %v10882_v52  ;;  %v11302_v39 = vld [vmem:[%s16523_s0 + $0x1c] ss:$12 sps:$4 sm:$0xff]  }
0x144d   : > { %v10891_v30 = vpop.permute.xlu1 %10890 }
0x144e   : > { %9661 = vmatprep.subr.bf16.mxu1 %v7255_v28  ;;  %v10893_v60 = vunpack.i.h.bf16 %v10891_v30  ;;  %v10892_v44 = vunpack.i.l.bf16 %v10891_v30  ;;  %v11301_v28 = vld [vmem:[%s16523_s0 + $0x20] ss:$12 sps:$4 sm:$0xff]   ;;  %v11304_v30 = vld [vmem:[%s16523_s0 + $0x18] ss:$12 sps:$4 sm:$0xff]   ;;  %s16536_s0 = sld [smem:[#allocation31_spill]] }
0x144f   : > { %9662 = vmatpush3.bf16.msra.mxu1 %v7247_v53 }
0x1450   : > { %v7257_v41 = vpack.c.bf16 %v10893_v60, %v10892_v44 }
0x1451   : > { %v10886_v51 = vpop.permute.xlu0 %10885  ;;  %v10901_v57 = vpop.permute.xlu1 %10900 }
0x1452   : > { %v10888_v16 = vunpack.i.h.bf16 %v10886_v51  ;;  %v10887_v47 = vunpack.i.l.bf16 %v10886_v51  ;;  %v10903_v11 = vunpack.i.h.bf16 %v10901_v57  ;;  %v10902_v22 = vunpack.i.l.bf16 %v10901_v57 }
0x1454   : > { %v7256_v23 = vpack.c.bf16 %v10888_v16, %v10887_v47  ;;  %v7258_v3 = vpack.c.bf16 %v10903_v11, %v10902_v22  ;;  %v7434_v16 = vld [vmem:[%s16530_s7] sm:$0x1]  ;;  %s16533_s7 = sld [smem:[#allocation28_spill]] }
0x1455   : > { %v10896_v24 = vpop.permute.xlu0 %10895  ;;  %v10906_v46 = vpop.permute.xlu1 %10905 }
0x1456   : > { %v10898_v63 = vunpack.i.h.bf16 %v10896_v24  ;;  %v10897_v29 = vunpack.i.l.bf16 %v10896_v24  ;;  %9663 = vmatprep.subr.bf16.mxu1 %v7256_v23  ;;  %v10908_v20 = vunpack.i.h.bf16 %v10906_v46  ;;  %v10907_v43 = vunpack.i.l.bf16 %v10906_v46 }
0x1457   : > { %9664 = vmatpush3.bf16.msra.mxu1 %v7248_v40 }
0x1458   : > { %v7249_v0 = vpack.c.bf16 %v10898_v63, %v10897_v29  ;;  %9665 = vmatprep.subr.bf16.mxu1 %v7257_v41  ;;  %v7259_v34 = vpack.c.bf16 %v10908_v20, %v10907_v43  ;;  %v7453_v63 = vsub.f32 1.0, %v7434_v16  ;;  %v9564_v43 = vld [vmem:[%s16531_s1] ss:$0 sm:$0xff]  ;;  %s16534_s1 = sld [smem:[#allocation29_spill]] }
0x1459   : > { %v10911_v8 = vpop.permute.xlu0 %10910  ;;  %v10921_v9 = vpop.permute.xlu1 %10920 }
0x145a   : > { %v10913_v38 = vunpack.i.h.bf16 %v10911_v8  ;;  %v10912_v4 = vunpack.i.l.bf16 %v10911_v8  ;;  %v10923_v25 = vunpack.i.h.bf16 %v10921_v9  ;;  %v10922_v48 = vunpack.i.l.bf16 %v10921_v9 }
0x145b   : > { %9666 = vmatpush3.bf16.msra.mxu1 %v7249_v0 }
0x145c   : > { %v7250_v15 = vpack.c.bf16 %v10913_v38, %v10912_v4  ;;  %9667 = vmatprep.subr.bf16.mxu1 %v7258_v3  ;;  %v7260_v50 = vpack.c.bf16 %v10923_v25, %v10922_v48  ;;  %v7439_v38 = vrot.slane %v7434_v16, %v16489_v12 }
0x145d   : > { %v10916_v27 = vpop.permute.xlu0 %10915  ;;  %v10926_v36 = vpop.permute.xlu1 %10925 }
0x145e   : > { %v10918_v19 = vunpack.i.h.bf16 %v10916_v27  ;;  %v10917_v56 = vunpack.i.l.bf16 %v10916_v27  ;;  %v10928_v10 = vunpack.i.h.bf16 %v10926_v36  ;;  %v10927_v13 = vunpack.i.l.bf16 %v10926_v36 }
0x145f   : > { %9668 = vmatpush3.bf16.msra.mxu1 %v7250_v15  ;;  %v7458_v27 = vrot.slane %v7453_v63, %v16489_v12 }
0x1460   : > { %v7251_v6 = vpack.c.bf16 %v10918_v19, %v10917_v56  ;;  %9669 = vmatprep.subr.bf16.mxu1 %v7259_v34  ;;  %v7261_v21 = vpack.c.bf16 %v10928_v10, %v10927_v13 }
0x1461   : > { %v10931_v32 = vpop.permute.xlu0 %10930  ;;  %v10941_v49 = vpop.permute.xlu1 %10940 }
0x1462   : > { %v10933_v31 = vunpack.i.h.bf16 %v10931_v32  ;;  %v10932_v62 = vunpack.i.l.bf16 %v10931_v32  ;;  %v10943_v1 = vunpack.i.h.bf16 %v10941_v49  ;;  %v10942_v14 = vunpack.i.l.bf16 %v10941_v49 }
0x1463   : > { %9670 = vmatpush3.bf16.msra.mxu1 %v7251_v6 }
0x1464   : > { %v7252_v59 = vpack.c.bf16 %v10933_v31, %v10932_v62  ;;  %9671 = vmatprep.subr.bf16.mxu1 %v7260_v50  ;;  %v7262_v61 = vpack.c.bf16 %v10943_v1, %v10942_v14 }
0x1465   : > { %v10936_v55 = vpop.permute.xlu0 %10935  ;;  %v10951_v45 = vpop.permute.xlu1 %10950 }
0x1466   : > { %v10938_v33 = vunpack.i.h.bf16 %v10936_v55  ;;  %v10937_v53 = vunpack.i.l.bf16 %v10936_v55  ;;  %v10953_v54 = vunpack.i.h.bf16 %v10951_v45  ;;  %v10952_v37 = vunpack.i.l.bf16 %v10951_v45 }
0x1467   : > { %9672 = vmatpush3.bf16.msra.mxu1 %v7252_v59 }
0x1468   : > { %v7253_v7 = vpack.c.bf16 %v10938_v33, %v10937_v53  ;;  %9673 = vmatprep.subr.bf16.mxu1 %v7261_v21  ;;  %v7263_v2 = vpack.c.bf16 %v10953_v54, %v10952_v37 }
0x1469   : > { %v10946_v35 = vpop.permute.xlu0 %10945 }
0x146a   : > { %v10948_v40 = vunpack.i.h.bf16 %v10946_v35  ;;  %v10947_v58 = vunpack.i.l.bf16 %v10946_v35  ;;  %9853 = vmatprep.subr.bf16.mxu0 %v7263_v2 }
0x146b   : > { %9674 = vmatpush3.bf16.msra.mxu1 %v7253_v7  ;;  %9854 = vmatpush3.bf16.msra.mxu0 %v7263_v2  ;;  %v7468_v2 = vld [vmem:[%s16532_s2] sm:$0x1]  ;;  %s16319_s2 = smov 114  }
0x146c   : > { %v7254_v5 = vpack.c.bf16 %v10948_v40, %v10947_v58  ;;  %9675 = vmatprep.subr.bf16.mxu1 %v7262_v61  ;;  %v7473_v35 = vrot.slane %v7468_v2, %v16489_v12 }
0x146d   : > { %v10956_v42 = vpop.permute.xlu0 %10955 }
0x146e   : > { %v10958_v17 = vunpack.i.h.bf16 %v10956_v42  ;;  %v10957_v18 = vunpack.i.l.bf16 %v10956_v42 }
0x146f   : > { %9676 = vmatpush3.bf16.msra.mxu1 %v7254_v5 }
0x1470   : > { %v7264_v52 = vpack.c.bf16 %v10958_v17, %v10957_v18 }
0x1472   : > { %7354 = vmatmul.mubr.bf16.vlgmr.msra.gmra.mrb[48].mxu1 %v11297_v26  ;;  %9855 = vmatprep.subr.bf16.mxu0 %v7264_v52 }
0x1473   : > { %9856 = vmatpush3.bf16.msra.mxu0 %v7264_v52  ;;  %7361 = vmatprep.mubr.bf16.mxu1 %v11302_v39 }
0x1476   : > { %9858 = vmatmul.mubr.msk.bf16.vlgmr.msra.gmra.mrb[48].mxu0 %vm7039_vm12, %v11301_v28  ;;  %v7268_v47 = vpop.permute.xlu1 %7267 }
0x147a   : > { %7362 = vmatmul.mubr.bf16.gmra.mrb[52].mxu1 %v11304_v30  ;;  %v7278_v19 = vpop.permute.xlu1 %7277 }
0x147e   : > { %v7273_v11 = vpop.permute.xlu0 %7272 }
0x1482   : > { %v7283_v49 = vpop.permute.xlu0 %7282 }
0x1545   : > { %v9677_v60 = vpop.f32.mrb[48].mxu1 }
0x1546   : > { %v9678_v44 = vpop.f32.mrb[49].mxu1 }
0x1547   : > { %v9679_v51 = vadd.f32 %v9678_v44, %v9677_v60  ;;  %v9680_v57 = vpop.f32.mrb[50].mxu1  ;;  %v7487_v60 = vsub.f32 1.0, %v7468_v2 }
0x1548   : > { %v9681_v23 = vpop.f32.mrb[51].mxu1 }
0x1549   : > { %v9682_v24 = vadd.f32 %v9681_v23, %v9680_v57  ;;  %v9859_v46 = vpop.f32.mrb[48].mxu0  ;;  %v7356_v41 = vadd.f32 %v9679_v51, %v7268_v47  ;;  %v7492_v44 = vrot.slane %v7487_v60, %v16489_v12  ;;  %v7502_v51 = vld [vmem:[%s16533_s7] sm:$0x1]  ;;  %s11455_s7 = smov 100  }
0x154a   : > { %v7404_v22 = vpop.f32.mrb[49].mxu0  ;;  %v7507_v16 = vrot.slane %v7502_v51, %v16489_v12 }
0x154b   : > { %v7405_v29 = vadd.f32 %v7404_v22, %v7356_v41  ;;  %v9860_v0 = vpop.f32.mrb[50].mxu0  ;;  %v7359_v20 = vadd.f32 %v9682_v24, %v7273_v11 }
0x154c   : > { %v7407_v8 = vpop.f32.mrb[51].mxu0 }
0x154d   : > { %v7419_v9 = vmax.f32 %v7405_v29, 0.0  ;;  %v7408_v4 = vadd.f32 %v7407_v8, %v7359_v20  ;;  %v9683_v3 = vpop.f32.mrb[52].mxu1 }
0x154e   : > { %v9684_v15 = vpop.f32.mrb[53].mxu1 }
0x154f   : > { %v7430_v36 = vmul.f32 %v9564_v43, %v7419_v9  ;;  %v7420_v34 = vmax.f32 %v7408_v4, 0.0  ;;  %v9685_v25 = vadd.f32 %v9684_v15, %v9683_v3  ;;  %v9686_v48 = vpop.f32.mrb[54].mxu1  ;;  %v7521_v4 = vsub.f32 1.0, %v7502_v51  ;;  %v7536_v15 = vld [vmem:[%s16534_s1] sm:$0x1]  ;;  %s16322_s1 = smov 7  }
0x1550   : > { %v9687_v56 = vpop.f32.mrb[55].mxu1 }
0x1551   : > { %v7441_v6 = vmul.f32 %v7439_v38, %v7430_v36  ;;  %v7431_v10 = vmul.f32 %v9564_v43, %v7420_v34  ;;  %v7364_v13 = vadd.f32 %v9685_v25, %v7278_v19  ;;  %v9688_v32 = vadd.f32 %v9687_v56, %v9686_v48 }
0x1552   : > { %v7460_v31 = vmul.f32 %v7458_v27, %v7430_v36  ;;  %v7526_v3 = vrot.slane %v7521_v4, %v16489_v12  ;;  %v7541_v36 = vrot.slane %v7536_v15, %v16489_v12 }
0x1553   : > { %v7442_v62 = vmul.f32 %v7439_v38, %v7431_v10  ;;  %v7413_v50 = vadd.f32 %v9859_v46, %v7364_v13  ;;  %v7367_v59 = vadd.f32 %v9688_v32, %v7283_v49  ;;  %7445 = vrot.lane.b32.xlu1 %v7441_v6, %s16503_s18  ;;  %v7461_v1 = vmul.f32 %v7458_v27, %v7431_v10 }
0x1555   : > { %v7421_v14 = vmax.f32 %v7413_v50, 0.0  ;;  %v7416_v55 = vadd.f32 %v9860_v0, %v7367_v59  ;;  %7447 = vrot.lane.b32.xlu0 %v7442_v62, %s16503_s18 }
0x1557   : > { %v7432_v45 = vmul.f32 %v9564_v43, %v7421_v14  ;;  %v7422_v21 = vmax.f32 %v7416_v55, 0.0  ;;  %v7555_v14 = vsub.f32 1.0, %v7536_v15 }
0x1559   : > { %v7433_v33 = vmul.f32 %v9564_v43, %v7422_v21  ;;  %v7443_v53 = vmul.f32 %v7439_v38, %v7432_v45  ;;  %v7462_v54 = vmul.f32 %v7458_v27, %v7432_v45  ;;  %v7560_v55 = vrot.slane %v7555_v14, %v16489_v12 }
0x155b   : > { %7449 = vrot.lane.b32.xlu1 %v7443_v53, %s16503_s18  ;;  %v7444_v37 = vmul.f32 %v7439_v38, %v7433_v33  ;;  %v7463_v7 = vmul.f32 %v7458_v27, %v7433_v33 }
0x155d   : > { %7451 = vrot.lane.b32.xlu0 %v7444_v37, %s16503_s18 }
0x15c5   : > { %v7446_v40 = vpop.permute.xlu1 %7445 }
0x15c6   : > { %v7464_v58 = vadd.f32 %v7460_v31, %v7446_v40 }
0x15c7   : > { %v7448_v61 = vpop.permute.xlu0 %7447 }
0x15c8   : > { %v7475_v5 = vmul.f32 %v7473_v35, %v7464_v58  ;;  %v7465_v42 = vadd.f32 %v7461_v1, %v7448_v61  ;;  %v7494_v57 = vmul.f32 %v7492_v44, %v7464_v58 }
0x15ca   : > { %v7476_v17 = vmul.f32 %v7473_v35, %v7465_v42  ;;  %7479 = vrot.lane.b32.xlu1 %v7475_v5, %s16520_s5  ;;  %v7495_v24 = vmul.f32 %v7492_v44, %v7465_v42 }
0x15cc   : > { %7481 = vrot.lane.b32.xlu0 %v7476_v17, %s16520_s5 }
0x15cd   : > { %v7450_v18 = vpop.permute.xlu1 %7449 }
0x15ce   : > { %v7466_v26 = vadd.f32 %v7462_v54, %v7450_v18 }
0x15cf   : > { %v7452_v39 = vpop.permute.xlu0 %7451 }
0x15d0   : > { %v7477_v52 = vmul.f32 %v7473_v35, %v7466_v26  ;;  %v7467_v28 = vadd.f32 %v7463_v7, %v7452_v39  ;;  %v7496_v63 = vmul.f32 %v7492_v44, %v7466_v26 }
0x15d2   : > { %v7478_v30 = vmul.f32 %v7473_v35, %v7467_v28  ;;  %7483 = vrot.lane.b32.xlu1 %v7477_v52, %s16520_s5  ;;  %v7497_v20 = vmul.f32 %v7492_v44, %v7467_v28  ;;  %v11307_v52 = vld [vmem:[%s16536_s0 + $0x4] ss:$12 sps:$4 sm:$0xff]   ;;  %v11308_v28 = vld [vmem:[%s16536_s0 + $0x8] ss:$12 sps:$4 sm:$0xff]  }
0x15d3   : > { %7760 = vmatprep.mubr.bf16.mxu0 %v11307_v52  ;;  %9865 = vmatprep.mubr.msk.bf16.mxu1 %vm7039_vm12, %v11308_v28 }
0x15d4   : > { %7485 = vrot.lane.b32.xlu0 %v7478_v30, %s16520_s5 }
0x163c   : > { %v7480_v47 = vpop.permute.xlu1 %7479 }
0x163d   : > { %v7498_v23 = vadd.f32 %v7494_v57, %v7480_v47 }
0x163e   : > { %v7482_v46 = vpop.permute.xlu0 %7481 }
0x163f   : > { %v7509_v41 = vmul.f32 %v7507_v16, %v7498_v23  ;;  %v7499_v11 = vadd.f32 %v7495_v24, %v7482_v46  ;;  %v7528_v27 = vmul.f32 %v7526_v3, %v7498_v23 }
0x1641   : > { %v7510_v22 = vmul.f32 %v7507_v16, %v7499_v11  ;;  %7513 = vrot.lane.b32.xlu1 %v7509_v41, %s16319_s2  ;;  %v7529_v48 = vmul.f32 %v7526_v3, %v7499_v11 }
0x1643   : > { %7515 = vrot.lane.b32.xlu0 %v7510_v22, %s16319_s2 }
0x1644   : > { %v7484_v29 = vpop.permute.xlu1 %7483 }
0x1645   : > { %v7500_v0 = vadd.f32 %v7496_v63, %v7484_v29 }
0x1646   : > { %v7486_v43 = vpop.permute.xlu0 %7485 }
0x1647   : > { %v7511_v8 = vmul.f32 %v7507_v16, %v7500_v0  ;;  %v7501_v9 = vadd.f32 %v7497_v20, %v7486_v43  ;;  %v7530_v13 = vmul.f32 %v7526_v3, %v7500_v0 }
0x1649   : > { %v7512_v38 = vmul.f32 %v7507_v16, %v7501_v9  ;;  %7517 = vrot.lane.b32.xlu1 %v7511_v8, %s16319_s2  ;;  %v7531_v31 = vmul.f32 %v7526_v3, %v7501_v9 }
0x164b   : > { %7519 = vrot.lane.b32.xlu0 %v7512_v38, %s16319_s2  ;;  %s16535_s2 = smov 120  }
0x16b3   : > { %v7514_v34 = vpop.permute.xlu1 %7513 }
0x16b4   : > { %v7532_v25 = vadd.f32 %v7528_v27, %v7514_v34 }
0x16b5   : > { %v7516_v19 = vpop.permute.xlu0 %7515 }
0x16b6   : > { %v7543_v56 = vmul.f32 %v7541_v36, %v7532_v25  ;;  %v7533_v6 = vadd.f32 %v7529_v48, %v7516_v19  ;;  %v7562_v45 = vmul.f32 %v7560_v55, %v7532_v25 }
0x16b8   : > { %v7544_v10 = vmul.f32 %v7541_v36, %v7533_v6  ;;  %7547 = vrot.lane.b32.xlu1 %v7543_v56, %s11455_s7  ;;  %v7563_v53 = vmul.f32 %v7560_v55, %v7533_v6 }
0x16ba   : > { %7549 = vrot.lane.b32.xlu0 %v7544_v10, %s11455_s7 }
0x16bb   : > { %v7518_v32 = vpop.permute.xlu1 %7517 }
0x16bc   : > { %v7534_v49 = vadd.f32 %v7530_v13, %v7518_v32 }
0x16bd   : > { %v7520_v62 = vpop.permute.xlu0 %7519 }
0x16be   : > { %v7545_v50 = vmul.f32 %v7541_v36, %v7534_v49  ;;  %v7535_v59 = vadd.f32 %v7531_v31, %v7520_v62  ;;  %v7564_v7 = vmul.f32 %v7560_v55, %v7534_v49 }
0x16c0   : > { %v7546_v1 = vmul.f32 %v7541_v36, %v7535_v59  ;;  %7551 = vrot.lane.b32.xlu1 %v7545_v50, %s11455_s7  ;;  %v7565_v40 = vmul.f32 %v7560_v55, %v7535_v59 }
0x16c2   : > { %7553 = vrot.lane.b32.xlu0 %v7546_v1, %s11455_s7  ;;  %s16324_s7 = smov 121  }
0x172a   : > { %v7548_v21 = vpop.permute.xlu1 %7547 }
0x172b   : > { %v7566_v33 = vadd.f32 %v7562_v45, %v7548_v21 }
0x172c   : > { %v7550_v54 = vpop.permute.xlu0 %7549 }
0x172d   : > { %v7567_v37 = vadd.f32 %v7563_v53, %v7550_v54  ;;  %7570 = vrot.lane.b32.xlu1 %v7566_v33, %s16322_s1 }
0x172f   : > { %7572 = vrot.lane.b32.xlu0 %v7567_v37, %s16322_s1 }
0x1732   : > { %v7552_v2 = vpop.permute.xlu1 %7551 }
0x1733   : > { %v7568_v35 = vadd.f32 %v7564_v7, %v7552_v2 }
0x1734   : > { %v7554_v58 = vpop.permute.xlu0 %7553 }
0x1735   : > { %v7569_v61 = vadd.f32 %v7565_v40, %v7554_v58  ;;  %7574 = vrot.lane.b32.xlu1 %v7568_v35, %s16322_s1 }
0x1737   : > { %7576 = vrot.lane.b32.xlu0 %v7569_v61, %s16322_s1  ;;  %s16537_s1 = sld [smem:[#allocation32_spill]] }
0x173d   : > { %v7586_v30 = vld [vmem:[%s16537_s1] sm:$0xff]  ;;  %v7588_v60 = vld [vmem:[%s16537_s1 + $0x10] sm:$0xff]  ;;  %v7587_v44 = vld [vmem:[%s16537_s1 + $0x8] sm:$0xff] }
0x173e   : > { %v7589_v51 = vld [vmem:[%s16537_s1 + $0x18] sm:$0xff]  ;;  %s16544_s1 = smov 115  }
0x179f   : > { %v15928_v5 = vpop.permute.xlu1 %7570 }
0x17a1   : > { %v15930_v42 = vpop.permute.xlu0 %7572 }
0x17a2   : > { %v10959_v17 = vpack.i.bf16 %v15930_v42, %v15928_v5  ;;  %v7654_v46 = vpack.c.bf16 %v15930_v42, %v15928_v5 }
0x17a4   : > { %10960 = vrot.lane.b32.xlu1 %v10959_v17, %s16324_s7 }
0x17a7   : > { %v15936_v18 = vpop.permute.xlu1 %7574 }
0x17a8   : > { %10970 = vrot.lane.b32.xlu1 %v10959_v17, %s16535_s2 }
0x17a9   : > { %v15938_v26 = vpop.permute.xlu0 %7576 }
0x17aa   : > { %v10979_v39 = vpack.i.bf16 %v15938_v26, %v15936_v18  ;;  %v7655_v9 = vpack.c.bf16 %v15938_v26, %v15936_v18 }
0x17ac   : > { %10980 = vrot.lane.b32.xlu1 %v10979_v39, %s16535_s2  ;;  %10965 = vrot.lane.b32.xlu0 %v10979_v39, %s16324_s7  ;;  %s16538_s7 = smov 114  }
0x17b0   : > { %10985 = vrot.lane.b32.xlu1 %v10959_v17, %s16524_s3  ;;  %10975 = vrot.lane.b32.xlu0 %v10959_v17, %s16503_s18 }
0x17b4   : > { %11000 = vrot.lane.b32.xlu1 %v10979_v39, %s16524_s3  ;;  %10990 = vrot.lane.b32.xlu0 %v10979_v39, %s16503_s18 }
0x17b8   : > { %11005 = vrot.lane.b32.xlu1 %v10959_v17, %s16329_s9  ;;  %10995 = vrot.lane.b32.xlu0 %v10959_v17, %s16520_s5 }
0x17bc   : > { %11020 = vrot.lane.b32.xlu1 %v10979_v39, %s16329_s9  ;;  %11010 = vrot.lane.b32.xlu0 %v10979_v39, %s16520_s5  ;;  %s16540_s9 = smov 7  }
0x17c0   : > { %11030 = vrot.lane.b32.xlu1 %v10959_v17, %s16538_s7  ;;  %11015 = vrot.lane.b32.xlu0 %v10959_v17, %s16327_s10 }
0x17c4   : > { %7674 = vperm.xlu1 %10558, %v7586_v30   ;;  %11025 = vrot.lane.b32.xlu0 %v10979_v39, %s16327_s10  ;;  %s16539_s10 = sld [smem:[#allocation33_spill]] }
0x17c8   : > { %7684 = vperm.xlu1 %10558, %v7588_v60   ;;  %11035 = vrot.lane.b32.xlu0 %v10979_v39, %s16538_s7 }
0x17cc   : > { %7679 = vperm.xlu0 %10217, %v7587_v44  }
0x17d0   : > { %7689 = vperm.xlu0 %10217, %v7589_v51  }
0x1816   : > { %v10961_v57 = vpop.permute.xlu1 %10960 }
0x1817   : > { %v10963_v16 = vunpack.i.h.bf16 %v10961_v57  ;;  %v10962_v47 = vunpack.i.l.bf16 %v10961_v57 }
0x1819   : > { %v7662_v23 = vpack.c.bf16 %v10963_v16, %v10962_v47 }
0x181a   : > { %v10971_v24 = vpop.permute.xlu1 %10970 }
0x181b   : > { %9693 = vmatprep.subr.bf16.mxu0 %v7662_v23  ;;  %v10973_v41 = vunpack.i.h.bf16 %v10971_v24  ;;  %v10972_v11 = vunpack.i.l.bf16 %v10971_v24 }
0x181c   : > { %9694 = vmatpush3.bf16.msra.mxu0 %v7654_v46 }
0x181d   : > { %v7664_v38 = vpack.c.bf16 %v10973_v41, %v10972_v11  ;;  %v11305_v41 = vld [vmem:[%s16536_s0] ss:$12 sps:$4 sm:$0xff]   ;;  %v11310_v11 = vld [vmem:[%s16536_s0 + $0x1c] ss:$12 sps:$4 sm:$0xff]  }
0x181e   : > { %v10966_v22 = vpop.permute.xlu0 %10965  ;;  %v10981_v63 = vpop.permute.xlu1 %10980 }
0x181f   : > { %v10968_v29 = vunpack.i.h.bf16 %v10966_v22  ;;  %v10967_v0 = vunpack.i.l.bf16 %v10966_v22  ;;  %v10983_v4 = vunpack.i.h.bf16 %v10981_v63  ;;  %v10982_v3 = vunpack.i.l.bf16 %v10981_v63  ;;  %v11309_v63 = vld [vmem:[%s16536_s0 + $0x20] ss:$12 sps:$4 sm:$0xff]  }
0x1821   : > { %v7663_v20 = vpack.c.bf16 %v10968_v29, %v10967_v0  ;;  %v7665_v10 = vpack.c.bf16 %v10983_v4, %v10982_v3  ;;  %v11312_v29 = vld [vmem:[%s16536_s0 + $0x18] ss:$12 sps:$4 sm:$0xff]   ;;  %s16542_s0 = sld [smem:[#allocation34_spill]] }
0x1822   : > { %v10976_v43 = vpop.permute.xlu0 %10975  ;;  %v10986_v8 = vpop.permute.xlu1 %10985 }
0x1823   : > { %v10978_v15 = vunpack.i.h.bf16 %v10976_v43  ;;  %v10977_v27 = vunpack.i.l.bf16 %v10976_v43  ;;  %9695 = vmatprep.subr.bf16.mxu0 %v7663_v20  ;;  %v10988_v34 = vunpack.i.h.bf16 %v10986_v8  ;;  %v10987_v25 = vunpack.i.l.bf16 %v10986_v8 }
0x1824   : > { %9696 = vmatpush3.bf16.msra.mxu0 %v7655_v9 }
0x1825   : > { %v7656_v36 = vpack.c.bf16 %v10978_v15, %v10977_v27  ;;  %9697 = vmatprep.subr.bf16.mxu0 %v7664_v38  ;;  %v7666_v31 = vpack.c.bf16 %v10988_v34, %v10987_v25 }
0x1826   : > { %v10991_v48 = vpop.permute.xlu0 %10990  ;;  %v11001_v19 = vpop.permute.xlu1 %11000 }
0x1827   : > { %v10993_v56 = vunpack.i.h.bf16 %v10991_v48  ;;  %v10992_v6 = vunpack.i.l.bf16 %v10991_v48  ;;  %v11003_v62 = vunpack.i.h.bf16 %v11001_v19  ;;  %v11002_v50 = vunpack.i.l.bf16 %v11001_v19  ;;  %v9573_v19 = vld [vmem:[%s16539_s10] ss:$0 sm:$0xff]  ;;  %s16541_s10 = smov 121  }
0x1828   : > { %9698 = vmatpush3.bf16.msra.mxu0 %v7656_v36 }
0x1829   : > { %v7657_v13 = vpack.c.bf16 %v10993_v56, %v10992_v6  ;;  %9699 = vmatprep.subr.bf16.mxu0 %v7665_v10  ;;  %v7667_v37 = vpack.c.bf16 %v11003_v62, %v11002_v50 }
0x182a   : > { %v10996_v32 = vpop.permute.xlu0 %10995  ;;  %v11006_v49 = vpop.permute.xlu1 %11005 }
0x182b   : > { %v10998_v59 = vunpack.i.h.bf16 %v10996_v32  ;;  %v10997_v1 = vunpack.i.l.bf16 %v10996_v32  ;;  %v11008_v55 = vunpack.i.h.bf16 %v11006_v49  ;;  %v11007_v45 = vunpack.i.l.bf16 %v11006_v49 }
0x182c   : > { %9700 = vmatpush3.bf16.msra.mxu0 %v7657_v13 }
0x182d   : > { %v7658_v14 = vpack.c.bf16 %v10998_v59, %v10997_v1  ;;  %9701 = vmatprep.subr.bf16.mxu0 %v7666_v31  ;;  %v7668_v61 = vpack.c.bf16 %v11008_v55, %v11007_v45 }
0x182e   : > { %v11011_v21 = vpop.permute.xlu0 %11010  ;;  %v11021_v33 = vpop.permute.xlu1 %11020 }
0x182f   : > { %v11013_v53 = vunpack.i.h.bf16 %v11011_v21  ;;  %v11012_v54 = vunpack.i.l.bf16 %v11011_v21  ;;  %v11023_v2 = vunpack.i.h.bf16 %v11021_v33  ;;  %v11022_v35 = vunpack.i.l.bf16 %v11021_v33 }
0x1830   : > { %9702 = vmatpush3.bf16.msra.mxu0 %v7658_v14 }
0x1831   : > { %v7659_v7 = vpack.c.bf16 %v11013_v53, %v11012_v54  ;;  %9703 = vmatprep.subr.bf16.mxu0 %v7667_v37  ;;  %v7669_v16 = vpack.c.bf16 %v11023_v2, %v11022_v35 }
0x1832   : > { %v11016_v40 = vpop.permute.xlu0 %11015  ;;  %v11031_v58 = vpop.permute.xlu1 %11030 }
0x1833   : > { %v11018_v17 = vunpack.i.h.bf16 %v11016_v40  ;;  %v11017_v39 = vunpack.i.l.bf16 %v11016_v40  ;;  %v11033_v52 = vunpack.i.h.bf16 %v11031_v58  ;;  %v11032_v28 = vunpack.i.l.bf16 %v11031_v58 }
0x1834   : > { %9704 = vmatpush3.bf16.msra.mxu0 %v7659_v7 }
0x1835   : > { %v7660_v30 = vpack.c.bf16 %v11018_v17, %v11017_v39  ;;  %9705 = vmatprep.subr.bf16.mxu0 %v7668_v61  ;;  %v7670_v60 = vpack.c.bf16 %v11033_v52, %v11032_v28 }
0x1836   : > { %v11026_v44 = vpop.permute.xlu0 %11025 }
0x1837   : > { %v11028_v51 = vunpack.i.h.bf16 %v11026_v44  ;;  %v11027_v57 = vunpack.i.l.bf16 %v11026_v44  ;;  %9861 = vmatprep.subr.bf16.mxu1 %v7670_v60 }
0x1838   : > { %9706 = vmatpush3.bf16.msra.mxu0 %v7660_v30  ;;  %9862 = vmatpush3.bf16.msra.mxu1 %v7670_v60 }
0x1839   : > { %v7661_v47 = vpack.c.bf16 %v11028_v51, %v11027_v57  ;;  %9707 = vmatprep.subr.bf16.mxu0 %v7669_v16 }
0x183a   : > { %v11036_v23 = vpop.permute.xlu0 %11035 }
0x183b   : > { %v11038_v24 = vunpack.i.h.bf16 %v11036_v23  ;;  %v11037_v46 = vunpack.i.l.bf16 %v11036_v23 }
0x183c   : > { %9708 = vmatpush3.bf16.msra.mxu0 %v7661_v47 }
0x183d   : > { %v7671_v22 = vpack.c.bf16 %v11038_v24, %v11037_v46 }
0x183f   : > { %7761 = vmatmul.mubr.bf16.vlgmr.msra.gmra.mrb[52].mxu0 %v11305_v41  ;;  %9863 = vmatprep.subr.bf16.mxu1 %v7671_v22 }
0x1840   : > { %9864 = vmatpush3.bf16.msra.mxu1 %v7671_v22  ;;  %7768 = vmatprep.mubr.bf16.mxu0 %v11310_v11 }
0x1843   : > { %9866 = vmatmul.mubr.msk.bf16.vlgmr.msra.gmra.mrb[56].mxu1 %vm7039_vm12, %v11309_v63  ;;  %v7675_v9 = vpop.permute.xlu1 %7674 }
0x1847   : > { %7769 = vmatmul.mubr.bf16.gmra.mrb[56].mxu0 %v11312_v29  ;;  %v7685_v59 = vpop.permute.xlu1 %7684 }
0x184b   : > { %v7680_v27 = vpop.permute.xlu0 %7679 }
0x184f   : > { %v7690_v21 = vpop.permute.xlu0 %7689 }
0x1912   : > { %v9709_v0 = vpop.f32.mrb[52].mxu0 }
0x1913   : > { %v9710_v20 = vpop.f32.mrb[53].mxu0 }
0x1914   : > { %v9711_v43 = vadd.f32 %v9710_v20, %v9709_v0  ;;  %v9712_v8 = vpop.f32.mrb[54].mxu0 }
0x1915   : > { %v9713_v38 = vpop.f32.mrb[55].mxu0 }
0x1916   : > { %v9714_v4 = vadd.f32 %v9713_v38, %v9712_v8  ;;  %v9867_v3 = vpop.f32.mrb[56].mxu1  ;;  %v7763_v15 = vadd.f32 %v9711_v43, %v7675_v9 }
0x1917   : > { %v7811_v36 = vpop.f32.mrb[57].mxu1 }
0x1918   : > { %v7812_v34 = vadd.f32 %v7811_v36, %v7763_v15  ;;  %v9868_v25 = vpop.f32.mrb[58].mxu1  ;;  %v7766_v48 = vadd.f32 %v9714_v4, %v7680_v27 }
0x1919   : > { %v7814_v56 = vpop.f32.mrb[59].mxu1 }
0x191a   : > { %v7826_v6 = vmax.f32 %v7812_v34, 0.0  ;;  %v7815_v10 = vadd.f32 %v7814_v56, %v7766_v48  ;;  %v9715_v13 = vpop.f32.mrb[56].mxu0 }
0x191b   : > { %v9716_v32 = vpop.f32.mrb[57].mxu0 }
0x191c   : > { %v7837_v49 = vmul.f32 %v9573_v19, %v7826_v6  ;;  %v7827_v31 = vmax.f32 %v7815_v10, 0.0  ;;  %v9717_v62 = vadd.f32 %v9716_v32, %v9715_v13  ;;  %v9718_v50 = vpop.f32.mrb[58].mxu0 }
0x191d   : > { %v9719_v1 = vpop.f32.mrb[59].mxu0 }
0x191e   : > { %v7838_v14 = vmul.f32 %v9573_v19, %v7827_v31  ;;  %v7771_v55 = vadd.f32 %v9717_v62, %v7685_v59  ;;  %v9720_v45 = vadd.f32 %v9719_v1, %v9718_v50  ;;  %7841 = vrot.lane.b32.xlu1 %v7837_v49, %s16540_s9 }
0x1920   : > { %v7820_v33 = vadd.f32 %v9867_v3, %v7771_v55  ;;  %v7774_v53 = vadd.f32 %v9720_v45, %v7690_v21  ;;  %7843 = vrot.lane.b32.xlu0 %v7838_v14, %s16540_s9 }
0x1922   : > { %v7828_v54 = vmax.f32 %v7820_v33, 0.0  ;;  %v7823_v37 = vadd.f32 %v9868_v25, %v7774_v53 }
0x1924   : > { %v7839_v7 = vmul.f32 %v9573_v19, %v7828_v54  ;;  %v7829_v2 = vmax.f32 %v7823_v37, 0.0 }
0x1926   : > { %v7840_v35 = vmul.f32 %v9573_v19, %v7829_v2  ;;  %7845 = vrot.lane.b32.xlu1 %v7839_v7, %s16540_s9 }
0x1928   : > { %7847 = vrot.lane.b32.xlu0 %v7840_v35, %s16540_s9  ;;  %s16543_s9 = sld [smem:[#allocation35_spill]] }
0x192e   : > { %v7863_v57 = vld [vmem:[%s16543_s9 + $0x10] sm:$0xff]  ;;  %v7862_v16 = vld [vmem:[%s16543_s9 + $0x8] sm:$0xff]  ;;  %v7864_v47 = vld [vmem:[%s16543_s9 + $0x18] sm:$0xff] }
0x1990   : > { %v7842_v40 = vpop.permute.xlu1 %7841 }
0x1991   : > { %v7849_v61 = vadd.f32 %v7842_v40, %v15928_v5 }
0x1992   : > { %v7844_v58 = vpop.permute.xlu0 %7843 }
0x1993   : > { %v7850_v17 = vadd.f32 %v7844_v58, %v15930_v42  ;;  %v11315_v42 = vld [vmem:[%s16542_s0 + $0x4] ss:$12 sps:$4 sm:$0xff]  }
0x1994   : > { %8035 = vmatprep.mubr.bf16.mxu0 %v11315_v42 }
0x1995   : > { %v11039_v39 = vpack.i.bf16 %v7850_v17, %v7849_v61  ;;  %v7929_v52 = vpack.c.bf16 %v7850_v17, %v7849_v61 }
0x1997   : > { %11040 = vrot.lane.b32.xlu1 %v11039_v39, %s16541_s10 }
0x1998   : > { %v7846_v28 = vpop.permute.xlu1 %7845 }
0x1999   : > { %v7851_v60 = vadd.f32 %v7846_v28, %v15936_v18  ;;  %v11316_v18 = vld [vmem:[%s16542_s0 + $0x8] ss:$12 sps:$4 sm:$0xff]  }
0x199a   : > { %v7848_v30 = vpop.permute.xlu0 %7847  ;;  %9873 = vmatprep.mubr.msk.bf16.mxu1 %vm7039_vm12, %v11316_v18 }
0x199b   : > { %v7852_v44 = vadd.f32 %v7848_v30, %v15938_v26  ;;  %11050 = vrot.lane.b32.xlu1 %v11039_v39, %s16535_s2  ;;  %v7861_v26 = vld [vmem:[%s16543_s9] sm:$0xff] }
0x199d   : > { %v11059_v51 = vpack.i.bf16 %v7852_v44, %v7851_v60  ;;  %v7930_v5 = vpack.c.bf16 %v7852_v44, %v7851_v60 }
0x199f   : > { %11060 = vrot.lane.b32.xlu1 %v11059_v51, %s16535_s2  ;;  %11045 = vrot.lane.b32.xlu0 %v11059_v51, %s16541_s10  ;;  %s16545_s10 = smov 122  }
0x19a3   : > { %11065 = vrot.lane.b32.xlu1 %v11039_v39, %s16524_s3  ;;  %11055 = vrot.lane.b32.xlu0 %v11039_v39, %s16503_s18 }
0x19a7   : > { %11080 = vrot.lane.b32.xlu1 %v11059_v51, %s16524_s3  ;;  %11070 = vrot.lane.b32.xlu0 %v11059_v51, %s16503_s18  ;;  %s16546_s3 = sld [smem:[#allocation36_spill]] }
0x19ab   : > { %11085 = vrot.lane.b32.xlu1 %v11039_v39, %s16544_s1  ;;  %11075 = vrot.lane.b32.xlu0 %v11039_v39, %s16520_s5 }
0x19af   : > { %11100 = vrot.lane.b32.xlu1 %v11059_v51, %s16544_s1  ;;  %11090 = vrot.lane.b32.xlu0 %v11059_v51, %s16520_s5  ;;  %s16547_s1 = sld [smem:[#allocation38_spill]] }
0x19b3   : > { %11110 = vrot.lane.b32.xlu1 %v11039_v39, %s16538_s7  ;;  %11095 = vrot.lane.b32.xlu0 %v11039_v39, %s16545_s10 }
0x19b7   : > { %7949 = vperm.xlu1 %10558, %v7861_v26   ;;  %11105 = vrot.lane.b32.xlu0 %v11059_v51, %s16545_s10 }
0x19bb   : > { %7959 = vperm.xlu1 %10558, %v7863_v57   ;;  %11115 = vrot.lane.b32.xlu0 %v11059_v51, %s16538_s7  ;;  %s16548_s7 = sld [smem:[#allocation37_spill]] }
0x19bf   : > { %7954 = vperm.xlu0 %10217, %v7862_v16  }
0x19c3   : > { %7964 = vperm.xlu0 %10217, %v7864_v47  }
0x1a09   : > { %v11041_v23 = vpop.permute.xlu1 %11040 }
0x1a0a   : > { %v11043_v24 = vunpack.i.h.bf16 %v11041_v23  ;;  %v11042_v46 = vunpack.i.l.bf16 %v11041_v23  ;;  %v11313_v23 = vld [vmem:[%s16542_s0] ss:$12 sps:$4 sm:$0xff]  }
0x1a0c   : > { %v7937_v41 = vpack.c.bf16 %v11043_v24, %v11042_v46  ;;  %v11318_v24 = vld [vmem:[%s16542_s0 + $0x1c] ss:$12 sps:$4 sm:$0xff]  }
0x1a0d   : > { %v11051_v11 = vpop.permute.xlu1 %11050 }
0x1a0e   : > { %9725 = vmatprep.subr.bf16.mxu0 %v7937_v41  ;;  %v11053_v22 = vunpack.i.h.bf16 %v11051_v11  ;;  %v11052_v63 = vunpack.i.l.bf16 %v11051_v11  ;;  %v11317_v41 = vld [vmem:[%s16542_s0 + $0x20] ss:$12 sps:$4 sm:$0xff]   ;;  %v11320_v11 = vld [vmem:[%s16542_s0 + $0x18] ss:$12 sps:$4 sm:$0xff]   ;;  %s16336_s0 = smov 119  }
0x1a0f   : > { %9726 = vmatpush3.bf16.msra.mxu0 %v7929_v52 }
0x1a10   : > { %v7939_v4 = vpack.c.bf16 %v11053_v22, %v11052_v63 }
0x1a11   : > { %v11046_v29 = vpop.permute.xlu0 %11045  ;;  %v11061_v0 = vpop.permute.xlu1 %11060 }
0x1a12   : > { %v11048_v20 = vunpack.i.h.bf16 %v11046_v29  ;;  %v11047_v43 = vunpack.i.l.bf16 %v11046_v29  ;;  %v11063_v3 = vunpack.i.h.bf16 %v11061_v0  ;;  %v11062_v15 = vunpack.i.l.bf16 %v11061_v0 }
0x1a14   : > { %v7938_v8 = vpack.c.bf16 %v11048_v20, %v11047_v43  ;;  %v7940_v13 = vpack.c.bf16 %v11063_v3, %v11062_v15  ;;  %v8116_v20 = vld [vmem:[%s16546_s3] sm:$0x1]  ;;  %s16333_s3 = smov 5  }
0x1a15   : > { %v11056_v9 = vpop.permute.xlu0 %11055  ;;  %v11066_v38 = vpop.permute.xlu1 %11065 }
0x1a16   : > { %v11058_v27 = vunpack.i.h.bf16 %v11056_v9  ;;  %v11057_v36 = vunpack.i.l.bf16 %v11056_v9  ;;  %9727 = vmatprep.subr.bf16.mxu0 %v7938_v8  ;;  %v11068_v25 = vunpack.i.h.bf16 %v11066_v38  ;;  %v11067_v48 = vunpack.i.l.bf16 %v11066_v38 }
0x1a17   : > { %9728 = vmatpush3.bf16.msra.mxu0 %v7930_v5 }
0x1a18   : > { %v7931_v34 = vpack.c.bf16 %v11058_v27, %v11057_v36  ;;  %9729 = vmatprep.subr.bf16.mxu0 %v7939_v4  ;;  %v7941_v49 = vpack.c.bf16 %v11068_v25, %v11067_v48  ;;  %v8135_v27 = vsub.f32 1.0, %v8116_v20  ;;  %v9582_v48 = vld [vmem:[%s16547_s1] ss:$0 sm:$0xff]  ;;  %s16338_s1 = smov 123  }
0x1a19   : > { %v11071_v19 = vpop.permute.xlu0 %11070  ;;  %v11081_v56 = vpop.permute.xlu1 %11080 }
0x1a1a   : > { %v11073_v6 = vunpack.i.h.bf16 %v11071_v19  ;;  %v11072_v10 = vunpack.i.l.bf16 %v11071_v19  ;;  %v11083_v50 = vunpack.i.h.bf16 %v11081_v56  ;;  %v11082_v59 = vunpack.i.l.bf16 %v11081_v56 }
0x1a1b   : > { %9730 = vmatpush3.bf16.msra.mxu0 %v7931_v34 }
0x1a1c   : > { %v7932_v32 = vpack.c.bf16 %v11073_v6, %v11072_v10  ;;  %9731 = vmatprep.subr.bf16.mxu0 %v7940_v13  ;;  %v7942_v54 = vpack.c.bf16 %v11083_v50, %v11082_v59  ;;  %v8121_v6 = vrot.slane %v8116_v20, %v16489_v12 }
0x1a1d   : > { %v11076_v31 = vpop.permute.xlu0 %11075  ;;  %v11086_v62 = vpop.permute.xlu1 %11085 }
0x1a1e   : > { %v11078_v1 = vunpack.i.h.bf16 %v11076_v31  ;;  %v11077_v14 = vunpack.i.l.bf16 %v11076_v31  ;;  %v11088_v45 = vunpack.i.h.bf16 %v11086_v62  ;;  %v11087_v21 = vunpack.i.l.bf16 %v11086_v62 }
0x1a1f   : > { %9732 = vmatpush3.bf16.msra.mxu0 %v7932_v32 }
0x1a20   : > { %v7933_v55 = vpack.c.bf16 %v11078_v1, %v11077_v14  ;;  %9733 = vmatprep.subr.bf16.mxu0 %v7941_v49  ;;  %v7943_v35 = vpack.c.bf16 %v11088_v45, %v11087_v21  ;;  %v8140_v49 = vrot.slane %v8135_v27, %v16489_v12 }
0x1a21   : > { %v11091_v33 = vpop.permute.xlu0 %11090  ;;  %v11101_v53 = vpop.permute.xlu1 %11100 }
0x1a22   : > { %v11093_v37 = vunpack.i.h.bf16 %v11091_v33  ;;  %v11092_v7 = vunpack.i.l.bf16 %v11091_v33  ;;  %v11103_v40 = vunpack.i.h.bf16 %v11101_v53  ;;  %v11102_v58 = vunpack.i.l.bf16 %v11101_v53 }
0x1a23   : > { %9734 = vmatpush3.bf16.msra.mxu0 %v7933_v55 }
0x1a24   : > { %v7934_v2 = vpack.c.bf16 %v11093_v37, %v11092_v7  ;;  %9735 = vmatprep.subr.bf16.mxu0 %v7942_v54  ;;  %v7944_v5 = vpack.c.bf16 %v11103_v40, %v11102_v58 }
0x1a25   : > { %v11096_v61 = vpop.permute.xlu0 %11095  ;;  %v11111_v17 = vpop.permute.xlu1 %11110 }
0x1a26   : > { %v11098_v39 = vunpack.i.h.bf16 %v11096_v61  ;;  %v11097_v52 = vunpack.i.l.bf16 %v11096_v61  ;;  %v11113_v28 = vunpack.i.h.bf16 %v11111_v17  ;;  %v11112_v30 = vunpack.i.l.bf16 %v11111_v17 }
0x1a27   : > { %9736 = vmatpush3.bf16.msra.mxu0 %v7934_v2 }
0x1a28   : > { %v7935_v60 = vpack.c.bf16 %v11098_v39, %v11097_v52  ;;  %v7945_v44 = vpack.c.bf16 %v11113_v28, %v11112_v30  ;;  %9737 = vmatprep.subr.bf16.mxu0 %v7943_v35 }
0x1a29   : > { %v11106_v51 = vpop.permute.xlu0 %11105 }
0x1a2a   : > { %v11108_v42 = vunpack.i.h.bf16 %v11106_v51  ;;  %v11107_v18 = vunpack.i.l.bf16 %v11106_v51  ;;  %9869 = vmatprep.subr.bf16.mxu1 %v7945_v44 }
0x1a2b   : > { %9738 = vmatpush3.bf16.msra.mxu0 %v7935_v60  ;;  %9870 = vmatpush3.bf16.msra.mxu1 %v7945_v44  ;;  %v8150_v44 = vld [vmem:[%s16548_s7] sm:$0x1]  ;;  %s16549_s7 = sld [smem:[#allocation39_spill]] }
0x1a2c   : > { %v7936_v26 = vpack.c.bf16 %v11108_v42, %v11107_v18  ;;  %9739 = vmatprep.subr.bf16.mxu0 %v7944_v5  ;;  %v8155_v51 = vrot.slane %v8150_v44, %v16489_v12 }
0x1a2d   : > { %v11116_v57 = vpop.permute.xlu0 %11115 }
0x1a2e   : > { %v11118_v16 = vunpack.i.h.bf16 %v11116_v57  ;;  %v11117_v47 = vunpack.i.l.bf16 %v11116_v57 }
0x1a2f   : > { %9740 = vmatpush3.bf16.msra.mxu0 %v7936_v26 }
0x1a30   : > { %v7946_v46 = vpack.c.bf16 %v11118_v16, %v11117_v47 }
0x1a32   : > { %8036 = vmatmul.mubr.bf16.vlgmr.msra.gmra.mrb[60].mxu0 %v11313_v23  ;;  %9871 = vmatprep.subr.bf16.mxu1 %v7946_v46 }
0x1a33   : > { %9872 = vmatpush3.bf16.msra.mxu1 %v7946_v46  ;;  %8043 = vmatprep.mubr.bf16.mxu0 %v11318_v24 }
0x1a36   : > { %9874 = vmatmul.mubr.msk.bf16.vlgmr.msra.gmra.mrb[60].mxu1 %vm7039_vm12, %v11317_v41  ;;  %v7950_v43 = vpop.permute.xlu1 %7949 }
0x1a3a   : > { %8044 = vmatmul.mubr.bf16.gmra.mrb[64].mxu0 %v11320_v11  ;;  %v7960_v1 = vpop.permute.xlu1 %7959 }
0x1a3e   : > { %v7955_v3 = vpop.permute.xlu0 %7954 }
0x1a42   : > { %v7965_v53 = vpop.permute.xlu0 %7964 }
0x1b05   : > { %v9741_v22 = vpop.f32.mrb[60].mxu0 }
0x1b06   : > { %v9742_v63 = vpop.f32.mrb[61].mxu0 }
0x1b07   : > { %v9743_v29 = vadd.f32 %v9742_v63, %v9741_v22  ;;  %v9744_v0 = vpop.f32.mrb[62].mxu0  ;;  %v8169_v22 = vsub.f32 1.0, %v8150_v44 }
0x1b08   : > { %v9745_v8 = vpop.f32.mrb[63].mxu0 }
0x1b09   : > { %v9746_v9 = vadd.f32 %v9745_v8, %v9744_v0  ;;  %v9875_v38 = vpop.f32.mrb[60].mxu1  ;;  %v8038_v4 = vadd.f32 %v9743_v29, %v7950_v43  ;;  %v8174_v63 = vrot.slane %v8169_v22, %v16489_v12 }
0x1b0a   : > { %v8086_v15 = vpop.f32.mrb[61].mxu1 }
0x1b0b   : > { %v8087_v36 = vadd.f32 %v8086_v15, %v8038_v4  ;;  %v9876_v34 = vpop.f32.mrb[62].mxu1  ;;  %v8041_v25 = vadd.f32 %v9746_v9, %v7955_v3 }
0x1b0c   : > { %v8089_v19 = vpop.f32.mrb[63].mxu1 }
0x1b0d   : > { %v8101_v56 = vmax.f32 %v8087_v36, 0.0  ;;  %v8090_v10 = vadd.f32 %v8089_v19, %v8041_v25  ;;  %v9747_v13 = vpop.f32.mrb[64].mxu0 }
0x1b0e   : > { %v9748_v32 = vpop.f32.mrb[65].mxu0 }
0x1b0f   : > { %v8112_v31 = vmul.f32 %v9582_v48, %v8101_v56  ;;  %v8102_v62 = vmax.f32 %v8090_v10, 0.0  ;;  %v9749_v50 = vadd.f32 %v9748_v32, %v9747_v13  ;;  %v9750_v59 = vpop.f32.mrb[66].mxu0  ;;  %v11324_v10 = vld [vmem:[%s16549_s7 + $0x8] ss:$12 sps:$4 sm:$0xff]  }
0x1b10   : > { %v9751_v14 = vpop.f32.mrb[67].mxu0  ;;  %9881 = vmatprep.mubr.msk.bf16.mxu0 %vm7039_vm12, %v11324_v10 }
0x1b11   : > { %v8123_v55 = vmul.f32 %v8121_v6, %v8112_v31  ;;  %v8113_v45 = vmul.f32 %v9582_v48, %v8102_v62  ;;  %v8046_v21 = vadd.f32 %v9749_v50, %v7960_v1  ;;  %v9752_v33 = vadd.f32 %v9751_v14, %v9750_v59 }
0x1b12   : > { %v8142_v54 = vmul.f32 %v8140_v49, %v8112_v31 }
0x1b13   : > { %v8124_v37 = vmul.f32 %v8121_v6, %v8113_v45  ;;  %v8095_v7 = vadd.f32 %v9875_v38, %v8046_v21  ;;  %v8049_v2 = vadd.f32 %v9752_v33, %v7965_v53  ;;  %8127 = vrot.lane.b32.xlu1 %v8123_v55, %s16503_s18  ;;  %v8143_v35 = vmul.f32 %v8140_v49, %v8113_v45 }
0x1b15   : > { %v8103_v40 = vmax.f32 %v8095_v7, 0.0  ;;  %v8098_v58 = vadd.f32 %v9876_v34, %v8049_v2  ;;  %8129 = vrot.lane.b32.xlu0 %v8124_v37, %s16503_s18 }
0x1b17   : > { %v8114_v61 = vmul.f32 %v9582_v48, %v8103_v40  ;;  %v8104_v17 = vmax.f32 %v8098_v58, 0.0 }
0x1b19   : > { %v8115_v39 = vmul.f32 %v9582_v48, %v8104_v17  ;;  %v8125_v52 = vmul.f32 %v8121_v6, %v8114_v61  ;;  %v8144_v28 = vmul.f32 %v8140_v49, %v8114_v61 }
0x1b1b   : > { %8131 = vrot.lane.b32.xlu1 %v8125_v52, %s16503_s18  ;;  %v8126_v30 = vmul.f32 %v8121_v6, %v8115_v39  ;;  %v8145_v60 = vmul.f32 %v8140_v49, %v8115_v39  ;;  %v11323_v6 = vld [vmem:[%s16549_s7 + $0x4] ss:$12 sps:$4 sm:$0xff]  }
0x1b1c   : > { %8374 = vmatprep.mubr.bf16.mxu1 %v11323_v6 }
0x1b1d   : > { %8133 = vrot.lane.b32.xlu0 %v8126_v30, %s16503_s18 }
0x1b85   : > { %v8128_v5 = vpop.permute.xlu1 %8127 }
0x1b86   : > { %v8146_v42 = vadd.f32 %v8142_v54, %v8128_v5 }
0x1b87   : > { %v8130_v18 = vpop.permute.xlu0 %8129 }
0x1b88   : > { %v8157_v26 = vmul.f32 %v8155_v51, %v8146_v42  ;;  %v8147_v57 = vadd.f32 %v8143_v35, %v8130_v18  ;;  %v8176_v29 = vmul.f32 %v8174_v63, %v8146_v42 }
0x1b8a   : > { %v8158_v16 = vmul.f32 %v8155_v51, %v8147_v57  ;;  %8161 = vrot.lane.b32.xlu1 %v8157_v26, %s16535_s2  ;;  %v8177_v43 = vmul.f32 %v8174_v63, %v8147_v57 }
0x1b8c   : > { %8163 = vrot.lane.b32.xlu0 %v8158_v16, %s16535_s2 }
0x1b8d   : > { %v8132_v47 = vpop.permute.xlu1 %8131 }
0x1b8e   : > { %v8148_v23 = vadd.f32 %v8144_v28, %v8132_v47 }
0x1b8f   : > { %v8134_v24 = vpop.permute.xlu0 %8133 }
0x1b90   : > { %v8159_v46 = vmul.f32 %v8155_v51, %v8148_v23  ;;  %v8149_v41 = vadd.f32 %v8145_v60, %v8134_v24  ;;  %v8178_v38 = vmul.f32 %v8174_v63, %v8148_v23 }
0x1b92   : > { %v8160_v11 = vmul.f32 %v8155_v51, %v8149_v41  ;;  %8165 = vrot.lane.b32.xlu1 %v8159_v46, %s16535_s2  ;;  %v8179_v15 = vmul.f32 %v8174_v63, %v8149_v41 }
0x1b94   : > { %8167 = vrot.lane.b32.xlu0 %v8160_v11, %s16535_s2 }
0x1bfc   : > { %v8162_v0 = vpop.permute.xlu1 %8161 }
0x1bfd   : > { %v8180_v20 = vadd.f32 %v8176_v29, %v8162_v0 }
0x1bfe   : > { %v8164_v8 = vpop.permute.xlu0 %8163 }
0x1bff   : > { %v8181_v9 = vadd.f32 %v8177_v43, %v8164_v8  ;;  %8184 = vrot.lane.b32.xlu1 %v8180_v20, %s16333_s3 }
0x1c01   : > { %8186 = vrot.lane.b32.xlu0 %v8181_v9, %s16333_s3 }
0x1c04   : > { %v8166_v4 = vpop.permute.xlu1 %8165 }
0x1c05   : > { %v8182_v3 = vadd.f32 %v8178_v38, %v8166_v4 }
0x1c06   : > { %v8168_v27 = vpop.permute.xlu0 %8167 }
0x1c07   : > { %v8183_v36 = vadd.f32 %v8179_v15, %v8168_v27  ;;  %8188 = vrot.lane.b32.xlu1 %v8182_v3, %s16333_s3 }
0x1c09   : > { %8190 = vrot.lane.b32.xlu0 %v8183_v36, %s16333_s3  ;;  %s16550_s3 = sld [smem:[#allocation40_spill]] }
0x1c0f   : > { %v8200_v13 = vld [vmem:[%s16550_s3] sm:$0xff]  ;;  %v8202_v32 = vld [vmem:[%s16550_s3 + $0x10] sm:$0xff]  ;;  %v8201_v49 = vld [vmem:[%s16550_s3 + $0x8] sm:$0xff] }
0x1c10   : > { %v8203_v31 = vld [vmem:[%s16550_s3 + $0x18] sm:$0xff]  ;;  %s16554_s3 = sld [smem:[#allocation42_spill]] }
0x1c71   : > { %v16028_v12 = vpop.permute.xlu1 %8184 }
0x1c73   : > { %v16030_v34 = vpop.permute.xlu0 %8186 }
0x1c74   : > { %v11119_v25 = vpack.i.bf16 %v16030_v34, %v16028_v12  ;;  %v8268_v55 = vpack.c.bf16 %v16030_v34, %v16028_v12 }
0x1c76   : > { %11120 = vrot.lane.b32.xlu1 %v11119_v25, %s16338_s1 }
0x1c79   : > { %v16036_v48 = vpop.permute.xlu1 %8188 }
0x1c7a   : > { %11130 = vrot.lane.b32.xlu1 %v11119_v25, %s16545_s10 }
0x1c7b   : > { %v16038_v19 = vpop.permute.xlu0 %8190 }
0x1c7c   : > { %v11139_v56 = vpack.i.bf16 %v16038_v19, %v16036_v48  ;;  %v8269_v58 = vpack.c.bf16 %v16038_v19, %v16036_v48 }
0x1c7e   : > { %11140 = vrot.lane.b32.xlu1 %v11139_v56, %s16545_s10  ;;  %11125 = vrot.lane.b32.xlu0 %v11139_v56, %s16338_s1  ;;  %s16552_s1 = smov 5  }
0x1c82   : > { %11145 = vrot.lane.b32.xlu1 %v11119_v25, %s16535_s2  ;;  %11135 = vrot.lane.b32.xlu0 %v11119_v25, %s16503_s18 }
0x1c86   : > { %11160 = vrot.lane.b32.xlu1 %v11139_v56, %s16535_s2  ;;  %11150 = vrot.lane.b32.xlu0 %v11139_v56, %s16503_s18 }
0x1c8a   : > { %11165 = vrot.lane.b32.xlu1 %v11119_v25, %s16336_s0  ;;  %11155 = vrot.lane.b32.xlu0 %v11119_v25, %s16520_s5 }
0x1c8e   : > { %11180 = vrot.lane.b32.xlu1 %v11139_v56, %s16336_s0  ;;  %11170 = vrot.lane.b32.xlu0 %v11139_v56, %s16520_s5  ;;  %s16551_s0 = sld [smem:[#allocation41_spill]] }
0x1c92   : > { %11190 = vrot.lane.b32.xlu1 %v11119_v25, %s16529_s8  ;;  %11175 = vrot.lane.b32.xlu0 %v11119_v25, %s16514_s28 }
0x1c96   : > { %8288 = vperm.xlu1 %10558, %v8200_v13   ;;  %11185 = vrot.lane.b32.xlu0 %v11139_v56, %s16514_s28 }
0x1c9a   : > { %8298 = vperm.xlu1 %10558, %v8202_v32   ;;  %11195 = vrot.lane.b32.xlu0 %v11139_v56, %s16529_s8 }
0x1c9e   : > { %8293 = vperm.xlu0 %10217, %v8201_v49  }
0x1ca2   : > { %8303 = vperm.xlu0 %10217, %v8203_v31  }
0x1ce8   : > { %v11121_v62 = vpop.permute.xlu1 %11120 }
0x1ce9   : > { %v11123_v50 = vunpack.i.h.bf16 %v11121_v62  ;;  %v11122_v59 = vunpack.i.l.bf16 %v11121_v62 }
0x1ceb   : > { %v8276_v1 = vpack.c.bf16 %v11123_v50, %v11122_v59 }
0x1cec   : > { %v11131_v14 = vpop.permute.xlu1 %11130 }
0x1ced   : > { %9757 = vmatprep.subr.bf16.mxu1 %v8276_v1  ;;  %v11133_v45 = vunpack.i.h.bf16 %v11131_v14  ;;  %v11132_v21 = vunpack.i.l.bf16 %v11131_v14 }
0x1cee   : > { %9758 = vmatpush3.bf16.msra.mxu1 %v8268_v55  ;;  %v11321_v55 = vld [vmem:[%s16549_s7] ss:$12 sps:$4 sm:$0xff]  }
0x1cef   : > { %v8278_v2 = vpack.c.bf16 %v11133_v45, %v11132_v21  ;;  %v11326_v45 = vld [vmem:[%s16549_s7 + $0x1c] ss:$12 sps:$4 sm:$0xff]  }
0x1cf0   : > { %v11126_v33 = vpop.permute.xlu0 %11125  ;;  %v11141_v53 = vpop.permute.xlu1 %11140 }
0x1cf1   : > { %v11128_v54 = vunpack.i.h.bf16 %v11126_v33  ;;  %v11127_v37 = vunpack.i.l.bf16 %v11126_v33  ;;  %v11143_v61 = vunpack.i.h.bf16 %v11141_v53  ;;  %v11142_v17 = vunpack.i.l.bf16 %v11141_v53  ;;  %v11325_v33 = vld [vmem:[%s16549_s7 + $0x20] ss:$12 sps:$4 sm:$0xff]   ;;  %v11328_v53 = vld [vmem:[%s16549_s7 + $0x18] ss:$12 sps:$4 sm:$0xff]   ;;  %s16556_s7 = smov 119  }
0x1cf3   : > { %v8277_v7 = vpack.c.bf16 %v11128_v54, %v11127_v37  ;;  %v8279_v5 = vpack.c.bf16 %v11143_v61, %v11142_v17 }
0x1cf4   : > { %v11136_v35 = vpop.permute.xlu0 %11135  ;;  %v11146_v40 = vpop.permute.xlu1 %11145 }
0x1cf5   : > { %v11138_v39 = vunpack.i.h.bf16 %v11136_v35  ;;  %v11137_v52 = vunpack.i.l.bf16 %v11136_v35  ;;  %9759 = vmatprep.subr.bf16.mxu1 %v8277_v7  ;;  %v11148_v30 = vunpack.i.h.bf16 %v11146_v40  ;;  %v11147_v60 = vunpack.i.l.bf16 %v11146_v40 }
0x1cf6   : > { %9760 = vmatpush3.bf16.msra.mxu1 %v8269_v58 }
0x1cf7   : > { %v8270_v28 = vpack.c.bf16 %v11138_v39, %v11137_v52  ;;  %9761 = vmatprep.subr.bf16.mxu1 %v8278_v2  ;;  %v8280_v57 = vpack.c.bf16 %v11148_v30, %v11147_v60 }
0x1cf8   : > { %v11151_v44 = vpop.permute.xlu0 %11150  ;;  %v11161_v51 = vpop.permute.xlu1 %11160 }
0x1cf9   : > { %v11153_v42 = vunpack.i.h.bf16 %v11151_v44  ;;  %v11152_v18 = vunpack.i.l.bf16 %v11151_v44  ;;  %v11163_v23 = vunpack.i.h.bf16 %v11161_v51  ;;  %v11162_v24 = vunpack.i.l.bf16 %v11161_v51  ;;  %v9591_v44 = vld [vmem:[%s16551_s0] ss:$0 sm:$0xff]  ;;  %s16553_s0 = smov 123  }
0x1cfa   : > { %9762 = vmatpush3.bf16.msra.mxu1 %v8270_v28 }
0x1cfb   : > { %v8271_v26 = vpack.c.bf16 %v11153_v42, %v11152_v18  ;;  %9763 = vmatprep.subr.bf16.mxu1 %v8279_v5  ;;  %v8281_v20 = vpack.c.bf16 %v11163_v23, %v11162_v24 }
0x1cfc   : > { %v11156_v16 = vpop.permute.xlu0 %11155  ;;  %v11166_v47 = vpop.permute.xlu1 %11165 }
0x1cfd   : > { %v11158_v46 = vunpack.i.h.bf16 %v11156_v16  ;;  %v11157_v41 = vunpack.i.l.bf16 %v11156_v16  ;;  %v11168_v22 = vunpack.i.h.bf16 %v11166_v47  ;;  %v11167_v63 = vunpack.i.l.bf16 %v11166_v47 }
0x1cfe   : > { %9764 = vmatpush3.bf16.msra.mxu1 %v8271_v26 }
0x1cff   : > { %v8272_v11 = vpack.c.bf16 %v11158_v46, %v11157_v41  ;;  %9765 = vmatprep.subr.bf16.mxu1 %v8280_v57  ;;  %v8282_v38 = vpack.c.bf16 %v11168_v22, %v11167_v63 }
0x1d00   : > { %v11171_v29 = vpop.permute.xlu0 %11170  ;;  %v11181_v0 = vpop.permute.xlu1 %11180 }
0x1d01   : > { %v11173_v43 = vunpack.i.h.bf16 %v11171_v29  ;;  %v11172_v8 = vunpack.i.l.bf16 %v11171_v29  ;;  %v11183_v4 = vunpack.i.h.bf16 %v11181_v0  ;;  %v11182_v3 = vunpack.i.l.bf16 %v11181_v0 }
0x1d02   : > { %9766 = vmatpush3.bf16.msra.mxu1 %v8272_v11 }
0x1d03   : > { %v8273_v9 = vpack.c.bf16 %v11173_v43, %v11172_v8  ;;  %9767 = vmatprep.subr.bf16.mxu1 %v8281_v20  ;;  %v8283_v49 = vpack.c.bf16 %v11183_v4, %v11182_v3 }
0x1d04   : > { %v11176_v15 = vpop.permute.xlu0 %11175  ;;  %v11191_v27 = vpop.permute.xlu1 %11190 }
0x1d05   : > { %v11178_v36 = vunpack.i.h.bf16 %v11176_v15  ;;  %v11177_v25 = vunpack.i.l.bf16 %v11176_v15  ;;  %v11193_v56 = vunpack.i.h.bf16 %v11191_v27  ;;  %v11192_v6 = vunpack.i.l.bf16 %v11191_v27 }
0x1d06   : > { %9768 = vmatpush3.bf16.msra.mxu1 %v8273_v9 }
0x1d07   : > { %v8274_v10 = vpack.c.bf16 %v11178_v36, %v11177_v25  ;;  %v8284_v13 = vpack.c.bf16 %v11193_v56, %v11192_v6  ;;  %9769 = vmatprep.subr.bf16.mxu1 %v8282_v38 }
0x1d08   : > { %v11186_v32 = vpop.permute.xlu0 %11185 }
0x1d09   : > { %v11188_v31 = vunpack.i.h.bf16 %v11186_v32  ;;  %v11187_v62 = vunpack.i.l.bf16 %v11186_v32  ;;  %9877 = vmatprep.subr.bf16.mxu0 %v8284_v13 }
0x1d0a   : > { %9770 = vmatpush3.bf16.msra.mxu1 %v8274_v10  ;;  %9878 = vmatpush3.bf16.msra.mxu0 %v8284_v13 }
0x1d0b   : > { %v8275_v50 = vpack.c.bf16 %v11188_v31, %v11187_v62  ;;  %9771 = vmatprep.subr.bf16.mxu1 %v8283_v49 }
0x1d0c   : > { %v11196_v59 = vpop.permute.xlu0 %11195 }
0x1d0d   : > { %v11198_v1 = vunpack.i.h.bf16 %v11196_v59  ;;  %v11197_v14 = vunpack.i.l.bf16 %v11196_v59 }
0x1d0e   : > { %9772 = vmatpush3.bf16.msra.mxu1 %v8275_v50 }
0x1d0f   : > { %v8285_v21 = vpack.c.bf16 %v11198_v1, %v11197_v14 }
0x1d11   : > { %8375 = vmatmul.mubr.bf16.vlgmr.msra.gmra.mrb[64].mxu1 %v11321_v55  ;;  %9879 = vmatprep.subr.bf16.mxu0 %v8285_v21 }
0x1d12   : > { %9880 = vmatpush3.bf16.msra.mxu0 %v8285_v21  ;;  %8382 = vmatprep.mubr.bf16.mxu1 %v11326_v45 }
0x1d15   : > { %9882 = vmatmul.mubr.msk.bf16.vlgmr.msra.gmra.mrb[68].mxu0 %vm7039_vm12, %v11325_v33  ;;  %v8289_v35 = vpop.permute.xlu1 %8288 }
0x1d19   : > { %8383 = vmatmul.mubr.bf16.gmra.mrb[68].mxu1 %v11328_v53  ;;  %v8299_v24 = vpop.permute.xlu1 %8298 }
0x1d1d   : > { %v8294_v39 = vpop.permute.xlu0 %8293 }
0x1d21   : > { %v8304_v63 = vpop.permute.xlu0 %8303 }
0x1de4   : > { %v9773_v54 = vpop.f32.mrb[64].mxu1 }
0x1de5   : > { %v9774_v37 = vpop.f32.mrb[65].mxu1 }
0x1de6   : > { %v9775_v7 = vadd.f32 %v9774_v37, %v9773_v54  ;;  %v9776_v2 = vpop.f32.mrb[66].mxu1 }
0x1de7   : > { %v9777_v40 = vpop.f32.mrb[67].mxu1 }
0x1de8   : > { %v9778_v58 = vadd.f32 %v9777_v40, %v9776_v2  ;;  %v9883_v61 = vpop.f32.mrb[68].mxu0  ;;  %v8377_v17 = vadd.f32 %v9775_v7, %v8289_v35 }
0x1de9   : > { %v8425_v52 = vpop.f32.mrb[69].mxu0 }
0x1dea   : > { %v8426_v28 = vadd.f32 %v8425_v52, %v8377_v17  ;;  %v9884_v30 = vpop.f32.mrb[70].mxu0  ;;  %v8380_v60 = vadd.f32 %v9778_v58, %v8294_v39 }
0x1deb   : > { %v8428_v51 = vpop.f32.mrb[71].mxu0 }
0x1dec   : > { %v8440_v5 = vmax.f32 %v8426_v28, 0.0  ;;  %v8429_v42 = vadd.f32 %v8428_v51, %v8380_v60  ;;  %v9779_v18 = vpop.f32.mrb[68].mxu1 }
0x1ded   : > { %v9780_v26 = vpop.f32.mrb[69].mxu1 }
0x1dee   : > { %v8451_v57 = vmul.f32 %v9591_v44, %v8440_v5  ;;  %v8441_v16 = vmax.f32 %v8429_v42, 0.0  ;;  %v9781_v47 = vadd.f32 %v9780_v26, %v9779_v18  ;;  %v9782_v23 = vpop.f32.mrb[70].mxu1 }
0x1def   : > { %v9783_v46 = vpop.f32.mrb[71].mxu1 }
0x1df0   : > { %v8452_v41 = vmul.f32 %v9591_v44, %v8441_v16  ;;  %v8385_v11 = vadd.f32 %v9781_v47, %v8299_v24  ;;  %v9784_v22 = vadd.f32 %v9783_v46, %v9782_v23  ;;  %8455 = vrot.lane.b32.xlu1 %v8451_v57, %s16552_s1 }
0x1df2   : > { %v8434_v29 = vadd.f32 %v9883_v61, %v8385_v11  ;;  %v8388_v0 = vadd.f32 %v9784_v22, %v8304_v63  ;;  %8457 = vrot.lane.b32.xlu0 %v8452_v41, %s16552_s1 }
0x1df4   : > { %v8442_v20 = vmax.f32 %v8434_v29, 0.0  ;;  %v8437_v43 = vadd.f32 %v9884_v30, %v8388_v0 }
0x1df6   : > { %v8453_v8 = vmul.f32 %v9591_v44, %v8442_v20  ;;  %v8443_v9 = vmax.f32 %v8437_v43, 0.0 }
0x1df8   : > { %v8454_v38 = vmul.f32 %v9591_v44, %v8443_v9  ;;  %8459 = vrot.lane.b32.xlu1 %v8453_v8, %s16552_s1 }
0x1dfa   : > { %8461 = vrot.lane.b32.xlu0 %v8454_v38, %s16552_s1  ;;  %s16555_s1 = sld [smem:[#allocation43_spill]] }
0x1e00   : > { %v8477_v49 = vld [vmem:[%s16555_s1 + $0x10] sm:$0xff]  ;;  %v8476_v31 = vld [vmem:[%s16555_s1 + $0x8] sm:$0xff]  ;;  %v8478_v62 = vld [vmem:[%s16555_s1 + $0x18] sm:$0xff] }
0x1e62   : > { %v8456_v4 = vpop.permute.xlu1 %8455 }
0x1e63   : > { %v8463_v15 = vadd.f32 %v8456_v4, %v16028_v12 }
0x1e64   : > { %v8458_v3 = vpop.permute.xlu0 %8457 }
0x1e65   : > { %v8464_v27 = vadd.f32 %v8458_v3, %v16030_v34  ;;  %v11331_v34 = vld [vmem:[%s16554_s3 + $0x4] ss:$12 sps:$4 sm:$0xff]  }
0x1e66   : > { %8649 = vmatprep.mubr.bf16.mxu1 %v11331_v34 }
0x1e67   : > { %v11199_v36 = vpack.i.bf16 %v8464_v27, %v8463_v15  ;;  %v8543_v25 = vpack.c.bf16 %v8464_v27, %v8463_v15 }
0x1e69   : > { %11200 = vrot.lane.b32.xlu1 %v11199_v36, %s16553_s0 }
0x1e6a   : > { %v8460_v56 = vpop.permute.xlu1 %8459 }
0x1e6b   : > { %v8465_v10 = vadd.f32 %v8460_v56, %v16036_v48  ;;  %v11332_v48 = vld [vmem:[%s16554_s3 + $0x8] ss:$12 sps:$4 sm:$0xff]  }
0x1e6c   : > { %v8462_v6 = vpop.permute.xlu0 %8461  ;;  %9889 = vmatprep.mubr.msk.bf16.mxu0 %vm7039_vm12, %v11332_v48 }
0x1e6d   : > { %v8466_v13 = vadd.f32 %v8462_v6, %v16038_v19  ;;  %11210 = vrot.lane.b32.xlu1 %v11199_v36, %s16545_s10  ;;  %v8475_v19 = vld [vmem:[%s16555_s1] sm:$0xff] }
0x1e6f   : > { %v11219_v32 = vpack.i.bf16 %v8466_v13, %v8465_v10  ;;  %v8544_v12 = vpack.c.bf16 %v8466_v13, %v8465_v10 }
0x1e71   : > { %11220 = vrot.lane.b32.xlu1 %v11219_v32, %s16545_s10  ;;  %11205 = vrot.lane.b32.xlu0 %v11219_v32, %s16553_s0  ;;  %s16561_s10 = sld [smem:[#allocation51_spill]]  ;;  %s16563_s0 = sld [smem:[#allocation48_spill]] }
0x1e75   : > { %11225 = vrot.lane.b32.xlu1 %v11199_v36, %s16535_s2  ;;  %11215 = vrot.lane.b32.xlu0 %v11199_v36, %s16503_s18 }
0x1e79   : > { %11240 = vrot.lane.b32.xlu1 %v11219_v32, %s16535_s2  ;;  %11230 = vrot.lane.b32.xlu0 %v11219_v32, %s16503_s18  ;;  %s16559_s18 = sld [smem:[#allocation46_spill]]  ;;  %s16560_s2 = sld [smem:[#allocation49_spill]] }
0x1e7d   : > { %11245 = vrot.lane.b32.xlu1 %v11199_v36, %s16556_s7  ;;  %11235 = vrot.lane.b32.xlu0 %v11199_v36, %s16520_s5 }
0x1e81   : > { %11260 = vrot.lane.b32.xlu1 %v11219_v32, %s16556_s7  ;;  %11250 = vrot.lane.b32.xlu0 %v11219_v32, %s16520_s5  ;;  %s16557_s5 = sld [smem:[#allocation44_spill]]  ;;  %s16562_s7 = sld [smem:[#allocation53_spill]] }
0x1e85   : > { %11270 = vrot.lane.b32.xlu1 %v11199_v36, %s16529_s8  ;;  %11255 = vrot.lane.b32.xlu0 %v11199_v36, %s16514_s28 }
0x1e89   : > { %8563 = vperm.xlu1 %10558, %v8475_v19   ;;  %11265 = vrot.lane.b32.xlu0 %v11219_v32, %s16514_s28  ;;  %s11463_s28 = smov 4  }
0x1e8d   : > { %8573 = vperm.xlu1 %10558, %v8477_v49   ;;  %11275 = vrot.lane.b32.xlu0 %v11219_v32, %s16529_s8  ;;  %s16558_s8 = sld [smem:[#allocation45_spill]] }
0x1e91   : > { %8568 = vperm.xlu0 %10217, %v8476_v31  }
0x1e95   : > { %8578 = vperm.xlu0 %10217, %v8478_v62   ;;  %v11329_v62 = vld [vmem:[%s16554_s3] ss:$12 sps:$4 sm:$0xff]  }
0x1edb   : > { %v11201_v50 = vpop.permute.xlu1 %11200 }
0x1edc   : > { %v11203_v59 = vunpack.i.h.bf16 %v11201_v50  ;;  %v11202_v1 = vunpack.i.l.bf16 %v11201_v50  ;;  %v11334_v50 = vld [vmem:[%s16554_s3 + $0x1c] ss:$12 sps:$4 sm:$0xff]  }
0x1ede   : > { %v8551_v14 = vpack.c.bf16 %v11203_v59, %v11202_v1  ;;  %v11333_v1 = vld [vmem:[%s16554_s3 + $0x20] ss:$12 sps:$4 sm:$0xff]  }
0x1edf   : > { %v11211_v55 = vpop.permute.xlu1 %11210 }
0x1ee0   : > { %9789 = vmatprep.subr.bf16.mxu1 %v8551_v14  ;;  %v11213_v45 = vunpack.i.h.bf16 %v11211_v55  ;;  %v11212_v21 = vunpack.i.l.bf16 %v11211_v55  ;;  %v11336_v14 = vld [vmem:[%s16554_s3 + $0x18] ss:$12 sps:$4 sm:$0xff]  }
0x1ee1   : > { %9790 = vmatpush3.bf16.msra.mxu1 %v8543_v25 }
0x1ee2   : > { %v8553_v2 = vpack.c.bf16 %v11213_v45, %v11212_v21 }
0x1ee3   : > { %v11206_v33 = vpop.permute.xlu0 %11205  ;;  %v11221_v53 = vpop.permute.xlu1 %11220 }
0x1ee4   : > { %v11208_v54 = vunpack.i.h.bf16 %v11206_v33  ;;  %v11207_v37 = vunpack.i.l.bf16 %v11206_v33  ;;  %v11223_v58 = vunpack.i.h.bf16 %v11221_v53  ;;  %v11222_v61 = vunpack.i.l.bf16 %v11221_v53 }
0x1ee6   : > { %v8552_v7 = vpack.c.bf16 %v11208_v54, %v11207_v37  ;;  %v8554_v51 = vpack.c.bf16 %v11223_v58, %v11222_v61 }
0x1ee7   : > { %v11216_v35 = vpop.permute.xlu0 %11215  ;;  %v11226_v40 = vpop.permute.xlu1 %11225 }
0x1ee8   : > { %v11218_v17 = vunpack.i.h.bf16 %v11216_v35  ;;  %v11217_v39 = vunpack.i.l.bf16 %v11216_v35  ;;  %9791 = vmatprep.subr.bf16.mxu1 %v8552_v7  ;;  %v11228_v28 = vunpack.i.h.bf16 %v11226_v40  ;;  %v11227_v30 = vunpack.i.l.bf16 %v11226_v40 }
0x1ee9   : > { %9792 = vmatpush3.bf16.msra.mxu1 %v8544_v12 }
0x1eea   : > { %v8545_v52 = vpack.c.bf16 %v11218_v17, %v11217_v39  ;;  %9793 = vmatprep.subr.bf16.mxu1 %v8553_v2  ;;  %v8555_v26 = vpack.c.bf16 %v11228_v28, %v11227_v30  ;;  %v9600_v39 = vld [vmem:[%s16557_s5] ss:$0 sm:$0xff]  ;;  %s16564_s5 = sld [smem:[#allocation47_spill]] }
0x1eeb   : > { %v11231_v60 = vpop.permute.xlu0 %11230  ;;  %v11241_v44 = vpop.permute.xlu1 %11240 }
0x1eec   : > { %v11233_v5 = vunpack.i.h.bf16 %v11231_v60  ;;  %v11232_v42 = vunpack.i.l.bf16 %v11231_v60  ;;  %v11243_v47 = vunpack.i.h.bf16 %v11241_v44  ;;  %v11242_v23 = vunpack.i.l.bf16 %v11241_v44 }
0x1eed   : > { %9794 = vmatpush3.bf16.msra.mxu1 %v8545_v52 }
0x1eee   : > { %v8546_v18 = vpack.c.bf16 %v11233_v5, %v11232_v42  ;;  %9795 = vmatprep.subr.bf16.mxu1 %v8554_v51  ;;  %v8556_v0 = vpack.c.bf16 %v11243_v47, %v11242_v23 }
0x1eef   : > { %v11236_v57 = vpop.permute.xlu0 %11235  ;;  %v11246_v16 = vpop.permute.xlu1 %11245 }
0x1ef0   : > { %v11238_v24 = vunpack.i.h.bf16 %v11236_v57  ;;  %v11237_v46 = vunpack.i.l.bf16 %v11236_v57  ;;  %v11248_v11 = vunpack.i.h.bf16 %v11246_v16  ;;  %v11247_v22 = vunpack.i.l.bf16 %v11246_v16 }
0x1ef1   : > { %9796 = vmatpush3.bf16.msra.mxu1 %v8546_v18 }
0x1ef2   : > { %v8547_v41 = vpack.c.bf16 %v11238_v24, %v11237_v46  ;;  %9797 = vmatprep.subr.bf16.mxu1 %v8555_v26  ;;  %v8557_v9 = vpack.c.bf16 %v11248_v11, %v11247_v22  ;;  %v11337_v24 = vld [vmem:[%s16558_s8] sm:$0xff]  }
0x1ef3   : > { %v11251_v63 = vpop.permute.xlu0 %11250  ;;  %v11261_v29 = vpop.permute.xlu1 %11260 }
0x1ef4   : > { %v11253_v20 = vunpack.i.h.bf16 %v11251_v63  ;;  %v11252_v43 = vunpack.i.l.bf16 %v11251_v63  ;;  %v11263_v38 = vunpack.i.h.bf16 %v11261_v29  ;;  %v11262_v4 = vunpack.i.l.bf16 %v11261_v29 }
0x1ef5   : > { %9798 = vmatpush3.bf16.msra.mxu1 %v8547_v41 }
0x1ef6   : > { %v8548_v8 = vpack.c.bf16 %v11253_v20, %v11252_v43  ;;  %9799 = vmatprep.subr.bf16.mxu1 %v8556_v0  ;;  %v8558_v32 = vpack.c.bf16 %v11263_v38, %v11262_v4  ;;  %v8742_v43 = vld [vmem:[%s16559_s18] sm:$0xff]  ;;  %v8745_v38 = vld [vmem:[%s16559_s18 + $0x18] sm:$0xff] }
0x1ef7   : > { %v11256_v3 = vpop.permute.xlu0 %11255  ;;  %v11271_v15 = vpop.permute.xlu1 %11270  ;;  %v8856_v4 = vld [vmem:[%s16560_s2] sm:$0xff] }
0x1ef8   : > { %v11258_v27 = vunpack.i.h.bf16 %v11256_v3  ;;  %v11257_v36 = vunpack.i.l.bf16 %v11256_v3  ;;  %v11273_v25 = vunpack.i.h.bf16 %v11271_v15  ;;  %v11272_v56 = vunpack.i.l.bf16 %v11271_v15  ;;  %v8857_v3 = vld [vmem:[%s16560_s2 + $0x8] sm:$0xff]  ;;  %v8858_v15 = vld [vmem:[%s16560_s2 + $0x10] sm:$0xff] }
0x1ef9   : > { %9800 = vmatpush3.bf16.msra.mxu1 %v8548_v8  ;;  %v8743_v8 = vld [vmem:[%s16559_s18 + $0x8] sm:$0xff] }
0x1efa   : > { %v8549_v6 = vpack.c.bf16 %v11258_v27, %v11257_v36  ;;  %v8559_v10 = vpack.c.bf16 %v11273_v25, %v11272_v56  ;;  %9801 = vmatprep.subr.bf16.mxu1 %v8557_v9  ;;  %v8744_v9 = vld [vmem:[%s16559_s18 + $0x10] sm:$0xff]  ;;  %v8859_v27 = vld [vmem:[%s16560_s2 + $0x18] sm:$0xff]  ;;  %v8959_v36 = vld [vmem:[%s16561_s10] sm:$0xff] }
0x1efb   : > { %v11266_v13 = vpop.permute.xlu0 %11265  ;;  %v8960_v25 = vld [vmem:[%s16561_s10 + $0x8] sm:$0xff]  ;;  %v8961_v56 = vld [vmem:[%s16561_s10 + $0x10] sm:$0xff] }
0x1efc   : > { %v11268_v12 = vunpack.i.h.bf16 %v11266_v13  ;;  %v11267_v34 = vunpack.i.l.bf16 %v11266_v13  ;;  %9885 = vmatprep.subr.bf16.mxu0 %v8559_v10  ;;  %v9067_v13 = vld [vmem:[%s16562_s7 + $0x8] sm:$0xff] }
0x1efd   : > { %9802 = vmatpush3.bf16.msra.mxu1 %v8549_v6  ;;  %9886 = vmatpush3.bf16.msra.mxu0 %v8559_v10  ;;  %v8962_v6 = vld [vmem:[%s16561_s10 + $0x18] sm:$0xff]  ;;  %v9066_v10 = vld [vmem:[%s16562_s7] sm:$0xff] }
0x1efe   : > { %v8550_v48 = vpack.c.bf16 %v11268_v12, %v11267_v34  ;;  %9803 = vmatprep.subr.bf16.mxu1 %v8558_v32  ;;  %v9068_v32 = vld [vmem:[%s16562_s7 + $0x10] sm:$0xff]  ;;  %v9069_v12 = vld [vmem:[%s16562_s7 + $0x18] sm:$0xff]  ;;  %v9169_v34 = vld [vmem:[%s11787_s20] sm:$0xff] }
0x1eff   : > { %v11276_v19 = vpop.permute.xlu0 %11275 }
0x1f00   : > { %v11278_v49 = vunpack.i.h.bf16 %v11276_v19  ;;  %v11277_v31 = vunpack.i.l.bf16 %v11276_v19  ;;  %v9171_v19 = vld [vmem:[%s11787_s20 + $0x10] sm:$0xff] }
0x1f01   : > { %9804 = vmatpush3.bf16.msra.mxu1 %v8550_v48  ;;  %v9170_v48 = vld [vmem:[%s11787_s20 + $0x8] sm:$0xff] }
0x1f02   : > { %v8560_v59 = vpack.c.bf16 %v11278_v49, %v11277_v31  ;;  %v9172_v49 = vld [vmem:[%s11787_s20 + $0x18] sm:$0xff]  ;;  %v9276_v31 = vld [vmem:[%s11797_s4] sm:$0xff] }
0x1f04   : > { %8650 = vmatmul.mubr.bf16.vlgmr.msra.gmra.mrb[72].mxu1 %v11329_v62  ;;  %9887 = vmatprep.subr.bf16.mxu0 %v8560_v59  ;;  %v9277_v62 = vld [vmem:[%s11797_s4 + $0x8] sm:$0xff] }
0x1f05   : > { %9888 = vmatpush3.bf16.msra.mxu0 %v8560_v59  ;;  %8657 = vmatprep.mubr.bf16.mxu1 %v11334_v50  ;;  %v9278_v50 = vld [vmem:[%s11797_s4 + $0x10] sm:$0xff]  ;;  %v9279_v59 = vld [vmem:[%s11797_s4 + $0x18] sm:$0xff] }
0x1f08   : > { %9890 = vmatmul.mubr.msk.bf16.vlgmr.msra.gmra.mrb[72].mxu0 %vm7039_vm12, %v11333_v1  ;;  %v8564_v53 = vpop.permute.xlu1 %8563 }
0x1f09   : > { %9897 = vmatprep.mubr.msk.bf16.mxu0 %vm7039_vm12, %v11337_v24 }
0x1f0c   : > { %8658 = vmatmul.mubr.bf16.gmra.mrb[76].mxu1 %v11336_v14  ;;  %v8574_v26 = vpop.permute.xlu1 %8573 }
0x1f10   : > { %v8569_v35 = vpop.permute.xlu0 %8568 }
0x1f14   : > { %v8579_v46 = vpop.permute.xlu0 %8578 }
0x1fd7   : > { %v9805_v55 = vpop.f32.mrb[72].mxu1 }
0x1fd8   : > { %v9806_v45 = vpop.f32.mrb[73].mxu1 }
0x1fd9   : > { %v9807_v21 = vadd.f32 %v9806_v45, %v9805_v55  ;;  %v9808_v33 = vpop.f32.mrb[74].mxu1 }
0x1fda   : > { %v9809_v54 = vpop.f32.mrb[75].mxu1 }
0x1fdb   : > { %v9810_v37 = vadd.f32 %v9809_v54, %v9808_v33  ;;  %v9891_v7 = vpop.f32.mrb[72].mxu0  ;;  %v8652_v2 = vadd.f32 %v9807_v21, %v8564_v53  ;;  %v11338_v53 = vld [vmem:[%s16558_s8 + $0x8] sm:$0xff]   ;;  %v11339_v54 = vld [vmem:[%s16563_s0] sm:$0xff]  }
0x1fdc   : > { %v8700_v40 = vpop.f32.mrb[73].mxu0 }
0x1fdd   : > { %v8701_v58 = vadd.f32 %v8700_v40, %v8652_v2  ;;  %v9892_v61 = vpop.f32.mrb[74].mxu0  ;;  %v8655_v17 = vadd.f32 %v9810_v37, %v8569_v35 }
0x1fde   : > { %v8703_v52 = vpop.f32.mrb[75].mxu0 }
0x1fdf   : > { %v8715_v28 = vmax.f32 %v8701_v58, 0.0  ;;  %v8704_v30 = vadd.f32 %v8703_v52, %v8655_v17  ;;  %v9811_v60 = vpop.f32.mrb[76].mxu1  ;;  %v16141_v17 = vld [vmem:[%s16564_s5] ss:$0 sm:$0xff]  ;;  %s16566_s5 = sld [smem:[#allocation52_spill]] }
0x1fe0   : > { %v9812_v44 = vpop.f32.mrb[77].mxu1 }
0x1fe1   : > { %v8726_v51 = vmul.f32 %v9600_v39, %v8715_v28  ;;  %v8716_v5 = vmax.f32 %v8704_v30, 0.0  ;;  %v9813_v42 = vadd.f32 %v9812_v44, %v9811_v60  ;;  %v9814_v18 = vpop.f32.mrb[78].mxu1 }
0x1fe2   : > { %v9815_v57 = vpop.f32.mrb[79].mxu1 }
0x1fe3   : > { %v8727_v16 = vmul.f32 %v9600_v39, %v8716_v5  ;;  %v8660_v47 = vadd.f32 %v9813_v42, %v8574_v26  ;;  %v9816_v23 = vadd.f32 %v9815_v57, %v9814_v18  ;;  %8730 = vrot.lane.b32.xlu1 %v8726_v51, %s11463_s28 }
0x1fe5   : > { %v8709_v41 = vadd.f32 %v9891_v7, %v8660_v47  ;;  %v8663_v11 = vadd.f32 %v9816_v23, %v8579_v46  ;;  %8732 = vrot.lane.b32.xlu0 %v8727_v16, %s11463_s28 }
0x1fe7   : > { %v8717_v22 = vmax.f32 %v8709_v41, 0.0  ;;  %v8712_v63 = vadd.f32 %v9892_v61, %v8663_v11 }
0x1fe9   : > { %v8728_v29 = vmul.f32 %v9600_v39, %v8717_v22  ;;  %v8718_v0 = vmax.f32 %v8712_v63, 0.0  ;;  %v11340_v22 = vld [vmem:[%s16563_s0 + $0x8] sm:$0xff]   ;;  %s16567_s0 = sld [smem:[#allocation54_spill]] }
0x1feb   : > { %v8729_v20 = vmul.f32 %v9600_v39, %v8718_v0  ;;  %8734 = vrot.lane.b32.xlu1 %v8728_v29, %s11463_s28 }
0x1fed   : > { %8736 = vrot.lane.b32.xlu0 %v8729_v20, %s11463_s28  ;;  %s16565_s28 = sld [smem:[#allocation50_spill]] }
0x1fef   : > { %8750 = vperm.xlu1 %10558, %v8742_v43  }
0x1ff1   : > { %8755 = vperm.xlu0 %10217, %v8743_v8  }
0x1ff3   : > { %8760 = vperm.xlu1 %10558, %v8744_v9   ;;  %v11341_v63 = vld [vmem:[%s16565_s28] sm:$0xff]  }
0x1ff5   : > { %8765 = vperm.xlu0 %10217, %v8745_v38  }
0x1ff7   : > { %8864 = vperm.xlu1 %10558, %v8856_v4  }
0x1ff9   : > { %8869 = vperm.xlu0 %10217, %v8857_v3  }
0x1ffb   : > { %8874 = vperm.xlu1 %10558, %v8858_v15  }
0x1ffd   : > { %8879 = vperm.xlu0 %10217, %v8859_v27  }
0x1fff   : > { %8967 = vperm.xlu1 %10558, %v8959_v36  }
0x2001   : > { %8972 = vperm.xlu0 %10217, %v8960_v25  }
0x2003   : > { %8977 = vperm.xlu1 %10558, %v8961_v56  }
0x2005   : > { %8982 = vperm.xlu0 %10217, %v8962_v6  }
0x2007   : > { %9074 = vperm.xlu1 %10558, %v9066_v10  }
0x2009   : > { %9079 = vperm.xlu0 %10217, %v9067_v13  }
0x200b   : > { %9084 = vperm.xlu1 %10558, %v9068_v32  }
0x200d   : > { %9089 = vperm.xlu0 %10217, %v9069_v12  }
0x200f   : > { %9177 = vperm.xlu1 %10558, %v9169_v34  }
0x2011   : > { %9182 = vperm.xlu0 %10217, %v9170_v48  }
0x2013   : > { %9187 = vperm.xlu1 %10558, %v9171_v19  }
0x2015   : > { %9192 = vperm.xlu0 %10217, %v9172_v49   ;;  %v11342_v49 = vld [vmem:[%s16565_s28 + $0x8] sm:$0xff]  }
0x2017   : > { %9284 = vperm.xlu1 %10558, %v9276_v31   ;;  %v11343_v31 = vld [vmem:[%s16566_s5] sm:$0xff]  }
0x2019   : > { %9289 = vperm.xlu0 %10217, %v9277_v62  }
0x201b   : > { %9294 = vperm.xlu1 %10558, %v9278_v50  }
0x201d   : > { %9299 = vperm.xlu0 %10217, %v9279_v59  }
0x2055   : > { %v8731_v1 = vpop.permute.xlu1 %8730 }
0x2057   : > { %v8733_v14 = vpop.permute.xlu0 %8732 }
0x2058   : > { %v8746_v55 = vpack.c.bf16 %v8733_v14, %v8731_v1 }
0x205a   : > { %9893 = vmatprep.subr.bf16.mxu0 %v8746_v55 }
0x205b   : > { %9894 = vmatpush3.bf16.msra.mxu0 %v8746_v55 }
0x205d   : > { %v8735_v45 = vpop.permute.xlu1 %8734 }
0x205f   : > { %v8737_v21 = vpop.permute.xlu0 %8736 }
0x2060   : > { %v8747_v33 = vpack.c.bf16 %v8737_v21, %v8735_v45 }
0x2062   : > { %9895 = vmatprep.subr.bf16.mxu0 %v8747_v33 }
0x2063   : > { %9896 = vmatpush3.bf16.msra.mxu0 %v8747_v33 }
0x2066   : > { %9898 = vmatmul.mubr.msk.bf16.vlgmr.msra.gmra.mrb[76].mxu0 %vm7039_vm12, %v11338_v53 }
0x2067   : > { %9905 = vmatprep.mubr.msk.bf16.mxu0 %vm7039_vm12, %v11339_v54 }
0x206e   : > { %v8751_v37 = vpop.permute.xlu1 %8750 }
0x2070   : > { %v8756_v7 = vpop.permute.xlu0 %8755 }
0x2072   : > { %v8761_v2 = vpop.permute.xlu1 %8760 }
0x2074   : > { %v8766_v61 = vpop.permute.xlu0 %8765 }
0x2076   : > { %v8865_v29 = vpop.permute.xlu1 %8864 }
0x2078   : > { %v8870_v0 = vpop.permute.xlu0 %8869 }
0x207a   : > { %v8875_v43 = vpop.permute.xlu1 %8874 }
0x207c   : > { %v8880_v9 = vpop.permute.xlu0 %8879 }
0x207e   : > { %v8968_v62 = vpop.permute.xlu1 %8967 }
0x2080   : > { %v8973_v50 = vpop.permute.xlu0 %8972 }
0x2082   : > { %v8978_v59 = vpop.permute.xlu1 %8977 }
0x2139   : > { %v9899_v35 = vpop.f32.mrb[76].mxu0 }
0x213a   : > { %v8827_v40 = vadd.f32 %v9899_v35, %v8761_v2  ;;  %v8818_v58 = vpop.f32.mrb[77].mxu0 }
0x213b   : > { %v8819_v39 = vadd.f32 %v8818_v58, %v8751_v37  ;;  %v9900_v52 = vpop.f32.mrb[78].mxu0 }
0x213c   : > { %v8835_v28 = vmax.f32 %v8827_v40, 0.0  ;;  %v8830_v30 = vadd.f32 %v9900_v52, %v8766_v61  ;;  %v8821_v60 = vpop.f32.mrb[79].mxu0 }
0x213d   : > { %v8833_v44 = vmax.f32 %v8819_v39, 0.0  ;;  %v8822_v51 = vadd.f32 %v8821_v60, %v8756_v7 }
0x213e   : > { %v8846_v5 = vmul.f32 %v16141_v17, %v8835_v28  ;;  %v8836_v42 = vmax.f32 %v8830_v30, 0.0 }
0x213f   : > { %v8844_v18 = vmul.f32 %v16141_v17, %v8833_v44  ;;  %v8834_v26 = vmax.f32 %v8822_v51, 0.0 }
0x2140   : > { %v8847_v57 = vmul.f32 %v16141_v17, %v8836_v42  ;;  %v8850_v47 = vadd.f32 %v8846_v5, %v8735_v45  ;;  %v8983_v45 = vpop.permute.xlu0 %8982  ;;  %v11344_v42 = vld [vmem:[%s16566_s5 + $0x8] sm:$0xff]  }
0x2141   : > { %v8845_v16 = vmul.f32 %v16141_v17, %v8834_v26  ;;  %v8848_v24 = vadd.f32 %v8844_v18, %v8731_v1  ;;  %v11345_v18 = vld [vmem:[%s16567_s0] sm:$0xff]   ;;  %v9075_v26 = vpop.permute.xlu1 %9074 }
0x2142   : > { %v8851_v23 = vadd.f32 %v8847_v57, %v8737_v21  ;;  %9929 = vmatprep.mubr.msk.bf16.mxu1 %vm7039_vm12, %v11345_v18 }
0x2143   : > { %v8849_v46 = vadd.f32 %v8845_v16, %v8733_v14 }
0x2144   : > { %v8861_v41 = vpack.c.bf16 %v8851_v23, %v8850_v47  ;;  %v9080_v57 = vpop.permute.xlu0 %9079 }
0x2145   : > { %v8860_v11 = vpack.c.bf16 %v8849_v46, %v8848_v24  ;;  %v9085_v47 = vpop.permute.xlu1 %9084 }
0x2147   : > { %9901 = vmatprep.subr.bf16.mxu0 %v8860_v11 }
0x2148   : > { %9902 = vmatpush3.bf16.msra.mxu0 %v8860_v11  ;;  %v9090_v24 = vpop.permute.xlu0 %9089 }
0x2149   : > { %9903 = vmatprep.subr.bf16.mxu0 %v8861_v41 }
0x214c   : > { %9904 = vmatpush3.bf16.msra.mxu0 %v8861_v41 }
0x214f   : > { %9906 = vmatmul.mubr.msk.bf16.vlgmr.msra.gmra.mrb[80].mxu0 %vm7039_vm12, %v11340_v22 }
0x2150   : > { %9913 = vmatprep.mubr.msk.bf16.mxu0 %vm7039_vm12, %v11341_v63 }
0x2222   : > { %v9907_v20 = vpop.f32.mrb[80].mxu0 }
0x2223   : > { %v8932_v8 = vpop.f32.mrb[81].mxu0  ;;  %v8941_v38 = vadd.f32 %v9907_v20, %v8875_v43 }
0x2224   : > { %v8933_v4 = vadd.f32 %v8932_v8, %v8865_v29  ;;  %v9908_v3 = vpop.f32.mrb[82].mxu0 }
0x2225   : > { %v8944_v15 = vadd.f32 %v9908_v3, %v8880_v9  ;;  %v8935_v27 = vpop.f32.mrb[83].mxu0  ;;  %v8949_v6 = vmax.f32 %v8941_v38, 0.0 }
0x2226   : > { %v8947_v36 = vmax.f32 %v8933_v4, 0.0  ;;  %v8936_v25 = vadd.f32 %v8935_v27, %v8870_v0 }
0x2227   : > { %v8950_v56 = vmax.f32 %v8944_v15, 0.0  ;;  %v8953_v34 = vmul.f32 %v16141_v17, %v8949_v6  ;;  %v9183_v6 = vpop.permute.xlu0 %9182 }
0x2228   : > { %v8948_v10 = vmax.f32 %v8936_v25, 0.0  ;;  %v8951_v13 = vmul.f32 %v16141_v17, %v8947_v36  ;;  %v11346_v36 = vld [vmem:[%s16567_s0 + $0x8] sm:$0xff]   ;;  %v11347_v25 = vld [vmem:[%s11792_s6] sm:$0xff]   ;;  %s9628_s0 = sshll.u32 %s16569_s16, 5 }
0x2229   : > { %v8954_v32 = vmul.f32 %v16141_v17, %v8950_v56  ;;  %v9178_v56 = vpop.permute.xlu1 %9177  ;;  %s1938_s1 = scalar_lea.vmem %s11802_s12, %s9628_s0 }
0x222a   : > { %v8952_v12 = vmul.f32 %v16141_v17, %v8948_v10 }
0x222b   : > { %v8964_v19 = vpack.c.bf16 %v8954_v32, %v8953_v34 }
0x222c   : > { %v8963_v48 = vpack.c.bf16 %v8952_v12, %v8951_v13 }
0x222d   : > { %v9188_v10 = vpop.permute.xlu1 %9187 }
0x222e   : > { %9909 = vmatprep.subr.bf16.mxu0 %v8963_v48 }
0x222f   : > { %9910 = vmatpush3.bf16.msra.mxu0 %v8963_v48 }
0x2230   : > { %9911 = vmatprep.subr.bf16.mxu0 %v8964_v19 }
0x2233   : > { %9912 = vmatpush3.bf16.msra.mxu0 %v8964_v19 }
0x2236   : > { %9914 = vmatmul.mubr.msk.bf16.vlgmr.msra.gmra.mrb[84].mxu0 %vm7039_vm12, %v11342_v49 }
0x2237   : > { %9921 = vmatprep.mubr.msk.bf16.mxu0 %vm7039_vm12, %v11343_v31 }
0x2309   : > { %v9915_v1 = vpop.f32.mrb[84].mxu0 }
0x230a   : > { %v9044_v14 = vadd.f32 %v9915_v1, %v8978_v59  ;;  %v9035_v55 = vpop.f32.mrb[85].mxu0 }
0x230b   : > { %v9036_v21 = vadd.f32 %v9035_v55, %v8968_v62  ;;  %v9916_v33 = vpop.f32.mrb[86].mxu0 }
0x230c   : > { %v9052_v53 = vmax.f32 %v9044_v14, 0.0  ;;  %v9047_v54 = vadd.f32 %v9916_v33, %v8983_v45  ;;  %v9038_v37 = vpop.f32.mrb[87].mxu0 }
0x230d   : > { %v9050_v7 = vmax.f32 %v9036_v21, 0.0  ;;  %v9039_v2 = vadd.f32 %v9038_v37, %v8973_v50 }
0x230e   : > { %v9056_v35 = vmul.f32 %v16141_v17, %v9052_v53  ;;  %v9053_v40 = vmax.f32 %v9047_v54, 0.0 }
0x230f   : > { %v9054_v58 = vmul.f32 %v16141_v17, %v9050_v7  ;;  %v9051_v61 = vmax.f32 %v9039_v2, 0.0 }
0x2310   : > { %v9057_v39 = vmul.f32 %v16141_v17, %v9053_v40  ;;  %v9060_v28 = vadd.f32 %v9056_v35, %v8953_v34  ;;  %v9193_v34 = vpop.permute.xlu0 %9192  ;;  %v11348_v40 = vld [vmem:[%s11792_s6 + $0x8] sm:$0xff]  }
0x2311   : > { %v9055_v52 = vmul.f32 %v16141_v17, %v9051_v61  ;;  %v9058_v60 = vadd.f32 %v9054_v58, %v8951_v13  ;;  %v9285_v58 = vpop.permute.xlu1 %9284 }
0x2312   : > { %v9061_v30 = vadd.f32 %v9057_v39, %v8954_v32 }
0x2313   : > { %v9059_v44 = vadd.f32 %v9055_v52, %v8952_v12 }
0x2314   : > { %v9071_v51 = vpack.c.bf16 %v9061_v30, %v9060_v28  ;;  %v9290_v61 = vpop.permute.xlu0 %9289 }
0x2315   : > { %v9070_v5 = vpack.c.bf16 %v9059_v44, %v9058_v60  ;;  %v9295_v39 = vpop.permute.xlu1 %9294 }
0x2317   : > { %9917 = vmatprep.subr.bf16.mxu0 %v9070_v5 }
0x2318   : > { %9918 = vmatpush3.bf16.msra.mxu0 %v9070_v5  ;;  %v9300_v30 = vpop.permute.xlu0 %9299 }
0x2319   : > { %9919 = vmatprep.subr.bf16.mxu0 %v9071_v51 }
0x231c   : > { %9920 = vmatpush3.bf16.msra.mxu0 %v9071_v51 }
0x231f   : > { %9922 = vmatmul.mubr.msk.bf16.vlgmr.msra.gmra.mrb[88].mxu0 %vm7039_vm12, %v11344_v42 }
0x2320   : > { %9937 = vmatprep.mubr.msk.bf16.mxu0 %vm7039_vm12, %v11347_v25 }
0x23f2   : > { %v9923_v16 = vpop.f32.mrb[88].mxu0 }
0x23f3   : > { %v9142_v23 = vpop.f32.mrb[89].mxu0  ;;  %v9151_v46 = vadd.f32 %v9923_v16, %v9085_v47 }
0x23f4   : > { %v9143_v41 = vadd.f32 %v9142_v23, %v9075_v26  ;;  %v9924_v11 = vpop.f32.mrb[90].mxu0 }
0x23f5   : > { %v9154_v22 = vadd.f32 %v9924_v11, %v9090_v24  ;;  %v9145_v63 = vpop.f32.mrb[91].mxu0  ;;  %v9159_v43 = vmax.f32 %v9151_v46, 0.0 }
0x23f6   : > { %v9157_v29 = vmax.f32 %v9143_v41, 0.0  ;;  %v9146_v0 = vadd.f32 %v9145_v63, %v9080_v57 }
0x23f7   : > { %v9160_v20 = vmax.f32 %v9154_v22, 0.0  ;;  %v9163_v3 = vmul.f32 %v16141_v17, %v9159_v43 }
0x23f8   : > { %v9158_v8 = vmax.f32 %v9146_v0, 0.0  ;;  %v9161_v9 = vmul.f32 %v16141_v17, %v9157_v29 }
0x23f9   : > { %v9164_v38 = vmul.f32 %v16141_v17, %v9160_v20 }
0x23fa   : > { %v9162_v4 = vmul.f32 %v16141_v17, %v9158_v8 }
0x23fb   : > { %v9174_v27 = vpack.c.bf16 %v9164_v38, %v9163_v3 }
0x23fc   : > { %v9173_v15 = vpack.c.bf16 %v9162_v4, %v9161_v9 }
0x23fe   : > { %9925 = vmatprep.subr.bf16.mxu1 %v9173_v15 }
0x23ff   : > { %9926 = vmatpush3.bf16.msra.mxu1 %v9173_v15 }
0x2400   : > { %9927 = vmatprep.subr.bf16.mxu1 %v9174_v27 }
0x2403   : > { %9928 = vmatpush3.bf16.msra.mxu1 %v9174_v27 }
0x2406   : > { %9930 = vmatmul.mubr.msk.bf16.vlgmr.msra.gmra.mrb[80].mxu1 %vm7039_vm12, %v11346_v36 }
0x24d9   : > { %v9931_v13 = vpop.f32.mrb[80].mxu1 }
0x24da   : > { %v9254_v32 = vadd.f32 %v9931_v13, %v9188_v10  ;;  %v9245_v12 = vpop.f32.mrb[81].mxu1 }
0x24db   : > { %v9246_v48 = vadd.f32 %v9245_v12, %v9178_v56  ;;  %v9932_v19 = vpop.f32.mrb[82].mxu1 }
0x24dc   : > { %v9262_v49 = vmax.f32 %v9254_v32, 0.0  ;;  %v9257_v31 = vadd.f32 %v9932_v19, %v9193_v34  ;;  %v9248_v62 = vpop.f32.mrb[83].mxu1 }
0x24dd   : > { %v9260_v50 = vmax.f32 %v9246_v48, 0.0  ;;  %v9249_v59 = vadd.f32 %v9248_v62, %v9183_v6 }
0x24de   : > { %v9266_v1 = vmul.f32 %v16141_v17, %v9262_v49  ;;  %v9263_v14 = vmax.f32 %v9257_v31, 0.0 }
0x24df   : > { %v9264_v55 = vmul.f32 %v16141_v17, %v9260_v50  ;;  %v9261_v45 = vmax.f32 %v9249_v59, 0.0 }
0x24e0   : > { %v9267_v21 = vmul.f32 %v16141_v17, %v9263_v14  ;;  %v9270_v53 = vadd.f32 %v9266_v1, %v9163_v3 }
0x24e1   : > { %v9265_v33 = vmul.f32 %v16141_v17, %v9261_v45  ;;  %v9268_v37 = vadd.f32 %v9264_v55, %v9161_v9 }
0x24e2   : > { %v9271_v54 = vadd.f32 %v9267_v21, %v9164_v38 }
0x24e3   : > { %v9269_v7 = vadd.f32 %v9265_v33, %v9162_v4 }
0x24e4   : > { %v9281_v2 = vpack.c.bf16 %v9271_v54, %v9270_v53 }
0x24e5   : > { %v9280_v35 = vpack.c.bf16 %v9269_v7, %v9268_v37 }
0x24e7   : > { %9933 = vmatprep.subr.bf16.mxu0 %v9280_v35 }
0x24e8   : > { %9934 = vmatpush3.bf16.msra.mxu0 %v9280_v35 }
0x24e9   : > { %9935 = vmatprep.subr.bf16.mxu0 %v9281_v2 }
0x24ec   : > { %9936 = vmatpush3.bf16.msra.mxu0 %v9281_v2 }
0x24ef   : > { %9938 = vmatmul.mubr.msk.bf16.vlgmr.msra.gmra.mrb[92].mxu0 %vm7039_vm12, %v11348_v40 }
0x25c2   : > { %v9939_v52 = vpop.f32.mrb[92].mxu0 }
0x25c3   : > { %v9361_v17 = vadd.f32 %v9939_v52, %v9295_v39  ;;  %v9352_v28 = vpop.f32.mrb[93].mxu0 }
0x25c4   : > { %v9353_v60 = vadd.f32 %v9352_v28, %v9285_v58  ;;  %v9940_v44 = vpop.f32.mrb[94].mxu0 }
0x25c5   : > { %v9369_v51 = vmax.f32 %v9361_v17, 0.0  ;;  %v9364_v5 = vadd.f32 %v9940_v44, %v9300_v30  ;;  %v9355_v42 = vpop.f32.mrb[95].mxu0 }
0x25c6   : > { %v9367_v18 = vmax.f32 %v9353_v60, 0.0  ;;  %v9356_v26 = vadd.f32 %v9355_v42, %v9290_v61 }
0x25c7   : > { %9373 = vst [vmem:[%s1938_s1 + $0x10] sm:$0xff] %v9369_v51  ;;  %v9370_v57 = vmax.f32 %v9364_v5, 0.0 }
0x25c8   : > { %9371 = vst [vmem:[%s1938_s1] sm:$0xff] %v9367_v18  ;;  %v9368_v16 = vmax.f32 %v9356_v26, 0.0 }
0x25c9   : > { %9374 = vst [vmem:[%s1938_s1 + $0x18] sm:$0xff] %v9370_v57 }
0x25ca   : > { %9372 = vst [vmem:[%s1938_s1 + $0x8] sm:$0xff] %v9368_v16 }
0x25cb PF: > { %s143_s15 = sadd.s32 1, %s11355_s15  }
0x25cc   : > { %p140_p4 = scmp.ge.s32.totalorder %s143_s15, 4  }
0x25ce   :  { %142 = sbr.rel (!%p140_p4) target bundleno = 132 (0x84), region = 380 }

</bundles_post_ra>
